<compile_context>
chip_gen: v7x
topology: tpu7x:2x2x1
jax: 0.10.0
libtpu: 0.0.40
codegen_flags: <defaults>
</compile_context>

<pallas_src>
import functools
import math

import jax
import jax.numpy as jnp
from jax.experimental import pallas as pl
from jax.experimental.pallas import tpu as pltpu

K = 5            # conv kernel size used everywhere in OutBlock
PAD = K // 2     # "same" padding
LANES = 128      # TPU vreg lane width


# ---------------------------------------------------------------------------
# Fused OutBlock kernel: one grid step = B_tile images, full 7-conv chain
# ---------------------------------------------------------------------------
def _outblock_kernel(x_ref, w_ref, b_ref, m_ref, o_ref, act_ref, taps_ref, *,
                     H, W, cin, cout, CP, NP, TOP, B_tile, scaling_factor):
    # x_ref   : (B_tile, cin, H*W)     input images, spatial flattened on lanes
    # w_ref   : (7*K, CP, K*CP)        per-conv, per-kw packed weights (resident)
    # b_ref   : (7, CP, 1)             packed biases (resident)
    # m_ref   : (K+1, B_tile*NP)       rows 0..K-1: col masks for dw=-2..2,
    #                                  row K: real-pixel-row ("valid") mask
    # o_ref   : (B_tile, cout, H*W)    output
    # act_ref : (CP, B_tile*NP)        padded activation, halo lanes kept at 0
    # taps_ref: (K*CP, B_tile*NP)      staged taps for ONE kw column group
    TOTAL_W = B_tile * NP
    HW = H * W
    row0 = TOP * W                     # 128-aligned lane offset of real pixels

    mall = m_ref[...]                                    # loaded once per step
    col_masks = [mall[j:j + 1] for j in range(K)]        # each (1, TOTAL_W)
    valid = mall[K:K + 1]                                # (1, TOTAL_W)

    def conv5x5(src, conv_idx):
        """5x5 'same' conv of src (CP, TOTAL_W); src halo rows must be zero."""
        acc = None
        for j, dw in enumerate(range(-PAD, PAD + 1)):          # kw = dw + PAD
            if dw == 0:
                shifted = src
            else:
                # tap[q] = src[q + dw]; horizontally out-of-image -> 0
                shifted = pltpu.roll(src, (-dw) % TOTAL_W, axis=1) * col_masks[j]
            for dh in range(-PAD, PAD + 1):                    # kh = dh + PAD
                r = (dh + PAD) * CP                            # 8-row aligned slab
                if dh == 0:
                    taps_ref[pl.ds(r, CP), :] = shifted
                else:
                    # whole-row shift; vertically out-of-image rows land on the
                    # zero halo rows of src
                    taps_ref[pl.ds(r, CP), :] = pltpu.roll(
                        shifted, (-dh * W) % TOTAL_W, axis=1)
            part = jnp.dot(w_ref[conv_idx * K + j], taps_ref[...],
                           preferred_element_type=jnp.float32)
            acc = part if acc is None else acc + part
        return acc + b_ref[conv_idx]

    # --- scatter this step's images into the zero-halo padded layout --------
    # Full zero keeps halo lanes AND padded-channel rows at 0 regardless of what
    # a previous (possibly other-core) step left in the scratch, so the grid axis
    # is truly "parallel".  This is only a few % of per-step store traffic.
    act_ref[...] = jnp.zeros((CP, TOTAL_W), jnp.float32)
    for bb in range(B_tile):
        act_ref[pl.ds(0, cin), pl.ds(bb * NP + row0, HW)] = (
            x_ref[bb].astype(jnp.float32))

    # --- 3 residual blocks: conv -> ReLU -> conv -> (+ scaled residual) -----
    for i in range(3):
        h = jnp.maximum(conv5x5(act_ref[...], 2 * i), 0.0) * valid
        y2 = conv5x5(h, 2 * i + 1)
        for bb in range(B_tile):
            s = bb * NP + row0
            res = act_ref[pl.ds(0, CP), pl.ds(s, HW)]
            if scaling_factor != 1.0:
                res = res * scaling_factor
            # write back only the real-pixel region: halo lanes stay zero
            act_ref[pl.ds(0, CP), pl.ds(s, HW)] = y2[:, s:s + HW] + res

    # --- final 5x5 conv (no activation) + lane-dense output gather ----------
    y = conv5x5(act_ref[...], 6)
    for bb in range(B_tile):
        s = bb * NP + row0
        o_ref[bb] = y[0:cout, s:s + HW].astype(o_ref.dtype)


# ---------------------------------------------------------------------------
# Wrapper: aligned layout, parameter packing, one pallas_call over the batch
# ---------------------------------------------------------------------------
def _round_up(n, m):
    return ((n + m - 1) // m) * m


def _pack_weight(w, cp):
    # w: (K, K, cin, cout) [kh, kw, ci, co] -> (K, cp, K*cp): [kw, co, kh*cp + ci]
    _, _, cin, cout = w.shape
    wp = jnp.zeros((K, K, cp, cp), jnp.float32).at[:, :, :cin, :cout].set(w)
    return jnp.transpose(wp, (1, 3, 0, 2)).reshape(K, cp, K * cp)


def _pack_bias(b, cp):
    return jnp.zeros((cp, 1), jnp.float32).at[:b.shape[0], 0].set(b)


def _make_masks(H, W, TOP, NP, B_tile):
    total = B_tile * NP
    q = jnp.arange(total, dtype=jnp.int32)
    col = q % W
    rows = [((col + dw >= 0) & (col + dw < W)).astype(jnp.float32)
            for dw in range(-PAD, PAD + 1)]
    inseg = q % NP
    rows.append(((inseg >= TOP * W) & (inseg < TOP * W + H * W))
                .astype(jnp.float32))
    return jnp.stack(rows)           # (K+1, total)


def outblock_forward(x_nchw, params, *, scaling_factor=1.0):
    assert isinstance(scaling_factor, (int, float)), (
        "scaling_factor must be a static Python scalar (selects code at trace time)")
    B, Cin, H, W = x_nchw.shape
    Cout = params["out"]["w"].shape[-1]
    CP = _round_up(max(Cin, Cout), 8)       # pad channels to a sublane tile
    HW = H * W

    # 128-lane-aligned halo: TOP*W and NP are multiples of 128 -> whole-vreg
    # rolls, lane-dense scatter / write-back / gather.
    g = math.gcd(W, LANES)
    step = LANES // g
    TOP = -(-PAD // step) * step
    BOT = (-(TOP + H)) % step
    while BOT < PAD:
        BOT += step
    NP = (TOP + H + BOT) * W

    # Pack several images along the lane axis per grid step (amortizes rolls,
    # masks and per-step overhead) but keep >= 2 grid steps whenever B >= 2 so
    # both v7x TensorCores are fed.
    lane_target = 1024
    bt_cap = max(1, lane_target // NP)
    B_tile = 1
    for cand in range(min(bt_cap, B), 0, -1):
        if B % cand == 0 and (B // cand >= 2 or B < 2):
            B_tile = cand
            break
    TOTAL_W = B_tile * NP

    ws, bs = [], []
    for i in range(3):
        p = params[f"res{i}"]
        ws += [_pack_weight(p["w1"], CP), _pack_weight(p["w2"], CP)]
        bs += [_pack_bias(p["b1"], CP), _pack_bias(p["b2"], CP)]
    ws.append(_pack_weight(params["out"]["w"], CP))
    bs.append(_pack_bias(params["out"]["b"], CP))
    w_all = jnp.concatenate(ws, axis=0)      # (7*K, CP, K*CP)
    b_all = jnp.stack(bs)                    # (7, CP, 1)
    masks = _make_masks(H, W, TOP, NP, B_tile)   # (K+1, TOTAL_W)

    x_flat = x_nchw.reshape(B, Cin, HW)      # free reshape, stays NC(HW)

    kernel = functools.partial(
        _outblock_kernel, H=H, W=W, cin=Cin, cout=Cout, CP=CP, NP=NP, TOP=TOP,
        B_tile=B_tile, scaling_factor=float(scaling_factor))

    # Explicit VMEM budget: double-buffered I/O blocks + resident scratch + slack,
    # never below the platform default so small shapes are unaffected.
    blk_bytes = 4 * (B_tile * Cin * HW
                     + 7 * K * CP * (K * CP)
                     + 7 * CP
                     + (K + 1) * TOTAL_W
                     + B_tile * Cout * HW)
    scratch_bytes = 4 * (CP + K * CP) * TOTAL_W
    vmem_limit = int(min(100 << 20,
                         max(32 << 20, 2 * blk_bytes + scratch_bytes + (8 << 20))))

    y_flat = pl.pallas_call(
        kernel,
        out_shape=jax.ShapeDtypeStruct((B, Cout, HW), x_nchw.dtype),
        grid=(B // B_tile,),
        in_specs=[
            pl.BlockSpec((B_tile, Cin, HW), lambda b: (b, 0, 0)),
            pl.BlockSpec((7 * K, CP, K * CP), lambda b: (0, 0, 0)),
            pl.BlockSpec((7, CP, 1), lambda b: (0, 0, 0)),
            pl.BlockSpec((K + 1, TOTAL_W), lambda b: (0, 0)),
        ],
        out_specs=pl.BlockSpec((B_tile, Cout, HW), lambda b: (b, 0, 0)),
        scratch_shapes=[
            pltpu.VMEM((CP, TOTAL_W), jnp.float32),        # padded activation
            pltpu.VMEM((K * CP, TOTAL_W), jnp.float32),    # staged taps (1 kw group)
        ],
        compiler_params=pltpu.CompilerParams(
            dimension_semantics=("parallel",),
            vmem_limit_bytes=vmem_limit),
    )(x_flat, w_all, b_all, masks)
    return y_flat.reshape(B, Cout, H, W)


# ---------------------------------------------------------------------------
# Deterministic parameter init (kaiming for ReLU convs, xavier otherwise)
# ---------------------------------------------------------------------------
def init_params(key, in_channels, out_channels):
    def make_w(k, cin, cout, mode):
        fan_in = cin * K * K
        fan_out = cout * K * K
        std = ((2.0 / fan_in) ** 0.5 if mode == "kaiming"
               else (2.0 / (fan_in + fan_out)) ** 0.5)
        return jax.random.normal(k, (K, K, cin, cout), jnp.float32) * std

    def make_b(k, cin, cout):
        bound = 1.0 / (cin * K * K) ** 0.5
        return jax.random.uniform(k, (cout,), jnp.float32, -bound, bound)

    keys = jax.random.split(key, 14)
    params, ki = {}, 0
    for i in range(3):
        params[f"res{i}"] = {
            "w1": make_w(keys[ki + 0], in_channels, in_channels, "kaiming"),
            "b1": make_b(keys[ki + 1], in_channels, in_channels),
            "w2": make_w(keys[ki + 2], in_channels, in_channels, "xavier"),
            "b2": make_b(keys[ki + 3], in_channels, in_channels),
        }
        ki += 4
    params["out"] = {
        "w": make_w(keys[ki + 0], in_channels, out_channels, "xavier"),
        "b": make_b(keys[ki + 1], in_channels, out_channels),
    }
    return params


# ---------------------------------------------------------------------------
# Pure-JAX reference (for correctness check)
# ---------------------------------------------------------------------------
def _conv5x5_ref(x_nchw, w_kkio, b):
    y = jax.lax.conv_general_dilated(
        x_nchw, w_kkio, window_strides=(1, 1),
        padding=((PAD, PAD), (PAD, PAD)),
        dimension_numbers=("NCHW", "HWIO", "NCHW"),
        precision=jax.lax.Precision.HIGHEST)
    return y + b.reshape(1, -1, 1, 1)


def reference_forward(x_nchw, params, *, scaling_factor=1.0):
    x = x_nchw
    for i in range(3):
        p = params[f"res{i}"]
        h = jnp.maximum(_conv5x5_ref(x, p["w1"], p["b1"]), 0.0)
        x = _conv5x5_ref(h, p["w2"], p["b2"]) + scaling_factor * x
    p = params["out"]
    return _conv5x5_ref(x, p["w"], p["b"])


if __name__ == "__main__":
    key = jax.random.PRNGKey(0)
    kx, kp = jax.random.split(key)

    B, Cin, Hs, Ws = 2, 4, 16, 16
    Cout = 3
    x = jax.random.normal(kx, (B, Cin, Hs, Ws), jnp.float32)
    params = init_params(kp, Cin, Cout)

    y = jax.block_until_ready(outblock_forward(x, params))
    y_ref = reference_forward(x, params)

    assert y.shape == (B, Cout, Hs, Ws), y.shape
    max_err = float(jnp.max(jnp.abs(y - y_ref)))
    # 20x tighter than before: catches packing/ordering bugs (O(1) errors) and any
    # bf16-truncation regression (~1e-2), while tolerating MXU f32 multi-pass vs
    # HIGHEST-precision reference rounding across the 7 chained convs.
    assert jnp.allclose(y, y_ref, rtol=1e-3, atol=1e-3), max_err

    print("KERNEL_OK")
</pallas_src>

<mosaic_0001>
module attributes {stable_mosaic.version = 11 : i64} {
  func.func @_outblock_kernel(%arg0: i32, %arg1: memref<1x4x256xf32, #tpu.memory_space<vmem>>, %arg2: memref<35x8x40xf32, #tpu.memory_space<vmem>>, %arg3: memref<7x8x1xf32, #tpu.memory_space<vmem>>, %arg4: memref<6x512xf32, #tpu.memory_space<vmem>>, %arg5: memref<1x3x256xf32, #tpu.memory_space<vmem>>, %arg6: memref<8x512xf32, #tpu.memory_space<vmem>>, %arg7: memref<40x512xf32, #tpu.memory_space<vmem>>) attributes {dimension_semantics = [#tpu.dimension_semantics<parallel>], iteration_bounds = array<i64: 2>, scalar_prefetch = 0 : i64, scratch_operands = 2 : i64, tpu.core_type = #tpu.core_type<tc>, window_params = [{transform_indices = @transform_0, window_bounds = array<i64: 1, 4, 256>}, {pipeline_mode = #tpu.pipeline_mode<synchronous>, transform_indices = @transform_1, window_bounds = array<i64: 35, 8, 40>}, {pipeline_mode = #tpu.pipeline_mode<synchronous>, transform_indices = @transform_2, window_bounds = array<i64: 7, 8, 1>}, {pipeline_mode = #tpu.pipeline_mode<synchronous>, transform_indices = @transform_3, window_bounds = array<i64: 6, 512>}, {transform_indices = @transform_4, window_bounds = array<i64: 1, 3, 256>}]} {
    %c0 = arith.constant 0 : index
    %c0_0 = arith.constant 0 : index
    %0 = vector.load %arg4[%c0, %c0_0] : memref<6x512xf32, #tpu.memory_space<vmem>>, vector<6x512xf32>
    %1 = vector.extract_strided_slice %0 {offsets = [0, 0], sizes = [1, 512], strides = [1, 1]} : vector<6x512xf32> to vector<1x512xf32>
    %2 = vector.extract_strided_slice %0 {offsets = [1, 0], sizes = [1, 512], strides = [1, 1]} : vector<6x512xf32> to vector<1x512xf32>
    %3 = vector.extract_strided_slice %0 {offsets = [3, 0], sizes = [1, 512], strides = [1, 1]} : vector<6x512xf32> to vector<1x512xf32>
    %4 = vector.extract_strided_slice %0 {offsets = [4, 0], sizes = [1, 512], strides = [1, 1]} : vector<6x512xf32> to vector<1x512xf32>
    %5 = vector.extract_strided_slice %0 {offsets = [5, 0], sizes = [1, 512], strides = [1, 1]} : vector<6x512xf32> to vector<1x512xf32>
    %cst = arith.constant 0.000000e+00 : f32
    %6 = vector.broadcast %cst : f32 to vector<8x512xf32>
    %c0_1 = arith.constant 0 : index
    %c0_2 = arith.constant 0 : index
    %7 = vector.load %arg6[%c0_1, %c0_2] : memref<8x512xf32, #tpu.memory_space<vmem>>, vector<8x512xf32>
    tpu.vector_store %arg6[%c0_1, %c0_2], %6 {strides = array<i32>} : memref<8x512xf32, #tpu.memory_space<vmem>>, vector<8x512xf32>,
    %c0_3 = arith.constant 0 : index
    %c0_4 = arith.constant 0 : index
    %c0_5 = arith.constant 0 : index
    %8 = vector.load %arg1[%c0_3, %c0_4, %c0_5] : memref<1x4x256xf32, #tpu.memory_space<vmem>>, vector<1x4x256xf32>
    %9 = vector.shape_cast %8 : vector<1x4x256xf32> to vector<4x256xf32>
    %c0_6 = arith.constant 0 : index
    %c128 = arith.constant 128 : index
    %10 = vector.load %arg6[%c0_6, %c128] : memref<8x512xf32, #tpu.memory_space<vmem>>, vector<4x256xf32>
    tpu.vector_store %arg6[%c0_6, %c128], %9 {strides = array<i32>} : memref<8x512xf32, #tpu.memory_space<vmem>>, vector<4x256xf32>,
    %c0_7 = arith.constant 0 : index
    %c0_8 = arith.constant 0 : index
    %11 = vector.load %arg6[%c0_7, %c0_8] : memref<8x512xf32, #tpu.memory_space<vmem>>, vector<8x512xf32>
    %c2_i32 = arith.constant 2 : i32
    %12 = tpu.dynamic_rotate %11 by %c2_i32 dim 1 : vector<8x512xf32>, i32 -> vector<8x512xf32>
    %13 = vector.broadcast %1 : vector<1x512xf32> to vector<8x512xf32>
    %14 = arith.mulf %12, %13 : vector<8x512xf32>
    %c32_i32 = arith.constant 32 : i32
    %15 = tpu.dynamic_rotate %14 by %c32_i32 dim 1 : vector<8x512xf32>, i32 -> vector<8x512xf32>
    %c0_9 = arith.constant 0 : index
    %c0_10 = arith.constant 0 : index
    %16 = vector.load %arg7[%c0_9, %c0_10] : memref<40x512xf32, #tpu.memory_space<vmem>>, vector<8x512xf32>
    tpu.vector_store %arg7[%c0_9, %c0_10], %15 {strides = array<i32>} : memref<40x512xf32, #tpu.memory_space<vmem>>, vector<8x512xf32>,
    %c16_i32 = arith.constant 16 : i32
    %17 = tpu.dynamic_rotate %14 by %c16_i32 dim 1 : vector<8x512xf32>, i32 -> vector<8x512xf32>
    %c8 = arith.constant 8 : index
    %c0_11 = arith.constant 0 : index
    %18 = vector.load %arg7[%c8, %c0_11] : memref<40x512xf32, #tpu.memory_space<vmem>>, vector<8x512xf32>
    tpu.vector_store %arg7[%c8, %c0_11], %17 {strides = array<i32>} : memref<40x512xf32, #tpu.memory_space<vmem>>, vector<8x512xf32>,
    %c16 = arith.constant 16 : index
    %c0_12 = arith.constant 0 : index
    %19 = vector.load %arg7[%c16, %c0_12] : memref<40x512xf32, #tpu.memory_space<vmem>>, vector<8x512xf32>
    tpu.vector_store %arg7[%c16, %c0_12], %14 {strides = array<i32>} : memref<40x512xf32, #tpu.memory_space<vmem>>, vector<8x512xf32>,
    %c496_i32 = arith.constant 496 : i32
    %20 = tpu.dynamic_rotate %14 by %c496_i32 dim 1 : vector<8x512xf32>, i32 -> vector<8x512xf32>
    %c24 = arith.constant 24 : index
    %c0_13 = arith.constant 0 : index
    %21 = vector.load %arg7[%c24, %c0_13] : memref<40x512xf32, #tpu.memory_space<vmem>>, vector<8x512xf32>
    tpu.vector_store %arg7[%c24, %c0_13], %20 {strides = array<i32>} : memref<40x512xf32, #tpu.memory_space<vmem>>, vector<8x512xf32>,
    %c480_i32 = arith.constant 480 : i32
    %22 = tpu.dynamic_rotate %14 by %c480_i32 dim 1 : vector<8x512xf32>, i32 -> vector<8x512xf32>
    %c32 = arith.constant 32 : index
    %c0_14 = arith.constant 0 : index
    %23 = vector.load %arg7[%c32, %c0_14] : memref<40x512xf32, #tpu.memory_space<vmem>>, vector<8x512xf32>
    tpu.vector_store %arg7[%c32, %c0_14], %22 {strides = array<i32>} : memref<40x512xf32, #tpu.memory_space<vmem>>, vector<8x512xf32>,
    %c0_15 = arith.constant 0 : index
    %c0_16 = arith.constant 0 : index
    %c0_17 = arith.constant 0 : index
    %24 = vector.load %arg2[%c0_15, %c0_16, %c0_17] : memref<35x8x40xf32, #tpu.memory_space<vmem>>, vector<1x8x40xf32>
    %25 = vector.shape_cast %24 : vector<1x8x40xf32> to vector<8x40xf32>
    %c0_18 = arith.constant 0 : index
    %c0_19 = arith.constant 0 : index
    %26 = vector.load %arg7[%c0_18, %c0_19] : memref<40x512xf32, #tpu.memory_space<vmem>>, vector<40x512xf32>
    %cst_20 = arith.constant dense<0.000000e+00> : vector<8x512xf32>
    %27 = tpu.matmul %25, %26, %cst_20 {dimension_numbers = #tpu.dot_dimension_numbers<[1], [0], [0], [1], [0, 0, 1, 1], [], []>} : vector<8x40xf32>, vector<40x512xf32>, vector<8x512xf32> -> vector<8x512xf32>
    %c1_i32 = arith.constant 1 : i32
    %28 = tpu.dynamic_rotate %11 by %c1_i32 dim 1 : vector<8x512xf32>, i32 -> vector<8x512xf32>
    %29 = vector.broadcast %2 : vector<1x512xf32> to vector<8x512xf32>
    %30 = arith.mulf %28, %29 : vector<8x512xf32>
    %c32_i32_21 = arith.constant 32 : i32
    %31 = tpu.dynamic_rotate %30 by %c32_i32_21 dim 1 : vector<8x512xf32>, i32 -> vector<8x512xf32>
    %c0_22 = arith.constant 0 : index
    %c0_23 = arith.constant 0 : index
    %32 = vector.load %arg7[%c0_22, %c0_23] : memref<40x512xf32, #tpu.memory_space<vmem>>, vector<8x512xf32>
    tpu.vector_store %arg7[%c0_22, %c0_23], %31 {strides = array<i32>} : memref<40x512xf32, #tpu.memory_space<vmem>>, vector<8x512xf32>,
    %c16_i32_24 = arith.constant 16 : i32
    %33 = tpu.dynamic_rotate %30 by %c16_i32_24 dim 1 : vector<8x512xf32>, i32 -> vector<8x512xf32>
    %c8_25 = arith.constant 8 : index
    %c0_26 = arith.constant 0 : index
    %34 = vector.load %arg7[%c8_25, %c0_26] : memref<40x512xf32, #tpu.memory_space<vmem>>, vector<8x512xf32>
    tpu.vector_store %arg7[%c8_25, %c0_26], %33 {strides = array<i32>} : memref<40x512xf32, #tpu.memory_space<vmem>>, vector<8x512xf32>,
    %c16_27 = arith.constant 16 : index
    %c0_28 = arith.constant 0 : index
    %35 = vector.load %arg7[%c16_27, %c0_28] : memref<40x512xf32, #tpu.memory_space<vmem>>, vector<8x512xf32>
    tpu.vector_store %arg7[%c16_27, %c0_28], %30 {strides = array<i32>} : memref<40x512xf32, #tpu.memory_space<vmem>>, vector<8x512xf32>,
    %c496_i32_29 = arith.constant 496 : i32
    %36 = tpu.dynamic_rotate %30 by %c496_i32_29 dim 1 : vector<8x512xf32>, i32 -> vector<8x512xf32>
    %c24_30 = arith.constant 24 : index
    %c0_31 = arith.constant 0 : index
    %37 = vector.load %arg7[%c24_30, %c0_31] : memref<40x512xf32, #tpu.memory_space<vmem>>, vector<8x512xf32>
    tpu.vector_store %arg7[%c24_30, %c0_31], %36 {strides = array<i32>} : memref<40x512xf32, #tpu.memory_space<vmem>>, vector<8x512xf32>,
    %c480_i32_32 = arith.constant 480 : i32
    %38 = tpu.dynamic_rotate %30 by %c480_i32_32 dim 1 : vector<8x512xf32>, i32 -> vector<8x512xf32>
    %c32_33 = arith.constant 32 : index
    %c0_34 = arith.constant 0 : index
    %39 = vector.load %arg7[%c32_33, %c0_34] : memref<40x512xf32, #tpu.memory_space<vmem>>, vector<8x512xf32>
    tpu.vector_store %arg7[%c32_33, %c0_34], %38 {strides = array<i32>} : memref<40x512xf32, #tpu.memory_space<vmem>>, vector<8x512xf32>,
    %c1 = arith.constant 1 : index
    %c0_35 = arith.constant 0 : index
    %c0_36 = arith.constant 0 : index
    %40 = vector.load %arg2[%c1, %c0_35, %c0_36] : memref<35x8x40xf32, #tpu.memory_space<vmem>>, vector<1x8x40xf32>
    %41 = vector.shape_cast %40 : vector<1x8x40xf32> to vector<8x40xf32>
    %c0_37 = arith.constant 0 : index
    %c0_38 = arith.constant 0 : index
    %42 = vector.load %arg7[%c0_37, %c0_38] : memref<40x512xf32, #tpu.memory_space<vmem>>, vector<40x512xf32>
    %cst_39 = arith.constant dense<0.000000e+00> : vector<8x512xf32>
    %43 = tpu.matmul %41, %42, %cst_39 {dimension_numbers = #tpu.dot_dimension_numbers<[1], [0], [0], [1], [0, 0, 1, 1], [], []>} : vector<8x40xf32>, vector<40x512xf32>, vector<8x512xf32> -> vector<8x512xf32>
    %44 = arith.addf %27, %43 : vector<8x512xf32>
    %c32_i32_40 = arith.constant 32 : i32
    %45 = tpu.dynamic_rotate %11 by %c32_i32_40 dim 1 : vector<8x512xf32>, i32 -> vector<8x512xf32>
    %c0_41 = arith.constant 0 : index
    %c0_42 = arith.constant 0 : index
    %46 = vector.load %arg7[%c0_41, %c0_42] : memref<40x512xf32, #tpu.memory_space<vmem>>, vector<8x512xf32>
    tpu.vector_store %arg7[%c0_41, %c0_42], %45 {strides = array<i32>} : memref<40x512xf32, #tpu.memory_space<vmem>>, vector<8x512xf32>,
    %c16_i32_43 = arith.constant 16 : i32
    %47 = tpu.dynamic_rotate %11 by %c16_i32_43 dim 1 : vector<8x512xf32>, i32 -> vector<8x512xf32>
    %c8_44 = arith.constant 8 : index
    %c0_45 = arith.constant 0 : index
    %48 = vector.load %arg7[%c8_44, %c0_45] : memref<40x512xf32, #tpu.memory_space<vmem>>, vector<8x512xf32>
    tpu.vector_store %arg7[%c8_44, %c0_45], %47 {strides = array<i32>} : memref<40x512xf32, #tpu.memory_space<vmem>>, vector<8x512xf32>,
    %c16_46 = arith.constant 16 : index
    %c0_47 = arith.constant 0 : index
    %49 = vector.load %arg7[%c16_46, %c0_47] : memref<40x512xf32, #tpu.memory_space<vmem>>, vector<8x512xf32>
    tpu.vector_store %arg7[%c16_46, %c0_47], %11 {strides = array<i32>} : memref<40x512xf32, #tpu.memory_space<vmem>>, vector<8x512xf32>,
    %c496_i32_48 = arith.constant 496 : i32
    %50 = tpu.dynamic_rotate %11 by %c496_i32_48 dim 1 : vector<8x512xf32>, i32 -> vector<8x512xf32>
    %c24_49 = arith.constant 24 : index
    %c0_50 = arith.constant 0 : index
    %51 = vector.load %arg7[%c24_49, %c0_50] : memref<40x512xf32, #tpu.memory_space<vmem>>, vector<8x512xf32>
    tpu.vector_store %arg7[%c24_49, %c0_50], %50 {strides = array<i32>} : memref<40x512xf32, #tpu.memory_space<vmem>>, vector<8x512xf32>,
    %c480_i32_51 = arith.constant 480 : i32
    %52 = tpu.dynamic_rotate %11 by %c480_i32_51 dim 1 : vector<8x512xf32>, i32 -> vector<8x512xf32>
    %c32_52 = arith.constant 32 : index
    %c0_53 = arith.constant 0 : index
    %53 = vector.load %arg7[%c32_52, %c0_53] : memref<40x512xf32, #tpu.memory_space<vmem>>, vector<8x512xf32>
    tpu.vector_store %arg7[%c32_52, %c0_53], %52 {strides = array<i32>} : memref<40x512xf32, #tpu.memory_space<vmem>>, vector<8x512xf32>,
    %c2 = arith.constant 2 : index
    %c0_54 = arith.constant 0 : index
    %c0_55 = arith.constant 0 : index
    %54 = vector.load %arg2[%c2, %c0_54, %c0_55] : memref<35x8x40xf32, #tpu.memory_space<vmem>>, vector<1x8x40xf32>
    %55 = vector.shape_cast %54 : vector<1x8x40xf32> to vector<8x40xf32>
    %c0_56 = arith.constant 0 : index
    %c0_57 = arith.constant 0 : index
    %56 = vector.load %arg7[%c0_56, %c0_57] : memref<40x512xf32, #tpu.memory_space<vmem>>, vector<40x512xf32>
    %cst_58 = arith.constant dense<0.000000e+00> : vector<8x512xf32>
    %57 = tpu.matmul %55, %56, %cst_58 {dimension_numbers = #tpu.dot_dimension_numbers<[1], [0], [0], [1], [0, 0, 1, 1], [], []>} : vector<8x40xf32>, vector<40x512xf32>, vector<8x512xf32> -> vector<8x512xf32>
    %58 = arith.addf %44, %57 : vector<8x512xf32>
    %c511_i32 = arith.constant 511 : i32
    %59 = tpu.dynamic_rotate %11 by %c511_i32 dim 1 : vector<8x512xf32>, i32 -> vector<8x512xf32>
    %60 = vector.broadcast %3 : vector<1x512xf32> to vector<8x512xf32>
    %61 = arith.mulf %59, %60 : vector<8x512xf32>
    %c32_i32_59 = arith.constant 32 : i32
    %62 = tpu.dynamic_rotate %61 by %c32_i32_59 dim 1 : vector<8x512xf32>, i32 -> vector<8x512xf32>
    %c0_60 = arith.constant 0 : index
    %c0_61 = arith.constant 0 : index
    %63 = vector.load %arg7[%c0_60, %c0_61] : memref<40x512xf32, #tpu.memory_space<vmem>>, vector<8x512xf32>
    tpu.vector_store %arg7[%c0_60, %c0_61], %62 {strides = array<i32>} : memref<40x512xf32, #tpu.memory_space<vmem>>, vector<8x512xf32>,
    %c16_i32_62 = arith.constant 16 : i32
    %64 = tpu.dynamic_rotate %61 by %c16_i32_62 dim 1 : vector<8x512xf32>, i32 -> vector<8x512xf32>
    %c8_63 = arith.constant 8 : index
    %c0_64 = arith.constant 0 : index
    %65 = vector.load %arg7[%c8_63, %c0_64] : memref<40x512xf32, #tpu.memory_space<vmem>>, vector<8x512xf32>
    tpu.vector_store %arg7[%c8_63, %c0_64], %64 {strides = array<i32>} : memref<40x512xf32, #tpu.memory_space<vmem>>, vector<8x512xf32>,
    %c16_65 = arith.constant 16 : index
    %c0_66 = arith.constant 0 : index
    %66 = vector.load %arg7[%c16_65, %c0_66] : memref<40x512xf32, #tpu.memory_space<vmem>>, vector<8x512xf32>
    tpu.vector_store %arg7[%c16_65, %c0_66], %61 {strides = array<i32>} : memref<40x512xf32, #tpu.memory_space<vmem>>, vector<8x512xf32>,
    %c496_i32_67 = arith.constant 496 : i32
    %67 = tpu.dynamic_rotate %61 by %c496_i32_67 dim 1 : vector<8x512xf32>, i32 -> vector<8x512xf32>
    %c24_68 = arith.constant 24 : index
    %c0_69 = arith.constant 0 : index
    %68 = vector.load %arg7[%c24_68, %c0_69] : memref<40x512xf32, #tpu.memory_space<vmem>>, vector<8x512xf32>
    tpu.vector_store %arg7[%c24_68, %c0_69], %67 {strides = array<i32>} : memref<40x512xf32, #tpu.memory_space<vmem>>, vector<8x512xf32>,
    %c480_i32_70 = arith.constant 480 : i32
    %69 = tpu.dynamic_rotate %61 by %c480_i32_70 dim 1 : vector<8x512xf32>, i32 -> vector<8x512xf32>
    %c32_71 = arith.constant 32 : index
    %c0_72 = arith.constant 0 : index
    %70 = vector.load %arg7[%c32_71, %c0_72] : memref<40x512xf32, #tpu.memory_space<vmem>>, vector<8x512xf32>
    tpu.vector_store %arg7[%c32_71, %c0_72], %69 {strides = array<i32>} : memref<40x512xf32, #tpu.memory_space<vmem>>, vector<8x512xf32>,
    %c3 = arith.constant 3 : index
    %c0_73 = arith.constant 0 : index
    %c0_74 = arith.constant 0 : index
    %71 = vector.load %arg2[%c3, %c0_73, %c0_74] : memref<35x8x40xf32, #tpu.memory_space<vmem>>, vector<1x8x40xf32>
    %72 = vector.shape_cast %71 : vector<1x8x40xf32> to vector<8x40xf32>
    %c0_75 = arith.constant 0 : index
    %c0_76 = arith.constant 0 : index
    %73 = vector.load %arg7[%c0_75, %c0_76] : memref<40x512xf32, #tpu.memory_space<vmem>>, vector<40x512xf32>
    %cst_77 = arith.constant dense<0.000000e+00> : vector<8x512xf32>
    %74 = tpu.matmul %72, %73, %cst_77 {dimension_numbers = #tpu.dot_dimension_numbers<[1], [0], [0], [1], [0, 0, 1, 1], [], []>} : vector<8x40xf32>, vector<40x512xf32>, vector<8x512xf32> -> vector<8x512xf32>
    %75 = arith.addf %58, %74 : vector<8x512xf32>
    %c510_i32 = arith.constant 510 : i32
    %76 = tpu.dynamic_rotate %11 by %c510_i32 dim 1 : vector<8x512xf32>, i32 -> vector<8x512xf32>
    %77 = vector.broadcast %4 : vector<1x512xf32> to vector<8x512xf32>
    %78 = arith.mulf %76, %77 : vector<8x512xf32>
    %c32_i32_78 = arith.constant 32 : i32
    %79 = tpu.dynamic_rotate %78 by %c32_i32_78 dim 1 : vector<8x512xf32>, i32 -> vector<8x512xf32>
    %c0_79 = arith.constant 0 : index
    %c0_80 = arith.constant 0 : index
    %80 = vector.load %arg7[%c0_79, %c0_80] : memref<40x512xf32, #tpu.memory_space<vmem>>, vector<8x512xf32>
    tpu.vector_store %arg7[%c0_79, %c0_80], %79 {strides = array<i32>} : memref<40x512xf32, #tpu.memory_space<vmem>>, vector<8x512xf32>,
    %c16_i32_81 = arith.constant 16 : i32
    %81 = tpu.dynamic_rotate %78 by %c16_i32_81 dim 1 : vector<8x512xf32>, i32 -> vector<8x512xf32>
    %c8_82 = arith.constant 8 : index
    %c0_83 = arith.constant 0 : index
    %82 = vector.load %arg7[%c8_82, %c0_83] : memref<40x512xf32, #tpu.memory_space<vmem>>, vector<8x512xf32>
    tpu.vector_store %arg7[%c8_82, %c0_83], %81 {strides = array<i32>} : memref<40x512xf32, #tpu.memory_space<vmem>>, vector<8x512xf32>,
    %c16_84 = arith.constant 16 : index
    %c0_85 = arith.constant 0 : index
    %83 = vector.load %arg7[%c16_84, %c0_85] : memref<40x512xf32, #tpu.memory_space<vmem>>, vector<8x512xf32>
    tpu.vector_store %arg7[%c16_84, %c0_85], %78 {strides = array<i32>} : memref<40x512xf32, #tpu.memory_space<vmem>>, vector<8x512xf32>,
    %c496_i32_86 = arith.constant 496 : i32
    %84 = tpu.dynamic_rotate %78 by %c496_i32_86 dim 1 : vector<8x512xf32>, i32 -> vector<8x512xf32>
    %c24_87 = arith.constant 24 : index
    %c0_88 = arith.constant 0 : index
    %85 = vector.load %arg7[%c24_87, %c0_88] : memref<40x512xf32, #tpu.memory_space<vmem>>, vector<8x512xf32>
    tpu.vector_store %arg7[%c24_87, %c0_88], %84 {strides = array<i32>} : memref<40x512xf32, #tpu.memory_space<vmem>>, vector<8x512xf32>,
    %c480_i32_89 = arith.constant 480 : i32
    %86 = tpu.dynamic_rotate %78 by %c480_i32_89 dim 1 : vector<8x512xf32>, i32 -> vector<8x512xf32>
    %c32_90 = arith.constant 32 : index
    %c0_91 = arith.constant 0 : index
    %87 = vector.load %arg7[%c32_90, %c0_91] : memref<40x512xf32, #tpu.memory_space<vmem>>, vector<8x512xf32>
    tpu.vector_store %arg7[%c32_90, %c0_91], %86 {strides = array<i32>} : memref<40x512xf32, #tpu.memory_space<vmem>>, vector<8x512xf32>,
    %c4 = arith.constant 4 : index
    %c0_92 = arith.constant 0 : index
    %c0_93 = arith.constant 0 : index
    %88 = vector.load %arg2[%c4, %c0_92, %c0_93] : memref<35x8x40xf32, #tpu.memory_space<vmem>>, vector<1x8x40xf32>
    %89 = vector.shape_cast %88 : vector<1x8x40xf32> to vector<8x40xf32>
    %c0_94 = arith.constant 0 : index
    %c0_95 = arith.constant 0 : index
    %90 = vector.load %arg7[%c0_94, %c0_95] : memref<40x512xf32, #tpu.memory_space<vmem>>, vector<40x512xf32>
    %cst_96 = arith.constant dense<0.000000e+00> : vector<8x512xf32>
    %91 = tpu.matmul %89, %90, %cst_96 {dimension_numbers = #tpu.dot_dimension_numbers<[1], [0], [0], [1], [0, 0, 1, 1], [], []>} : vector<8x40xf32>, vector<40x512xf32>, vector<8x512xf32> -> vector<8x512xf32>
    %92 = arith.addf %75, %91 : vector<8x512xf32>
    %c0_97 = arith.constant 0 : index
    %c0_98 = arith.constant 0 : index
    %c0_99 = arith.constant 0 : index
    %93 = vector.load %arg3[%c0_97, %c0_98, %c0_99] : memref<7x8x1xf32, #tpu.memory_space<vmem>>, vector<1x8x1xf32>
    %94 = vector.shape_cast %93 : vector<1x8x1xf32> to vector<8x1xf32>
    %95 = vector.broadcast %94 : vector<8x1xf32> to vector<8x512xf32>
    %96 = arith.addf %92, %95 : vector<8x512xf32>
    %cst_100 = arith.constant 0.000000e+00 : f32
    %97 = vector.broadcast %cst_100 : f32 to vector<8x512xf32>
    %98 = arith.maximumf %96, %97 : vector<8x512xf32>
    %99 = vector.broadcast %5 : vector<1x512xf32> to vector<8x512xf32>
    %100 = arith.mulf %98, %99 : vector<8x512xf32>
    %c2_i32_101 = arith.constant 2 : i32
    %101 = tpu.dynamic_rotate %100 by %c2_i32_101 dim 1 : vector<8x512xf32>, i32 -> vector<8x512xf32>
    %102 = vector.broadcast %1 : vector<1x512xf32> to vector<8x512xf32>
    %103 = arith.mulf %101, %102 : vector<8x512xf32>
    %c32_i32_102 = arith.constant 32 : i32
    %104 = tpu.dynamic_rotate %103 by %c32_i32_102 dim 1 : vector<8x512xf32>, i32 -> vector<8x512xf32>
    %c0_103 = arith.constant 0 : index
    %c0_104 = arith.constant 0 : index
    %105 = vector.load %arg7[%c0_103, %c0_104] : memref<40x512xf32, #tpu.memory_space<vmem>>, vector<8x512xf32>
    tpu.vector_store %arg7[%c0_103, %c0_104], %104 {strides = array<i32>} : memref<40x512xf32, #tpu.memory_space<vmem>>, vector<8x512xf32>,
    %c16_i32_105 = arith.constant 16 : i32
    %106 = tpu.dynamic_rotate %103 by %c16_i32_105 dim 1 : vector<8x512xf32>, i32 -> vector<8x512xf32>
    %c8_106 = arith.constant 8 : index
    %c0_107 = arith.constant 0 : index
    %107 = vector.load %arg7[%c8_106, %c0_107] : memref<40x512xf32, #tpu.memory_space<vmem>>, vector<8x512xf32>
    tpu.vector_store %arg7[%c8_106, %c0_107], %106 {strides = array<i32>} : memref<40x512xf32, #tpu.memory_space<vmem>>, vector<8x512xf32>,
    %c16_108 = arith.constant 16 : index
    %c0_109 = arith.constant 0 : index
    %108 = vector.load %arg7[%c16_108, %c0_109] : memref<40x512xf32, #tpu.memory_space<vmem>>, vector<8x512xf32>
    tpu.vector_store %arg7[%c16_108, %c0_109], %103 {strides = array<i32>} : memref<40x512xf32, #tpu.memory_space<vmem>>, vector<8x512xf32>,
    %c496_i32_110 = arith.constant 496 : i32
    %109 = tpu.dynamic_rotate %103 by %c496_i32_110 dim 1 : vector<8x512xf32>, i32 -> vector<8x512xf32>
    %c24_111 = arith.constant 24 : index
    %c0_112 = arith.constant 0 : index
    %110 = vector.load %arg7[%c24_111, %c0_112] : memref<40x512xf32, #tpu.memory_space<vmem>>, vector<8x512xf32>
    tpu.vector_store %arg7[%c24_111, %c0_112], %109 {strides = array<i32>} : memref<40x512xf32, #tpu.memory_space<vmem>>, vector<8x512xf32>,
    %c480_i32_113 = arith.constant 480 : i32
    %111 = tpu.dynamic_rotate %103 by %c480_i32_113 dim 1 : vector<8x512xf32>, i32 -> vector<8x512xf32>
    %c32_114 = arith.constant 32 : index
    %c0_115 = arith.constant 0 : index
    %112 = vector.load %arg7[%c32_114, %c0_115] : memref<40x512xf32, #tpu.memory_space<vmem>>, vector<8x512xf32>
    tpu.vector_store %arg7[%c32_114, %c0_115], %111 {strides = array<i32>} : memref<40x512xf32, #tpu.memory_space<vmem>>, vector<8x512xf32>,
    %c5 = arith.constant 5 : index
    %c0_116 = arith.constant 0 : index
    %c0_117 = arith.constant 0 : index
    %113 = vector.load %arg2[%c5, %c0_116, %c0_117] : memref<35x8x40xf32, #tpu.memory_space<vmem>>, vector<1x8x40xf32>
    %114 = vector.shape_cast %113 : vector<1x8x40xf32> to vector<8x40xf32>
    %c0_118 = arith.constant 0 : index
    %c0_119 = arith.constant 0 : index
    %115 = vector.load %arg7[%c0_118, %c0_119] : memref<40x512xf32, #tpu.memory_space<vmem>>, vector<40x512xf32>
    %cst_120 = arith.constant dense<0.000000e+00> : vector<8x512xf32>
    %116 = tpu.matmul %114, %115, %cst_120 {dimension_numbers = #tpu.dot_dimension_numbers<[1], [0], [0], [1], [0, 0, 1, 1], [], []>} : vector<8x40xf32>, vector<40x512xf32>, vector<8x512xf32> -> vector<8x512xf32>
    %c1_i32_121 = arith.constant 1 : i32
    %117 = tpu.dynamic_rotate %100 by %c1_i32_121 dim 1 : vector<8x512xf32>, i32 -> vector<8x512xf32>
    %118 = vector.broadcast %2 : vector<1x512xf32> to vector<8x512xf32>
    %119 = arith.mulf %117, %118 : vector<8x512xf32>
    %c32_i32_122 = arith.constant 32 : i32
    %120 = tpu.dynamic_rotate %119 by %c32_i32_122 dim 1 : vector<8x512xf32>, i32 -> vector<8x512xf32>
    %c0_123 = arith.constant 0 : index
    %c0_124 = arith.constant 0 : index
    %121 = vector.load %arg7[%c0_123, %c0_124] : memref<40x512xf32, #tpu.memory_space<vmem>>, vector<8x512xf32>
    tpu.vector_store %arg7[%c0_123, %c0_124], %120 {strides = array<i32>} : memref<40x512xf32, #tpu.memory_space<vmem>>, vector<8x512xf32>,
    %c16_i32_125 = arith.constant 16 : i32
    %122 = tpu.dynamic_rotate %119 by %c16_i32_125 dim 1 : vector<8x512xf32>, i32 -> vector<8x512xf32>
    %c8_126 = arith.constant 8 : index
    %c0_127 = arith.constant 0 : index
    %123 = vector.load %arg7[%c8_126, %c0_127] : memref<40x512xf32, #tpu.memory_space<vmem>>, vector<8x512xf32>
    tpu.vector_store %arg7[%c8_126, %c0_127], %122 {strides = array<i32>} : memref<40x512xf32, #tpu.memory_space<vmem>>, vector<8x512xf32>,
    %c16_128 = arith.constant 16 : index
    %c0_129 = arith.constant 0 : index
    %124 = vector.load %arg7[%c16_128, %c0_129] : memref<40x512xf32, #tpu.memory_space<vmem>>, vector<8x512xf32>
    tpu.vector_store %arg7[%c16_128, %c0_129], %119 {strides = array<i32>} : memref<40x512xf32, #tpu.memory_space<vmem>>, vector<8x512xf32>,
    %c496_i32_130 = arith.constant 496 : i32
    %125 = tpu.dynamic_rotate %119 by %c496_i32_130 dim 1 : vector<8x512xf32>, i32 -> vector<8x512xf32>
    %c24_131 = arith.constant 24 : index
    %c0_132 = arith.constant 0 : index
    %126 = vector.load %arg7[%c24_131, %c0_132] : memref<40x512xf32, #tpu.memory_space<vmem>>, vector<8x512xf32>
    tpu.vector_store %arg7[%c24_131, %c0_132], %125 {strides = array<i32>} : memref<40x512xf32, #tpu.memory_space<vmem>>, vector<8x512xf32>,
    %c480_i32_133 = arith.constant 480 : i32
    %127 = tpu.dynamic_rotate %119 by %c480_i32_133 dim 1 : vector<8x512xf32>, i32 -> vector<8x512xf32>
    %c32_134 = arith.constant 32 : index
    %c0_135 = arith.constant 0 : index
    %128 = vector.load %arg7[%c32_134, %c0_135] : memref<40x512xf32, #tpu.memory_space<vmem>>, vector<8x512xf32>
    tpu.vector_store %arg7[%c32_134, %c0_135], %127 {strides = array<i32>} : memref<40x512xf32, #tpu.memory_space<vmem>>, vector<8x512xf32>,
    %c6 = arith.constant 6 : index
    %c0_136 = arith.constant 0 : index
    %c0_137 = arith.constant 0 : index
    %129 = vector.load %arg2[%c6, %c0_136, %c0_137] : memref<35x8x40xf32, #tpu.memory_space<vmem>>, vector<1x8x40xf32>
    %130 = vector.shape_cast %129 : vector<1x8x40xf32> to vector<8x40xf32>
    %c0_138 = arith.constant 0 : index
    %c0_139 = arith.constant 0 : index
    %131 = vector.load %arg7[%c0_138, %c0_139] : memref<40x512xf32, #tpu.memory_space<vmem>>, vector<40x512xf32>
    %cst_140 = arith.constant dense<0.000000e+00> : vector<8x512xf32>
    %132 = tpu.matmul %130, %131, %cst_140 {dimension_numbers = #tpu.dot_dimension_numbers<[1], [0], [0], [1], [0, 0, 1, 1], [], []>} : vector<8x40xf32>, vector<40x512xf32>, vector<8x512xf32> -> vector<8x512xf32>
    %133 = arith.addf %116, %132 : vector<8x512xf32>
    %c32_i32_141 = arith.constant 32 : i32
    %134 = tpu.dynamic_rotate %100 by %c32_i32_141 dim 1 : vector<8x512xf32>, i32 -> vector<8x512xf32>
    %c0_142 = arith.constant 0 : index
    %c0_143 = arith.constant 0 : index
    %135 = vector.load %arg7[%c0_142, %c0_143] : memref<40x512xf32, #tpu.memory_space<vmem>>, vector<8x512xf32>
    tpu.vector_store %arg7[%c0_142, %c0_143], %134 {strides = array<i32>} : memref<40x512xf32, #tpu.memory_space<vmem>>, vector<8x512xf32>,
    %c16_i32_144 = arith.constant 16 : i32
    %136 = tpu.dynamic_rotate %100 by %c16_i32_144 dim 1 : vector<8x512xf32>, i32 -> vector<8x512xf32>
    %c8_145 = arith.constant 8 : index
    %c0_146 = arith.constant 0 : index
    %137 = vector.load %arg7[%c8_145, %c0_146] : memref<40x512xf32, #tpu.memory_space<vmem>>, vector<8x512xf32>
    tpu.vector_store %arg7[%c8_145, %c0_146], %136 {strides = array<i32>} : memref<40x512xf32, #tpu.memory_space<vmem>>, vector<8x512xf32>,
    %c16_147 = arith.constant 16 : index
    %c0_148 = arith.constant 0 : index
    %138 = vector.load %arg7[%c16_147, %c0_148] : memref<40x512xf32, #tpu.memory_space<vmem>>, vector<8x512xf32>
    tpu.vector_store %arg7[%c16_147, %c0_148], %100 {strides = array<i32>} : memref<40x512xf32, #tpu.memory_space<vmem>>, vector<8x512xf32>,
    %c496_i32_149 = arith.constant 496 : i32
    %139 = tpu.dynamic_rotate %100 by %c496_i32_149 dim 1 : vector<8x512xf32>, i32 -> vector<8x512xf32>
    %c24_150 = arith.constant 24 : index
    %c0_151 = arith.constant 0 : index
    %140 = vector.load %arg7[%c24_150, %c0_151] : memref<40x512xf32, #tpu.memory_space<vmem>>, vector<8x512xf32>
    tpu.vector_store %arg7[%c24_150, %c0_151], %139 {strides = array<i32>} : memref<40x512xf32, #tpu.memory_space<vmem>>, vector<8x512xf32>,
    %c480_i32_152 = arith.constant 480 : i32
    %141 = tpu.dynamic_rotate %100 by %c480_i32_152 dim 1 : vector<8x512xf32>, i32 -> vector<8x512xf32>
    %c32_153 = arith.constant 32 : index
    %c0_154 = arith.constant 0 : index
    %142 = vector.load %arg7[%c32_153, %c0_154] : memref<40x512xf32, #tpu.memory_space<vmem>>, vector<8x512xf32>
    tpu.vector_store %arg7[%c32_153, %c0_154], %141 {strides = array<i32>} : memref<40x512xf32, #tpu.memory_space<vmem>>, vector<8x512xf32>,
    %c7 = arith.constant 7 : index
    %c0_155 = arith.constant 0 : index
    %c0_156 = arith.constant 0 : index
    %143 = vector.load %arg2[%c7, %c0_155, %c0_156] : memref<35x8x40xf32, #tpu.memory_space<vmem>>, vector<1x8x40xf32>
    %144 = vector.shape_cast %143 : vector<1x8x40xf32> to vector<8x40xf32>
    %c0_157 = arith.constant 0 : index
    %c0_158 = arith.constant 0 : index
    %145 = vector.load %arg7[%c0_157, %c0_158] : memref<40x512xf32, #tpu.memory_space<vmem>>, vector<40x512xf32>
    %cst_159 = arith.constant dense<0.000000e+00> : vector<8x512xf32>
    %146 = tpu.matmul %144, %145, %cst_159 {dimension_numbers = #tpu.dot_dimension_numbers<[1], [0], [0], [1], [0, 0, 1, 1], [], []>} : vector<8x40xf32>, vector<40x512xf32>, vector<8x512xf32> -> vector<8x512xf32>
    %147 = arith.addf %133, %146 : vector<8x512xf32>
    %c511_i32_160 = arith.constant 511 : i32
    %148 = tpu.dynamic_rotate %100 by %c511_i32_160 dim 1 : vector<8x512xf32>, i32 -> vector<8x512xf32>
    %149 = vector.broadcast %3 : vector<1x512xf32> to vector<8x512xf32>
    %150 = arith.mulf %148, %149 : vector<8x512xf32>
    %c32_i32_161 = arith.constant 32 : i32
    %151 = tpu.dynamic_rotate %150 by %c32_i32_161 dim 1 : vector<8x512xf32>, i32 -> vector<8x512xf32>
    %c0_162 = arith.constant 0 : index
    %c0_163 = arith.constant 0 : index
    %152 = vector.load %arg7[%c0_162, %c0_163] : memref<40x512xf32, #tpu.memory_space<vmem>>, vector<8x512xf32>
    tpu.vector_store %arg7[%c0_162, %c0_163], %151 {strides = array<i32>} : memref<40x512xf32, #tpu.memory_space<vmem>>, vector<8x512xf32>,
    %c16_i32_164 = arith.constant 16 : i32
    %153 = tpu.dynamic_rotate %150 by %c16_i32_164 dim 1 : vector<8x512xf32>, i32 -> vector<8x512xf32>
    %c8_165 = arith.constant 8 : index
    %c0_166 = arith.constant 0 : index
    %154 = vector.load %arg7[%c8_165, %c0_166] : memref<40x512xf32, #tpu.memory_space<vmem>>, vector<8x512xf32>
    tpu.vector_store %arg7[%c8_165, %c0_166], %153 {strides = array<i32>} : memref<40x512xf32, #tpu.memory_space<vmem>>, vector<8x512xf32>,
    %c16_167 = arith.constant 16 : index
    %c0_168 = arith.constant 0 : index
    %155 = vector.load %arg7[%c16_167, %c0_168] : memref<40x512xf32, #tpu.memory_space<vmem>>, vector<8x512xf32>
    tpu.vector_store %arg7[%c16_167, %c0_168], %150 {strides = array<i32>} : memref<40x512xf32, #tpu.memory_space<vmem>>, vector<8x512xf32>,
    %c496_i32_169 = arith.constant 496 : i32
    %156 = tpu.dynamic_rotate %150 by %c496_i32_169 dim 1 : vector<8x512xf32>, i32 -> vector<8x512xf32>
    %c24_170 = arith.constant 24 : index
    %c0_171 = arith.constant 0 : index
    %157 = vector.load %arg7[%c24_170, %c0_171] : memref<40x512xf32, #tpu.memory_space<vmem>>, vector<8x512xf32>
    tpu.vector_store %arg7[%c24_170, %c0_171], %156 {strides = array<i32>} : memref<40x512xf32, #tpu.memory_space<vmem>>, vector<8x512xf32>,
    %c480_i32_172 = arith.constant 480 : i32
    %158 = tpu.dynamic_rotate %150 by %c480_i32_172 dim 1 : vector<8x512xf32>, i32 -> vector<8x512xf32>
    %c32_173 = arith.constant 32 : index
    %c0_174 = arith.constant 0 : index
    %159 = vector.load %arg7[%c32_173, %c0_174] : memref<40x512xf32, #tpu.memory_space<vmem>>, vector<8x512xf32>
    tpu.vector_store %arg7[%c32_173, %c0_174], %158 {strides = array<i32>} : memref<40x512xf32, #tpu.memory_space<vmem>>, vector<8x512xf32>,
    %c8_175 = arith.constant 8 : index
    %c0_176 = arith.constant 0 : index
    %c0_177 = arith.constant 0 : index
    %160 = vector.load %arg2[%c8_175, %c0_176, %c0_177] : memref<35x8x40xf32, #tpu.memory_space<vmem>>, vector<1x8x40xf32>
    %161 = vector.shape_cast %160 : vector<1x8x40xf32> to vector<8x40xf32>
    %c0_178 = arith.constant 0 : index
    %c0_179 = arith.constant 0 : index
    %162 = vector.load %arg7[%c0_178, %c0_179] : memref<40x512xf32, #tpu.memory_space<vmem>>, vector<40x512xf32>
    %cst_180 = arith.constant dense<0.000000e+00> : vector<8x512xf32>
    %163 = tpu.matmul %161, %162, %cst_180 {dimension_numbers = #tpu.dot_dimension_numbers<[1], [0], [0], [1], [0, 0, 1, 1], [], []>} : vector<8x40xf32>, vector<40x512xf32>, vector<8x512xf32> -> vector<8x512xf32>
    %164 = arith.addf %147, %163 : vector<8x512xf32>
    %c510_i32_181 = arith.constant 510 : i32
    %165 = tpu.dynamic_rotate %100 by %c510_i32_181 dim 1 : vector<8x512xf32>, i32 -> vector<8x512xf32>
    %166 = vector.broadcast %4 : vector<1x512xf32> to vector<8x512xf32>
    %167 = arith.mulf %165, %166 : vector<8x512xf32>
    %c32_i32_182 = arith.constant 32 : i32
    %168 = tpu.dynamic_rotate %167 by %c32_i32_182 dim 1 : vector<8x512xf32>, i32 -> vector<8x512xf32>
    %c0_183 = arith.constant 0 : index
    %c0_184 = arith.constant 0 : index
    %169 = vector.load %arg7[%c0_183, %c0_184] : memref<40x512xf32, #tpu.memory_space<vmem>>, vector<8x512xf32>
    tpu.vector_store %arg7[%c0_183, %c0_184], %168 {strides = array<i32>} : memref<40x512xf32, #tpu.memory_space<vmem>>, vector<8x512xf32>,
    %c16_i32_185 = arith.constant 16 : i32
    %170 = tpu.dynamic_rotate %167 by %c16_i32_185 dim 1 : vector<8x512xf32>, i32 -> vector<8x512xf32>
    %c8_186 = arith.constant 8 : index
    %c0_187 = arith.constant 0 : index
    %171 = vector.load %arg7[%c8_186, %c0_187] : memref<40x512xf32, #tpu.memory_space<vmem>>, vector<8x512xf32>
    tpu.vector_store %arg7[%c8_186, %c0_187], %170 {strides = array<i32>} : memref<40x512xf32, #tpu.memory_space<vmem>>, vector<8x512xf32>,
    %c16_188 = arith.constant 16 : index
    %c0_189 = arith.constant 0 : index
    %172 = vector.load %arg7[%c16_188, %c0_189] : memref<40x512xf32, #tpu.memory_space<vmem>>, vector<8x512xf32>
    tpu.vector_store %arg7[%c16_188, %c0_189], %167 {strides = array<i32>} : memref<40x512xf32, #tpu.memory_space<vmem>>, vector<8x512xf32>,
    %c496_i32_190 = arith.constant 496 : i32
    %173 = tpu.dynamic_rotate %167 by %c496_i32_190 dim 1 : vector<8x512xf32>, i32 -> vector<8x512xf32>
    %c24_191 = arith.constant 24 : index
    %c0_192 = arith.constant 0 : index
    %174 = vector.load %arg7[%c24_191, %c0_192] : memref<40x512xf32, #tpu.memory_space<vmem>>, vector<8x512xf32>
    tpu.vector_store %arg7[%c24_191, %c0_192], %173 {strides = array<i32>} : memref<40x512xf32, #tpu.memory_space<vmem>>, vector<8x512xf32>,
    %c480_i32_193 = arith.constant 480 : i32
    %175 = tpu.dynamic_rotate %167 by %c480_i32_193 dim 1 : vector<8x512xf32>, i32 -> vector<8x512xf32>
    %c32_194 = arith.constant 32 : index
    %c0_195 = arith.constant 0 : index
    %176 = vector.load %arg7[%c32_194, %c0_195] : memref<40x512xf32, #tpu.memory_space<vmem>>, vector<8x512xf32>
    tpu.vector_store %arg7[%c32_194, %c0_195], %175 {strides = array<i32>} : memref<40x512xf32, #tpu.memory_space<vmem>>, vector<8x512xf32>,
    %c9 = arith.constant 9 : index
    %c0_196 = arith.constant 0 : index
    %c0_197 = arith.constant 0 : index
    %177 = vector.load %arg2[%c9, %c0_196, %c0_197] : memref<35x8x40xf32, #tpu.memory_space<vmem>>, vector<1x8x40xf32>
    %178 = vector.shape_cast %177 : vector<1x8x40xf32> to vector<8x40xf32>
    %c0_198 = arith.constant 0 : index
    %c0_199 = arith.constant 0 : index
    %179 = vector.load %arg7[%c0_198, %c0_199] : memref<40x512xf32, #tpu.memory_space<vmem>>, vector<40x512xf32>
    %cst_200 = arith.constant dense<0.000000e+00> : vector<8x512xf32>
    %180 = tpu.matmul %178, %179, %cst_200 {dimension_numbers = #tpu.dot_dimension_numbers<[1], [0], [0], [1], [0, 0, 1, 1], [], []>} : vector<8x40xf32>, vector<40x512xf32>, vector<8x512xf32> -> vector<8x512xf32>
    %181 = arith.addf %164, %180 : vector<8x512xf32>
    %c1_201 = arith.constant 1 : index
    %c0_202 = arith.constant 0 : index
    %c0_203 = arith.constant 0 : index
    %182 = vector.load %arg3[%c1_201, %c0_202, %c0_203] : memref<7x8x1xf32, #tpu.memory_space<vmem>>, vector<1x8x1xf32>
    %183 = vector.shape_cast %182 : vector<1x8x1xf32> to vector<8x1xf32>
    %184 = vector.broadcast %183 : vector<8x1xf32> to vector<8x512xf32>
    %185 = arith.addf %181, %184 : vector<8x512xf32>
    %c0_204 = arith.constant 0 : index
    %c128_205 = arith.constant 128 : index
    %186 = vector.load %arg6[%c0_204, %c128_205] : memref<8x512xf32, #tpu.memory_space<vmem>>, vector<8x256xf32>
    %187 = vector.extract_strided_slice %185 {offsets = [0, 128], sizes = [8, 256], strides = [1, 1]} : vector<8x512xf32> to vector<8x256xf32>
    %188 = arith.addf %187, %186 : vector<8x256xf32>
    %c0_206 = arith.constant 0 : index
    %c128_207 = arith.constant 128 : index
    %189 = vector.load %arg6[%c0_206, %c128_207] : memref<8x512xf32, #tpu.memory_space<vmem>>, vector<8x256xf32>
    tpu.vector_store %arg6[%c0_206, %c128_207], %188 {strides = array<i32>} : memref<8x512xf32, #tpu.memory_space<vmem>>, vector<8x256xf32>,
    %c0_208 = arith.constant 0 : index
    %c0_209 = arith.constant 0 : index
    %190 = vector.load %arg6[%c0_208, %c0_209] : memref<8x512xf32, #tpu.memory_space<vmem>>, vector<8x512xf32>
    %c2_i32_210 = arith.constant 2 : i32
    %191 = tpu.dynamic_rotate %190 by %c2_i32_210 dim 1 : vector<8x512xf32>, i32 -> vector<8x512xf32>
    %192 = vector.broadcast %1 : vector<1x512xf32> to vector<8x512xf32>
    %193 = arith.mulf %191, %192 : vector<8x512xf32>
    %c32_i32_211 = arith.constant 32 : i32
    %194 = tpu.dynamic_rotate %193 by %c32_i32_211 dim 1 : vector<8x512xf32>, i32 -> vector<8x512xf32>
    %c0_212 = arith.constant 0 : index
    %c0_213 = arith.constant 0 : index
    %195 = vector.load %arg7[%c0_212, %c0_213] : memref<40x512xf32, #tpu.memory_space<vmem>>, vector<8x512xf32>
    tpu.vector_store %arg7[%c0_212, %c0_213], %194 {strides = array<i32>} : memref<40x512xf32, #tpu.memory_space<vmem>>, vector<8x512xf32>,
    %c16_i32_214 = arith.constant 16 : i32
    %196 = tpu.dynamic_rotate %193 by %c16_i32_214 dim 1 : vector<8x512xf32>, i32 -> vector<8x512xf32>
    %c8_215 = arith.constant 8 : index
    %c0_216 = arith.constant 0 : index
    %197 = vector.load %arg7[%c8_215, %c0_216] : memref<40x512xf32, #tpu.memory_space<vmem>>, vector<8x512xf32>
    tpu.vector_store %arg7[%c8_215, %c0_216], %196 {strides = array<i32>} : memref<40x512xf32, #tpu.memory_space<vmem>>, vector<8x512xf32>,
    %c16_217 = arith.constant 16 : index
    %c0_218 = arith.constant 0 : index
    %198 = vector.load %arg7[%c16_217, %c0_218] : memref<40x512xf32, #tpu.memory_space<vmem>>, vector<8x512xf32>
    tpu.vector_store %arg7[%c16_217, %c0_218], %193 {strides = array<i32>} : memref<40x512xf32, #tpu.memory_space<vmem>>, vector<8x512xf32>,
    %c496_i32_219 = arith.constant 496 : i32
    %199 = tpu.dynamic_rotate %193 by %c496_i32_219 dim 1 : vector<8x512xf32>, i32 -> vector<8x512xf32>
    %c24_220 = arith.constant 24 : index
    %c0_221 = arith.constant 0 : index
    %200 = vector.load %arg7[%c24_220, %c0_221] : memref<40x512xf32, #tpu.memory_space<vmem>>, vector<8x512xf32>
    tpu.vector_store %arg7[%c24_220, %c0_221], %199 {strides = array<i32>} : memref<40x512xf32, #tpu.memory_space<vmem>>, vector<8x512xf32>,
    %c480_i32_222 = arith.constant 480 : i32
    %201 = tpu.dynamic_rotate %193 by %c480_i32_222 dim 1 : vector<8x512xf32>, i32 -> vector<8x512xf32>
    %c32_223 = arith.constant 32 : index
    %c0_224 = arith.constant 0 : index
    %202 = vector.load %arg7[%c32_223, %c0_224] : memref<40x512xf32, #tpu.memory_space<vmem>>, vector<8x512xf32>
    tpu.vector_store %arg7[%c32_223, %c0_224], %201 {strides = array<i32>} : memref<40x512xf32, #tpu.memory_space<vmem>>, vector<8x512xf32>,
    %c10 = arith.constant 10 : index
    %c0_225 = arith.constant 0 : index
    %c0_226 = arith.constant 0 : index
    %203 = vector.load %arg2[%c10, %c0_225, %c0_226] : memref<35x8x40xf32, #tpu.memory_space<vmem>>, vector<1x8x40xf32>
    %204 = vector.shape_cast %203 : vector<1x8x40xf32> to vector<8x40xf32>
    %c0_227 = arith.constant 0 : index
    %c0_228 = arith.constant 0 : index
    %205 = vector.load %arg7[%c0_227, %c0_228] : memref<40x512xf32, #tpu.memory_space<vmem>>, vector<40x512xf32>
    %cst_229 = arith.constant dense<0.000000e+00> : vector<8x512xf32>
    %206 = tpu.matmul %204, %205, %cst_229 {dimension_numbers = #tpu.dot_dimension_numbers<[1], [0], [0], [1], [0, 0, 1, 1], [], []>} : vector<8x40xf32>, vector<40x512xf32>, vector<8x512xf32> -> vector<8x512xf32>
    %c1_i32_230 = arith.constant 1 : i32
    %207 = tpu.dynamic_rotate %190 by %c1_i32_230 dim 1 : vector<8x512xf32>, i32 -> vector<8x512xf32>
    %208 = vector.broadcast %2 : vector<1x512xf32> to vector<8x512xf32>
    %209 = arith.mulf %207, %208 : vector<8x512xf32>
    %c32_i32_231 = arith.constant 32 : i32
    %210 = tpu.dynamic_rotate %209 by %c32_i32_231 dim 1 : vector<8x512xf32>, i32 -> vector<8x512xf32>
    %c0_232 = arith.constant 0 : index
    %c0_233 = arith.constant 0 : index
    %211 = vector.load %arg7[%c0_232, %c0_233] : memref<40x512xf32, #tpu.memory_space<vmem>>, vector<8x512xf32>
    tpu.vector_store %arg7[%c0_232, %c0_233], %210 {strides = array<i32>} : memref<40x512xf32, #tpu.memory_space<vmem>>, vector<8x512xf32>,
    %c16_i32_234 = arith.constant 16 : i32
    %212 = tpu.dynamic_rotate %209 by %c16_i32_234 dim 1 : vector<8x512xf32>, i32 -> vector<8x512xf32>
    %c8_235 = arith.constant 8 : index
    %c0_236 = arith.constant 0 : index
    %213 = vector.load %arg7[%c8_235, %c0_236] : memref<40x512xf32, #tpu.memory_space<vmem>>, vector<8x512xf32>
    tpu.vector_store %arg7[%c8_235, %c0_236], %212 {strides = array<i32>} : memref<40x512xf32, #tpu.memory_space<vmem>>, vector<8x512xf32>,
    %c16_237 = arith.constant 16 : index
    %c0_238 = arith.constant 0 : index
    %214 = vector.load %arg7[%c16_237, %c0_238] : memref<40x512xf32, #tpu.memory_space<vmem>>, vector<8x512xf32>
    tpu.vector_store %arg7[%c16_237, %c0_238], %209 {strides = array<i32>} : memref<40x512xf32, #tpu.memory_space<vmem>>, vector<8x512xf32>,
    %c496_i32_239 = arith.constant 496 : i32
    %215 = tpu.dynamic_rotate %209 by %c496_i32_239 dim 1 : vector<8x512xf32>, i32 -> vector<8x512xf32>
    %c24_240 = arith.constant 24 : index
    %c0_241 = arith.constant 0 : index
    %216 = vector.load %arg7[%c24_240, %c0_241] : memref<40x512xf32, #tpu.memory_space<vmem>>, vector<8x512xf32>
    tpu.vector_store %arg7[%c24_240, %c0_241], %215 {strides = array<i32>} : memref<40x512xf32, #tpu.memory_space<vmem>>, vector<8x512xf32>,
    %c480_i32_242 = arith.constant 480 : i32
    %217 = tpu.dynamic_rotate %209 by %c480_i32_242 dim 1 : vector<8x512xf32>, i32 -> vector<8x512xf32>
    %c32_243 = arith.constant 32 : index
    %c0_244 = arith.constant 0 : index
    %218 = vector.load %arg7[%c32_243, %c0_244] : memref<40x512xf32, #tpu.memory_space<vmem>>, vector<8x512xf32>
    tpu.vector_store %arg7[%c32_243, %c0_244], %217 {strides = array<i32>} : memref<40x512xf32, #tpu.memory_space<vmem>>, vector<8x512xf32>,
    %c11 = arith.constant 11 : index
    %c0_245 = arith.constant 0 : index
    %c0_246 = arith.constant 0 : index
    %219 = vector.load %arg2[%c11, %c0_245, %c0_246] : memref<35x8x40xf32, #tpu.memory_space<vmem>>, vector<1x8x40xf32>
    %220 = vector.shape_cast %219 : vector<1x8x40xf32> to vector<8x40xf32>
    %c0_247 = arith.constant 0 : index
    %c0_248 = arith.constant 0 : index
    %221 = vector.load %arg7[%c0_247, %c0_248] : memref<40x512xf32, #tpu.memory_space<vmem>>, vector<40x512xf32>
    %cst_249 = arith.constant dense<0.000000e+00> : vector<8x512xf32>
    %222 = tpu.matmul %220, %221, %cst_249 {dimension_numbers = #tpu.dot_dimension_numbers<[1], [0], [0], [1], [0, 0, 1, 1], [], []>} : vector<8x40xf32>, vector<40x512xf32>, vector<8x512xf32> -> vector<8x512xf32>
    %223 = arith.addf %206, %222 : vector<8x512xf32>
    %c32_i32_250 = arith.constant 32 : i32
    %224 = tpu.dynamic_rotate %190 by %c32_i32_250 dim 1 : vector<8x512xf32>, i32 -> vector<8x512xf32>
    %c0_251 = arith.constant 0 : index
    %c0_252 = arith.constant 0 : index
    %225 = vector.load %arg7[%c0_251, %c0_252] : memref<40x512xf32, #tpu.memory_space<vmem>>, vector<8x512xf32>
    tpu.vector_store %arg7[%c0_251, %c0_252], %224 {strides = array<i32>} : memref<40x512xf32, #tpu.memory_space<vmem>>, vector<8x512xf32>,
    %c16_i32_253 = arith.constant 16 : i32
    %226 = tpu.dynamic_rotate %190 by %c16_i32_253 dim 1 : vector<8x512xf32>, i32 -> vector<8x512xf32>
    %c8_254 = arith.constant 8 : index
    %c0_255 = arith.constant 0 : index
    %227 = vector.load %arg7[%c8_254, %c0_255] : memref<40x512xf32, #tpu.memory_space<vmem>>, vector<8x512xf32>
    tpu.vector_store %arg7[%c8_254, %c0_255], %226 {strides = array<i32>} : memref<40x512xf32, #tpu.memory_space<vmem>>, vector<8x512xf32>,
    %c16_256 = arith.constant 16 : index
    %c0_257 = arith.constant 0 : index
    %228 = vector.load %arg7[%c16_256, %c0_257] : memref<40x512xf32, #tpu.memory_space<vmem>>, vector<8x512xf32>
    tpu.vector_store %arg7[%c16_256, %c0_257], %190 {strides = array<i32>} : memref<40x512xf32, #tpu.memory_space<vmem>>, vector<8x512xf32>,
    %c496_i32_258 = arith.constant 496 : i32
    %229 = tpu.dynamic_rotate %190 by %c496_i32_258 dim 1 : vector<8x512xf32>, i32 -> vector<8x512xf32>
    %c24_259 = arith.constant 24 : index
    %c0_260 = arith.constant 0 : index
    %230 = vector.load %arg7[%c24_259, %c0_260] : memref<40x512xf32, #tpu.memory_space<vmem>>, vector<8x512xf32>
    tpu.vector_store %arg7[%c24_259, %c0_260], %229 {strides = array<i32>} : memref<40x512xf32, #tpu.memory_space<vmem>>, vector<8x512xf32>,
    %c480_i32_261 = arith.constant 480 : i32
    %231 = tpu.dynamic_rotate %190 by %c480_i32_261 dim 1 : vector<8x512xf32>, i32 -> vector<8x512xf32>
    %c32_262 = arith.constant 32 : index
    %c0_263 = arith.constant 0 : index
    %232 = vector.load %arg7[%c32_262, %c0_263] : memref<40x512xf32, #tpu.memory_space<vmem>>, vector<8x512xf32>
    tpu.vector_store %arg7[%c32_262, %c0_263], %231 {strides = array<i32>} : memref<40x512xf32, #tpu.memory_space<vmem>>, vector<8x512xf32>,
    %c12 = arith.constant 12 : index
    %c0_264 = arith.constant 0 : index
    %c0_265 = arith.constant 0 : index
    %233 = vector.load %arg2[%c12, %c0_264, %c0_265] : memref<35x8x40xf32, #tpu.memory_space<vmem>>, vector<1x8x40xf32>
    %234 = vector.shape_cast %233 : vector<1x8x40xf32> to vector<8x40xf32>
    %c0_266 = arith.constant 0 : index
    %c0_267 = arith.constant 0 : index
    %235 = vector.load %arg7[%c0_266, %c0_267] : memref<40x512xf32, #tpu.memory_space<vmem>>, vector<40x512xf32>
    %cst_268 = arith.constant dense<0.000000e+00> : vector<8x512xf32>
    %236 = tpu.matmul %234, %235, %cst_268 {dimension_numbers = #tpu.dot_dimension_numbers<[1], [0], [0], [1], [0, 0, 1, 1], [], []>} : vector<8x40xf32>, vector<40x512xf32>, vector<8x512xf32> -> vector<8x512xf32>
    %237 = arith.addf %223, %236 : vector<8x512xf32>
    %c511_i32_269 = arith.constant 511 : i32
    %238 = tpu.dynamic_rotate %190 by %c511_i32_269 dim 1 : vector<8x512xf32>, i32 -> vector<8x512xf32>
    %239 = vector.broadcast %3 : vector<1x512xf32> to vector<8x512xf32>
    %240 = arith.mulf %238, %239 : vector<8x512xf32>
    %c32_i32_270 = arith.constant 32 : i32
    %241 = tpu.dynamic_rotate %240 by %c32_i32_270 dim 1 : vector<8x512xf32>, i32 -> vector<8x512xf32>
    %c0_271 = arith.constant 0 : index
    %c0_272 = arith.constant 0 : index
    %242 = vector.load %arg7[%c0_271, %c0_272] : memref<40x512xf32, #tpu.memory_space<vmem>>, vector<8x512xf32>
    tpu.vector_store %arg7[%c0_271, %c0_272], %241 {strides = array<i32>} : memref<40x512xf32, #tpu.memory_space<vmem>>, vector<8x512xf32>,
    %c16_i32_273 = arith.constant 16 : i32
    %243 = tpu.dynamic_rotate %240 by %c16_i32_273 dim 1 : vector<8x512xf32>, i32 -> vector<8x512xf32>
    %c8_274 = arith.constant 8 : index
    %c0_275 = arith.constant 0 : index
    %244 = vector.load %arg7[%c8_274, %c0_275] : memref<40x512xf32, #tpu.memory_space<vmem>>, vector<8x512xf32>
    tpu.vector_store %arg7[%c8_274, %c0_275], %243 {strides = array<i32>} : memref<40x512xf32, #tpu.memory_space<vmem>>, vector<8x512xf32>,
    %c16_276 = arith.constant 16 : index
    %c0_277 = arith.constant 0 : index
    %245 = vector.load %arg7[%c16_276, %c0_277] : memref<40x512xf32, #tpu.memory_space<vmem>>, vector<8x512xf32>
    tpu.vector_store %arg7[%c16_276, %c0_277], %240 {strides = array<i32>} : memref<40x512xf32, #tpu.memory_space<vmem>>, vector<8x512xf32>,
    %c496_i32_278 = arith.constant 496 : i32
    %246 = tpu.dynamic_rotate %240 by %c496_i32_278 dim 1 : vector<8x512xf32>, i32 -> vector<8x512xf32>
    %c24_279 = arith.constant 24 : index
    %c0_280 = arith.constant 0 : index
    %247 = vector.load %arg7[%c24_279, %c0_280] : memref<40x512xf32, #tpu.memory_space<vmem>>, vector<8x512xf32>
    tpu.vector_store %arg7[%c24_279, %c0_280], %246 {strides = array<i32>} : memref<40x512xf32, #tpu.memory_space<vmem>>, vector<8x512xf32>,
    %c480_i32_281 = arith.constant 480 : i32
    %248 = tpu.dynamic_rotate %240 by %c480_i32_281 dim 1 : vector<8x512xf32>, i32 -> vector<8x512xf32>
    %c32_282 = arith.constant 32 : index
    %c0_283 = arith.constant 0 : index
    %249 = vector.load %arg7[%c32_282, %c0_283] : memref<40x512xf32, #tpu.memory_space<vmem>>, vector<8x512xf32>
    tpu.vector_store %arg7[%c32_282, %c0_283], %248 {strides = array<i32>} : memref<40x512xf32, #tpu.memory_space<vmem>>, vector<8x512xf32>,
    %c13 = arith.constant 13 : index
    %c0_284 = arith.constant 0 : index
    %c0_285 = arith.constant 0 : index
    %250 = vector.load %arg2[%c13, %c0_284, %c0_285] : memref<35x8x40xf32, #tpu.memory_space<vmem>>, vector<1x8x40xf32>
    %251 = vector.shape_cast %250 : vector<1x8x40xf32> to vector<8x40xf32>
    %c0_286 = arith.constant 0 : index
    %c0_287 = arith.constant 0 : index
    %252 = vector.load %arg7[%c0_286, %c0_287] : memref<40x512xf32, #tpu.memory_space<vmem>>, vector<40x512xf32>
    %cst_288 = arith.constant dense<0.000000e+00> : vector<8x512xf32>
    %253 = tpu.matmul %251, %252, %cst_288 {dimension_numbers = #tpu.dot_dimension_numbers<[1], [0], [0], [1], [0, 0, 1, 1], [], []>} : vector<8x40xf32>, vector<40x512xf32>, vector<8x512xf32> -> vector<8x512xf32>
    %254 = arith.addf %237, %253 : vector<8x512xf32>
    %c510_i32_289 = arith.constant 510 : i32
    %255 = tpu.dynamic_rotate %190 by %c510_i32_289 dim 1 : vector<8x512xf32>, i32 -> vector<8x512xf32>
    %256 = vector.broadcast %4 : vector<1x512xf32> to vector<8x512xf32>
    %257 = arith.mulf %255, %256 : vector<8x512xf32>
    %c32_i32_290 = arith.constant 32 : i32
    %258 = tpu.dynamic_rotate %257 by %c32_i32_290 dim 1 : vector<8x512xf32>, i32 -> vector<8x512xf32>
    %c0_291 = arith.constant 0 : index
    %c0_292 = arith.constant 0 : index
    %259 = vector.load %arg7[%c0_291, %c0_292] : memref<40x512xf32, #tpu.memory_space<vmem>>, vector<8x512xf32>
    tpu.vector_store %arg7[%c0_291, %c0_292], %258 {strides = array<i32>} : memref<40x512xf32, #tpu.memory_space<vmem>>, vector<8x512xf32>,
    %c16_i32_293 = arith.constant 16 : i32
    %260 = tpu.dynamic_rotate %257 by %c16_i32_293 dim 1 : vector<8x512xf32>, i32 -> vector<8x512xf32>
    %c8_294 = arith.constant 8 : index
    %c0_295 = arith.constant 0 : index
    %261 = vector.load %arg7[%c8_294, %c0_295] : memref<40x512xf32, #tpu.memory_space<vmem>>, vector<8x512xf32>
    tpu.vector_store %arg7[%c8_294, %c0_295], %260 {strides = array<i32>} : memref<40x512xf32, #tpu.memory_space<vmem>>, vector<8x512xf32>,
    %c16_296 = arith.constant 16 : index
    %c0_297 = arith.constant 0 : index
    %262 = vector.load %arg7[%c16_296, %c0_297] : memref<40x512xf32, #tpu.memory_space<vmem>>, vector<8x512xf32>
    tpu.vector_store %arg7[%c16_296, %c0_297], %257 {strides = array<i32>} : memref<40x512xf32, #tpu.memory_space<vmem>>, vector<8x512xf32>,
    %c496_i32_298 = arith.constant 496 : i32
    %263 = tpu.dynamic_rotate %257 by %c496_i32_298 dim 1 : vector<8x512xf32>, i32 -> vector<8x512xf32>
    %c24_299 = arith.constant 24 : index
    %c0_300 = arith.constant 0 : index
    %264 = vector.load %arg7[%c24_299, %c0_300] : memref<40x512xf32, #tpu.memory_space<vmem>>, vector<8x512xf32>
    tpu.vector_store %arg7[%c24_299, %c0_300], %263 {strides = array<i32>} : memref<40x512xf32, #tpu.memory_space<vmem>>, vector<8x512xf32>,
    %c480_i32_301 = arith.constant 480 : i32
    %265 = tpu.dynamic_rotate %257 by %c480_i32_301 dim 1 : vector<8x512xf32>, i32 -> vector<8x512xf32>
    %c32_302 = arith.constant 32 : index
    %c0_303 = arith.constant 0 : index
    %266 = vector.load %arg7[%c32_302, %c0_303] : memref<40x512xf32, #tpu.memory_space<vmem>>, vector<8x512xf32>
    tpu.vector_store %arg7[%c32_302, %c0_303], %265 {strides = array<i32>} : memref<40x512xf32, #tpu.memory_space<vmem>>, vector<8x512xf32>,
    %c14 = arith.constant 14 : index
    %c0_304 = arith.constant 0 : index
    %c0_305 = arith.constant 0 : index
    %267 = vector.load %arg2[%c14, %c0_304, %c0_305] : memref<35x8x40xf32, #tpu.memory_space<vmem>>, vector<1x8x40xf32>
    %268 = vector.shape_cast %267 : vector<1x8x40xf32> to vector<8x40xf32>
    %c0_306 = arith.constant 0 : index
    %c0_307 = arith.constant 0 : index
    %269 = vector.load %arg7[%c0_306, %c0_307] : memref<40x512xf32, #tpu.memory_space<vmem>>, vector<40x512xf32>
    %cst_308 = arith.constant dense<0.000000e+00> : vector<8x512xf32>
    %270 = tpu.matmul %268, %269, %cst_308 {dimension_numbers = #tpu.dot_dimension_numbers<[1], [0], [0], [1], [0, 0, 1, 1], [], []>} : vector<8x40xf32>, vector<40x512xf32>, vector<8x512xf32> -> vector<8x512xf32>
    %271 = arith.addf %254, %270 : vector<8x512xf32>
    %c2_309 = arith.constant 2 : index
    %c0_310 = arith.constant 0 : index
    %c0_311 = arith.constant 0 : index
    %272 = vector.load %arg3[%c2_309, %c0_310, %c0_311] : memref<7x8x1xf32, #tpu.memory_space<vmem>>, vector<1x8x1xf32>
    %273 = vector.shape_cast %272 : vector<1x8x1xf32> to vector<8x1xf32>
    %274 = vector.broadcast %273 : vector<8x1xf32> to vector<8x512xf32>
    %275 = arith.addf %271, %274 : vector<8x512xf32>
    %cst_312 = arith.constant 0.000000e+00 : f32
    %276 = vector.broadcast %cst_312 : f32 to vector<8x512xf32>
    %277 = arith.maximumf %275, %276 : vector<8x512xf32>
    %278 = vector.broadcast %5 : vector<1x512xf32> to vector<8x512xf32>
    %279 = arith.mulf %277, %278 : vector<8x512xf32>
    %c2_i32_313 = arith.constant 2 : i32
    %280 = tpu.dynamic_rotate %279 by %c2_i32_313 dim 1 : vector<8x512xf32>, i32 -> vector<8x512xf32>
    %281 = vector.broadcast %1 : vector<1x512xf32> to vector<8x512xf32>
    %282 = arith.mulf %280, %281 : vector<8x512xf32>
    %c32_i32_314 = arith.constant 32 : i32
    %283 = tpu.dynamic_rotate %282 by %c32_i32_314 dim 1 : vector<8x512xf32>, i32 -> vector<8x512xf32>
    %c0_315 = arith.constant 0 : index
    %c0_316 = arith.constant 0 : index
    %284 = vector.load %arg7[%c0_315, %c0_316] : memref<40x512xf32, #tpu.memory_space<vmem>>, vector<8x512xf32>
    tpu.vector_store %arg7[%c0_315, %c0_316], %283 {strides = array<i32>} : memref<40x512xf32, #tpu.memory_space<vmem>>, vector<8x512xf32>,
    %c16_i32_317 = arith.constant 16 : i32
    %285 = tpu.dynamic_rotate %282 by %c16_i32_317 dim 1 : vector<8x512xf32>, i32 -> vector<8x512xf32>
    %c8_318 = arith.constant 8 : index
    %c0_319 = arith.constant 0 : index
    %286 = vector.load %arg7[%c8_318, %c0_319] : memref<40x512xf32, #tpu.memory_space<vmem>>, vector<8x512xf32>
    tpu.vector_store %arg7[%c8_318, %c0_319], %285 {strides = array<i32>} : memref<40x512xf32, #tpu.memory_space<vmem>>, vector<8x512xf32>,
    %c16_320 = arith.constant 16 : index
    %c0_321 = arith.constant 0 : index
    %287 = vector.load %arg7[%c16_320, %c0_321] : memref<40x512xf32, #tpu.memory_space<vmem>>, vector<8x512xf32>
    tpu.vector_store %arg7[%c16_320, %c0_321], %282 {strides = array<i32>} : memref<40x512xf32, #tpu.memory_space<vmem>>, vector<8x512xf32>,
    %c496_i32_322 = arith.constant 496 : i32
    %288 = tpu.dynamic_rotate %282 by %c496_i32_322 dim 1 : vector<8x512xf32>, i32 -> vector<8x512xf32>
    %c24_323 = arith.constant 24 : index
    %c0_324 = arith.constant 0 : index
    %289 = vector.load %arg7[%c24_323, %c0_324] : memref<40x512xf32, #tpu.memory_space<vmem>>, vector<8x512xf32>
    tpu.vector_store %arg7[%c24_323, %c0_324], %288 {strides = array<i32>} : memref<40x512xf32, #tpu.memory_space<vmem>>, vector<8x512xf32>,
    %c480_i32_325 = arith.constant 480 : i32
    %290 = tpu.dynamic_rotate %282 by %c480_i32_325 dim 1 : vector<8x512xf32>, i32 -> vector<8x512xf32>
    %c32_326 = arith.constant 32 : index
    %c0_327 = arith.constant 0 : index
    %291 = vector.load %arg7[%c32_326, %c0_327] : memref<40x512xf32, #tpu.memory_space<vmem>>, vector<8x512xf32>
    tpu.vector_store %arg7[%c32_326, %c0_327], %290 {strides = array<i32>} : memref<40x512xf32, #tpu.memory_space<vmem>>, vector<8x512xf32>,
    %c15 = arith.constant 15 : index
    %c0_328 = arith.constant 0 : index
    %c0_329 = arith.constant 0 : index
    %292 = vector.load %arg2[%c15, %c0_328, %c0_329] : memref<35x8x40xf32, #tpu.memory_space<vmem>>, vector<1x8x40xf32>
    %293 = vector.shape_cast %292 : vector<1x8x40xf32> to vector<8x40xf32>
    %c0_330 = arith.constant 0 : index
    %c0_331 = arith.constant 0 : index
    %294 = vector.load %arg7[%c0_330, %c0_331] : memref<40x512xf32, #tpu.memory_space<vmem>>, vector<40x512xf32>
    %cst_332 = arith.constant dense<0.000000e+00> : vector<8x512xf32>
    %295 = tpu.matmul %293, %294, %cst_332 {dimension_numbers = #tpu.dot_dimension_numbers<[1], [0], [0], [1], [0, 0, 1, 1], [], []>} : vector<8x40xf32>, vector<40x512xf32>, vector<8x512xf32> -> vector<8x512xf32>
    %c1_i32_333 = arith.constant 1 : i32
    %296 = tpu.dynamic_rotate %279 by %c1_i32_333 dim 1 : vector<8x512xf32>, i32 -> vector<8x512xf32>
    %297 = vector.broadcast %2 : vector<1x512xf32> to vector<8x512xf32>
    %298 = arith.mulf %296, %297 : vector<8x512xf32>
    %c32_i32_334 = arith.constant 32 : i32
    %299 = tpu.dynamic_rotate %298 by %c32_i32_334 dim 1 : vector<8x512xf32>, i32 -> vector<8x512xf32>
    %c0_335 = arith.constant 0 : index
    %c0_336 = arith.constant 0 : index
    %300 = vector.load %arg7[%c0_335, %c0_336] : memref<40x512xf32, #tpu.memory_space<vmem>>, vector<8x512xf32>
    tpu.vector_store %arg7[%c0_335, %c0_336], %299 {strides = array<i32>} : memref<40x512xf32, #tpu.memory_space<vmem>>, vector<8x512xf32>,
    %c16_i32_337 = arith.constant 16 : i32
    %301 = tpu.dynamic_rotate %298 by %c16_i32_337 dim 1 : vector<8x512xf32>, i32 -> vector<8x512xf32>
    %c8_338 = arith.constant 8 : index
    %c0_339 = arith.constant 0 : index
    %302 = vector.load %arg7[%c8_338, %c0_339] : memref<40x512xf32, #tpu.memory_space<vmem>>, vector<8x512xf32>
    tpu.vector_store %arg7[%c8_338, %c0_339], %301 {strides = array<i32>} : memref<40x512xf32, #tpu.memory_space<vmem>>, vector<8x512xf32>,
    %c16_340 = arith.constant 16 : index
    %c0_341 = arith.constant 0 : index
    %303 = vector.load %arg7[%c16_340, %c0_341] : memref<40x512xf32, #tpu.memory_space<vmem>>, vector<8x512xf32>
    tpu.vector_store %arg7[%c16_340, %c0_341], %298 {strides = array<i32>} : memref<40x512xf32, #tpu.memory_space<vmem>>, vector<8x512xf32>,
    %c496_i32_342 = arith.constant 496 : i32
    %304 = tpu.dynamic_rotate %298 by %c496_i32_342 dim 1 : vector<8x512xf32>, i32 -> vector<8x512xf32>
    %c24_343 = arith.constant 24 : index
    %c0_344 = arith.constant 0 : index
    %305 = vector.load %arg7[%c24_343, %c0_344] : memref<40x512xf32, #tpu.memory_space<vmem>>, vector<8x512xf32>
    tpu.vector_store %arg7[%c24_343, %c0_344], %304 {strides = array<i32>} : memref<40x512xf32, #tpu.memory_space<vmem>>, vector<8x512xf32>,
    %c480_i32_345 = arith.constant 480 : i32
    %306 = tpu.dynamic_rotate %298 by %c480_i32_345 dim 1 : vector<8x512xf32>, i32 -> vector<8x512xf32>
    %c32_346 = arith.constant 32 : index
    %c0_347 = arith.constant 0 : index
    %307 = vector.load %arg7[%c32_346, %c0_347] : memref<40x512xf32, #tpu.memory_space<vmem>>, vector<8x512xf32>
    tpu.vector_store %arg7[%c32_346, %c0_347], %306 {strides = array<i32>} : memref<40x512xf32, #tpu.memory_space<vmem>>, vector<8x512xf32>,
    %c16_348 = arith.constant 16 : index
    %c0_349 = arith.constant 0 : index
    %c0_350 = arith.constant 0 : index
    %308 = vector.load %arg2[%c16_348, %c0_349, %c0_350] : memref<35x8x40xf32, #tpu.memory_space<vmem>>, vector<1x8x40xf32>
    %309 = vector.shape_cast %308 : vector<1x8x40xf32> to vector<8x40xf32>
    %c0_351 = arith.constant 0 : index
    %c0_352 = arith.constant 0 : index
    %310 = vector.load %arg7[%c0_351, %c0_352] : memref<40x512xf32, #tpu.memory_space<vmem>>, vector<40x512xf32>
    %cst_353 = arith.constant dense<0.000000e+00> : vector<8x512xf32>
    %311 = tpu.matmul %309, %310, %cst_353 {dimension_numbers = #tpu.dot_dimension_numbers<[1], [0], [0], [1], [0, 0, 1, 1], [], []>} : vector<8x40xf32>, vector<40x512xf32>, vector<8x512xf32> -> vector<8x512xf32>
    %312 = arith.addf %295, %311 : vector<8x512xf32>
    %c32_i32_354 = arith.constant 32 : i32
    %313 = tpu.dynamic_rotate %279 by %c32_i32_354 dim 1 : vector<8x512xf32>, i32 -> vector<8x512xf32>
    %c0_355 = arith.constant 0 : index
    %c0_356 = arith.constant 0 : index
    %314 = vector.load %arg7[%c0_355, %c0_356] : memref<40x512xf32, #tpu.memory_space<vmem>>, vector<8x512xf32>
    tpu.vector_store %arg7[%c0_355, %c0_356], %313 {strides = array<i32>} : memref<40x512xf32, #tpu.memory_space<vmem>>, vector<8x512xf32>,
    %c16_i32_357 = arith.constant 16 : i32
    %315 = tpu.dynamic_rotate %279 by %c16_i32_357 dim 1 : vector<8x512xf32>, i32 -> vector<8x512xf32>
    %c8_358 = arith.constant 8 : index
    %c0_359 = arith.constant 0 : index
    %316 = vector.load %arg7[%c8_358, %c0_359] : memref<40x512xf32, #tpu.memory_space<vmem>>, vector<8x512xf32>
    tpu.vector_store %arg7[%c8_358, %c0_359], %315 {strides = array<i32>} : memref<40x512xf32, #tpu.memory_space<vmem>>, vector<8x512xf32>,
    %c16_360 = arith.constant 16 : index
    %c0_361 = arith.constant 0 : index
    %317 = vector.load %arg7[%c16_360, %c0_361] : memref<40x512xf32, #tpu.memory_space<vmem>>, vector<8x512xf32>
    tpu.vector_store %arg7[%c16_360, %c0_361], %279 {strides = array<i32>} : memref<40x512xf32, #tpu.memory_space<vmem>>, vector<8x512xf32>,
    %c496_i32_362 = arith.constant 496 : i32
    %318 = tpu.dynamic_rotate %279 by %c496_i32_362 dim 1 : vector<8x512xf32>, i32 -> vector<8x512xf32>
    %c24_363 = arith.constant 24 : index
    %c0_364 = arith.constant 0 : index
    %319 = vector.load %arg7[%c24_363, %c0_364] : memref<40x512xf32, #tpu.memory_space<vmem>>, vector<8x512xf32>
    tpu.vector_store %arg7[%c24_363, %c0_364], %318 {strides = array<i32>} : memref<40x512xf32, #tpu.memory_space<vmem>>, vector<8x512xf32>,
    %c480_i32_365 = arith.constant 480 : i32
    %320 = tpu.dynamic_rotate %279 by %c480_i32_365 dim 1 : vector<8x512xf32>, i32 -> vector<8x512xf32>
    %c32_366 = arith.constant 32 : index
    %c0_367 = arith.constant 0 : index
    %321 = vector.load %arg7[%c32_366, %c0_367] : memref<40x512xf32, #tpu.memory_space<vmem>>, vector<8x512xf32>
    tpu.vector_store %arg7[%c32_366, %c0_367], %320 {strides = array<i32>} : memref<40x512xf32, #tpu.memory_space<vmem>>, vector<8x512xf32>,
    %c17 = arith.constant 17 : index
    %c0_368 = arith.constant 0 : index
    %c0_369 = arith.constant 0 : index
    %322 = vector.load %arg2[%c17, %c0_368, %c0_369] : memref<35x8x40xf32, #tpu.memory_space<vmem>>, vector<1x8x40xf32>
    %323 = vector.shape_cast %322 : vector<1x8x40xf32> to vector<8x40xf32>
    %c0_370 = arith.constant 0 : index
    %c0_371 = arith.constant 0 : index
    %324 = vector.load %arg7[%c0_370, %c0_371] : memref<40x512xf32, #tpu.memory_space<vmem>>, vector<40x512xf32>
    %cst_372 = arith.constant dense<0.000000e+00> : vector<8x512xf32>
    %325 = tpu.matmul %323, %324, %cst_372 {dimension_numbers = #tpu.dot_dimension_numbers<[1], [0], [0], [1], [0, 0, 1, 1], [], []>} : vector<8x40xf32>, vector<40x512xf32>, vector<8x512xf32> -> vector<8x512xf32>
    %326 = arith.addf %312, %325 : vector<8x512xf32>
    %c511_i32_373 = arith.constant 511 : i32
    %327 = tpu.dynamic_rotate %279 by %c511_i32_373 dim 1 : vector<8x512xf32>, i32 -> vector<8x512xf32>
    %328 = vector.broadcast %3 : vector<1x512xf32> to vector<8x512xf32>
    %329 = arith.mulf %327, %328 : vector<8x512xf32>
    %c32_i32_374 = arith.constant 32 : i32
    %330 = tpu.dynamic_rotate %329 by %c32_i32_374 dim 1 : vector<8x512xf32>, i32 -> vector<8x512xf32>
    %c0_375 = arith.constant 0 : index
    %c0_376 = arith.constant 0 : index
    %331 = vector.load %arg7[%c0_375, %c0_376] : memref<40x512xf32, #tpu.memory_space<vmem>>, vector<8x512xf32>
    tpu.vector_store %arg7[%c0_375, %c0_376], %330 {strides = array<i32>} : memref<40x512xf32, #tpu.memory_space<vmem>>, vector<8x512xf32>,
    %c16_i32_377 = arith.constant 16 : i32
    %332 = tpu.dynamic_rotate %329 by %c16_i32_377 dim 1 : vector<8x512xf32>, i32 -> vector<8x512xf32>
    %c8_378 = arith.constant 8 : index
    %c0_379 = arith.constant 0 : index
    %333 = vector.load %arg7[%c8_378, %c0_379] : memref<40x512xf32, #tpu.memory_space<vmem>>, vector<8x512xf32>
    tpu.vector_store %arg7[%c8_378, %c0_379], %332 {strides = array<i32>} : memref<40x512xf32, #tpu.memory_space<vmem>>, vector<8x512xf32>,
    %c16_380 = arith.constant 16 : index
    %c0_381 = arith.constant 0 : index
    %334 = vector.load %arg7[%c16_380, %c0_381] : memref<40x512xf32, #tpu.memory_space<vmem>>, vector<8x512xf32>
    tpu.vector_store %arg7[%c16_380, %c0_381], %329 {strides = array<i32>} : memref<40x512xf32, #tpu.memory_space<vmem>>, vector<8x512xf32>,
    %c496_i32_382 = arith.constant 496 : i32
    %335 = tpu.dynamic_rotate %329 by %c496_i32_382 dim 1 : vector<8x512xf32>, i32 -> vector<8x512xf32>
    %c24_383 = arith.constant 24 : index
    %c0_384 = arith.constant 0 : index
    %336 = vector.load %arg7[%c24_383, %c0_384] : memref<40x512xf32, #tpu.memory_space<vmem>>, vector<8x512xf32>
    tpu.vector_store %arg7[%c24_383, %c0_384], %335 {strides = array<i32>} : memref<40x512xf32, #tpu.memory_space<vmem>>, vector<8x512xf32>,
    %c480_i32_385 = arith.constant 480 : i32
    %337 = tpu.dynamic_rotate %329 by %c480_i32_385 dim 1 : vector<8x512xf32>, i32 -> vector<8x512xf32>
    %c32_386 = arith.constant 32 : index
    %c0_387 = arith.constant 0 : index
    %338 = vector.load %arg7[%c32_386, %c0_387] : memref<40x512xf32, #tpu.memory_space<vmem>>, vector<8x512xf32>
    tpu.vector_store %arg7[%c32_386, %c0_387], %337 {strides = array<i32>} : memref<40x512xf32, #tpu.memory_space<vmem>>, vector<8x512xf32>,
    %c18 = arith.constant 18 : index
    %c0_388 = arith.constant 0 : index
    %c0_389 = arith.constant 0 : index
    %339 = vector.load %arg2[%c18, %c0_388, %c0_389] : memref<35x8x40xf32, #tpu.memory_space<vmem>>, vector<1x8x40xf32>
    %340 = vector.shape_cast %339 : vector<1x8x40xf32> to vector<8x40xf32>
    %c0_390 = arith.constant 0 : index
    %c0_391 = arith.constant 0 : index
    %341 = vector.load %arg7[%c0_390, %c0_391] : memref<40x512xf32, #tpu.memory_space<vmem>>, vector<40x512xf32>
    %cst_392 = arith.constant dense<0.000000e+00> : vector<8x512xf32>
    %342 = tpu.matmul %340, %341, %cst_392 {dimension_numbers = #tpu.dot_dimension_numbers<[1], [0], [0], [1], [0, 0, 1, 1], [], []>} : vector<8x40xf32>, vector<40x512xf32>, vector<8x512xf32> -> vector<8x512xf32>
    %343 = arith.addf %326, %342 : vector<8x512xf32>
    %c510_i32_393 = arith.constant 510 : i32
    %344 = tpu.dynamic_rotate %279 by %c510_i32_393 dim 1 : vector<8x512xf32>, i32 -> vector<8x512xf32>
    %345 = vector.broadcast %4 : vector<1x512xf32> to vector<8x512xf32>
    %346 = arith.mulf %344, %345 : vector<8x512xf32>
    %c32_i32_394 = arith.constant 32 : i32
    %347 = tpu.dynamic_rotate %346 by %c32_i32_394 dim 1 : vector<8x512xf32>, i32 -> vector<8x512xf32>
    %c0_395 = arith.constant 0 : index
    %c0_396 = arith.constant 0 : index
    %348 = vector.load %arg7[%c0_395, %c0_396] : memref<40x512xf32, #tpu.memory_space<vmem>>, vector<8x512xf32>
    tpu.vector_store %arg7[%c0_395, %c0_396], %347 {strides = array<i32>} : memref<40x512xf32, #tpu.memory_space<vmem>>, vector<8x512xf32>,
    %c16_i32_397 = arith.constant 16 : i32
    %349 = tpu.dynamic_rotate %346 by %c16_i32_397 dim 1 : vector<8x512xf32>, i32 -> vector<8x512xf32>
    %c8_398 = arith.constant 8 : index
    %c0_399 = arith.constant 0 : index
    %350 = vector.load %arg7[%c8_398, %c0_399] : memref<40x512xf32, #tpu.memory_space<vmem>>, vector<8x512xf32>
    tpu.vector_store %arg7[%c8_398, %c0_399], %349 {strides = array<i32>} : memref<40x512xf32, #tpu.memory_space<vmem>>, vector<8x512xf32>,
    %c16_400 = arith.constant 16 : index
    %c0_401 = arith.constant 0 : index
    %351 = vector.load %arg7[%c16_400, %c0_401] : memref<40x512xf32, #tpu.memory_space<vmem>>, vector<8x512xf32>
    tpu.vector_store %arg7[%c16_400, %c0_401], %346 {strides = array<i32>} : memref<40x512xf32, #tpu.memory_space<vmem>>, vector<8x512xf32>,
    %c496_i32_402 = arith.constant 496 : i32
    %352 = tpu.dynamic_rotate %346 by %c496_i32_402 dim 1 : vector<8x512xf32>, i32 -> vector<8x512xf32>
    %c24_403 = arith.constant 24 : index
    %c0_404 = arith.constant 0 : index
    %353 = vector.load %arg7[%c24_403, %c0_404] : memref<40x512xf32, #tpu.memory_space<vmem>>, vector<8x512xf32>
    tpu.vector_store %arg7[%c24_403, %c0_404], %352 {strides = array<i32>} : memref<40x512xf32, #tpu.memory_space<vmem>>, vector<8x512xf32>,
    %c480_i32_405 = arith.constant 480 : i32
    %354 = tpu.dynamic_rotate %346 by %c480_i32_405 dim 1 : vector<8x512xf32>, i32 -> vector<8x512xf32>
    %c32_406 = arith.constant 32 : index
    %c0_407 = arith.constant 0 : index
    %355 = vector.load %arg7[%c32_406, %c0_407] : memref<40x512xf32, #tpu.memory_space<vmem>>, vector<8x512xf32>
    tpu.vector_store %arg7[%c32_406, %c0_407], %354 {strides = array<i32>} : memref<40x512xf32, #tpu.memory_space<vmem>>, vector<8x512xf32>,
    %c19 = arith.constant 19 : index
    %c0_408 = arith.constant 0 : index
    %c0_409 = arith.constant 0 : index
    %356 = vector.load %arg2[%c19, %c0_408, %c0_409] : memref<35x8x40xf32, #tpu.memory_space<vmem>>, vector<1x8x40xf32>
    %357 = vector.shape_cast %356 : vector<1x8x40xf32> to vector<8x40xf32>
    %c0_410 = arith.constant 0 : index
    %c0_411 = arith.constant 0 : index
    %358 = vector.load %arg7[%c0_410, %c0_411] : memref<40x512xf32, #tpu.memory_space<vmem>>, vector<40x512xf32>
    %cst_412 = arith.constant dense<0.000000e+00> : vector<8x512xf32>
    %359 = tpu.matmul %357, %358, %cst_412 {dimension_numbers = #tpu.dot_dimension_numbers<[1], [0], [0], [1], [0, 0, 1, 1], [], []>} : vector<8x40xf32>, vector<40x512xf32>, vector<8x512xf32> -> vector<8x512xf32>
    %360 = arith.addf %343, %359 : vector<8x512xf32>
    %c3_413 = arith.constant 3 : index
    %c0_414 = arith.constant 0 : index
    %c0_415 = arith.constant 0 : index
    %361 = vector.load %arg3[%c3_413, %c0_414, %c0_415] : memref<7x8x1xf32, #tpu.memory_space<vmem>>, vector<1x8x1xf32>
    %362 = vector.shape_cast %361 : vector<1x8x1xf32> to vector<8x1xf32>
    %363 = vector.broadcast %362 : vector<8x1xf32> to vector<8x512xf32>
    %364 = arith.addf %360, %363 : vector<8x512xf32>
    %c0_416 = arith.constant 0 : index
    %c128_417 = arith.constant 128 : index
    %365 = vector.load %arg6[%c0_416, %c128_417] : memref<8x512xf32, #tpu.memory_space<vmem>>, vector<8x256xf32>
    %366 = vector.extract_strided_slice %364 {offsets = [0, 128], sizes = [8, 256], strides = [1, 1]} : vector<8x512xf32> to vector<8x256xf32>
    %367 = arith.addf %366, %365 : vector<8x256xf32>
    %c0_418 = arith.constant 0 : index
    %c128_419 = arith.constant 128 : index
    %368 = vector.load %arg6[%c0_418, %c128_419] : memref<8x512xf32, #tpu.memory_space<vmem>>, vector<8x256xf32>
    tpu.vector_store %arg6[%c0_418, %c128_419], %367 {strides = array<i32>} : memref<8x512xf32, #tpu.memory_space<vmem>>, vector<8x256xf32>,
    %c0_420 = arith.constant 0 : index
    %c0_421 = arith.constant 0 : index
    %369 = vector.load %arg6[%c0_420, %c0_421] : memref<8x512xf32, #tpu.memory_space<vmem>>, vector<8x512xf32>
    %c2_i32_422 = arith.constant 2 : i32
    %370 = tpu.dynamic_rotate %369 by %c2_i32_422 dim 1 : vector<8x512xf32>, i32 -> vector<8x512xf32>
    %371 = vector.broadcast %1 : vector<1x512xf32> to vector<8x512xf32>
    %372 = arith.mulf %370, %371 : vector<8x512xf32>
    %c32_i32_423 = arith.constant 32 : i32
    %373 = tpu.dynamic_rotate %372 by %c32_i32_423 dim 1 : vector<8x512xf32>, i32 -> vector<8x512xf32>
    %c0_424 = arith.constant 0 : index
    %c0_425 = arith.constant 0 : index
    %374 = vector.load %arg7[%c0_424, %c0_425] : memref<40x512xf32, #tpu.memory_space<vmem>>, vector<8x512xf32>
    tpu.vector_store %arg7[%c0_424, %c0_425], %373 {strides = array<i32>} : memref<40x512xf32, #tpu.memory_space<vmem>>, vector<8x512xf32>,
    %c16_i32_426 = arith.constant 16 : i32
    %375 = tpu.dynamic_rotate %372 by %c16_i32_426 dim 1 : vector<8x512xf32>, i32 -> vector<8x512xf32>
    %c8_427 = arith.constant 8 : index
    %c0_428 = arith.constant 0 : index
    %376 = vector.load %arg7[%c8_427, %c0_428] : memref<40x512xf32, #tpu.memory_space<vmem>>, vector<8x512xf32>
    tpu.vector_store %arg7[%c8_427, %c0_428], %375 {strides = array<i32>} : memref<40x512xf32, #tpu.memory_space<vmem>>, vector<8x512xf32>,
    %c16_429 = arith.constant 16 : index
    %c0_430 = arith.constant 0 : index
    %377 = vector.load %arg7[%c16_429, %c0_430] : memref<40x512xf32, #tpu.memory_space<vmem>>, vector<8x512xf32>
    tpu.vector_store %arg7[%c16_429, %c0_430], %372 {strides = array<i32>} : memref<40x512xf32, #tpu.memory_space<vmem>>, vector<8x512xf32>,
    %c496_i32_431 = arith.constant 496 : i32
    %378 = tpu.dynamic_rotate %372 by %c496_i32_431 dim 1 : vector<8x512xf32>, i32 -> vector<8x512xf32>
    %c24_432 = arith.constant 24 : index
    %c0_433 = arith.constant 0 : index
    %379 = vector.load %arg7[%c24_432, %c0_433] : memref<40x512xf32, #tpu.memory_space<vmem>>, vector<8x512xf32>
    tpu.vector_store %arg7[%c24_432, %c0_433], %378 {strides = array<i32>} : memref<40x512xf32, #tpu.memory_space<vmem>>, vector<8x512xf32>,
    %c480_i32_434 = arith.constant 480 : i32
    %380 = tpu.dynamic_rotate %372 by %c480_i32_434 dim 1 : vector<8x512xf32>, i32 -> vector<8x512xf32>
    %c32_435 = arith.constant 32 : index
    %c0_436 = arith.constant 0 : index
    %381 = vector.load %arg7[%c32_435, %c0_436] : memref<40x512xf32, #tpu.memory_space<vmem>>, vector<8x512xf32>
    tpu.vector_store %arg7[%c32_435, %c0_436], %380 {strides = array<i32>} : memref<40x512xf32, #tpu.memory_space<vmem>>, vector<8x512xf32>,
    %c20 = arith.constant 20 : index
    %c0_437 = arith.constant 0 : index
    %c0_438 = arith.constant 0 : index
    %382 = vector.load %arg2[%c20, %c0_437, %c0_438] : memref<35x8x40xf32, #tpu.memory_space<vmem>>, vector<1x8x40xf32>
    %383 = vector.shape_cast %382 : vector<1x8x40xf32> to vector<8x40xf32>
    %c0_439 = arith.constant 0 : index
    %c0_440 = arith.constant 0 : index
    %384 = vector.load %arg7[%c0_439, %c0_440] : memref<40x512xf32, #tpu.memory_space<vmem>>, vector<40x512xf32>
    %cst_441 = arith.constant dense<0.000000e+00> : vector<8x512xf32>
    %385 = tpu.matmul %383, %384, %cst_441 {dimension_numbers = #tpu.dot_dimension_numbers<[1], [0], [0], [1], [0, 0, 1, 1], [], []>} : vector<8x40xf32>, vector<40x512xf32>, vector<8x512xf32> -> vector<8x512xf32>
    %c1_i32_442 = arith.constant 1 : i32
    %386 = tpu.dynamic_rotate %369 by %c1_i32_442 dim 1 : vector<8x512xf32>, i32 -> vector<8x512xf32>
    %387 = vector.broadcast %2 : vector<1x512xf32> to vector<8x512xf32>
    %388 = arith.mulf %386, %387 : vector<8x512xf32>
    %c32_i32_443 = arith.constant 32 : i32
    %389 = tpu.dynamic_rotate %388 by %c32_i32_443 dim 1 : vector<8x512xf32>, i32 -> vector<8x512xf32>
    %c0_444 = arith.constant 0 : index
    %c0_445 = arith.constant 0 : index
    %390 = vector.load %arg7[%c0_444, %c0_445] : memref<40x512xf32, #tpu.memory_space<vmem>>, vector<8x512xf32>
    tpu.vector_store %arg7[%c0_444, %c0_445], %389 {strides = array<i32>} : memref<40x512xf32, #tpu.memory_space<vmem>>, vector<8x512xf32>,
    %c16_i32_446 = arith.constant 16 : i32
    %391 = tpu.dynamic_rotate %388 by %c16_i32_446 dim 1 : vector<8x512xf32>, i32 -> vector<8x512xf32>
    %c8_447 = arith.constant 8 : index
    %c0_448 = arith.constant 0 : index
    %392 = vector.load %arg7[%c8_447, %c0_448] : memref<40x512xf32, #tpu.memory_space<vmem>>, vector<8x512xf32>
    tpu.vector_store %arg7[%c8_447, %c0_448], %391 {strides = array<i32>} : memref<40x512xf32, #tpu.memory_space<vmem>>, vector<8x512xf32>,
    %c16_449 = arith.constant 16 : index
    %c0_450 = arith.constant 0 : index
    %393 = vector.load %arg7[%c16_449, %c0_450] : memref<40x512xf32, #tpu.memory_space<vmem>>, vector<8x512xf32>
    tpu.vector_store %arg7[%c16_449, %c0_450], %388 {strides = array<i32>} : memref<40x512xf32, #tpu.memory_space<vmem>>, vector<8x512xf32>,
    %c496_i32_451 = arith.constant 496 : i32
    %394 = tpu.dynamic_rotate %388 by %c496_i32_451 dim 1 : vector<8x512xf32>, i32 -> vector<8x512xf32>
    %c24_452 = arith.constant 24 : index
    %c0_453 = arith.constant 0 : index
    %395 = vector.load %arg7[%c24_452, %c0_453] : memref<40x512xf32, #tpu.memory_space<vmem>>, vector<8x512xf32>
    tpu.vector_store %arg7[%c24_452, %c0_453], %394 {strides = array<i32>} : memref<40x512xf32, #tpu.memory_space<vmem>>, vector<8x512xf32>,
    %c480_i32_454 = arith.constant 480 : i32
    %396 = tpu.dynamic_rotate %388 by %c480_i32_454 dim 1 : vector<8x512xf32>, i32 -> vector<8x512xf32>
    %c32_455 = arith.constant 32 : index
    %c0_456 = arith.constant 0 : index
    %397 = vector.load %arg7[%c32_455, %c0_456] : memref<40x512xf32, #tpu.memory_space<vmem>>, vector<8x512xf32>
    tpu.vector_store %arg7[%c32_455, %c0_456], %396 {strides = array<i32>} : memref<40x512xf32, #tpu.memory_space<vmem>>, vector<8x512xf32>,
    %c21 = arith.constant 21 : index
    %c0_457 = arith.constant 0 : index
    %c0_458 = arith.constant 0 : index
    %398 = vector.load %arg2[%c21, %c0_457, %c0_458] : memref<35x8x40xf32, #tpu.memory_space<vmem>>, vector<1x8x40xf32>
    %399 = vector.shape_cast %398 : vector<1x8x40xf32> to vector<8x40xf32>
    %c0_459 = arith.constant 0 : index
    %c0_460 = arith.constant 0 : index
    %400 = vector.load %arg7[%c0_459, %c0_460] : memref<40x512xf32, #tpu.memory_space<vmem>>, vector<40x512xf32>
    %cst_461 = arith.constant dense<0.000000e+00> : vector<8x512xf32>
    %401 = tpu.matmul %399, %400, %cst_461 {dimension_numbers = #tpu.dot_dimension_numbers<[1], [0], [0], [1], [0, 0, 1, 1], [], []>} : vector<8x40xf32>, vector<40x512xf32>, vector<8x512xf32> -> vector<8x512xf32>
    %402 = arith.addf %385, %401 : vector<8x512xf32>
    %c32_i32_462 = arith.constant 32 : i32
    %403 = tpu.dynamic_rotate %369 by %c32_i32_462 dim 1 : vector<8x512xf32>, i32 -> vector<8x512xf32>
    %c0_463 = arith.constant 0 : index
    %c0_464 = arith.constant 0 : index
    %404 = vector.load %arg7[%c0_463, %c0_464] : memref<40x512xf32, #tpu.memory_space<vmem>>, vector<8x512xf32>
    tpu.vector_store %arg7[%c0_463, %c0_464], %403 {strides = array<i32>} : memref<40x512xf32, #tpu.memory_space<vmem>>, vector<8x512xf32>,
    %c16_i32_465 = arith.constant 16 : i32
    %405 = tpu.dynamic_rotate %369 by %c16_i32_465 dim 1 : vector<8x512xf32>, i32 -> vector<8x512xf32>
    %c8_466 = arith.constant 8 : index
    %c0_467 = arith.constant 0 : index
    %406 = vector.load %arg7[%c8_466, %c0_467] : memref<40x512xf32, #tpu.memory_space<vmem>>, vector<8x512xf32>
    tpu.vector_store %arg7[%c8_466, %c0_467], %405 {strides = array<i32>} : memref<40x512xf32, #tpu.memory_space<vmem>>, vector<8x512xf32>,
    %c16_468 = arith.constant 16 : index
    %c0_469 = arith.constant 0 : index
    %407 = vector.load %arg7[%c16_468, %c0_469] : memref<40x512xf32, #tpu.memory_space<vmem>>, vector<8x512xf32>
    tpu.vector_store %arg7[%c16_468, %c0_469], %369 {strides = array<i32>} : memref<40x512xf32, #tpu.memory_space<vmem>>, vector<8x512xf32>,
    %c496_i32_470 = arith.constant 496 : i32
    %408 = tpu.dynamic_rotate %369 by %c496_i32_470 dim 1 : vector<8x512xf32>, i32 -> vector<8x512xf32>
    %c24_471 = arith.constant 24 : index
    %c0_472 = arith.constant 0 : index
    %409 = vector.load %arg7[%c24_471, %c0_472] : memref<40x512xf32, #tpu.memory_space<vmem>>, vector<8x512xf32>
    tpu.vector_store %arg7[%c24_471, %c0_472], %408 {strides = array<i32>} : memref<40x512xf32, #tpu.memory_space<vmem>>, vector<8x512xf32>,
    %c480_i32_473 = arith.constant 480 : i32
    %410 = tpu.dynamic_rotate %369 by %c480_i32_473 dim 1 : vector<8x512xf32>, i32 -> vector<8x512xf32>
    %c32_474 = arith.constant 32 : index
    %c0_475 = arith.constant 0 : index
    %411 = vector.load %arg7[%c32_474, %c0_475] : memref<40x512xf32, #tpu.memory_space<vmem>>, vector<8x512xf32>
    tpu.vector_store %arg7[%c32_474, %c0_475], %410 {strides = array<i32>} : memref<40x512xf32, #tpu.memory_space<vmem>>, vector<8x512xf32>,
    %c22 = arith.constant 22 : index
    %c0_476 = arith.constant 0 : index
    %c0_477 = arith.constant 0 : index
    %412 = vector.load %arg2[%c22, %c0_476, %c0_477] : memref<35x8x40xf32, #tpu.memory_space<vmem>>, vector<1x8x40xf32>
    %413 = vector.shape_cast %412 : vector<1x8x40xf32> to vector<8x40xf32>
    %c0_478 = arith.constant 0 : index
    %c0_479 = arith.constant 0 : index
    %414 = vector.load %arg7[%c0_478, %c0_479] : memref<40x512xf32, #tpu.memory_space<vmem>>, vector<40x512xf32>
    %cst_480 = arith.constant dense<0.000000e+00> : vector<8x512xf32>
    %415 = tpu.matmul %413, %414, %cst_480 {dimension_numbers = #tpu.dot_dimension_numbers<[1], [0], [0], [1], [0, 0, 1, 1], [], []>} : vector<8x40xf32>, vector<40x512xf32>, vector<8x512xf32> -> vector<8x512xf32>
    %416 = arith.addf %402, %415 : vector<8x512xf32>
    %c511_i32_481 = arith.constant 511 : i32
    %417 = tpu.dynamic_rotate %369 by %c511_i32_481 dim 1 : vector<8x512xf32>, i32 -> vector<8x512xf32>
    %418 = vector.broadcast %3 : vector<1x512xf32> to vector<8x512xf32>
    %419 = arith.mulf %417, %418 : vector<8x512xf32>
    %c32_i32_482 = arith.constant 32 : i32
    %420 = tpu.dynamic_rotate %419 by %c32_i32_482 dim 1 : vector<8x512xf32>, i32 -> vector<8x512xf32>
    %c0_483 = arith.constant 0 : index
    %c0_484 = arith.constant 0 : index
    %421 = vector.load %arg7[%c0_483, %c0_484] : memref<40x512xf32, #tpu.memory_space<vmem>>, vector<8x512xf32>
    tpu.vector_store %arg7[%c0_483, %c0_484], %420 {strides = array<i32>} : memref<40x512xf32, #tpu.memory_space<vmem>>, vector<8x512xf32>,
    %c16_i32_485 = arith.constant 16 : i32
    %422 = tpu.dynamic_rotate %419 by %c16_i32_485 dim 1 : vector<8x512xf32>, i32 -> vector<8x512xf32>
    %c8_486 = arith.constant 8 : index
    %c0_487 = arith.constant 0 : index
    %423 = vector.load %arg7[%c8_486, %c0_487] : memref<40x512xf32, #tpu.memory_space<vmem>>, vector<8x512xf32>
    tpu.vector_store %arg7[%c8_486, %c0_487], %422 {strides = array<i32>} : memref<40x512xf32, #tpu.memory_space<vmem>>, vector<8x512xf32>,
    %c16_488 = arith.constant 16 : index
    %c0_489 = arith.constant 0 : index
    %424 = vector.load %arg7[%c16_488, %c0_489] : memref<40x512xf32, #tpu.memory_space<vmem>>, vector<8x512xf32>
    tpu.vector_store %arg7[%c16_488, %c0_489], %419 {strides = array<i32>} : memref<40x512xf32, #tpu.memory_space<vmem>>, vector<8x512xf32>,
    %c496_i32_490 = arith.constant 496 : i32
    %425 = tpu.dynamic_rotate %419 by %c496_i32_490 dim 1 : vector<8x512xf32>, i32 -> vector<8x512xf32>
    %c24_491 = arith.constant 24 : index
    %c0_492 = arith.constant 0 : index
    %426 = vector.load %arg7[%c24_491, %c0_492] : memref<40x512xf32, #tpu.memory_space<vmem>>, vector<8x512xf32>
    tpu.vector_store %arg7[%c24_491, %c0_492], %425 {strides = array<i32>} : memref<40x512xf32, #tpu.memory_space<vmem>>, vector<8x512xf32>,
    %c480_i32_493 = arith.constant 480 : i32
    %427 = tpu.dynamic_rotate %419 by %c480_i32_493 dim 1 : vector<8x512xf32>, i32 -> vector<8x512xf32>
    %c32_494 = arith.constant 32 : index
    %c0_495 = arith.constant 0 : index
    %428 = vector.load %arg7[%c32_494, %c0_495] : memref<40x512xf32, #tpu.memory_space<vmem>>, vector<8x512xf32>
    tpu.vector_store %arg7[%c32_494, %c0_495], %427 {strides = array<i32>} : memref<40x512xf32, #tpu.memory_space<vmem>>, vector<8x512xf32>,
    %c23 = arith.constant 23 : index
    %c0_496 = arith.constant 0 : index
    %c0_497 = arith.constant 0 : index
    %429 = vector.load %arg2[%c23, %c0_496, %c0_497] : memref<35x8x40xf32, #tpu.memory_space<vmem>>, vector<1x8x40xf32>
    %430 = vector.shape_cast %429 : vector<1x8x40xf32> to vector<8x40xf32>
    %c0_498 = arith.constant 0 : index
    %c0_499 = arith.constant 0 : index
    %431 = vector.load %arg7[%c0_498, %c0_499] : memref<40x512xf32, #tpu.memory_space<vmem>>, vector<40x512xf32>
    %cst_500 = arith.constant dense<0.000000e+00> : vector<8x512xf32>
    %432 = tpu.matmul %430, %431, %cst_500 {dimension_numbers = #tpu.dot_dimension_numbers<[1], [0], [0], [1], [0, 0, 1, 1], [], []>} : vector<8x40xf32>, vector<40x512xf32>, vector<8x512xf32> -> vector<8x512xf32>
    %433 = arith.addf %416, %432 : vector<8x512xf32>
    %c510_i32_501 = arith.constant 510 : i32
    %434 = tpu.dynamic_rotate %369 by %c510_i32_501 dim 1 : vector<8x512xf32>, i32 -> vector<8x512xf32>
    %435 = vector.broadcast %4 : vector<1x512xf32> to vector<8x512xf32>
    %436 = arith.mulf %434, %435 : vector<8x512xf32>
    %c32_i32_502 = arith.constant 32 : i32
    %437 = tpu.dynamic_rotate %436 by %c32_i32_502 dim 1 : vector<8x512xf32>, i32 -> vector<8x512xf32>
    %c0_503 = arith.constant 0 : index
    %c0_504 = arith.constant 0 : index
    %438 = vector.load %arg7[%c0_503, %c0_504] : memref<40x512xf32, #tpu.memory_space<vmem>>, vector<8x512xf32>
    tpu.vector_store %arg7[%c0_503, %c0_504], %437 {strides = array<i32>} : memref<40x512xf32, #tpu.memory_space<vmem>>, vector<8x512xf32>,
    %c16_i32_505 = arith.constant 16 : i32
    %439 = tpu.dynamic_rotate %436 by %c16_i32_505 dim 1 : vector<8x512xf32>, i32 -> vector<8x512xf32>
    %c8_506 = arith.constant 8 : index
    %c0_507 = arith.constant 0 : index
    %440 = vector.load %arg7[%c8_506, %c0_507] : memref<40x512xf32, #tpu.memory_space<vmem>>, vector<8x512xf32>
    tpu.vector_store %arg7[%c8_506, %c0_507], %439 {strides = array<i32>} : memref<40x512xf32, #tpu.memory_space<vmem>>, vector<8x512xf32>,
    %c16_508 = arith.constant 16 : index
    %c0_509 = arith.constant 0 : index
    %441 = vector.load %arg7[%c16_508, %c0_509] : memref<40x512xf32, #tpu.memory_space<vmem>>, vector<8x512xf32>
    tpu.vector_store %arg7[%c16_508, %c0_509], %436 {strides = array<i32>} : memref<40x512xf32, #tpu.memory_space<vmem>>, vector<8x512xf32>,
    %c496_i32_510 = arith.constant 496 : i32
    %442 = tpu.dynamic_rotate %436 by %c496_i32_510 dim 1 : vector<8x512xf32>, i32 -> vector<8x512xf32>
    %c24_511 = arith.constant 24 : index
    %c0_512 = arith.constant 0 : index
    %443 = vector.load %arg7[%c24_511, %c0_512] : memref<40x512xf32, #tpu.memory_space<vmem>>, vector<8x512xf32>
    tpu.vector_store %arg7[%c24_511, %c0_512], %442 {strides = array<i32>} : memref<40x512xf32, #tpu.memory_space<vmem>>, vector<8x512xf32>,
    %c480_i32_513 = arith.constant 480 : i32
    %444 = tpu.dynamic_rotate %436 by %c480_i32_513 dim 1 : vector<8x512xf32>, i32 -> vector<8x512xf32>
    %c32_514 = arith.constant 32 : index
    %c0_515 = arith.constant 0 : index
    %445 = vector.load %arg7[%c32_514, %c0_515] : memref<40x512xf32, #tpu.memory_space<vmem>>, vector<8x512xf32>
    tpu.vector_store %arg7[%c32_514, %c0_515], %444 {strides = array<i32>} : memref<40x512xf32, #tpu.memory_space<vmem>>, vector<8x512xf32>,
    %c24_516 = arith.constant 24 : index
    %c0_517 = arith.constant 0 : index
    %c0_518 = arith.constant 0 : index
    %446 = vector.load %arg2[%c24_516, %c0_517, %c0_518] : memref<35x8x40xf32, #tpu.memory_space<vmem>>, vector<1x8x40xf32>
    %447 = vector.shape_cast %446 : vector<1x8x40xf32> to vector<8x40xf32>
    %c0_519 = arith.constant 0 : index
    %c0_520 = arith.constant 0 : index
    %448 = vector.load %arg7[%c0_519, %c0_520] : memref<40x512xf32, #tpu.memory_space<vmem>>, vector<40x512xf32>
    %cst_521 = arith.constant dense<0.000000e+00> : vector<8x512xf32>
    %449 = tpu.matmul %447, %448, %cst_521 {dimension_numbers = #tpu.dot_dimension_numbers<[1], [0], [0], [1], [0, 0, 1, 1], [], []>} : vector<8x40xf32>, vector<40x512xf32>, vector<8x512xf32> -> vector<8x512xf32>
    %450 = arith.addf %433, %449 : vector<8x512xf32>
    %c4_522 = arith.constant 4 : index
    %c0_523 = arith.constant 0 : index
    %c0_524 = arith.constant 0 : index
    %451 = vector.load %arg3[%c4_522, %c0_523, %c0_524] : memref<7x8x1xf32, #tpu.memory_space<vmem>>, vector<1x8x1xf32>
    %452 = vector.shape_cast %451 : vector<1x8x1xf32> to vector<8x1xf32>
    %453 = vector.broadcast %452 : vector<8x1xf32> to vector<8x512xf32>
    %454 = arith.addf %450, %453 : vector<8x512xf32>
    %cst_525 = arith.constant 0.000000e+00 : f32
    %455 = vector.broadcast %cst_525 : f32 to vector<8x512xf32>
    %456 = arith.maximumf %454, %455 : vector<8x512xf32>
    %457 = vector.broadcast %5 : vector<1x512xf32> to vector<8x512xf32>
    %458 = arith.mulf %456, %457 : vector<8x512xf32>
    %c2_i32_526 = arith.constant 2 : i32
    %459 = tpu.dynamic_rotate %458 by %c2_i32_526 dim 1 : vector<8x512xf32>, i32 -> vector<8x512xf32>
    %460 = vector.broadcast %1 : vector<1x512xf32> to vector<8x512xf32>
    %461 = arith.mulf %459, %460 : vector<8x512xf32>
    %c32_i32_527 = arith.constant 32 : i32
    %462 = tpu.dynamic_rotate %461 by %c32_i32_527 dim 1 : vector<8x512xf32>, i32 -> vector<8x512xf32>
    %c0_528 = arith.constant 0 : index
    %c0_529 = arith.constant 0 : index
    %463 = vector.load %arg7[%c0_528, %c0_529] : memref<40x512xf32, #tpu.memory_space<vmem>>, vector<8x512xf32>
    tpu.vector_store %arg7[%c0_528, %c0_529], %462 {strides = array<i32>} : memref<40x512xf32, #tpu.memory_space<vmem>>, vector<8x512xf32>,
    %c16_i32_530 = arith.constant 16 : i32
    %464 = tpu.dynamic_rotate %461 by %c16_i32_530 dim 1 : vector<8x512xf32>, i32 -> vector<8x512xf32>
    %c8_531 = arith.constant 8 : index
    %c0_532 = arith.constant 0 : index
    %465 = vector.load %arg7[%c8_531, %c0_532] : memref<40x512xf32, #tpu.memory_space<vmem>>, vector<8x512xf32>
    tpu.vector_store %arg7[%c8_531, %c0_532], %464 {strides = array<i32>} : memref<40x512xf32, #tpu.memory_space<vmem>>, vector<8x512xf32>,
    %c16_533 = arith.constant 16 : index
    %c0_534 = arith.constant 0 : index
    %466 = vector.load %arg7[%c16_533, %c0_534] : memref<40x512xf32, #tpu.memory_space<vmem>>, vector<8x512xf32>
    tpu.vector_store %arg7[%c16_533, %c0_534], %461 {strides = array<i32>} : memref<40x512xf32, #tpu.memory_space<vmem>>, vector<8x512xf32>,
    %c496_i32_535 = arith.constant 496 : i32
    %467 = tpu.dynamic_rotate %461 by %c496_i32_535 dim 1 : vector<8x512xf32>, i32 -> vector<8x512xf32>
    %c24_536 = arith.constant 24 : index
    %c0_537 = arith.constant 0 : index
    %468 = vector.load %arg7[%c24_536, %c0_537] : memref<40x512xf32, #tpu.memory_space<vmem>>, vector<8x512xf32>
    tpu.vector_store %arg7[%c24_536, %c0_537], %467 {strides = array<i32>} : memref<40x512xf32, #tpu.memory_space<vmem>>, vector<8x512xf32>,
    %c480_i32_538 = arith.constant 480 : i32
    %469 = tpu.dynamic_rotate %461 by %c480_i32_538 dim 1 : vector<8x512xf32>, i32 -> vector<8x512xf32>
    %c32_539 = arith.constant 32 : index
    %c0_540 = arith.constant 0 : index
    %470 = vector.load %arg7[%c32_539, %c0_540] : memref<40x512xf32, #tpu.memory_space<vmem>>, vector<8x512xf32>
    tpu.vector_store %arg7[%c32_539, %c0_540], %469 {strides = array<i32>} : memref<40x512xf32, #tpu.memory_space<vmem>>, vector<8x512xf32>,
    %c25 = arith.constant 25 : index
    %c0_541 = arith.constant 0 : index
    %c0_542 = arith.constant 0 : index
    %471 = vector.load %arg2[%c25, %c0_541, %c0_542] : memref<35x8x40xf32, #tpu.memory_space<vmem>>, vector<1x8x40xf32>
    %472 = vector.shape_cast %471 : vector<1x8x40xf32> to vector<8x40xf32>
    %c0_543 = arith.constant 0 : index
    %c0_544 = arith.constant 0 : index
    %473 = vector.load %arg7[%c0_543, %c0_544] : memref<40x512xf32, #tpu.memory_space<vmem>>, vector<40x512xf32>
    %cst_545 = arith.constant dense<0.000000e+00> : vector<8x512xf32>
    %474 = tpu.matmul %472, %473, %cst_545 {dimension_numbers = #tpu.dot_dimension_numbers<[1], [0], [0], [1], [0, 0, 1, 1], [], []>} : vector<8x40xf32>, vector<40x512xf32>, vector<8x512xf32> -> vector<8x512xf32>
    %c1_i32_546 = arith.constant 1 : i32
    %475 = tpu.dynamic_rotate %458 by %c1_i32_546 dim 1 : vector<8x512xf32>, i32 -> vector<8x512xf32>
    %476 = vector.broadcast %2 : vector<1x512xf32> to vector<8x512xf32>
    %477 = arith.mulf %475, %476 : vector<8x512xf32>
    %c32_i32_547 = arith.constant 32 : i32
    %478 = tpu.dynamic_rotate %477 by %c32_i32_547 dim 1 : vector<8x512xf32>, i32 -> vector<8x512xf32>
    %c0_548 = arith.constant 0 : index
    %c0_549 = arith.constant 0 : index
    %479 = vector.load %arg7[%c0_548, %c0_549] : memref<40x512xf32, #tpu.memory_space<vmem>>, vector<8x512xf32>
    tpu.vector_store %arg7[%c0_548, %c0_549], %478 {strides = array<i32>} : memref<40x512xf32, #tpu.memory_space<vmem>>, vector<8x512xf32>,
    %c16_i32_550 = arith.constant 16 : i32
    %480 = tpu.dynamic_rotate %477 by %c16_i32_550 dim 1 : vector<8x512xf32>, i32 -> vector<8x512xf32>
    %c8_551 = arith.constant 8 : index
    %c0_552 = arith.constant 0 : index
    %481 = vector.load %arg7[%c8_551, %c0_552] : memref<40x512xf32, #tpu.memory_space<vmem>>, vector<8x512xf32>
    tpu.vector_store %arg7[%c8_551, %c0_552], %480 {strides = array<i32>} : memref<40x512xf32, #tpu.memory_space<vmem>>, vector<8x512xf32>,
    %c16_553 = arith.constant 16 : index
    %c0_554 = arith.constant 0 : index
    %482 = vector.load %arg7[%c16_553, %c0_554] : memref<40x512xf32, #tpu.memory_space<vmem>>, vector<8x512xf32>
    tpu.vector_store %arg7[%c16_553, %c0_554], %477 {strides = array<i32>} : memref<40x512xf32, #tpu.memory_space<vmem>>, vector<8x512xf32>,
    %c496_i32_555 = arith.constant 496 : i32
    %483 = tpu.dynamic_rotate %477 by %c496_i32_555 dim 1 : vector<8x512xf32>, i32 -> vector<8x512xf32>
    %c24_556 = arith.constant 24 : index
    %c0_557 = arith.constant 0 : index
    %484 = vector.load %arg7[%c24_556, %c0_557] : memref<40x512xf32, #tpu.memory_space<vmem>>, vector<8x512xf32>
    tpu.vector_store %arg7[%c24_556, %c0_557], %483 {strides = array<i32>} : memref<40x512xf32, #tpu.memory_space<vmem>>, vector<8x512xf32>,
    %c480_i32_558 = arith.constant 480 : i32
    %485 = tpu.dynamic_rotate %477 by %c480_i32_558 dim 1 : vector<8x512xf32>, i32 -> vector<8x512xf32>
    %c32_559 = arith.constant 32 : index
    %c0_560 = arith.constant 0 : index
    %486 = vector.load %arg7[%c32_559, %c0_560] : memref<40x512xf32, #tpu.memory_space<vmem>>, vector<8x512xf32>
    tpu.vector_store %arg7[%c32_559, %c0_560], %485 {strides = array<i32>} : memref<40x512xf32, #tpu.memory_space<vmem>>, vector<8x512xf32>,
    %c26 = arith.constant 26 : index
    %c0_561 = arith.constant 0 : index
    %c0_562 = arith.constant 0 : index
    %487 = vector.load %arg2[%c26, %c0_561, %c0_562] : memref<35x8x40xf32, #tpu.memory_space<vmem>>, vector<1x8x40xf32>
    %488 = vector.shape_cast %487 : vector<1x8x40xf32> to vector<8x40xf32>
    %c0_563 = arith.constant 0 : index
    %c0_564 = arith.constant 0 : index
    %489 = vector.load %arg7[%c0_563, %c0_564] : memref<40x512xf32, #tpu.memory_space<vmem>>, vector<40x512xf32>
    %cst_565 = arith.constant dense<0.000000e+00> : vector<8x512xf32>
    %490 = tpu.matmul %488, %489, %cst_565 {dimension_numbers = #tpu.dot_dimension_numbers<[1], [0], [0], [1], [0, 0, 1, 1], [], []>} : vector<8x40xf32>, vector<40x512xf32>, vector<8x512xf32> -> vector<8x512xf32>
    %491 = arith.addf %474, %490 : vector<8x512xf32>
    %c32_i32_566 = arith.constant 32 : i32
    %492 = tpu.dynamic_rotate %458 by %c32_i32_566 dim 1 : vector<8x512xf32>, i32 -> vector<8x512xf32>
    %c0_567 = arith.constant 0 : index
    %c0_568 = arith.constant 0 : index
    %493 = vector.load %arg7[%c0_567, %c0_568] : memref<40x512xf32, #tpu.memory_space<vmem>>, vector<8x512xf32>
    tpu.vector_store %arg7[%c0_567, %c0_568], %492 {strides = array<i32>} : memref<40x512xf32, #tpu.memory_space<vmem>>, vector<8x512xf32>,
    %c16_i32_569 = arith.constant 16 : i32
    %494 = tpu.dynamic_rotate %458 by %c16_i32_569 dim 1 : vector<8x512xf32>, i32 -> vector<8x512xf32>
    %c8_570 = arith.constant 8 : index
    %c0_571 = arith.constant 0 : index
    %495 = vector.load %arg7[%c8_570, %c0_571] : memref<40x512xf32, #tpu.memory_space<vmem>>, vector<8x512xf32>
    tpu.vector_store %arg7[%c8_570, %c0_571], %494 {strides = array<i32>} : memref<40x512xf32, #tpu.memory_space<vmem>>, vector<8x512xf32>,
    %c16_572 = arith.constant 16 : index
    %c0_573 = arith.constant 0 : index
    %496 = vector.load %arg7[%c16_572, %c0_573] : memref<40x512xf32, #tpu.memory_space<vmem>>, vector<8x512xf32>
    tpu.vector_store %arg7[%c16_572, %c0_573], %458 {strides = array<i32>} : memref<40x512xf32, #tpu.memory_space<vmem>>, vector<8x512xf32>,
    %c496_i32_574 = arith.constant 496 : i32
    %497 = tpu.dynamic_rotate %458 by %c496_i32_574 dim 1 : vector<8x512xf32>, i32 -> vector<8x512xf32>
    %c24_575 = arith.constant 24 : index
    %c0_576 = arith.constant 0 : index
    %498 = vector.load %arg7[%c24_575, %c0_576] : memref<40x512xf32, #tpu.memory_space<vmem>>, vector<8x512xf32>
    tpu.vector_store %arg7[%c24_575, %c0_576], %497 {strides = array<i32>} : memref<40x512xf32, #tpu.memory_space<vmem>>, vector<8x512xf32>,
    %c480_i32_577 = arith.constant 480 : i32
    %499 = tpu.dynamic_rotate %458 by %c480_i32_577 dim 1 : vector<8x512xf32>, i32 -> vector<8x512xf32>
    %c32_578 = arith.constant 32 : index
    %c0_579 = arith.constant 0 : index
    %500 = vector.load %arg7[%c32_578, %c0_579] : memref<40x512xf32, #tpu.memory_space<vmem>>, vector<8x512xf32>
    tpu.vector_store %arg7[%c32_578, %c0_579], %499 {strides = array<i32>} : memref<40x512xf32, #tpu.memory_space<vmem>>, vector<8x512xf32>,
    %c27 = arith.constant 27 : index
    %c0_580 = arith.constant 0 : index
    %c0_581 = arith.constant 0 : index
    %501 = vector.load %arg2[%c27, %c0_580, %c0_581] : memref<35x8x40xf32, #tpu.memory_space<vmem>>, vector<1x8x40xf32>
    %502 = vector.shape_cast %501 : vector<1x8x40xf32> to vector<8x40xf32>
    %c0_582 = arith.constant 0 : index
    %c0_583 = arith.constant 0 : index
    %503 = vector.load %arg7[%c0_582, %c0_583] : memref<40x512xf32, #tpu.memory_space<vmem>>, vector<40x512xf32>
    %cst_584 = arith.constant dense<0.000000e+00> : vector<8x512xf32>
    %504 = tpu.matmul %502, %503, %cst_584 {dimension_numbers = #tpu.dot_dimension_numbers<[1], [0], [0], [1], [0, 0, 1, 1], [], []>} : vector<8x40xf32>, vector<40x512xf32>, vector<8x512xf32> -> vector<8x512xf32>
    %505 = arith.addf %491, %504 : vector<8x512xf32>
    %c511_i32_585 = arith.constant 511 : i32
    %506 = tpu.dynamic_rotate %458 by %c511_i32_585 dim 1 : vector<8x512xf32>, i32 -> vector<8x512xf32>
    %507 = vector.broadcast %3 : vector<1x512xf32> to vector<8x512xf32>
    %508 = arith.mulf %506, %507 : vector<8x512xf32>
    %c32_i32_586 = arith.constant 32 : i32
    %509 = tpu.dynamic_rotate %508 by %c32_i32_586 dim 1 : vector<8x512xf32>, i32 -> vector<8x512xf32>
    %c0_587 = arith.constant 0 : index
    %c0_588 = arith.constant 0 : index
    %510 = vector.load %arg7[%c0_587, %c0_588] : memref<40x512xf32, #tpu.memory_space<vmem>>, vector<8x512xf32>
    tpu.vector_store %arg7[%c0_587, %c0_588], %509 {strides = array<i32>} : memref<40x512xf32, #tpu.memory_space<vmem>>, vector<8x512xf32>,
    %c16_i32_589 = arith.constant 16 : i32
    %511 = tpu.dynamic_rotate %508 by %c16_i32_589 dim 1 : vector<8x512xf32>, i32 -> vector<8x512xf32>
    %c8_590 = arith.constant 8 : index
    %c0_591 = arith.constant 0 : index
    %512 = vector.load %arg7[%c8_590, %c0_591] : memref<40x512xf32, #tpu.memory_space<vmem>>, vector<8x512xf32>
    tpu.vector_store %arg7[%c8_590, %c0_591], %511 {strides = array<i32>} : memref<40x512xf32, #tpu.memory_space<vmem>>, vector<8x512xf32>,
    %c16_592 = arith.constant 16 : index
    %c0_593 = arith.constant 0 : index
    %513 = vector.load %arg7[%c16_592, %c0_593] : memref<40x512xf32, #tpu.memory_space<vmem>>, vector<8x512xf32>
    tpu.vector_store %arg7[%c16_592, %c0_593], %508 {strides = array<i32>} : memref<40x512xf32, #tpu.memory_space<vmem>>, vector<8x512xf32>,
    %c496_i32_594 = arith.constant 496 : i32
    %514 = tpu.dynamic_rotate %508 by %c496_i32_594 dim 1 : vector<8x512xf32>, i32 -> vector<8x512xf32>
    %c24_595 = arith.constant 24 : index
    %c0_596 = arith.constant 0 : index
    %515 = vector.load %arg7[%c24_595, %c0_596] : memref<40x512xf32, #tpu.memory_space<vmem>>, vector<8x512xf32>
    tpu.vector_store %arg7[%c24_595, %c0_596], %514 {strides = array<i32>} : memref<40x512xf32, #tpu.memory_space<vmem>>, vector<8x512xf32>,
    %c480_i32_597 = arith.constant 480 : i32
    %516 = tpu.dynamic_rotate %508 by %c480_i32_597 dim 1 : vector<8x512xf32>, i32 -> vector<8x512xf32>
    %c32_598 = arith.constant 32 : index
    %c0_599 = arith.constant 0 : index
    %517 = vector.load %arg7[%c32_598, %c0_599] : memref<40x512xf32, #tpu.memory_space<vmem>>, vector<8x512xf32>
    tpu.vector_store %arg7[%c32_598, %c0_599], %516 {strides = array<i32>} : memref<40x512xf32, #tpu.memory_space<vmem>>, vector<8x512xf32>,
    %c28 = arith.constant 28 : index
    %c0_600 = arith.constant 0 : index
    %c0_601 = arith.constant 0 : index
    %518 = vector.load %arg2[%c28, %c0_600, %c0_601] : memref<35x8x40xf32, #tpu.memory_space<vmem>>, vector<1x8x40xf32>
    %519 = vector.shape_cast %518 : vector<1x8x40xf32> to vector<8x40xf32>
    %c0_602 = arith.constant 0 : index
    %c0_603 = arith.constant 0 : index
    %520 = vector.load %arg7[%c0_602, %c0_603] : memref<40x512xf32, #tpu.memory_space<vmem>>, vector<40x512xf32>
    %cst_604 = arith.constant dense<0.000000e+00> : vector<8x512xf32>
    %521 = tpu.matmul %519, %520, %cst_604 {dimension_numbers = #tpu.dot_dimension_numbers<[1], [0], [0], [1], [0, 0, 1, 1], [], []>} : vector<8x40xf32>, vector<40x512xf32>, vector<8x512xf32> -> vector<8x512xf32>
    %522 = arith.addf %505, %521 : vector<8x512xf32>
    %c510_i32_605 = arith.constant 510 : i32
    %523 = tpu.dynamic_rotate %458 by %c510_i32_605 dim 1 : vector<8x512xf32>, i32 -> vector<8x512xf32>
    %524 = vector.broadcast %4 : vector<1x512xf32> to vector<8x512xf32>
    %525 = arith.mulf %523, %524 : vector<8x512xf32>
    %c32_i32_606 = arith.constant 32 : i32
    %526 = tpu.dynamic_rotate %525 by %c32_i32_606 dim 1 : vector<8x512xf32>, i32 -> vector<8x512xf32>
    %c0_607 = arith.constant 0 : index
    %c0_608 = arith.constant 0 : index
    %527 = vector.load %arg7[%c0_607, %c0_608] : memref<40x512xf32, #tpu.memory_space<vmem>>, vector<8x512xf32>
    tpu.vector_store %arg7[%c0_607, %c0_608], %526 {strides = array<i32>} : memref<40x512xf32, #tpu.memory_space<vmem>>, vector<8x512xf32>,
    %c16_i32_609 = arith.constant 16 : i32
    %528 = tpu.dynamic_rotate %525 by %c16_i32_609 dim 1 : vector<8x512xf32>, i32 -> vector<8x512xf32>
    %c8_610 = arith.constant 8 : index
    %c0_611 = arith.constant 0 : index
    %529 = vector.load %arg7[%c8_610, %c0_611] : memref<40x512xf32, #tpu.memory_space<vmem>>, vector<8x512xf32>
    tpu.vector_store %arg7[%c8_610, %c0_611], %528 {strides = array<i32>} : memref<40x512xf32, #tpu.memory_space<vmem>>, vector<8x512xf32>,
    %c16_612 = arith.constant 16 : index
    %c0_613 = arith.constant 0 : index
    %530 = vector.load %arg7[%c16_612, %c0_613] : memref<40x512xf32, #tpu.memory_space<vmem>>, vector<8x512xf32>
    tpu.vector_store %arg7[%c16_612, %c0_613], %525 {strides = array<i32>} : memref<40x512xf32, #tpu.memory_space<vmem>>, vector<8x512xf32>,
    %c496_i32_614 = arith.constant 496 : i32
    %531 = tpu.dynamic_rotate %525 by %c496_i32_614 dim 1 : vector<8x512xf32>, i32 -> vector<8x512xf32>
    %c24_615 = arith.constant 24 : index
    %c0_616 = arith.constant 0 : index
    %532 = vector.load %arg7[%c24_615, %c0_616] : memref<40x512xf32, #tpu.memory_space<vmem>>, vector<8x512xf32>
    tpu.vector_store %arg7[%c24_615, %c0_616], %531 {strides = array<i32>} : memref<40x512xf32, #tpu.memory_space<vmem>>, vector<8x512xf32>,
    %c480_i32_617 = arith.constant 480 : i32
    %533 = tpu.dynamic_rotate %525 by %c480_i32_617 dim 1 : vector<8x512xf32>, i32 -> vector<8x512xf32>
    %c32_618 = arith.constant 32 : index
    %c0_619 = arith.constant 0 : index
    %534 = vector.load %arg7[%c32_618, %c0_619] : memref<40x512xf32, #tpu.memory_space<vmem>>, vector<8x512xf32>
    tpu.vector_store %arg7[%c32_618, %c0_619], %533 {strides = array<i32>} : memref<40x512xf32, #tpu.memory_space<vmem>>, vector<8x512xf32>,
    %c29 = arith.constant 29 : index
    %c0_620 = arith.constant 0 : index
    %c0_621 = arith.constant 0 : index
    %535 = vector.load %arg2[%c29, %c0_620, %c0_621] : memref<35x8x40xf32, #tpu.memory_space<vmem>>, vector<1x8x40xf32>
    %536 = vector.shape_cast %535 : vector<1x8x40xf32> to vector<8x40xf32>
    %c0_622 = arith.constant 0 : index
    %c0_623 = arith.constant 0 : index
    %537 = vector.load %arg7[%c0_622, %c0_623] : memref<40x512xf32, #tpu.memory_space<vmem>>, vector<40x512xf32>
    %cst_624 = arith.constant dense<0.000000e+00> : vector<8x512xf32>
    %538 = tpu.matmul %536, %537, %cst_624 {dimension_numbers = #tpu.dot_dimension_numbers<[1], [0], [0], [1], [0, 0, 1, 1], [], []>} : vector<8x40xf32>, vector<40x512xf32>, vector<8x512xf32> -> vector<8x512xf32>
    %539 = arith.addf %522, %538 : vector<8x512xf32>
    %c5_625 = arith.constant 5 : index
    %c0_626 = arith.constant 0 : index
    %c0_627 = arith.constant 0 : index
    %540 = vector.load %arg3[%c5_625, %c0_626, %c0_627] : memref<7x8x1xf32, #tpu.memory_space<vmem>>, vector<1x8x1xf32>
    %541 = vector.shape_cast %540 : vector<1x8x1xf32> to vector<8x1xf32>
    %542 = vector.broadcast %541 : vector<8x1xf32> to vector<8x512xf32>
    %543 = arith.addf %539, %542 : vector<8x512xf32>
    %c0_628 = arith.constant 0 : index
    %c128_629 = arith.constant 128 : index
    %544 = vector.load %arg6[%c0_628, %c128_629] : memref<8x512xf32, #tpu.memory_space<vmem>>, vector<8x256xf32>
    %545 = vector.extract_strided_slice %543 {offsets = [0, 128], sizes = [8, 256], strides = [1, 1]} : vector<8x512xf32> to vector<8x256xf32>
    %546 = arith.addf %545, %544 : vector<8x256xf32>
    %c0_630 = arith.constant 0 : index
    %c128_631 = arith.constant 128 : index
    %547 = vector.load %arg6[%c0_630, %c128_631] : memref<8x512xf32, #tpu.memory_space<vmem>>, vector<8x256xf32>
    tpu.vector_store %arg6[%c0_630, %c128_631], %546 {strides = array<i32>} : memref<8x512xf32, #tpu.memory_space<vmem>>, vector<8x256xf32>,
    %c0_632 = arith.constant 0 : index
    %c0_633 = arith.constant 0 : index
    %548 = vector.load %arg6[%c0_632, %c0_633] : memref<8x512xf32, #tpu.memory_space<vmem>>, vector<8x512xf32>
    %c2_i32_634 = arith.constant 2 : i32
    %549 = tpu.dynamic_rotate %548 by %c2_i32_634 dim 1 : vector<8x512xf32>, i32 -> vector<8x512xf32>
    %550 = vector.broadcast %1 : vector<1x512xf32> to vector<8x512xf32>
    %551 = arith.mulf %549, %550 : vector<8x512xf32>
    %c32_i32_635 = arith.constant 32 : i32
    %552 = tpu.dynamic_rotate %551 by %c32_i32_635 dim 1 : vector<8x512xf32>, i32 -> vector<8x512xf32>
    %c0_636 = arith.constant 0 : index
    %c0_637 = arith.constant 0 : index
    %553 = vector.load %arg7[%c0_636, %c0_637] : memref<40x512xf32, #tpu.memory_space<vmem>>, vector<8x512xf32>
    tpu.vector_store %arg7[%c0_636, %c0_637], %552 {strides = array<i32>} : memref<40x512xf32, #tpu.memory_space<vmem>>, vector<8x512xf32>,
    %c16_i32_638 = arith.constant 16 : i32
    %554 = tpu.dynamic_rotate %551 by %c16_i32_638 dim 1 : vector<8x512xf32>, i32 -> vector<8x512xf32>
    %c8_639 = arith.constant 8 : index
    %c0_640 = arith.constant 0 : index
    %555 = vector.load %arg7[%c8_639, %c0_640] : memref<40x512xf32, #tpu.memory_space<vmem>>, vector<8x512xf32>
    tpu.vector_store %arg7[%c8_639, %c0_640], %554 {strides = array<i32>} : memref<40x512xf32, #tpu.memory_space<vmem>>, vector<8x512xf32>,
    %c16_641 = arith.constant 16 : index
    %c0_642 = arith.constant 0 : index
    %556 = vector.load %arg7[%c16_641, %c0_642] : memref<40x512xf32, #tpu.memory_space<vmem>>, vector<8x512xf32>
    tpu.vector_store %arg7[%c16_641, %c0_642], %551 {strides = array<i32>} : memref<40x512xf32, #tpu.memory_space<vmem>>, vector<8x512xf32>,
    %c496_i32_643 = arith.constant 496 : i32
    %557 = tpu.dynamic_rotate %551 by %c496_i32_643 dim 1 : vector<8x512xf32>, i32 -> vector<8x512xf32>
    %c24_644 = arith.constant 24 : index
    %c0_645 = arith.constant 0 : index
    %558 = vector.load %arg7[%c24_644, %c0_645] : memref<40x512xf32, #tpu.memory_space<vmem>>, vector<8x512xf32>
    tpu.vector_store %arg7[%c24_644, %c0_645], %557 {strides = array<i32>} : memref<40x512xf32, #tpu.memory_space<vmem>>, vector<8x512xf32>,
    %c480_i32_646 = arith.constant 480 : i32
    %559 = tpu.dynamic_rotate %551 by %c480_i32_646 dim 1 : vector<8x512xf32>, i32 -> vector<8x512xf32>
    %c32_647 = arith.constant 32 : index
    %c0_648 = arith.constant 0 : index
    %560 = vector.load %arg7[%c32_647, %c0_648] : memref<40x512xf32, #tpu.memory_space<vmem>>, vector<8x512xf32>
    tpu.vector_store %arg7[%c32_647, %c0_648], %559 {strides = array<i32>} : memref<40x512xf32, #tpu.memory_space<vmem>>, vector<8x512xf32>,
    %c30 = arith.constant 30 : index
    %c0_649 = arith.constant 0 : index
    %c0_650 = arith.constant 0 : index
    %561 = vector.load %arg2[%c30, %c0_649, %c0_650] : memref<35x8x40xf32, #tpu.memory_space<vmem>>, vector<1x8x40xf32>
    %562 = vector.shape_cast %561 : vector<1x8x40xf32> to vector<8x40xf32>
    %c0_651 = arith.constant 0 : index
    %c0_652 = arith.constant 0 : index
    %563 = vector.load %arg7[%c0_651, %c0_652] : memref<40x512xf32, #tpu.memory_space<vmem>>, vector<40x512xf32>
    %cst_653 = arith.constant dense<0.000000e+00> : vector<8x512xf32>
    %564 = tpu.matmul %562, %563, %cst_653 {dimension_numbers = #tpu.dot_dimension_numbers<[1], [0], [0], [1], [0, 0, 1, 1], [], []>} : vector<8x40xf32>, vector<40x512xf32>, vector<8x512xf32> -> vector<8x512xf32>
    %c1_i32_654 = arith.constant 1 : i32
    %565 = tpu.dynamic_rotate %548 by %c1_i32_654 dim 1 : vector<8x512xf32>, i32 -> vector<8x512xf32>
    %566 = vector.broadcast %2 : vector<1x512xf32> to vector<8x512xf32>
    %567 = arith.mulf %565, %566 : vector<8x512xf32>
    %c32_i32_655 = arith.constant 32 : i32
    %568 = tpu.dynamic_rotate %567 by %c32_i32_655 dim 1 : vector<8x512xf32>, i32 -> vector<8x512xf32>
    %c0_656 = arith.constant 0 : index
    %c0_657 = arith.constant 0 : index
    %569 = vector.load %arg7[%c0_656, %c0_657] : memref<40x512xf32, #tpu.memory_space<vmem>>, vector<8x512xf32>
    tpu.vector_store %arg7[%c0_656, %c0_657], %568 {strides = array<i32>} : memref<40x512xf32, #tpu.memory_space<vmem>>, vector<8x512xf32>,
    %c16_i32_658 = arith.constant 16 : i32
    %570 = tpu.dynamic_rotate %567 by %c16_i32_658 dim 1 : vector<8x512xf32>, i32 -> vector<8x512xf32>
    %c8_659 = arith.constant 8 : index
    %c0_660 = arith.constant 0 : index
    %571 = vector.load %arg7[%c8_659, %c0_660] : memref<40x512xf32, #tpu.memory_space<vmem>>, vector<8x512xf32>
    tpu.vector_store %arg7[%c8_659, %c0_660], %570 {strides = array<i32>} : memref<40x512xf32, #tpu.memory_space<vmem>>, vector<8x512xf32>,
    %c16_661 = arith.constant 16 : index
    %c0_662 = arith.constant 0 : index
    %572 = vector.load %arg7[%c16_661, %c0_662] : memref<40x512xf32, #tpu.memory_space<vmem>>, vector<8x512xf32>
    tpu.vector_store %arg7[%c16_661, %c0_662], %567 {strides = array<i32>} : memref<40x512xf32, #tpu.memory_space<vmem>>, vector<8x512xf32>,
    %c496_i32_663 = arith.constant 496 : i32
    %573 = tpu.dynamic_rotate %567 by %c496_i32_663 dim 1 : vector<8x512xf32>, i32 -> vector<8x512xf32>
    %c24_664 = arith.constant 24 : index
    %c0_665 = arith.constant 0 : index
    %574 = vector.load %arg7[%c24_664, %c0_665] : memref<40x512xf32, #tpu.memory_space<vmem>>, vector<8x512xf32>
    tpu.vector_store %arg7[%c24_664, %c0_665], %573 {strides = array<i32>} : memref<40x512xf32, #tpu.memory_space<vmem>>, vector<8x512xf32>,
    %c480_i32_666 = arith.constant 480 : i32
    %575 = tpu.dynamic_rotate %567 by %c480_i32_666 dim 1 : vector<8x512xf32>, i32 -> vector<8x512xf32>
    %c32_667 = arith.constant 32 : index
    %c0_668 = arith.constant 0 : index
    %576 = vector.load %arg7[%c32_667, %c0_668] : memref<40x512xf32, #tpu.memory_space<vmem>>, vector<8x512xf32>
    tpu.vector_store %arg7[%c32_667, %c0_668], %575 {strides = array<i32>} : memref<40x512xf32, #tpu.memory_space<vmem>>, vector<8x512xf32>,
    %c31 = arith.constant 31 : index
    %c0_669 = arith.constant 0 : index
    %c0_670 = arith.constant 0 : index
    %577 = vector.load %arg2[%c31, %c0_669, %c0_670] : memref<35x8x40xf32, #tpu.memory_space<vmem>>, vector<1x8x40xf32>
    %578 = vector.shape_cast %577 : vector<1x8x40xf32> to vector<8x40xf32>
    %c0_671 = arith.constant 0 : index
    %c0_672 = arith.constant 0 : index
    %579 = vector.load %arg7[%c0_671, %c0_672] : memref<40x512xf32, #tpu.memory_space<vmem>>, vector<40x512xf32>
    %cst_673 = arith.constant dense<0.000000e+00> : vector<8x512xf32>
    %580 = tpu.matmul %578, %579, %cst_673 {dimension_numbers = #tpu.dot_dimension_numbers<[1], [0], [0], [1], [0, 0, 1, 1], [], []>} : vector<8x40xf32>, vector<40x512xf32>, vector<8x512xf32> -> vector<8x512xf32>
    %581 = arith.addf %564, %580 : vector<8x512xf32>
    %c32_i32_674 = arith.constant 32 : i32
    %582 = tpu.dynamic_rotate %548 by %c32_i32_674 dim 1 : vector<8x512xf32>, i32 -> vector<8x512xf32>
    %c0_675 = arith.constant 0 : index
    %c0_676 = arith.constant 0 : index
    %583 = vector.load %arg7[%c0_675, %c0_676] : memref<40x512xf32, #tpu.memory_space<vmem>>, vector<8x512xf32>
    tpu.vector_store %arg7[%c0_675, %c0_676], %582 {strides = array<i32>} : memref<40x512xf32, #tpu.memory_space<vmem>>, vector<8x512xf32>,
    %c16_i32_677 = arith.constant 16 : i32
    %584 = tpu.dynamic_rotate %548 by %c16_i32_677 dim 1 : vector<8x512xf32>, i32 -> vector<8x512xf32>
    %c8_678 = arith.constant 8 : index
    %c0_679 = arith.constant 0 : index
    %585 = vector.load %arg7[%c8_678, %c0_679] : memref<40x512xf32, #tpu.memory_space<vmem>>, vector<8x512xf32>
    tpu.vector_store %arg7[%c8_678, %c0_679], %584 {strides = array<i32>} : memref<40x512xf32, #tpu.memory_space<vmem>>, vector<8x512xf32>,
    %c16_680 = arith.constant 16 : index
    %c0_681 = arith.constant 0 : index
    %586 = vector.load %arg7[%c16_680, %c0_681] : memref<40x512xf32, #tpu.memory_space<vmem>>, vector<8x512xf32>
    tpu.vector_store %arg7[%c16_680, %c0_681], %548 {strides = array<i32>} : memref<40x512xf32, #tpu.memory_space<vmem>>, vector<8x512xf32>,
    %c496_i32_682 = arith.constant 496 : i32
    %587 = tpu.dynamic_rotate %548 by %c496_i32_682 dim 1 : vector<8x512xf32>, i32 -> vector<8x512xf32>
    %c24_683 = arith.constant 24 : index
    %c0_684 = arith.constant 0 : index
    %588 = vector.load %arg7[%c24_683, %c0_684] : memref<40x512xf32, #tpu.memory_space<vmem>>, vector<8x512xf32>
    tpu.vector_store %arg7[%c24_683, %c0_684], %587 {strides = array<i32>} : memref<40x512xf32, #tpu.memory_space<vmem>>, vector<8x512xf32>,
    %c480_i32_685 = arith.constant 480 : i32
    %589 = tpu.dynamic_rotate %548 by %c480_i32_685 dim 1 : vector<8x512xf32>, i32 -> vector<8x512xf32>
    %c32_686 = arith.constant 32 : index
    %c0_687 = arith.constant 0 : index
    %590 = vector.load %arg7[%c32_686, %c0_687] : memref<40x512xf32, #tpu.memory_space<vmem>>, vector<8x512xf32>
    tpu.vector_store %arg7[%c32_686, %c0_687], %589 {strides = array<i32>} : memref<40x512xf32, #tpu.memory_space<vmem>>, vector<8x512xf32>,
    %c32_688 = arith.constant 32 : index
    %c0_689 = arith.constant 0 : index
    %c0_690 = arith.constant 0 : index
    %591 = vector.load %arg2[%c32_688, %c0_689, %c0_690] : memref<35x8x40xf32, #tpu.memory_space<vmem>>, vector<1x8x40xf32>
    %592 = vector.shape_cast %591 : vector<1x8x40xf32> to vector<8x40xf32>
    %c0_691 = arith.constant 0 : index
    %c0_692 = arith.constant 0 : index
    %593 = vector.load %arg7[%c0_691, %c0_692] : memref<40x512xf32, #tpu.memory_space<vmem>>, vector<40x512xf32>
    %cst_693 = arith.constant dense<0.000000e+00> : vector<8x512xf32>
    %594 = tpu.matmul %592, %593, %cst_693 {dimension_numbers = #tpu.dot_dimension_numbers<[1], [0], [0], [1], [0, 0, 1, 1], [], []>} : vector<8x40xf32>, vector<40x512xf32>, vector<8x512xf32> -> vector<8x512xf32>
    %595 = arith.addf %581, %594 : vector<8x512xf32>
    %c511_i32_694 = arith.constant 511 : i32
    %596 = tpu.dynamic_rotate %548 by %c511_i32_694 dim 1 : vector<8x512xf32>, i32 -> vector<8x512xf32>
    %597 = vector.broadcast %3 : vector<1x512xf32> to vector<8x512xf32>
    %598 = arith.mulf %596, %597 : vector<8x512xf32>
    %c32_i32_695 = arith.constant 32 : i32
    %599 = tpu.dynamic_rotate %598 by %c32_i32_695 dim 1 : vector<8x512xf32>, i32 -> vector<8x512xf32>
    %c0_696 = arith.constant 0 : index
    %c0_697 = arith.constant 0 : index
    %600 = vector.load %arg7[%c0_696, %c0_697] : memref<40x512xf32, #tpu.memory_space<vmem>>, vector<8x512xf32>
    tpu.vector_store %arg7[%c0_696, %c0_697], %599 {strides = array<i32>} : memref<40x512xf32, #tpu.memory_space<vmem>>, vector<8x512xf32>,
    %c16_i32_698 = arith.constant 16 : i32
    %601 = tpu.dynamic_rotate %598 by %c16_i32_698 dim 1 : vector<8x512xf32>, i32 -> vector<8x512xf32>
    %c8_699 = arith.constant 8 : index
    %c0_700 = arith.constant 0 : index
    %602 = vector.load %arg7[%c8_699, %c0_700] : memref<40x512xf32, #tpu.memory_space<vmem>>, vector<8x512xf32>
    tpu.vector_store %arg7[%c8_699, %c0_700], %601 {strides = array<i32>} : memref<40x512xf32, #tpu.memory_space<vmem>>, vector<8x512xf32>,
    %c16_701 = arith.constant 16 : index
    %c0_702 = arith.constant 0 : index
    %603 = vector.load %arg7[%c16_701, %c0_702] : memref<40x512xf32, #tpu.memory_space<vmem>>, vector<8x512xf32>
    tpu.vector_store %arg7[%c16_701, %c0_702], %598 {strides = array<i32>} : memref<40x512xf32, #tpu.memory_space<vmem>>, vector<8x512xf32>,
    %c496_i32_703 = arith.constant 496 : i32
    %604 = tpu.dynamic_rotate %598 by %c496_i32_703 dim 1 : vector<8x512xf32>, i32 -> vector<8x512xf32>
    %c24_704 = arith.constant 24 : index
    %c0_705 = arith.constant 0 : index
    %605 = vector.load %arg7[%c24_704, %c0_705] : memref<40x512xf32, #tpu.memory_space<vmem>>, vector<8x512xf32>
    tpu.vector_store %arg7[%c24_704, %c0_705], %604 {strides = array<i32>} : memref<40x512xf32, #tpu.memory_space<vmem>>, vector<8x512xf32>,
    %c480_i32_706 = arith.constant 480 : i32
    %606 = tpu.dynamic_rotate %598 by %c480_i32_706 dim 1 : vector<8x512xf32>, i32 -> vector<8x512xf32>
    %c32_707 = arith.constant 32 : index
    %c0_708 = arith.constant 0 : index
    %607 = vector.load %arg7[%c32_707, %c0_708] : memref<40x512xf32, #tpu.memory_space<vmem>>, vector<8x512xf32>
    tpu.vector_store %arg7[%c32_707, %c0_708], %606 {strides = array<i32>} : memref<40x512xf32, #tpu.memory_space<vmem>>, vector<8x512xf32>,
    %c33 = arith.constant 33 : index
    %c0_709 = arith.constant 0 : index
    %c0_710 = arith.constant 0 : index
    %608 = vector.load %arg2[%c33, %c0_709, %c0_710] : memref<35x8x40xf32, #tpu.memory_space<vmem>>, vector<1x8x40xf32>
    %609 = vector.shape_cast %608 : vector<1x8x40xf32> to vector<8x40xf32>
    %c0_711 = arith.constant 0 : index
    %c0_712 = arith.constant 0 : index
    %610 = vector.load %arg7[%c0_711, %c0_712] : memref<40x512xf32, #tpu.memory_space<vmem>>, vector<40x512xf32>
    %cst_713 = arith.constant dense<0.000000e+00> : vector<8x512xf32>
    %611 = tpu.matmul %609, %610, %cst_713 {dimension_numbers = #tpu.dot_dimension_numbers<[1], [0], [0], [1], [0, 0, 1, 1], [], []>} : vector<8x40xf32>, vector<40x512xf32>, vector<8x512xf32> -> vector<8x512xf32>
    %612 = arith.addf %595, %611 : vector<8x512xf32>
    %c510_i32_714 = arith.constant 510 : i32
    %613 = tpu.dynamic_rotate %548 by %c510_i32_714 dim 1 : vector<8x512xf32>, i32 -> vector<8x512xf32>
    %614 = vector.broadcast %4 : vector<1x512xf32> to vector<8x512xf32>
    %615 = arith.mulf %613, %614 : vector<8x512xf32>
    %c32_i32_715 = arith.constant 32 : i32
    %616 = tpu.dynamic_rotate %615 by %c32_i32_715 dim 1 : vector<8x512xf32>, i32 -> vector<8x512xf32>
    %c0_716 = arith.constant 0 : index
    %c0_717 = arith.constant 0 : index
    %617 = vector.load %arg7[%c0_716, %c0_717] : memref<40x512xf32, #tpu.memory_space<vmem>>, vector<8x512xf32>
    tpu.vector_store %arg7[%c0_716, %c0_717], %616 {strides = array<i32>} : memref<40x512xf32, #tpu.memory_space<vmem>>, vector<8x512xf32>,
    %c16_i32_718 = arith.constant 16 : i32
    %618 = tpu.dynamic_rotate %615 by %c16_i32_718 dim 1 : vector<8x512xf32>, i32 -> vector<8x512xf32>
    %c8_719 = arith.constant 8 : index
    %c0_720 = arith.constant 0 : index
    %619 = vector.load %arg7[%c8_719, %c0_720] : memref<40x512xf32, #tpu.memory_space<vmem>>, vector<8x512xf32>
    tpu.vector_store %arg7[%c8_719, %c0_720], %618 {strides = array<i32>} : memref<40x512xf32, #tpu.memory_space<vmem>>, vector<8x512xf32>,
    %c16_721 = arith.constant 16 : index
    %c0_722 = arith.constant 0 : index
    %620 = vector.load %arg7[%c16_721, %c0_722] : memref<40x512xf32, #tpu.memory_space<vmem>>, vector<8x512xf32>
    tpu.vector_store %arg7[%c16_721, %c0_722], %615 {strides = array<i32>} : memref<40x512xf32, #tpu.memory_space<vmem>>, vector<8x512xf32>,
    %c496_i32_723 = arith.constant 496 : i32
    %621 = tpu.dynamic_rotate %615 by %c496_i32_723 dim 1 : vector<8x512xf32>, i32 -> vector<8x512xf32>
    %c24_724 = arith.constant 24 : index
    %c0_725 = arith.constant 0 : index
    %622 = vector.load %arg7[%c24_724, %c0_725] : memref<40x512xf32, #tpu.memory_space<vmem>>, vector<8x512xf32>
    tpu.vector_store %arg7[%c24_724, %c0_725], %621 {strides = array<i32>} : memref<40x512xf32, #tpu.memory_space<vmem>>, vector<8x512xf32>,
    %c480_i32_726 = arith.constant 480 : i32
    %623 = tpu.dynamic_rotate %615 by %c480_i32_726 dim 1 : vector<8x512xf32>, i32 -> vector<8x512xf32>
    %c32_727 = arith.constant 32 : index
    %c0_728 = arith.constant 0 : index
    %624 = vector.load %arg7[%c32_727, %c0_728] : memref<40x512xf32, #tpu.memory_space<vmem>>, vector<8x512xf32>
    tpu.vector_store %arg7[%c32_727, %c0_728], %623 {strides = array<i32>} : memref<40x512xf32, #tpu.memory_space<vmem>>, vector<8x512xf32>,
    %c34 = arith.constant 34 : index
    %c0_729 = arith.constant 0 : index
    %c0_730 = arith.constant 0 : index
    %625 = vector.load %arg2[%c34, %c0_729, %c0_730] : memref<35x8x40xf32, #tpu.memory_space<vmem>>, vector<1x8x40xf32>
    %626 = vector.shape_cast %625 : vector<1x8x40xf32> to vector<8x40xf32>
    %c0_731 = arith.constant 0 : index
    %c0_732 = arith.constant 0 : index
    %627 = vector.load %arg7[%c0_731, %c0_732] : memref<40x512xf32, #tpu.memory_space<vmem>>, vector<40x512xf32>
    %cst_733 = arith.constant dense<0.000000e+00> : vector<8x512xf32>
    %628 = tpu.matmul %626, %627, %cst_733 {dimension_numbers = #tpu.dot_dimension_numbers<[1], [0], [0], [1], [0, 0, 1, 1], [], []>} : vector<8x40xf32>, vector<40x512xf32>, vector<8x512xf32> -> vector<8x512xf32>
    %629 = arith.addf %612, %628 : vector<8x512xf32>
    %c6_734 = arith.constant 6 : index
    %c0_735 = arith.constant 0 : index
    %c0_736 = arith.constant 0 : index
    %630 = vector.load %arg3[%c6_734, %c0_735, %c0_736] : memref<7x8x1xf32, #tpu.memory_space<vmem>>, vector<1x8x1xf32>
    %631 = vector.shape_cast %630 : vector<1x8x1xf32> to vector<8x1xf32>
    %632 = vector.broadcast %631 : vector<8x1xf32> to vector<8x512xf32>
    %633 = arith.addf %629, %632 : vector<8x512xf32>
    %634 = vector.extract_strided_slice %633 {offsets = [0, 128], sizes = [3, 256], strides = [1, 1]} : vector<8x512xf32> to vector<3x256xf32>
    %c0_737 = arith.constant 0 : index
    %c0_738 = arith.constant 0 : index
    %c0_739 = arith.constant 0 : index
    %635 = vector.load %arg5[%c0_737, %c0_738, %c0_739] : memref<1x3x256xf32, #tpu.memory_space<vmem>>, vector<1x3x256xf32>
    %636 = vector.shape_cast %635 : vector<1x3x256xf32> to vector<3x256xf32>
    %637 = vector.shape_cast %634 : vector<3x256xf32> to vector<1x3x256xf32>
    tpu.vector_store %arg5[%c0_737, %c0_738, %c0_739], %637 {strides = array<i32>} : memref<1x3x256xf32, #tpu.memory_space<vmem>>, vector<1x3x256xf32>,
    return
  }
  func.func @transform_0(%arg0: i32) -> (i32, i32, i32) {
    %c0_i32 = arith.constant 0 : i32
    %c0_i32_0 = arith.constant 0 : i32
    %c0_i32_1 = arith.constant 0 : i32
    return %arg0, %c0_i32, %c0_i32_0 : i32, i32, i32
  }
  func.func @transform_1(%arg0: i32) -> (i32, i32, i32) {
    %c0_i32 = arith.constant 0 : i32
    %c0_i32_0 = arith.constant 0 : i32
    %c0_i32_1 = arith.constant 0 : i32
    %c0_i32_2 = arith.constant 0 : i32
    return %c0_i32, %c0_i32_0, %c0_i32_1 : i32, i32, i32
  }
  func.func @transform_2(%arg0: i32) -> (i32, i32, i32) {
    %c0_i32 = arith.constant 0 : i32
    %c0_i32_0 = arith.constant 0 : i32
    %c0_i32_1 = arith.constant 0 : i32
    %c0_i32_2 = arith.constant 0 : i32
    return %c0_i32, %c0_i32_0, %c0_i32_1 : i32, i32, i32
  }
  func.func @transform_3(%arg0: i32) -> (i32, i32) {
    %c0_i32 = arith.constant 0 : i32
    %c0_i32_0 = arith.constant 0 : i32
    %c0_i32_1 = arith.constant 0 : i32
    return %c0_i32, %c0_i32_0 : i32, i32
  }
  func.func @transform_4(%arg0: i32) -> (i32, i32, i32) {
    %c0_i32 = arith.constant 0 : i32
    %c0_i32_0 = arith.constant 0 : i32
    %c0_i32_1 = arith.constant 0 : i32
    return %arg0, %c0_i32, %c0_i32_0 : i32, i32, i32
  }
}

</mosaic_0001>

<bundles_post_ra>
// kernel: tpu_custom_call.1
= control target key start
LH: loop header
LB: loop body
LE: loop exit
PB: predicated region body
PF: predicated region fallthrough
CT: control target
= control target key end

     0   :  { %9 = vsyncpa [#allocation5], 0  ;;  %s11074_s15 = smov 0   ;;  %s14920_s0 = inlined_call_operand.vmem [shape: f32[2,4,256], index: 0, kind: input, shape index: {}]   ;;  %s14921_s1 = inlined_call_operand.hbm [shape: f32[35,8,40], index: 1, kind: input, shape index: {}]   ;;  %s14922_s2 = inlined_call_operand.vmem [shape: f32[7,8,1], index: 2, kind: input, shape index: {}]   ;;  %s14923_s3 = inlined_call_operand.vmem [shape: f32[6,512], index: 3, kind: input, shape index: {}]   ;;  %s14924_s4 = inlined_call_operand.vmem [shape: f32[2,3,256], index: 4, kind: output, shape index: {}]  }
   0x1 LB: > { %s11080_s16 = sadd.s32 4294967295, %s11034_s15   ;;  %p9210_p0 = scmp.ge.s32.totalorder %s11034_s15, 1  ;;  %s11034_s15 = sphi %s11074_s15, %s15_s15  }
   0x2   : > { %p135_p1 = scmp.lt.s32.totalorder %s11034_s15, 3  ;;  %s11036_s17 = smov [#allocation4]  }
   0x3   : > { %s147_s18 = sshll.u32 %s11036_s17, 4  ;;  %p14925_p3 = scmp.eq.s32.totalorder %s11080_s16, 0  ;;  %s148_s18 = int_to_ptr.vmem [resolvable:$true] %s147_s18 }
   0x4   : > { %p11084_p2 = pnand %p9210_p0, %p135_p1  ;;  %s10996_s23 = scalar_lea.hbm %s14921_s1, 4480 }
   0x5   : > { %p10997_p6 = scmp.ne.s32.totalorder %s14921_s1, %s10996_s23  ;;  %p11003_p10 = scmp.lt.u32.totalorder %s10996_s23, %s14921_s1 }
   0x6   : > { %s14983_s19 = scalar_select %p11084_p2, 1, 0 }
   0x7   : > { %p9911_p4 = pneg %p11084_p2 }
   0x9   : > { %p11093_p5 = pnand %p14925_p3, %p9911_p4 }
   0xb   : > { %p10998_p7 = pneg %p11093_p5 }
   0xd   : > { %p10999_p8 = pnand %p10998_p7, %p10997_p6 }
   0xf   : > { %p11000_p9 = pneg %p10999_p8 }
  0x11   : > { %p11005_p11 = pnand %p11003_p10, %p11000_p9 }
  0x13   : > { %11008 = shalt.err (!%p11005_p11)
}
  0x14   : > { %s11009_s28 = scalar_lea.vmem %s148_s18, 4480  ;;  %p11017_p1 = scmp.lt.s32.totalorder %s148_s18, %s148_s18 }
  0x15   : > { %p11010_p12 = scmp.ne.s32.totalorder %s148_s18, %s11009_s28  ;;  %p11018_p4 = scmp.lt.s32.totalorder %s11009_s28, %s11009_s28 }
  0x17   : > { %p11012_p13 = pnand %p11010_p12, %p10998_p7  ;;  %p11019_p3 = por %p11018_p4, %p11017_p1 }
  0x19   : > { %p11013_p0 = pneg %p11012_p13 }
  0x1b   : > { %p11020_p2 = pnand %p11019_p3, %p11013_p0 }
  0x1d   : > { %11023 = shalt.err (!%p11020_p2)
}
  0x1e   : > { %s11037_s29 = smov 128   ;;  %s11038_s30 = smov 8  }
  0x1f   : > { %9914 = dma.hbm_to_vmem [thread:$0]  (!%p11093_p5), %s14921_s1, 4480, %s148_s18, [#allocation5], %s11037_s29, %s11037_s29, %s11038_s30  }
  0x20   : > { %p14985_p6 = scmp.ne.s32.totalorder %s14983_s19, 0 }
  0x22   : > { %177 = sbr.rel (%p14985_p6) target bundleno = 3870 (0xf1e), region = 36 }
  0x29   : > { %p14986_p8 = scmp.eq.s32.totalorder %s11080_s16, 0 }
  0x2b   : > { %11029 = dma.done.wait (%p14986_p8), [#allocation5], 4480   ;;  %p14987_p7 = pmov %p14986_p8 }
  0x2c   : > { %v14927_v0 = vmov 0.0   ;;  %s11040_s7 = smov 1   ;;  %p203_p2 = scmp.lt.s32.totalorder %s11080_s16, 1  ;;  %v239_v7 = vlaneseq  ;;  %v11196_v11 = vld [vmem:[%s14923_s3] sm:$0x3f]  ;;  %vm482_vm8 = vcmask 326656  }
  0x2d   : > { %11031 = vsyncadd (%p14987_p7), [#allocation5], 4294962816  ;;  %220 = vst [vmem:[#allocation2 + $0x18] sm:$0xff] %v14927_v0  ;;  %365 = vrot.lane.b32.xlu1 %v14927_v0, %s11040_s7  ;;  %359 = vrot.lane.b32.xlu0 %v14927_v0, %s11040_s7  ;;  %s11041_s8 = smov 2   ;;  %s11042_s13 = smov 127  }
  0x2e   : > { %218 = vst [vmem:[#allocation2 + $0x8] sm:$0xff] %v14927_v0  ;;  %219 = vst [vmem:[#allocation2 + $0x10] sm:$0xff] %v14927_v0  ;;  %550 = vmatprep.mubr.f32.mxu0 %v14927_v0  ;;  %621 = vmatprep.mubr.f32.mxu1 %v14927_v0  ;;  %s15096_s16 = smov (!%p203_p2, %s11080_s16), 1  ;;  %s11043_s14 = smov 126   ;;  %v11188_v8 = vshrl.u32 %v239_v7, 7  ;;  %v11190_v9 = vand.u32 127, %v239_v7 }
  0x2f   : > { %s9297_s9 = sshll.u32 %s15096_s16, 3  ;;  %s11044_s17 = smov 32   ;;  %v11224_v24 = vld [vmem:[%s14923_s3 + $0x8] sm:$0x3f]  ;;  %v11248_v36 = vld [vmem:[%s14923_s3 + $0x18] sm:$0x3f] }
  0x30   : > { %s207_s12 = scalar_lea.vmem %s14920_s0, %s9297_s9  ;;  %s11045_s18 = smov 16   ;;  %v374_v10 = vsub.s32 1, %v11188_v8  ;;  %vm367_vm0 = vcmp.lt.s32.totalorder %v11190_v9, 1  ;;  %v248_v13 = vsub.s32 0, %v11188_v8  ;;  %vm241_vm1 = vcmp.lt.s32.totalorder %v11190_v9, 2  ;;  %14992 = vst [vmem:[#allocation11_spill] sm:$0xff] %v11248_v36 }
  0x31   : > { %237 = vrot.lane.b32.xlu1 %v14927_v0, %s11041_s8  ;;  %231 = vrot.lane.b32.xlu0 %v14927_v0, %s11041_s8  ;;  %v221_v1 = vld [vmem:[%s207_s12] sm:$0xff]  ;;  %s11046_s19 = smov 112   ;;  %s11047_s20 = smov 96   ;;  %v11241_v33 = vsub.s32 3, %v11188_v8  ;;  %vm1020_vm2 = vcmp.lt.s32.totalorder %v11190_v9, 127  ;;  %v1299_v7 = vsub.s32 4, %v11188_v8 }
  0x32   : > { %v223_v2 = vcombine.high %v221_v1, %v221_v1  ;;  %225 = vst [vmem:[#allocation2 + $0x8] sm:$0xf] %v221_v1  ;;  %v11200_v12 = vrot.slane %v11196_v11, %v374_v10  ;;  %v11210_v18 = vrot.slane %v11196_v11, %v248_v13  ;;  %v11227_v25 = vrot.slane %v11224_v24, %v374_v10  ;;  %v11272_v43 = vld [vmem:[%s14923_s3 + $0x10] sm:$0x3f] }
  0x33   : > { %v11238_v32 = vrot.slane %v11224_v24, %v248_v13  ;;  %v11252_v37 = vrot.slane %v11248_v36, %v11241_v33  ;;  %14994 = vst [vmem:[#allocation13_spill] sm:$0xff] %v11272_v43  ;;  %v11275_v44 = vrot.slane %v11272_v43, %v374_v10  ;;  %v11278_v45 = vrot.slane %v11248_v36, %v374_v10 }
  0x34   : > { %226 = vst [vmem:[#allocation2 + $0x10] sm:$0xf] %v223_v2  ;;  %14988 = vst [vmem:[#allocation7_spill] sm:$0xff] %v11200_v12  ;;  %v11296_v50 = vrot.slane %v11196_v11, %v11241_v33  ;;  %v11310_v55 = vrot.slane %v11272_v43, %v248_v13  ;;  %v11313_v56 = vrot.slane %v11248_v36, %v248_v13  ;;  %vm1292_vm3 = vcmp.lt.s32.totalorder %v11190_v9, 126 }
  0x35   : > { %1012 = vrot.lane.b32.xlu0 %v14927_v0, %s11042_s13  ;;  %14989 = vst [vmem:[#allocation8_spill] sm:$0xff] %v11210_v18  ;;  %14990 = vst [vmem:[#allocation9_spill] sm:$0xff] %v11227_v25  ;;  %v11323_v60 = vrot.slane %v11224_v24, %v11241_v33  ;;  %vm274_vm4 = vcmp.lt.s32.totalorder %v11190_v9, 32  ;;  %vm291_vm5 = vcmp.lt.s32.totalorder %v11190_v9, 16  ;;  %vm312_vm6 = vcmp.lt.s32.totalorder %v11190_v9, 112 }
  0x36   : > { %14991 = vst [vmem:[#allocation10_spill] sm:$0xff] %v11238_v32  ;;  %14993 = vst [vmem:[#allocation12_spill] sm:$0xff] %v11252_v37  ;;  %vm329_vm7 = vcmp.lt.s32.totalorder %v11190_v9, 96 }
  0x37   : > { %14995 = vst [vmem:[#allocation14_spill] sm:$0xff] %v11275_v44  ;;  %14996 = vst [vmem:[#allocation15_spill] sm:$0xff] %v11278_v45 }
  0x38   : > { %14997 = vst [vmem:[#allocation16_spill] sm:$0xff] %v11296_v50  ;;  %14998 = vst [vmem:[#allocation17_spill] sm:$0xff] %v11310_v55 }
  0x39   : > { %v11144_v3 = vld [vmem:[#allocation2 + $0x8] sm:$0xff]  ;;  %14999 = vst [vmem:[#allocation18_spill] sm:$0xff] %v11313_v56  ;;  %15000 = vst [vmem:[#allocation19_spill] sm:$0xff] %v11323_v60 }
  0x3a   : > { %233 = vrot.lane.b32.xlu1 %v11144_v3, %s11041_s8  ;;  %361 = vrot.lane.b32.xlu0 %v11144_v3, %s11040_s7  ;;  %v9938_v5 = vpack.i.bf16 %v11144_v3, %v14927_v0 }
  0x3b   : > { %v11150_v4 = vld [vmem:[#allocation2 + $0x10] sm:$0xff] }
  0x3c   : > { %v9943_v6 = vpack.i.bf16 %v14927_v0, %v11150_v4 }
  0x3e   : > { %1014 = vrot.lane.b32.xlu1 %v11144_v3, %s11042_s13  ;;  %235 = vrot.lane.b32.xlu0 %v11150_v4, %s11041_s8 }
  0x42   : > { %363 = vrot.lane.b32.xlu1 %v11150_v4, %s11040_s7  ;;  %1016 = vrot.lane.b32.xlu0 %v11150_v4, %s11042_s13 }
  0x46   : > { %1018 = vrot.lane.b32.xlu1 %v14927_v0, %s11042_s13  ;;  %1284 = vrot.lane.b32.xlu0 %v14927_v0, %s11043_s14 }
  0x4a   : > { %1286 = vrot.lane.b32.xlu1 %v11144_v3, %s11043_s14  ;;  %1288 = vrot.lane.b32.xlu0 %v11150_v4, %s11043_s14 }
  0x4e   : > { %1290 = vrot.lane.b32.xlu1 %v14927_v0, %s11043_s14  ;;  %9939 = vrot.lane.b32.xlu0 %v9938_v5, %s11044_s17 }
  0x52   : > { %9949 = vrot.lane.b32.xlu0 %v9938_v5, %s11045_s18  ;;  %9944 = vrot.lane.b32.xlu1 %v9943_v6, %s11044_s17 }
  0x56   : > { %9959 = vrot.lane.b32.xlu0 %v9938_v5, %s11046_s19  ;;  %9954 = vrot.lane.b32.xlu1 %v9943_v6, %s11045_s18 }
  0x5a   : > { %825 = vrot.lane.b32.xlu0 %v14927_v0, %s11047_s20  ;;  %9964 = vrot.lane.b32.xlu1 %v9943_v6, %s11046_s19 }
  0x5e   : > { %829 = vrot.lane.b32.xlu0 %v11150_v4, %s11047_s20  ;;  %827 = vrot.lane.b32.xlu1 %v11144_v3, %s11047_s20 }
  0x62   : > { %831 = vrot.lane.b32.xlu1 %v14927_v0, %s11047_s20 }
  0x9f   : > { %v366_v14 = vpop.permute.xlu1 %365  ;;  %v360_v15 = vpop.permute.xlu0 %359 }
  0xa0   : > { %v371_v16 = vsel %vm367_vm0, %v366_v14, %v360_v15 }
  0xa1   : > { %v11207_v17 = vmul.f32 %v11200_v12, %v371_v16 }
  0xa3   : > { %v238_v19 = vpop.permute.xlu1 %237  ;;  %v232_v20 = vpop.permute.xlu0 %231  ;;  %444 = vrot.lane.b32.xlu0 %v11207_v17, %s11047_s20 }
  0xa4   : > { %v245_v21 = vsel %vm241_vm1, %v238_v19, %v232_v20 }
  0xa5   : > { %v11217_v22 = vmul.f32 %v11210_v18, %v245_v21 }
  0xa7   : > { %321 = vrot.lane.b32.xlu0 %v11217_v22, %s11047_s20  ;;  %v1013_v23 = vpop.permute.xlu0 %1012 }
  0xac   : > { %v234_v26 = vpop.permute.xlu1 %233  ;;  %v362_v27 = vpop.permute.xlu0 %361 }
  0xad   : > { %v370_v28 = vsel %vm367_vm0, %v360_v15, %v362_v27  ;;  %v244_v35 = vsel %vm241_vm1, %v232_v20, %v234_v26  ;;  %v11356_v15 = vrot.slane %v11224_v24, %v1299_v7  ;;  %v11364_v20 = vrot.slane %v11272_v43, %v11241_v33 }
  0xae   : > { %v11232_v29 = vmul.f32 %v11227_v25, %v370_v28  ;;  %v11257_v38 = vmul.f32 %v11238_v32, %v244_v35  ;;  %v11394_v33 = vrot.slane %v11272_v43, %v1299_v7 }
  0xaf   : > { %15002 = vst [vmem:[#allocation21_spill] sm:$0xff] %v11356_v15  ;;  %15003 = vst [vmem:[#allocation22_spill] sm:$0xff] %v11364_v20 }
  0xb0   : > { %v1015_v30 = vpop.permute.xlu1 %1014  ;;  %v9968_v31 = vpack.i.bf16 %v11232_v29, %v11207_v17  ;;  %v9983_v42 = vpack.i.bf16 %v11257_v38, %v11217_v22  ;;  %v236_v51 = vpop.permute.xlu0 %235  ;;  %15004 = vst [vmem:[#allocation23_spill] sm:$0xff] %v11394_v33 }
  0xb1   : > { %v1023_v52 = vsel %vm1020_vm2, %v1013_v23, %v1015_v30  ;;  %v242_v58 = vsel %vm241_vm1, %v236_v51, %v238_v19  ;;  %v243_v59 = vsel %vm241_vm1, %v234_v26, %v236_v51  ;;  %v1556_v51 = vld [vmem:[%s14922_s2] sm:$0xff] }
  0xb2   : > { %9969 = vrot.lane.b32.xlu0 %v9968_v31, %s11044_s17  ;;  %v11306_v54 = vmul.f32 %v11296_v50, %v1023_v52  ;;  %v11329_v62 = vmul.f32 %v11310_v55, %v243_v59  ;;  %v11332_v63 = vmul.f32 %v11313_v56, %v242_v58  ;;  %v11048_v52 = vmov 0  }
  0xb3   : > { %10088 = vset.pattern.permute.xlu0 %v11048_v52  ;;  %10389 = vset.pattern.permute.xlu1 %v11048_v52 }
  0xb4   : > { %v364_v34 = vpop.permute.xlu1 %363  ;;  %v1017_v57 = vpop.permute.xlu0 %1016  ;;  %v10013_v2 = vpack.i.bf16 %v11332_v63, %v11329_v62 }
  0xb5   : > { %v368_v46 = vsel %vm367_vm0, %v364_v34, %v366_v14  ;;  %v369_v47 = vsel %vm367_vm0, %v362_v27, %v364_v34  ;;  %v1022_v61 = vsel %vm1020_vm2, %v1015_v30, %v1017_v57  ;;  %v11353_v14 = vrot.slane %v11196_v11, %v1299_v7 }
  0xb6   : > { %9974 = vrot.lane.b32.xlu0 %v9968_v31, %s11045_s18  ;;  %v11288_v48 = vmul.f32 %v11275_v44, %v369_v47  ;;  %v11291_v49 = vmul.f32 %v11278_v45, %v368_v46  ;;  %v11337_v1 = vmul.f32 %v11323_v60, %v1022_v61  ;;  %v11397_v34 = vrot.slane %v11248_v36, %v1299_v7 }
  0xb7   : > { %15001 = vst [vmem:[#allocation20_spill] sm:$0xff] %v11353_v14 }
  0xb8   : > { %v1019_v39 = vpop.permute.xlu1 %1018  ;;  %v9998_v53 = vpack.i.bf16 %v11291_v49, %v11288_v48  ;;  %v1285_v5 = vpop.permute.xlu0 %1284  ;;  %v10028_v6 = vpack.i.bf16 %v11337_v1, %v11306_v54  ;;  %15005 = vst [vmem:[#allocation24_spill] sm:$0xff] %v11397_v34 }
  0xb9   : > { %v1024_v40 = vsel %vm1020_vm2, %v1019_v39, %v1013_v23  ;;  %v1021_v21 = vsel %vm1020_vm2, %v1017_v57, %v1019_v39 }
  0xba   : > { %v11262_v41 = vmul.f32 %v11252_v37, %v1024_v40  ;;  %9979 = vrot.lane.b32.xlu0 %v9968_v31, %s11046_s19  ;;  %v11378_v27 = vmul.f32 %v11364_v20, %v1021_v21 }
  0xbc   : > { %1103 = vrot.lane.b32.xlu1 %v11262_v41, %s11047_s20  ;;  %v1287_v10 = vpop.permute.xlu1 %1286  ;;  %v1289_v13 = vpop.permute.xlu0 %1288  ;;  %v10033_v30 = vpack.i.bf16 %v11262_v41, %v11378_v27 }
  0xbd   : > { %v1295_v16 = vsel %vm1292_vm3, %v1285_v5, %v1287_v10  ;;  %v1294_v19 = vsel %vm1292_vm3, %v1287_v10, %v1289_v13 }
  0xbe   : > { %9984 = vrot.lane.b32.xlu0 %v9983_v42, %s11044_s17  ;;  %v11372_v23 = vmul.f32 %v11353_v14, %v1295_v16  ;;  %v11375_v26 = vmul.f32 %v11356_v15, %v1294_v19 }
  0xc0   : > { %446 = vrot.lane.b32.xlu1 %v11232_v29, %s11047_s20  ;;  %v10058_v28 = vpack.i.bf16 %v11375_v26, %v11372_v23  ;;  %v1291_v31 = vpop.permute.xlu1 %1290  ;;  %v11421_v47 = vpop.permute.xlu0 %9939 }
  0xc1   : > { %v1293_v35 = vsel %vm1292_vm3, %v1289_v13, %v1291_v31  ;;  %v1296_v39 = vsel %vm1292_vm3, %v1291_v31, %v1285_v5 }
  0xc2   : > { %9989 = vrot.lane.b32.xlu0 %v9983_v42, %s11045_s18  ;;  %v11406_v40 = vmul.f32 %v11394_v33, %v1293_v35 }
  0xc4   : > { %323 = vrot.lane.b32.xlu1 %v11257_v38, %s11047_s20  ;;  %v11437_v59 = vpop.permute.xlu1 %9944 }
  0xc6   : > { %9994 = vrot.lane.b32.xlu0 %v9983_v42, %s11046_s19  ;;  %v11409_v42 = vmul.f32 %v11397_v34, %v1296_v39 }
  0xc8   : > { %9999 = vrot.lane.b32.xlu1 %v9998_v53, %s11044_s17  ;;  %v10063_v46 = vpack.i.bf16 %v11409_v42, %v11406_v40 }
  0xca   : > { %1097 = vrot.lane.b32.xlu0 %v11306_v54, %s11047_s20 }
  0xcc   : > { %10004 = vrot.lane.b32.xlu1 %v9998_v53, %s11045_s18 }
  0xce   : > { %448 = vrot.lane.b32.xlu0 %v11288_v48, %s11047_s20 }
  0xd0   : > { %10009 = vrot.lane.b32.xlu1 %v9998_v53, %s11046_s19  ;;  %v11427_v53 = vpop.permute.xlu0 %9949 }
  0xd2   : > { %325 = vrot.lane.b32.xlu0 %v11329_v62, %s11047_s20 }
  0xd4   : > { %10014 = vrot.lane.b32.xlu1 %v10013_v2, %s11044_s17  ;;  %v11433_v57 = vpop.permute.xlu0 %9959 }
  0xd6   : > { %10029 = vrot.lane.b32.xlu0 %v10028_v6, %s11044_s17 }
  0xd8   : > { %10019 = vrot.lane.b32.xlu1 %v10013_v2, %s11045_s18  ;;  %v11435_v58 = vpop.permute.xlu0 %825 }
  0xda   : > { %10039 = vrot.lane.b32.xlu0 %v10028_v6, %s11045_s18 }
  0xdc   : > { %450 = vrot.lane.b32.xlu1 %v11291_v49, %s11047_s20  ;;  %v11439_v61 = vpop.permute.xlu0 %829 }
  0xde   : > { %10049 = vrot.lane.b32.xlu0 %v10028_v6, %s11046_s19 }
  0xe0   : > { %10024 = vrot.lane.b32.xlu1 %v10013_v2, %s11046_s19  ;;  %v11441_v2 = vpop.permute.xlu1 %9954 }
  0xe2   : > { %1101 = vrot.lane.b32.xlu0 %v11378_v27, %s11047_s20 }
  0xe4   : > { %327 = vrot.lane.b32.xlu1 %v11332_v63, %s11047_s20  ;;  %v11445_v6 = vpop.permute.xlu1 %9964 }
  0xe6   : > { %10059 = vrot.lane.b32.xlu0 %v10058_v28, %s11044_s17 }
  0xe8   : > { %10034 = vrot.lane.b32.xlu1 %v10033_v30, %s11044_s17  ;;  %v11449_v10 = vpop.permute.xlu1 %827 }
  0xea   : > { %10069 = vrot.lane.b32.xlu0 %v10058_v28, %s11045_s18 }
  0xec   : > { %10044 = vrot.lane.b32.xlu1 %v10033_v30, %s11045_s18  ;;  %v11453_v31 = vpop.permute.xlu1 %831 }
  0xee   : > { %10079 = vrot.lane.b32.xlu0 %v10058_v28, %s11046_s19 }
  0xf0   : > { %10054 = vrot.lane.b32.xlu1 %v10033_v30, %s11046_s19 }
  0xf2   : > { %1369 = vrot.lane.b32.xlu0 %v11372_v23, %s11047_s20 }
  0xf4   : > { %1099 = vrot.lane.b32.xlu1 %v11337_v1, %s11047_s20 }
  0xf6   : > { %1373 = vrot.lane.b32.xlu0 %v11406_v40, %s11047_s20 }
  0xf8   : > { %10064 = vrot.lane.b32.xlu1 %v10063_v46, %s11044_s17 }
  0xfa   : > { %1559 = vperm.xlu0 %10088, %v1556_v51  }
  0xfc   : > { %10074 = vrot.lane.b32.xlu1 %v10063_v46, %s11045_s18 }
 0x100   : > { %10084 = vrot.lane.b32.xlu1 %v10063_v46, %s11046_s19 }
 0x104   : > { %1371 = vrot.lane.b32.xlu1 %v11375_v26, %s11047_s20 }
 0x108   : > { %1375 = vrot.lane.b32.xlu1 %v11409_v42, %s11047_s20 }
 0x115   : > { %v11443_v5 = vpop.permute.xlu0 %444 }
 0x119   : > { %v11447_v7 = vpop.permute.xlu0 %321 }
 0x124   : > { %v9970_v13 = vpop.permute.xlu0 %9969 }
 0x125   : > { %v9972_v16 = vunpack.i.h.bf16 %v9970_v13  ;;  %v9971_v19 = vunpack.i.l.bf16 %v9970_v13 }
 0x127   : > { %v402_v35 = vsel %vm274_vm4, %v9971_v19, %v9972_v16 }
 0x128   : > { %v9975_v21 = vpop.permute.xlu0 %9974 }
 0x129   : > { %v9977_v28 = vunpack.i.h.bf16 %v9975_v21  ;;  %v9976_v30 = vunpack.i.l.bf16 %v9975_v21 }
 0x12b   : > { %v418_v39 = vsel %vm291_vm5, %v9976_v30, %v9977_v28 }
 0x12c   : > { %v9980_v46 = vpop.permute.xlu0 %9979  ;;  %v9299_v51 = vpack.c.bf16 %v418_v39, %v402_v35 }
 0x12d   : > { %v9982_v39 = vunpack.i.h.bf16 %v9980_v46  ;;  %v9981_v45 = vunpack.i.l.bf16 %v9980_v46 }
 0x12e   : > { %v11459_v52 = vpop.permute.xlu1 %1103  ;;  %9300 = vmatprep.subr.bf16.mxu0 %v9299_v51 }
 0x130   : > { %v11461_v13 = vpop.permute.xlu0 %9984 }
 0x132   : > { %v447_v21 = vpop.permute.xlu1 %446 }
 0x134   : > { %v11463_v0 = vpop.permute.xlu0 %9989 }
 0x136   : > { %v11465_v34 = vpop.permute.xlu1 %323 }
 0x138   : > { %v11467_v33 = vpop.permute.xlu0 %9994 }
 0x13a   : > { %v10000_v37 = vpop.permute.xlu1 %9999 }
 0x13b   : > { %v10002_v20 = vunpack.i.h.bf16 %v10000_v37  ;;  %v10001_v15 = vunpack.i.l.bf16 %v10000_v37 }
 0x13c   : > { %v11469_v14 = vpop.permute.xlu0 %1097 }
 0x13d   : > { %v400_v51 = vsel %vm274_vm4, %v10001_v15, %v10002_v20  ;;  %v403_v60 = vsel %vm274_vm4, %v10002_v20, %v9971_v19  ;;  %v401_v55 = vsel %vm274_vm4, %v9972_v16, %v10001_v15  ;;  %v9992_v19 = vunpack.i.h.bf16 %v11463_v0 }
 0x13e   : > { %v10005_v56 = vpop.permute.xlu1 %10004  ;;  %v9991_v15 = vunpack.i.l.bf16 %v11463_v0  ;;  %v9986_v0 = vunpack.i.l.bf16 %v11461_v13 }
 0x13f   : > { %v10007_v18 = vunpack.i.h.bf16 %v10005_v56  ;;  %v10006_v35 = vunpack.i.l.bf16 %v10005_v56 }
 0x140   : > { %v449_v12 = vpop.permute.xlu0 %448 }
 0x141   : > { %v416_v50 = vsel %vm291_vm5, %v10006_v35, %v10007_v18  ;;  %v419_v37 = vsel %vm291_vm5, %v10007_v18, %v9976_v30  ;;  %v417_v56 = vsel %vm291_vm5, %v9977_v28, %v10006_v35  ;;  %v438_v18 = vsel %vm312_vm6, %v9981_v45, %v9982_v39 }
 0x142   : > { %v10010_v46 = vpop.permute.xlu1 %10009  ;;  %v9307_v32 = vpack.c.bf16 %v416_v50, %v400_v51  ;;  %v9301_v44 = vpack.c.bf16 %v419_v37, %v403_v60  ;;  %v9309_v25 = vpack.c.bf16 %v417_v56, %v401_v55  ;;  %v9987_v30 = vunpack.i.h.bf16 %v11461_v13  ;;  %v461_v51 = vld [vmem:[#allocation4 + $0x8] sm:$0xff] }
 0x143   : > { %v10012_v36 = vunpack.i.h.bf16 %v10010_v46  ;;  %v10011_v20 = vunpack.i.l.bf16 %v10010_v46  ;;  %v454_v37 = vsel %vm329_vm7, %v11443_v5, %v447_v21 }
 0x144   : > { %9308 = vmatprep.subr.bf16.mxu1 %v9307_v32  ;;  %9302 = vmatpush1.bf16.msra.mxu0 %v9301_v44  ;;  %v11485_v43 = vpop.permute.xlu0 %325 }
 0x145   : > { %9310 = vmatpush1.bf16.msra.mxu1 %v9309_v25  ;;  %v437_v50 = vsel %vm312_vm6, %v9982_v39, %v10011_v20  ;;  %v439_v55 = vsel %vm312_vm6, %v10012_v36, %v9981_v45  ;;  %v436_v60 = vsel %vm312_vm6, %v10011_v20, %v10012_v36  ;;  %v9305_v25 = vpack.c.bf16 %v438_v18, %v11207_v17 }
 0x146   : > { %v10015_v16 = vpop.permute.xlu1 %10014  ;;  %v9303_v32 = vpack.c.bf16 %v437_v50, %v11232_v29  ;;  %v9311_v44 = vpack.c.bf16 %v439_v55, %v11291_v49  ;;  %v9313_v28 = vpack.c.bf16 %v436_v60, %v11288_v48  ;;  %v453_v29 = vsel %vm329_vm7, %v447_v21, %v449_v12 }
 0x147   : > { %v10017_v36 = vunpack.i.h.bf16 %v10015_v16  ;;  %v294_v48 = vsel %vm291_vm5, %v9991_v15, %v9992_v19  ;;  %v10016_v13 = vunpack.i.l.bf16 %v10015_v16  ;;  %v277_v39 = vsel %vm274_vm4, %v9986_v0, %v9987_v30 }
 0x148   : > { %9304 = vmatprep.subr.bf16.mxu0 %v9303_v32  ;;  %9312 = vmatprep.subr.bf16.mxu1 %v9311_v44  ;;  %v11503_v45 = vpop.permute.xlu0 %10029  ;;  %v9315_v56 = vpack.c.bf16 %v294_v48, %v277_v39  ;;  %v15006_v32 = vmov 0.0   ;;  %v9997_v44 = vunpack.i.h.bf16 %v11467_v33  ;;  %v9951_v48 = vunpack.i.l.bf16 %v11427_v53 }
 0x149   : > { %9306 = vmatpush1.bf16.msra.mxu0 %v9305_v25  ;;  %9314 = vmatpush1.bf16.msra.mxu1 %v9313_v28  ;;  %v278_v46 = vsel %vm274_vm4, %v10017_v36, %v9986_v0  ;;  %v9996_v28 = vunpack.i.l.bf16 %v11467_v33  ;;  %v276_v0 = vsel %vm274_vm4, %v9987_v30, %v10016_v13  ;;  %v9947_v33 = vunpack.i.h.bf16 %v11437_v59 }
 0x14a   : > { %v10020_v49 = vpop.permute.xlu1 %10019  ;;  %494 = vmatprep.subr.mxu0 %v453_v29  ;;  %v9942_v29 = vunpack.i.h.bf16 %v11421_v47  ;;  %v9946_v30 = vunpack.i.l.bf16 %v11437_v59 }
 0x14b   : > { %v10022_v17 = vunpack.i.h.bf16 %v10020_v49  ;;  %v10021_v35 = vunpack.i.l.bf16 %v10020_v49 }
 0x14c   : > { %v11520_v55 = vpop.permute.xlu0 %10039 }
 0x14d   : > { %v295_v20 = vsel %vm291_vm5, %v10022_v17, %v9991_v15  ;;  %495 = vmatpush1.msra.mxu0 %v454_v37  ;;  %v293_v18 = vsel %vm291_vm5, %v9992_v19, %v10021_v35  ;;  %v292_v21 = vsel %vm291_vm5, %v10021_v35, %v10022_v17  ;;  %v275_v19 = vsel %vm274_vm4, %v10016_v13, %v10017_v36 }
 0x14e   : > { %v451_v50 = vpop.permute.xlu1 %450  ;;  %9316 = vmatprep.subr.bf16.mxu0 %v9315_v56  ;;  %9219 = vmatmul.mubr.msk.f32.vlgmr.msra.gmra.mrb[0].mxu0 %vm482_vm8, %v461_v51  ;;  %v9317_v60 = vpack.c.bf16 %v295_v20, %v278_v46  ;;  %v9323_v25 = vpack.c.bf16 %v292_v21, %v275_v19  ;;  %v9952_v36 = vunpack.i.h.bf16 %v11427_v53  ;;  %v9957_v35 = vunpack.i.h.bf16 %v11441_v2 }
 0x14f   : > { %v455_v16 = vsel %vm329_vm7, %v451_v50, %v11443_v5  ;;  %v452_v15 = vsel %vm329_vm7, %v449_v12, %v451_v50  ;;  %695 = vmatprep.mubr.f32.mxu0 %v15006_v32  ;;  %v9325_v5 = vpack.c.bf16 %v293_v18, %v276_v0  ;;  %v9941_v12 = vunpack.i.l.bf16 %v11421_v47 }
 0x150   : > { %565 = vmatprep.subr.mxu1 %v455_v16  ;;  %9318 = vmatpush1.bf16.msra.mxu0 %v9317_v60  ;;  %v9956_v47 = vunpack.i.l.bf16 %v11441_v2  ;;  %v315_v53 = vsel %vm312_vm6, %v9996_v28, %v9997_v44  ;;  %v11549_v39 = vpop.permute.xlu0 %10049  ;;  %v9962_v50 = vunpack.i.h.bf16 %v11433_v57  ;;  %v799_v21 = vsel %vm291_vm5, %v9951_v48, %v9952_v36 }
 0x151   : > { %566 = vmatpush1.msra.mxu1 %v452_v15  ;;  %v783_v18 = vsel %vm274_vm4, %v9941_v12, %v9942_v29  ;;  %v9321_v60 = vpack.c.bf16 %v315_v53, %v11217_v22  ;;  %v781_v16 = vsel %vm274_vm4, %v9946_v30, %v9947_v33  ;;  %v9961_v15 = vunpack.i.l.bf16 %v11433_v57 }
 0x152   : > { %v10025_v49 = vpop.permute.xlu1 %10024  ;;  %9324 = vmatprep.subr.bf16.mxu1 %v9323_v25  ;;  %9220 = vmatmul.mubr.msk.f32.vlgmr.msra.gmra.mrb[0].mxu1 %vm482_vm8, %v461_v51  ;;  %v331_v22 = vsel %vm329_vm7, %v11465_v34, %v11485_v43  ;;  %v782_v19 = vsel %vm274_vm4, %v9942_v29, %v9946_v30  ;;  %v798_v0 = vsel %vm291_vm5, %v9952_v36, %v9956_v47 }
 0x153   : > { %v10027_v13 = vunpack.i.h.bf16 %v10025_v49  ;;  %v10026_v17 = vunpack.i.l.bf16 %v10025_v49  ;;  %9326 = vmatpush1.bf16.msra.mxu1 %v9325_v5  ;;  %766 = vmatprep.mubr.f32.mxu1 %v15006_v32  ;;  %v800_v25 = vsel %vm291_vm5, %v9957_v35, %v9951_v48  ;;  %v9331_v5 = vpack.c.bf16 %v799_v21, %v783_v18 }
 0x154   : > { %v332_v29 = vsel %vm329_vm7, %v11447_v7, %v11465_v34  ;;  %v819_v48 = vsel %vm312_vm6, %v9961_v15, %v9962_v50  ;;  %v10041_v34 = vunpack.i.l.bf16 %v11520_v55 }
 0x155   : > { %v313_v51 = vsel %vm312_vm6, %v10026_v17, %v10027_v13  ;;  %v314_v59 = vsel %vm312_vm6, %v9997_v44, %v10026_v17  ;;  %v316_v37 = vsel %vm312_vm6, %v10027_v13, %v9996_v28  ;;  %v11584_v44 = vpop.permute.xlu0 %1101  ;;  %v10042_v13 = vunpack.i.h.bf16 %v11520_v55 }
 0x156   : > { %v328_v56 = vpop.permute.xlu1 %327  ;;  %v9319_v46 = vpack.c.bf16 %v314_v59, %v11257_v38  ;;  %v9327_v20 = vpack.c.bf16 %v316_v37, %v11332_v63  ;;  %v9329_v2 = vpack.c.bf16 %v313_v51, %v11329_v62  ;;  %v9967_v38 = vunpack.i.h.bf16 %v11445_v6 }
 0x157   : > { %v9966_v63 = vunpack.i.l.bf16 %v11445_v6  ;;  %v797_v62 = vsel %vm291_vm5, %v9956_v47, %v9957_v35  ;;  %v333_v57 = vsel %vm329_vm7, %v328_v56, %v11447_v7  ;;  %v784_v6 = vsel %vm274_vm4, %v9947_v33, %v9941_v12  ;;  %v338_v33 = vld [vmem:[#allocation4] sm:$0xff] }
 0x158   : > { %9320 = vmatprep.subr.bf16.mxu0 %v9319_v46  ;;  %9328 = vmatprep.subr.bf16.mxu1 %v9327_v20  ;;  %v9339_v49 = vpack.c.bf16 %v797_v62, %v781_v16  ;;  %v330_v12 = vsel %vm329_vm7, %v11485_v43, %v328_v56  ;;  %v820_v36 = vsel %vm312_vm6, %v9967_v38, %v9961_v15  ;;  %v10032_v37 = vunpack.i.h.bf16 %v11503_v45 }
 0x159   : > { %9322 = vmatpush1.bf16.msra.mxu0 %v9321_v60  ;;  %9330 = vmatpush1.bf16.msra.mxu1 %v9329_v2  ;;  %v818_v30 = vsel %vm312_vm6, %v9962_v50, %v9966_v63  ;;  %v9333_v43 = vpack.c.bf16 %v800_v25, %v784_v6  ;;  %v9341_v17 = vpack.c.bf16 %v798_v0, %v782_v19  ;;  %v11613_v51 = vpop.permute.xlu0 %10059  ;;  %v10031_v56 = vunpack.i.l.bf16 %v11503_v45 }
 0x15a   : > { %v11586_v28 = vpop.permute.xlu1 %10034  ;;  %639 = vmatprep.subr.mxu0 %v331_v22  ;;  %710 = vmatprep.subr.mxu1 %v333_v57  ;;  %v817_v35 = vsel %vm312_vm6, %v9966_v63, %v9967_v38  ;;  %v9335_v47 = vpack.c.bf16 %v818_v30, %v11144_v3  ;;  %v9343_v53 = vpack.c.bf16 %v820_v36, %v15006_v32  ;;  %v10052_v45 = vunpack.i.h.bf16 %v11549_v39 }
 0x15b   : > { %v9337_v46 = vpack.c.bf16 %v819_v48, %v15006_v32  ;;  %v10037_v20 = vunpack.i.h.bf16 %v11586_v28  ;;  %v10036_v3 = vunpack.i.l.bf16 %v11586_v28  ;;  %v9345_v18 = vpack.c.bf16 %v817_v35, %v11150_v4 }
 0x15c   : > { %v1071_v50 = vsel %vm291_vm5, %v10041_v34, %v10042_v13  ;;  %v10051_v60 = vunpack.i.l.bf16 %v11549_v39  ;;  %v834_v4 = vsel %vm329_vm7, %v11449_v10, %v11439_v61  ;;  %v836_v15 = vsel %vm329_vm7, %v11453_v31, %v11435_v58 }
 0x15d   : > { %640 = vmatpush1.msra.mxu0 %v332_v29  ;;  %711 = vmatpush1.msra.mxu1 %v330_v12  ;;  %v835_v39 = vsel %vm329_vm7, %v11435_v58, %v11449_v10  ;;  %v833_v63 = vsel %vm329_vm7, %v11439_v61, %v11453_v31  ;;  %v1055_v62 = vsel %vm274_vm4, %v10031_v56, %v10032_v37  ;;  %v10070_v19 = vpop.permute.xlu0 %10069  ;;  %v842_v61 = vld [vmem:[#allocation4 + $0x10] sm:$0xff]  ;;  %v10062_v29 = vunpack.i.h.bf16 %v11613_v51 }
 0x15e   : > { %v10045_v7 = vpop.permute.xlu1 %10044  ;;  %9332 = vmatprep.subr.bf16.mxu0 %v9331_v5  ;;  %9340 = vmatprep.subr.bf16.mxu1 %v9339_v49  ;;  %v9347_v28 = vpack.c.bf16 %v1071_v50, %v1055_v62  ;;  %v1053_v58 = vsel %vm274_vm4, %v10036_v3, %v10037_v20  ;;  %v1091_v10 = vsel %vm312_vm6, %v10051_v60, %v10052_v45  ;;  %v10061_v12 = vunpack.i.l.bf16 %v11613_v51 }
 0x15f   : > { %9221 = vmatmul.mubr.msk.f32.vlgmr.msra.gmra.mrb[0].mxu0 %vm482_vm8, %v338_v33  ;;  %9222 = vmatmul.mubr.msk.f32.vlgmr.msra.gmra.mrb[0].mxu1 %vm482_vm8, %v338_v33  ;;  %v10047_v59 = vunpack.i.h.bf16 %v10045_v7  ;;  %v10046_v55 = vunpack.i.l.bf16 %v10045_v7  ;;  %v1054_v5 = vsel %vm274_vm4, %v10032_v37, %v10036_v3  ;;  %v1056_v49 = vsel %vm274_vm4, %v10037_v20, %v10031_v56 }
 0x160   : > { %9334 = vmatpush1.bf16.msra.mxu0 %v9333_v43  ;;  %9342 = vmatpush1.bf16.msra.mxu1 %v9341_v17  ;;  %v10072_v33 = vunpack.i.h.bf16 %v10070_v19  ;;  %v10071_v30 = vunpack.i.l.bf16 %v10070_v19  ;;  %v1105_v56 = vsel %vm329_vm7, %v11584_v44, %v11459_v52 }
 0x161   : > { %9336 = vmatprep.subr.bf16.mxu0 %v9335_v47  ;;  %9344 = vmatprep.subr.bf16.mxu1 %v9343_v53  ;;  %v1069_v38 = vsel %vm291_vm5, %v10046_v55, %v10047_v59  ;;  %v1070_v22 = vsel %vm291_vm5, %v10042_v13, %v10046_v55  ;;  %v1072_v57 = vsel %vm291_vm5, %v10047_v59, %v10041_v34  ;;  %v10080_v17 = vpop.permute.xlu0 %10079 }
 0x162   : > { %v10055_v2 = vpop.permute.xlu1 %10054  ;;  %930 = vmatprep.mubr.f32.mxu0 %v15006_v32  ;;  %1001 = vmatprep.mubr.f32.mxu1 %v15006_v32  ;;  %v9355_v0 = vpack.c.bf16 %v1069_v38, %v1053_v58  ;;  %v9349_v36 = vpack.c.bf16 %v1072_v57, %v1056_v49  ;;  %v9357_v48 = vpack.c.bf16 %v1070_v22, %v1054_v5  ;;  %v10081_v20 = vunpack.i.l.bf16 %v10080_v17 }
 0x163   : > { %v10057_v21 = vunpack.i.h.bf16 %v10055_v2  ;;  %v10056_v16 = vunpack.i.l.bf16 %v10055_v2  ;;  %v9353_v47 = vpack.c.bf16 %v1091_v10, %v11306_v54  ;;  %v1327_v59 = vsel %vm274_vm4, %v10061_v12, %v10062_v29 }
 0x164   : > { %9338 = vmatpush1.bf16.msra.mxu0 %v9337_v46  ;;  %9346 = vmatpush1.bf16.msra.mxu1 %v9345_v18  ;;  %v1343_v55 = vsel %vm291_vm5, %v10071_v30, %v10072_v33  ;;  %v10082_v46 = vunpack.i.h.bf16 %v10080_v17  ;;  %v1572_v5 = vsub.s32 5, %v11188_v8 }
 0x165   : > { %874 = vmatprep.subr.mxu0 %v834_v4  ;;  %945 = vmatprep.subr.mxu1 %v836_v15  ;;  %v1090_v31 = vsel %vm312_vm6, %v10052_v45, %v10056_v16  ;;  %v1092_v25 = vsel %vm312_vm6, %v10057_v21, %v10051_v60  ;;  %v1089_v13 = vsel %vm312_vm6, %v10056_v16, %v10057_v21  ;;  %v1114_v45 = vld [vmem:[#allocation4 + $0x18] sm:$0xff] }
 0x166   : > { %v1100_v6 = vpop.permute.xlu1 %1099  ;;  %v9351_v7 = vpack.c.bf16 %v1090_v31, %v11337_v1  ;;  %v9359_v43 = vpack.c.bf16 %v1092_v25, %v11262_v41  ;;  %v9361_v51 = vpack.c.bf16 %v1089_v13, %v11378_v27  ;;  %v1108_v1 = vsel %vm329_vm7, %v11459_v52, %v11469_v14 }
 0x167   : > { %v1106_v37 = vsel %vm329_vm7, %v1100_v6, %v11584_v44  ;;  %v9363_v2 = vpack.c.bf16 %v1343_v55, %v1327_v59  ;;  %v1370_v44 = vpop.permute.xlu0 %1369  ;;  %v1107_v16 = vsel %vm329_vm7, %v11469_v14, %v1100_v6  ;;  %v1363_v22 = vsel %vm312_vm6, %v10081_v20, %v10082_v46  ;;  %v15011_v59 = vld [vmem:[#allocation11_spill] sm:$0xff] }
 0x168   : > { %875 = vmatpush1.msra.mxu0 %v835_v39  ;;  %946 = vmatpush1.msra.mxu1 %v833_v63  ;;  %v9369_v10 = vpack.c.bf16 %v1363_v22, %v11372_v23  ;;  %v11761_v55 = vrot.slane %v15011_v59, %v1572_v5 }
 0x169   : > { %9348 = vmatprep.subr.bf16.mxu0 %v9347_v28  ;;  %9356 = vmatprep.subr.bf16.mxu1 %v9355_v0 }
 0x16a   : > { %9223 = vmatmul.mubr.msk.f32.vlgmr.msra.gmra.mrb[0].mxu0 %vm482_vm8, %v842_v61  ;;  %9224 = vmatmul.mubr.msk.f32.vlgmr.msra.gmra.mrb[0].mxu1 %vm482_vm8, %v842_v61  ;;  %v10065_v34 = vpop.permute.xlu1 %10064  ;;  %15012 = vst [vmem:[#allocation11_spill] sm:$0xff] %v11761_v55 }
 0x16b   : > { %9350 = vmatpush1.bf16.msra.mxu0 %v9349_v36  ;;  %9358 = vmatpush1.bf16.msra.mxu1 %v9357_v48  ;;  %v10067_v35 = vunpack.i.h.bf16 %v10065_v34  ;;  %v10066_v53 = vunpack.i.l.bf16 %v10065_v34  ;;  %v1374_v61 = vpop.permute.xlu0 %1373 }
 0x16c   : > { %9352 = vmatprep.subr.bf16.mxu0 %v9351_v7  ;;  %9360 = vmatprep.subr.bf16.mxu1 %v9359_v43 }
 0x16d   : > { %1202 = vmatprep.mubr.f32.mxu0 %v15006_v32  ;;  %1273 = vmatprep.mubr.f32.mxu1 %v15006_v32  ;;  %v1328_v3 = vsel %vm274_vm4, %v10067_v35, %v10061_v12  ;;  %v1325_v60 = vsel %vm274_vm4, %v10066_v53, %v10067_v35  ;;  %v1326_v21 = vsel %vm274_vm4, %v10062_v29, %v10066_v53 }
 0x16e   : > { %v10075_v41 = vpop.permute.xlu1 %10074 }
 0x16f   : > { %9354 = vmatpush1.bf16.msra.mxu0 %v9353_v47  ;;  %9362 = vmatpush1.bf16.msra.mxu1 %v9361_v51  ;;  %v10077_v54 = vunpack.i.h.bf16 %v10075_v41  ;;  %v10076_v27 = vunpack.i.l.bf16 %v10075_v41 }
 0x170   : > { %1146 = vmatprep.subr.mxu0 %v1106_v37  ;;  %1217 = vmatprep.subr.mxu1 %v1108_v1 }
 0x171   : > { %v1342_v18 = vsel %vm291_vm5, %v10072_v33, %v10076_v27  ;;  %v1344_v50 = vsel %vm291_vm5, %v10077_v54, %v10071_v30  ;;  %v1341_v52 = vsel %vm291_vm5, %v10076_v27, %v10077_v54  ;;  %v11735_v33 = vrot.slane %v11196_v11, %v1572_v5  ;;  %v15009_v11 = vld [vmem:[#allocation13_spill] sm:$0xff] }
 0x172   : > { %v10085_v4 = vpop.permute.xlu1 %10084  ;;  %v9365_v15 = vpack.c.bf16 %v1344_v50, %v1328_v3  ;;  %v9371_v38 = vpack.c.bf16 %v1341_v52, %v1325_v60  ;;  %v9373_v62 = vpack.c.bf16 %v1342_v18, %v1326_v21  ;;  %v11748_v35 = vrot.slane %v15009_v11, %v1572_v5  ;;  %v15014_v52 = vld [vmem:[#allocation14_spill] sm:$0xff] }
 0x173   : > { %1147 = vmatpush1.msra.mxu0 %v1107_v16  ;;  %1218 = vmatpush1.msra.mxu1 %v1105_v56  ;;  %v10087_v39 = vunpack.i.h.bf16 %v10085_v4  ;;  %v10086_v63 = vunpack.i.l.bf16 %v10085_v4  ;;  %15007 = vst [vmem:[#allocation25_spill] sm:$0xff] %v11735_v33  ;;  %v15022_v11 = vld [vmem:[#allocation18_spill] sm:$0xff] }
 0x174   : > { %9364 = vmatprep.subr.bf16.mxu0 %v9363_v2  ;;  %9225 = vmatmul.mubr.msk.f32.vlgmr.msra.gmra.mrb[0].mxu0 %vm482_vm8, %v1114_v45  ;;  %15010 = vst [vmem:[#allocation13_spill] sm:$0xff] %v11748_v35 }
 0x175   : > { %v1361_v57 = vsel %vm312_vm6, %v10086_v63, %v10087_v39  ;;  %9366 = vmatpush1.bf16.msra.mxu0 %v9365_v15  ;;  %9372 = vmatprep.subr.bf16.mxu1 %v9371_v38  ;;  %v1362_v14 = vsel %vm312_vm6, %v10082_v46, %v10086_v63  ;;  %v1364_v19 = vsel %vm312_vm6, %v10087_v39, %v10081_v20 }
 0x176   : > { %9226 = vmatmul.mubr.msk.f32.vlgmr.msra.gmra.mrb[0].mxu1 %vm482_vm8, %v1114_v45  ;;  %v1372_v6 = vpop.permute.xlu1 %1371  ;;  %v9367_v28 = vpack.c.bf16 %v1362_v14, %v11375_v26  ;;  %v9375_v58 = vpack.c.bf16 %v1364_v19, %v11409_v42  ;;  %1474 = vmatprep.mubr.f32.mxu0 %v15006_v32  ;;  %v9377_v0 = vpack.c.bf16 %v1361_v57, %v11406_v40  ;;  %v1386_v42 = vld [vmem:[#allocation4 + $0x20] sm:$0xff]  ;;  %v15013_v45 = vld [vmem:[#allocation9_spill] sm:$0xff] }
 0x177   : > { %9374 = vmatpush1.bf16.msra.mxu1 %v9373_v62  ;;  %1545 = vmatprep.mubr.f32.mxu1 %v15006_v32  ;;  %v1378_v31 = vsel %vm329_vm7, %v1372_v6, %v1374_v61  ;;  %v1379_v23 = vsel %vm329_vm7, %v1370_v44, %v1372_v6  ;;  %v15015_v62 = vld [vmem:[#allocation10_spill] sm:$0xff]  ;;  %v15016_v57 = vld [vmem:[#allocation17_spill] sm:$0xff] }
 0x178   : > { %9368 = vmatprep.subr.bf16.mxu0 %v9367_v28  ;;  %9376 = vmatprep.subr.bf16.mxu1 %v9375_v58 }
 0x179   : > { %9370 = vmatpush1.bf16.msra.mxu0 %v9369_v10  ;;  %v1560_v49 = vpop.permute.xlu0 %1559 }
 0x17a   : > { %v1376_v25 = vpop.permute.xlu1 %1375  ;;  %1418 = vmatprep.subr.mxu0 %v1378_v31  ;;  %v15018_v31 = vld [vmem:[#allocation19_spill] sm:$0xff] }
 0x17b   : > { %9378 = vmatpush1.bf16.msra.mxu1 %v9377_v0  ;;  %v1380_v26 = vsel %vm329_vm7, %v1376_v25, %v1370_v44  ;;  %v1377_v40 = vsel %vm329_vm7, %v1374_v61, %v1376_v25  ;;  %v15017_v0 = vld [vmem:[#allocation16_spill] sm:$0xff] }
 0x17c   : > { %1489 = vmatprep.subr.mxu1 %v1380_v26  ;;  %v15019_v26 = vld [vmem:[#allocation7_spill] sm:$0xff] }
 0x17d   : > { %1419 = vmatpush1.msra.mxu0 %v1379_v23 }
 0x17e   : > { %9227 = vmatmul.mubr.msk.f32.vlgmr.msra.gmra.mrb[0].mxu0 %vm482_vm8, %v1386_v42 }
 0x17f   : > { %1490 = vmatpush1.msra.mxu1 %v1377_v40  ;;  %1869 = vmatprep.mubr.f32.mxu0 %v15006_v32 }
 0x180   : > { %9228 = vmatmul.mubr.msk.f32.vlgmr.msra.gmra.mrb[0].mxu1 %vm482_vm8, %v1386_v42 }
 0x181   : > { %1939 = vmatprep.mubr.f32.mxu1 %v15006_v32  ;;  %v11741_v32 = vrot.slane %v11224_v24, %v1572_v5 }
 0x183   : > { %15008 = vst [vmem:[#allocation26_spill] sm:$0xff] %v11741_v32 }
 0x251   : > { %v1476_v29 = vpop.f32.mrb[0].mxu0 }
 0x252   : > { %v1562_v12 = vadd.f32 %v1560_v49, %v1476_v29  ;;  %v1478_v30 = vpop.f32.mrb[1].mxu0 }
 0x253   : > { %v1547_v36 = vpop.f32.mrb[0].mxu1  ;;  %v1563_v48 = vadd.f32 %v1560_v49, %v1478_v30 }
 0x254   : > { %v1566_v13 = vmax.f32 %v1562_v12, 0.0  ;;  %v1549_v34 = vpop.f32.mrb[1].mxu1  ;;  %v1564_v43 = vadd.f32 %v1560_v49, %v1547_v36 }
 0x255   : > { %v1567_v17 = vmax.f32 %v1563_v48, 0.0  ;;  %v1565_v53 = vadd.f32 %v1560_v49, %v1549_v34  ;;  %v15020_v49 = vld [vmem:[#allocation15_spill] sm:$0xff] }
 0x256   : > { %v11738_v7 = vmul.f32 %v11735_v33, %v1566_v13  ;;  %v1568_v8 = vmax.f32 %v1564_v43, 0.0  ;;  %v15021_v13 = vld [vmem:[#allocation8_spill] sm:$0xff] }
 0x257   : > { %v11751_v47 = vmul.f32 %v11741_v32, %v1567_v17  ;;  %v1569_v51 = vmax.f32 %v1565_v53, 0.0 }
 0x258   : > { %1590 = vrot.lane.b32.xlu0 %v11738_v7, %s11041_s8  ;;  %1696 = vrot.lane.b32.xlu1 %v11738_v7, %s11040_s7  ;;  %v11758_v24 = vmul.f32 %v11748_v35, %v1568_v8 }
 0x259   : > { %v11768_v41 = vmul.f32 %v11761_v55, %v1569_v51  ;;  %v10089_v1 = vpack.i.bf16 %v11751_v47, %v11738_v7 }
 0x25a   : > { %v10099_v54 = vpack.i.bf16 %v11758_v24, %v11751_v47 }
 0x25b   : > { %v10104_v27 = vpack.i.bf16 %v11768_v41, %v11758_v24  ;;  %v10114_v37 = vpack.i.bf16 %v11768_v41, %v11738_v7 }
 0x25c   : > { %2323 = vrot.lane.b32.xlu0 %v11738_v7, %s11042_s13  ;;  %1698 = vrot.lane.b32.xlu1 %v11751_v47, %s11040_s7 }
 0x260   : > { %2327 = vrot.lane.b32.xlu0 %v11758_v24, %s11042_s13  ;;  %1700 = vrot.lane.b32.xlu1 %v11758_v24, %s11040_s7 }
 0x264   : > { %1702 = vrot.lane.b32.xlu0 %v11768_v41, %s11040_s7  ;;  %1592 = vrot.lane.b32.xlu1 %v11751_v47, %s11041_s8 }
 0x268   : > { %2574 = vrot.lane.b32.xlu0 %v11738_v7, %s11043_s14  ;;  %1594 = vrot.lane.b32.xlu1 %v11758_v24, %s11041_s8 }
 0x26c   : > { %1596 = vrot.lane.b32.xlu0 %v11768_v41, %s11041_s8  ;;  %2325 = vrot.lane.b32.xlu1 %v11751_v47, %s11042_s13 }
 0x270   : > { %2578 = vrot.lane.b32.xlu0 %v11758_v24, %s11043_s14  ;;  %2576 = vrot.lane.b32.xlu1 %v11751_v47, %s11043_s14 }
 0x274   : > { %10090 = vrot.lane.b32.xlu0 %v10089_v1, %s11044_s17  ;;  %10095 = vrot.lane.b32.xlu1 %v10089_v1, %s11045_s18 }
 0x278   : > { %10100 = vrot.lane.b32.xlu0 %v10099_v54, %s11046_s19  ;;  %2144 = vrot.lane.b32.xlu1 %v11758_v24, %s11047_s20 }
 0x27c   : > { %2142 = vrot.lane.b32.xlu0 %v11751_v47, %s11047_s20  ;;  %2329 = vrot.lane.b32.xlu1 %v11768_v41, %s11042_s13 }
 0x280   : > { %2140 = vrot.lane.b32.xlu0 %v11738_v7, %s11047_s20  ;;  %2580 = vrot.lane.b32.xlu1 %v11768_v41, %s11043_s14 }
 0x284   : > { %10105 = vrot.lane.b32.xlu0 %v10104_v27, %s11044_s17  ;;  %10110 = vrot.lane.b32.xlu1 %v10104_v27, %s11045_s18 }
 0x288   : > { %10115 = vrot.lane.b32.xlu1 %v10114_v37, %s11046_s19 }
 0x28c   : > { %2146 = vrot.lane.b32.xlu1 %v11768_v41, %s11047_s20 }
 0x2ca   : > { %v1591_v56 = vpop.permute.xlu0 %1590  ;;  %v1697_v46 = vpop.permute.xlu1 %1696 }
 0x2ce   : > { %v1699_v20 = vpop.permute.xlu1 %1698  ;;  %v11812_v3 = vpop.permute.xlu0 %2323 }
 0x2cf   : > { %v1706_v2 = vsel %vm367_vm0, %v1697_v46, %v1699_v20 }
 0x2d0   : > { %v11819_v60 = vmul.f32 %v1706_v2, %v15013_v45  ;;  %v15024_v2 = vld [vmem:[#allocation21_spill] sm:$0xff] }
 0x2d2   : > { %v1701_v18 = vpop.permute.xlu1 %1700  ;;  %v11824_v21 = vpop.permute.xlu0 %2327 }
 0x2d3   : > { %v1705_v50 = vsel %vm367_vm0, %v1699_v20, %v1701_v18 }
 0x2d4   : > { %v11822_v44 = vmul.f32 %v1705_v50, %v15014_v52 }
 0x2d6   : > { %1768 = vrot.lane.b32.xlu1 %v11822_v44, %s11047_s20  ;;  %v1593_v16 = vpop.permute.xlu1 %1592  ;;  %v10119_v4 = vpack.i.bf16 %v11822_v44, %v11819_v60  ;;  %v1703_v63 = vpop.permute.xlu0 %1702 }
 0x2d7   : > { %v1600_v15 = vsel %vm241_vm1, %v1591_v56, %v1593_v16  ;;  %v1707_v28 = vsel %vm367_vm0, %v1703_v63, %v1697_v46  ;;  %v1704_v5 = vsel %vm367_vm0, %v1701_v18, %v1703_v63  ;;  %v15023_v46 = vld [vmem:[#allocation20_spill] sm:$0xff] }
 0x2d8   : > { %10120 = vrot.lane.b32.xlu0 %v10119_v4, %s11046_s19  ;;  %v11836_v22 = vmul.f32 %v1600_v15, %v15015_v62  ;;  %v11863_v42 = vmul.f32 %v1707_v28, %v15019_v26  ;;  %v11873_v29 = vmul.f32 %v1704_v5, %v15020_v49  ;;  %v15027_v5 = vld [vmem:[#allocation23_spill] sm:$0xff] }
 0x2da   : > { %v1595_v38 = vpop.permute.xlu1 %1594  ;;  %v2575_v23 = vpop.permute.xlu0 %2574  ;;  %v10144_v12 = vpack.i.bf16 %v11819_v60, %v11863_v42  ;;  %v10154_v36 = vpack.i.bf16 %v11873_v29, %v11822_v44  ;;  %v10159_v17 = vpack.i.bf16 %v11873_v29, %v11863_v42 }
 0x2db   : > { %v1599_v39 = vsel %vm241_vm1, %v1593_v16, %v1595_v38 }
 0x2dc   : > { %v11839_v14 = vmul.f32 %v1599_v39, %v15016_v57  ;;  %1766 = vrot.lane.b32.xlu0 %v11819_v60, %s11047_s20  ;;  %v15025_v39 = vld [vmem:[#allocation22_spill] sm:$0xff] }
 0x2de   : > { %1662 = vrot.lane.b32.xlu1 %v11839_v14, %s11047_s20  ;;  %v2326_v19 = vpop.permute.xlu1 %2325  ;;  %v10124_v6 = vpack.i.bf16 %v11839_v14, %v11836_v22  ;;  %v1597_v30 = vpop.permute.xlu0 %1596 }
 0x2df   : > { %v2332_v58 = vsel %vm1020_vm2, %v2326_v19, %v11824_v21  ;;  %v2333_v10 = vsel %vm1020_vm2, %v11812_v3, %v2326_v19  ;;  %v1601_v48 = vsel %vm241_vm1, %v1597_v30, %v1591_v56  ;;  %v1598_v8 = vsel %vm241_vm1, %v1595_v38, %v1597_v30  ;;  %v15026_v19 = vld [vmem:[#allocation12_spill] sm:$0xff] }
 0x2e0   : > { %v11856_v61 = vmul.f32 %v2333_v10, %v15017_v0  ;;  %v11859_v25 = vmul.f32 %v2332_v58, %v15018_v31  ;;  %10125 = vrot.lane.b32.xlu0 %v10124_v6, %s11046_s19  ;;  %v11886_v34 = vmul.f32 %v1601_v48, %v15021_v13  ;;  %v11895_v53 = vmul.f32 %v1598_v8, %v15022_v11  ;;  %v15028_v30 = vld [vmem:[#allocation24_spill] sm:$0xff]  ;;  %v11995_v8 = vld [vmem:[#allocation2 + $0x18] sm:$0xff] }
 0x2e2   : > { %v10134_v40 = vpack.i.bf16 %v11859_v25, %v11856_v61  ;;  %v2577_v43 = vpop.permute.xlu1 %2576  ;;  %v10169_v51 = vpack.i.bf16 %v11836_v22, %v11886_v34  ;;  %v10179_v1 = vpack.i.bf16 %v11895_v53, %v11839_v14  ;;  %v2579_v54 = vpop.permute.xlu0 %2578  ;;  %v10184_v50 = vpack.i.bf16 %v11895_v53, %v11886_v34 }
 0x2e3   : > { %v2583_v37 = vsel %vm1292_vm3, %v2577_v43, %v2579_v54  ;;  %v2584_v56 = vsel %vm1292_vm3, %v2575_v23, %v2577_v43 }
 0x2e4   : > { %1660 = vrot.lane.b32.xlu0 %v11836_v22, %s11047_s20  ;;  %10135 = vrot.lane.b32.xlu1 %v10134_v40, %s11045_s18  ;;  %v11918_v20 = vmul.f32 %v2584_v56, %v15023_v46  ;;  %v11921_v18 = vmul.f32 %v2583_v37, %v15024_v2 }
 0x2e6   : > { %v11899_v59 = vpop.permute.xlu1 %10095  ;;  %v10194_v4 = vpack.i.bf16 %v11921_v18, %v11918_v20 }
 0x2e8   : > { %10145 = vrot.lane.b32.xlu1 %v10144_v12, %s11045_s18  ;;  %10130 = vrot.lane.b32.xlu0 %v10134_v40, %s11044_s17 }
 0x2ea   : > { %v11907_v27 = vpop.permute.xlu1 %2144 }
 0x2ec   : > { %10155 = vrot.lane.b32.xlu1 %v10154_v36, %s11045_s18  ;;  %10140 = vrot.lane.b32.xlu0 %v10144_v12, %s11044_s17 }
 0x2ee   : > { %v2330_v16 = vpop.permute.xlu1 %2329 }
 0x2ef   : > { %v2331_v15 = vsel %vm1020_vm2, %v11824_v21, %v2330_v16  ;;  %v2334_v38 = vsel %vm1020_vm2, %v2330_v16, %v11812_v3 }
 0x2f0   : > { %10160 = vrot.lane.b32.xlu1 %v10159_v17, %s11046_s19  ;;  %10150 = vrot.lane.b32.xlu0 %v10154_v36, %s11044_s17  ;;  %v11940_v63 = vmul.f32 %v2331_v15, %v15025_v39  ;;  %v11943_v6 = vmul.f32 %v2334_v38, %v15026_v19  ;;  %v9239_v17 = vld [vmem:[%s14922_s2 + $0x8] sm:$0xff] }
 0x2f2   : > { %v10204_v21 = vpack.i.bf16 %v11943_v6, %v11940_v63  ;;  %v2581_v3 = vpop.permute.xlu1 %2580  ;;  %v10214_v28 = vpack.i.bf16 %v11943_v6, %v11856_v61  ;;  %v10209_v58 = vpack.i.bf16 %v11940_v63, %v11859_v25 }
 0x2f3   : > { %v2582_v10 = vsel %vm1292_vm3, %v2579_v54, %v2581_v3  ;;  %v2585_v40 = vsel %vm1292_vm3, %v2581_v3, %v2575_v23 }
 0x2f4   : > { %10170 = vrot.lane.b32.xlu1 %v10169_v51, %s11045_s18  ;;  %10165 = vrot.lane.b32.xlu0 %v10169_v51, %s11044_s17  ;;  %v11963_v12 = vmul.f32 %v2582_v10, %v15027_v5  ;;  %v11966_v36 = vmul.f32 %v2585_v40, %v15028_v30  ;;  %v12001_v51 = vpop.permute.xlu0 %10090 }
 0x2f6   : > { %v10219_v48 = vpack.i.bf16 %v11966_v36, %v11963_v12  ;;  %v10229_v23 = vpack.i.bf16 %v11963_v12, %v11921_v18  ;;  %v10234_v43 = vpack.i.bf16 %v11966_v36, %v11918_v20  ;;  %v12019_v37 = vpop.permute.xlu1 %10110 }
 0x2f8   : > { %10180 = vrot.lane.b32.xlu1 %v10179_v1, %s11045_s18  ;;  %10175 = vrot.lane.b32.xlu0 %v10179_v1, %s11044_s17  ;;  %v12007_v1 = vpop.permute.xlu0 %10100 }
 0x2fc   : > { %1770 = vrot.lane.b32.xlu1 %v11873_v29, %s11047_s20  ;;  %1764 = vrot.lane.b32.xlu0 %v11863_v42, %s11047_s20  ;;  %v12017_v54 = vpop.permute.xlu0 %2142 }
 0x300   : > { %10185 = vrot.lane.b32.xlu1 %v10184_v50, %s11046_s19  ;;  %2393 = vrot.lane.b32.xlu0 %v11859_v25, %s11047_s20  ;;  %v12021_v56 = vpop.permute.xlu0 %2140  ;;  %v12023_v50 = vpop.permute.xlu1 %10115 }
 0x304   : > { %1658 = vrot.lane.b32.xlu0 %v11886_v34, %s11047_s20  ;;  %10195 = vrot.lane.b32.xlu1 %v10194_v4, %s11045_s18  ;;  %v12025_v16 = vpop.permute.xlu0 %10105 }
 0x308   : > { %1664 = vrot.lane.b32.xlu1 %v11895_v53, %s11047_s20  ;;  %10190 = vrot.lane.b32.xlu0 %v10194_v4, %s11044_s17  ;;  %v12027_v4 = vpop.permute.xlu1 %2146 }
 0x30c   : > { %10205 = vrot.lane.b32.xlu1 %v10204_v21, %s11045_s18  ;;  %10200 = vrot.lane.b32.xlu0 %v10204_v21, %s11044_s17 }
 0x310   : > { %10215 = vrot.lane.b32.xlu1 %v10214_v28, %s11046_s19  ;;  %10210 = vrot.lane.b32.xlu0 %v10209_v58, %s11046_s19 }
 0x314   : > { %2395 = vrot.lane.b32.xlu1 %v11940_v63, %s11047_s20  ;;  %2391 = vrot.lane.b32.xlu0 %v11856_v61, %s11047_s20 }
 0x318   : > { %2397 = vrot.lane.b32.xlu1 %v11943_v6, %s11047_s20  ;;  %10220 = vrot.lane.b32.xlu0 %v10219_v48, %s11044_s17 }
 0x31c   : > { %10225 = vrot.lane.b32.xlu1 %v10219_v48, %s11045_s18  ;;  %10230 = vrot.lane.b32.xlu0 %v10229_v23, %s11046_s19 }
 0x320   : > { %10235 = vrot.lane.b32.xlu1 %v10234_v43, %s11046_s19  ;;  %2644 = vrot.lane.b32.xlu0 %v11921_v18, %s11047_s20 }
 0x324   : > { %2646 = vrot.lane.b32.xlu1 %v11963_v12, %s11047_s20  ;;  %2642 = vrot.lane.b32.xlu0 %v11918_v20, %s11047_s20 }
 0x328   : > { %2648 = vrot.lane.b32.xlu1 %v11966_v36, %s11047_s20  ;;  %2829 = vperm.xlu0 %10088, %v9239_v17  }
 0x32c   : > { %2950 = vrot.lane.b32.xlu1 %v11995_v8, %s11040_s7  ;;  %2956 = vrot.lane.b32.xlu0 %v11995_v8, %s11040_s7 }
 0x330   : > { %2844 = vrot.lane.b32.xlu1 %v11995_v8, %s11041_s8  ;;  %2850 = vrot.lane.b32.xlu0 %v11995_v8, %s11041_s8 }
 0x334   : > { %3585 = vrot.lane.b32.xlu1 %v11995_v8, %s11042_s13  ;;  %3591 = vrot.lane.b32.xlu0 %v11995_v8, %s11042_s13 }
 0x338   : > { %3840 = vrot.lane.b32.xlu1 %v11995_v8, %s11043_s14  ;;  %3846 = vrot.lane.b32.xlu0 %v11995_v8, %s11043_s14 }
 0x348   : > { %v12029_v38 = vpop.permute.xlu1 %1768 }
 0x34a   : > { %v10121_v15 = vpop.permute.xlu0 %10120 }
 0x34b   : > { %v10123_v23 = vunpack.i.h.bf16 %v10121_v15  ;;  %v10122_v43 = vunpack.i.l.bf16 %v10121_v15 }
 0x34d   : > { %v1757_v0 = vsel %vm312_vm6, %v10122_v43, %v10123_v23 }
 0x34e   : > { %v12031_v21 = vpop.permute.xlu0 %1766  ;;  %v9383_v11 = vpack.c.bf16 %v1757_v0, %v11819_v60 }
 0x350   : > { %v12033_v3 = vpop.permute.xlu1 %1662 }
 0x352   : > { %v12035_v28 = vpop.permute.xlu0 %10125 }
 0x356   : > { %v12037_v58 = vpop.permute.xlu0 %1660  ;;  %v12039_v10 = vpop.permute.xlu1 %10135 }
 0x35a   : > { %v12041_v40 = vpop.permute.xlu0 %10130  ;;  %v10146_v48 = vpop.permute.xlu1 %10145 }
 0x35b   : > { %v10148_v17 = vunpack.i.h.bf16 %v10146_v48  ;;  %v10147_v55 = vunpack.i.l.bf16 %v10146_v48 }
 0x35d   : > { %v1738_v31 = vsel %vm291_vm5, %v10147_v55, %v10148_v17 }
 0x35e   : > { %v10141_v32 = vpop.permute.xlu0 %10140  ;;  %v10156_v35 = vpop.permute.xlu1 %10155 }
 0x35f   : > { %v10143_v33 = vunpack.i.h.bf16 %v10141_v32  ;;  %v10142_v30 = vunpack.i.l.bf16 %v10141_v32  ;;  %v10158_v5 = vunpack.i.h.bf16 %v10156_v35  ;;  %v10157_v2 = vunpack.i.l.bf16 %v10156_v35 }
 0x361   : > { %v1722_v46 = vsel %vm274_vm4, %v10142_v30, %v10143_v33  ;;  %v1737_v32 = vsel %vm291_vm5, %v10148_v17, %v10157_v2  ;;  %v1739_v35 = vsel %vm291_vm5, %v10158_v5, %v10147_v55 }
 0x362   : > { %v10151_v57 = vpop.permute.xlu0 %10150  ;;  %v10161_v52 = vpop.permute.xlu1 %10160  ;;  %v9379_v15 = vpack.c.bf16 %v1738_v31, %v1722_v46 }
 0x363   : > { %v10153_v39 = vunpack.i.h.bf16 %v10151_v57  ;;  %v10152_v48 = vunpack.i.l.bf16 %v10151_v57  ;;  %v10163_v19 = vunpack.i.h.bf16 %v10161_v52  ;;  %v10162_v62 = vunpack.i.l.bf16 %v10161_v52 }
 0x364   : > { %9380 = vmatprep.subr.bf16.mxu0 %v9379_v15  ;;  %v1736_v52 = vsel %vm291_vm5, %v10157_v2, %v10158_v5  ;;  %v10127_v2 = vunpack.i.l.bf16 %v12035_v28 }
 0x365   : > { %v1721_v45 = vsel %vm274_vm4, %v10143_v33, %v10152_v48  ;;  %v1723_v49 = vsel %vm274_vm4, %v10153_v39, %v10142_v30  ;;  %v1758_v57 = vsel %vm312_vm6, %v10162_v62, %v10122_v43  ;;  %v1720_v55 = vsel %vm274_vm4, %v10152_v48, %v10153_v39 }
 0x366   : > { %v10166_v31 = vpop.permute.xlu0 %10165  ;;  %v10171_v46 = vpop.permute.xlu1 %10170  ;;  %v9381_v17 = vpack.c.bf16 %v1739_v35, %v1723_v49  ;;  %v9389_v15 = vpack.c.bf16 %v1737_v32, %v1721_v45  ;;  %v1759_v60 = vsel %vm312_vm6, %v10163_v19, %v10162_v62  ;;  %v9387_v26 = vpack.c.bf16 %v1736_v52, %v1720_v55 }
 0x367   : > { %v10168_v33 = vunpack.i.h.bf16 %v10166_v31  ;;  %v10167_v0 = vunpack.i.l.bf16 %v10166_v31  ;;  %v10173_v13 = vunpack.i.h.bf16 %v10171_v46  ;;  %v10172_v30 = vunpack.i.l.bf16 %v10171_v46 }
 0x368   : > { %9382 = vmatpush1.bf16.msra.mxu0 %v9381_v17  ;;  %v10128_v43 = vunpack.i.h.bf16 %v12035_v28  ;;  %v1756_v49 = vsel %vm312_vm6, %v10123_v23, %v10163_v19  ;;  %9388 = vmatprep.subr.bf16.mxu1 %v9387_v26  ;;  %v9391_v5 = vpack.c.bf16 %v1759_v60, %v11873_v29  ;;  %v9385_v62 = vpack.c.bf16 %v1758_v57, %v11863_v42 }
 0x369   : > { %9384 = vmatprep.subr.bf16.mxu0 %v9383_v11  ;;  %v1616_v48 = vsel %vm274_vm4, %v10167_v0, %v10168_v33  ;;  %v1632_v32 = vsel %vm291_vm5, %v10172_v30, %v10173_v13  ;;  %9390 = vmatpush1.bf16.msra.mxu1 %v9389_v15  ;;  %v10093_v11 = vunpack.i.h.bf16 %v12001_v51  ;;  %v10092_v26 = vunpack.i.l.bf16 %v12001_v51 }
 0x36a   : > { %v10176_v39 = vpop.permute.xlu0 %10175  ;;  %v10181_v45 = vpop.permute.xlu1 %10180  ;;  %9392 = vmatprep.subr.bf16.mxu1 %v9391_v5  ;;  %v1773_v42 = vsel %vm329_vm7, %v12031_v21, %v12029_v38  ;;  %v10098_v29 = vunpack.i.h.bf16 %v11899_v59  ;;  %v9393_v57 = vpack.c.bf16 %v1756_v49, %v11822_v44  ;;  %v10097_v17 = vunpack.i.l.bf16 %v11899_v59 }
 0x36b   : > { %v10178_v35 = vunpack.i.h.bf16 %v10176_v39  ;;  %v10177_v52 = vunpack.i.l.bf16 %v10176_v39  ;;  %v10183_v31 = vunpack.i.h.bf16 %v10181_v45  ;;  %v10182_v46 = vunpack.i.l.bf16 %v10181_v45  ;;  %v1781_v45 = vld [vmem:[#allocation4 + $0x30] sm:$0xff] }
 0x36c   : > { %9386 = vmatpush1.bf16.msra.mxu0 %v9385_v62  ;;  %v9395_v39 = vpack.c.bf16 %v1632_v32, %v1616_v48 }
 0x36d   : > { %v1617_v19 = vsel %vm274_vm4, %v10178_v35, %v10167_v0  ;;  %v1633_v23 = vsel %vm291_vm5, %v10183_v31, %v10172_v30  ;;  %1813 = vmatprep.subr.mxu0 %v1773_v42  ;;  %v1615_v55 = vsel %vm274_vm4, %v10168_v33, %v10177_v52  ;;  %v1651_v0 = vsel %vm312_vm6, %v10127_v2, %v10128_v43 }
 0x36e   : > { %v1765_v15 = vpop.permute.xlu0 %1764  ;;  %v1771_v60 = vpop.permute.xlu1 %1770  ;;  %9394 = vmatpush1.bf16.msra.mxu1 %v9393_v57  ;;  %v1614_v33 = vsel %vm274_vm4, %v10177_v52, %v10178_v35  ;;  %v1630_v49 = vsel %vm291_vm5, %v10182_v46, %v10183_v31  ;;  %v1631_v5 = vsel %vm291_vm5, %v10173_v13, %v10182_v46  ;;  %v9397_v48 = vpack.c.bf16 %v1633_v23, %v1617_v19 }
 0x36f   : > { %v1774_v44 = vsel %vm329_vm7, %v1765_v15, %v12031_v21  ;;  %v1775_v30 = vsel %vm329_vm7, %v1771_v60, %v1765_v15  ;;  %v1772_v62 = vsel %vm329_vm7, %v12029_v38, %v1771_v60  ;;  %v9399_v21 = vpack.c.bf16 %v1651_v0, %v11836_v22 }
 0x370   : > { %1814 = vmatpush1.msra.mxu0 %v1774_v44  ;;  %1883 = vmatprep.subr.mxu1 %v1775_v30  ;;  %v9403_v52 = vpack.c.bf16 %v1630_v49, %v1614_v33  ;;  %v2098_v13 = vsel %vm274_vm4, %v10092_v26, %v10093_v11  ;;  %v9405_v46 = vpack.c.bf16 %v1631_v5, %v1615_v55  ;;  %v10103_v42 = vunpack.i.h.bf16 %v12007_v1 }
 0x371   : > { %9396 = vmatprep.subr.bf16.mxu0 %v9395_v39  ;;  %9229 = vmatmul.mubr.msk.f32.vlgmr.msra.gmra.mrb[2].mxu0 %vm482_vm8, %v1781_v45  ;;  %v2114_v22 = vsel %vm291_vm5, %v10097_v17, %v10098_v29  ;;  %v10102_v19 = vunpack.i.l.bf16 %v12007_v1  ;;  %v10108_v23 = vunpack.i.h.bf16 %v12025_v16  ;;  %v10107_v57 = vunpack.i.l.bf16 %v12025_v16 }
 0x372   : > { %v12113_v32 = vpop.permute.xlu0 %2393  ;;  %v10186_v35 = vpop.permute.xlu1 %10185  ;;  %9398 = vmatpush1.bf16.msra.mxu0 %v9397_v48  ;;  %2012 = vmatprep.mubr.f32.mxu0 %v11995_v8  ;;  %v10113_v15 = vunpack.i.h.bf16 %v12019_v37  ;;  %v10112_v16 = vunpack.i.l.bf16 %v12019_v37  ;;  %v10118_v44 = vunpack.i.h.bf16 %v12023_v50  ;;  %v1667_v37 = vsel %vm329_vm7, %v12037_v58, %v12033_v3  ;;  %v1675_v48 = vld [vmem:[#allocation4 + $0x28] sm:$0xff] }
 0x373   : > { %1884 = vmatpush1.msra.mxu1 %v1772_v62  ;;  %v10188_v38 = vunpack.i.h.bf16 %v10186_v35  ;;  %v10187_v31 = vunpack.i.l.bf16 %v10186_v35  ;;  %9400 = vmatprep.subr.bf16.mxu0 %v9399_v21 }
 0x374   : > { %9404 = vmatprep.subr.bf16.mxu1 %v9403_v52  ;;  %9230 = vmatmul.mubr.msk.f32.vlgmr.msra.gmra.mrb[2].mxu1 %vm482_vm8, %v1781_v45  ;;  %v2115_v30 = vsel %vm291_vm5, %v10113_v15, %v10097_v17  ;;  %v2112_v5 = vsel %vm291_vm5, %v10112_v16, %v10113_v15  ;;  %v2113_v51 = vsel %vm291_vm5, %v10098_v29, %v10112_v16  ;;  %v10133_v52 = vunpack.i.h.bf16 %v12041_v40 }
 0x375   : > { %v1650_v55 = vsel %vm312_vm6, %v10128_v43, %v10188_v38  ;;  %v1652_v60 = vsel %vm312_vm6, %v10187_v31, %v10127_v2  ;;  %9406 = vmatpush1.bf16.msra.mxu1 %v9405_v46  ;;  %v1653_v1 = vsel %vm312_vm6, %v10188_v38, %v10187_v31  ;;  %2082 = vmatprep.mubr.f32.mxu1 %v11995_v8  ;;  %v10117_v2 = vunpack.i.l.bf16 %v12023_v50 }
 0x376   : > { %v1659_v39 = vpop.permute.xlu0 %1658  ;;  %v12144_v45 = vpop.permute.xlu1 %10195  ;;  %v9401_v0 = vpack.c.bf16 %v1652_v60, %v11886_v34  ;;  %v9407_v43 = vpack.c.bf16 %v1653_v1, %v11895_v53  ;;  %v9409_v28 = vpack.c.bf16 %v1650_v55, %v11839_v14  ;;  %v2097_v34 = vsel %vm274_vm4, %v10093_v11, %v10107_v57 }
 0x377   : > { %v9411_v53 = vpack.c.bf16 %v2114_v22, %v2098_v13  ;;  %v2133_v14 = vsel %vm312_vm6, %v10102_v19, %v10103_v42  ;;  %v2099_v50 = vsel %vm274_vm4, %v10108_v23, %v10092_v26  ;;  %v2096_v11 = vsel %vm274_vm4, %v10107_v57, %v10108_v23 }
 0x378   : > { %9402 = vmatpush1.bf16.msra.mxu0 %v9401_v0  ;;  %9408 = vmatprep.subr.bf16.mxu1 %v9407_v43  ;;  %v1668_v26 = vsel %vm329_vm7, %v1659_v39, %v12037_v58  ;;  %v2135_v59 = vsel %vm312_vm6, %v10118_v44, %v10117_v2  ;;  %v9413_v29 = vpack.c.bf16 %v2115_v30, %v2099_v50  ;;  %v10132_v13 = vunpack.i.l.bf16 %v12041_v40 }
 0x379   : > { %1956 = vmatprep.subr.mxu0 %v1667_v37  ;;  %9410 = vmatpush1.bf16.msra.mxu1 %v9409_v28  ;;  %v9419_v21 = vpack.c.bf16 %v2112_v5, %v2096_v11  ;;  %v9415_v35 = vpack.c.bf16 %v2133_v14, %v11751_v47  ;;  %v2134_v58 = vsel %vm312_vm6, %v10117_v2, %v10102_v19  ;;  %v10138_v22 = vunpack.i.h.bf16 %v12039_v10  ;;  %v2157_v11 = vld [vmem:[#allocation4 + $0x38] sm:$0xff] }
 0x37a   : > { %v12167_v33 = vpop.permute.xlu0 %10190  ;;  %v1665_v49 = vpop.permute.xlu1 %1664  ;;  %v9421_v31 = vpack.c.bf16 %v2113_v51, %v2097_v34  ;;  %v2132_v46 = vsel %vm312_vm6, %v10103_v42, %v10118_v44  ;;  %v9423_v47 = vpack.c.bf16 %v2135_v59, %v11768_v41  ;;  %v10137_v19 = vunpack.i.l.bf16 %v12039_v10 }
 0x37b   : > { %v1669_v17 = vsel %vm329_vm7, %v1665_v49, %v1659_v39  ;;  %v1666_v62 = vsel %vm329_vm7, %v12033_v3, %v1665_v49  ;;  %v2149_v40 = vsel %vm329_vm7, %v12017_v54, %v11907_v27  ;;  %v9417_v42 = vpack.c.bf16 %v2134_v58, %v11738_v7 }
 0x37c   : > { %1957 = vmatpush1.msra.mxu0 %v1668_v26  ;;  %2026 = vmatprep.subr.mxu1 %v1669_v17  ;;  %v9425_v1 = vpack.c.bf16 %v2132_v46, %v11758_v24  ;;  %v2150_v10 = vsel %vm329_vm7, %v12021_v56, %v12017_v54  ;;  %v2349_v16 = vsel %vm274_vm4, %v10132_v13, %v10133_v52  ;;  %v10193_v5 = vunpack.i.h.bf16 %v12167_v33 }
 0x37d   : > { %2027 = vmatpush1.msra.mxu1 %v1666_v62  ;;  %9412 = vmatprep.subr.bf16.mxu0 %v9411_v53  ;;  %v2151_v54 = vsel %vm329_vm7, %v12027_v4, %v12021_v56  ;;  %v2365_v28 = vsel %vm291_vm5, %v10137_v19, %v10138_v22  ;;  %v2148_v30 = vsel %vm329_vm7, %v11907_v27, %v12027_v4  ;;  %v10192_v51 = vunpack.i.l.bf16 %v12167_v33 }
 0x37e   : > { %v10201_v3 = vpop.permute.xlu0 %10200  ;;  %v10206_v38 = vpop.permute.xlu1 %10205  ;;  %9231 = vmatmul.mubr.msk.f32.vlgmr.msra.gmra.mrb[4].mxu0 %vm482_vm8, %v1675_v48  ;;  %9232 = vmatmul.mubr.msk.f32.vlgmr.msra.gmra.mrb[4].mxu1 %vm482_vm8, %v1675_v48  ;;  %v9427_v49 = vpack.c.bf16 %v2365_v28, %v2349_v16  ;;  %v10198_v59 = vunpack.i.h.bf16 %v12144_v45  ;;  %v10197_v27 = vunpack.i.l.bf16 %v12144_v45 }
 0x37f   : > { %9414 = vmatpush1.bf16.msra.mxu0 %v9413_v29  ;;  %9420 = vmatprep.subr.bf16.mxu1 %v9419_v21  ;;  %v10203_v23 = vunpack.i.h.bf16 %v10201_v3  ;;  %v10202_v57 = vunpack.i.l.bf16 %v10201_v3  ;;  %v10208_v15 = vunpack.i.h.bf16 %v10206_v38  ;;  %v10207_v55 = vunpack.i.l.bf16 %v10206_v38 }
 0x380   : > { %9416 = vmatprep.subr.bf16.mxu0 %v9415_v35  ;;  %9422 = vmatpush1.bf16.msra.mxu1 %v9421_v31  ;;  %v2600_v45 = vsel %vm274_vm4, %v10192_v51, %v10193_v5  ;;  %v2616_v38 = vsel %vm291_vm5, %v10197_v27, %v10198_v59 }
 0x381   : > { %9424 = vmatprep.subr.bf16.mxu1 %v9423_v47  ;;  %2245 = vmatprep.mubr.f32.mxu0 %v11995_v8  ;;  %v2350_v24 = vsel %vm274_vm4, %v10203_v23, %v10132_v13  ;;  %v2366_v44 = vsel %vm291_vm5, %v10208_v15, %v10137_v19  ;;  %v2347_v2 = vsel %vm274_vm4, %v10202_v57, %v10203_v23 }
 0x382   : > { %v10211_v60 = vpop.permute.xlu0 %10210  ;;  %v10216_v41 = vpop.permute.xlu1 %10215  ;;  %2315 = vmatprep.mubr.f32.mxu1 %v11995_v8  ;;  %v2363_v37 = vsel %vm291_vm5, %v10207_v55, %v10208_v15  ;;  %v2348_v53 = vsel %vm274_vm4, %v10133_v52, %v10202_v57  ;;  %v2364_v56 = vsel %vm291_vm5, %v10138_v22, %v10207_v55  ;;  %v9429_v62 = vpack.c.bf16 %v2366_v44, %v2350_v24  ;;  %v2408_v55 = vld [vmem:[#allocation4 + $0x40] sm:$0xff] }
 0x383   : > { %v10213_v39 = vunpack.i.h.bf16 %v10211_v60  ;;  %v10212_v0 = vunpack.i.l.bf16 %v10211_v60  ;;  %v10218_v43 = vunpack.i.h.bf16 %v10216_v41  ;;  %v10217_v7 = vunpack.i.l.bf16 %v10216_v41  ;;  %9418 = vmatpush1.bf16.msra.mxu0 %v9417_v42 }
 0x384   : > { %2189 = vmatprep.subr.mxu0 %v2149_v40  ;;  %9426 = vmatpush1.bf16.msra.mxu1 %v9425_v1  ;;  %v9435_v48 = vpack.c.bf16 %v2363_v37, %v2347_v2  ;;  %v9437_v33 = vpack.c.bf16 %v2364_v56, %v2348_v53 }
 0x385   : > { %2259 = vmatprep.subr.mxu1 %v2151_v54  ;;  %v2384_v34 = vsel %vm312_vm6, %v10212_v0, %v10213_v39  ;;  %v2386_v17 = vsel %vm312_vm6, %v10218_v43, %v10217_v7  ;;  %v2385_v4 = vsel %vm312_vm6, %v10217_v7, %v10212_v0 }
 0x386   : > { %v2392_v14 = vpop.permute.xlu0 %2391  ;;  %v2396_v50 = vpop.permute.xlu1 %2395  ;;  %v9431_v26 = vpack.c.bf16 %v2384_v34, %v11859_v25  ;;  %v2383_v25 = vsel %vm312_vm6, %v10213_v39, %v10218_v43  ;;  %v9439_v35 = vpack.c.bf16 %v2386_v17, %v11943_v6  ;;  %v9433_v13 = vpack.c.bf16 %v2385_v4, %v11856_v61 }
 0x387   : > { %2190 = vmatpush1.msra.mxu0 %v2150_v10  ;;  %v9441_v3 = vpack.c.bf16 %v2383_v25, %v11940_v63  ;;  %v2400_v6 = vsel %vm329_vm7, %v12113_v32, %v2396_v50  ;;  %v2401_v61 = vsel %vm329_vm7, %v2392_v14, %v12113_v32  ;;  %v9443_v63 = vpack.c.bf16 %v2616_v38, %v2600_v45 }
 0x388   : > { %2260 = vmatpush1.msra.mxu1 %v2148_v30  ;;  %9428 = vmatprep.subr.bf16.mxu0 %v9427_v49  ;;  %v2659_v49 = vld [vmem:[#allocation4 + $0x48] sm:$0xff] }
 0x389   : > { %9233 = vmatmul.mubr.msk.f32.vlgmr.msra.gmra.mrb[6].mxu0 %vm482_vm8, %v2157_v11  ;;  %9234 = vmatmul.mubr.msk.f32.vlgmr.msra.gmra.mrb[6].mxu1 %vm482_vm8, %v2157_v11 }
 0x38a   : > { %9430 = vmatpush1.bf16.msra.mxu0 %v9429_v62  ;;  %9436 = vmatprep.subr.bf16.mxu1 %v9435_v48  ;;  %v10221_v29 = vpop.permute.xlu0 %10220  ;;  %v2398_v21 = vpop.permute.xlu1 %2397 }
 0x38b   : > { %9432 = vmatprep.subr.bf16.mxu0 %v9431_v26  ;;  %9438 = vmatpush1.bf16.msra.mxu1 %v9437_v33  ;;  %v10223_v58 = vunpack.i.h.bf16 %v10221_v29  ;;  %v10222_v52 = vunpack.i.l.bf16 %v10221_v29  ;;  %v2402_v47 = vsel %vm329_vm7, %v2398_v21, %v2392_v14  ;;  %v2399_v42 = vsel %vm329_vm7, %v2396_v50, %v2398_v21 }
 0x38c   : > { %9440 = vmatprep.subr.bf16.mxu1 %v9439_v35  ;;  %2496 = vmatprep.mubr.f32.mxu0 %v11995_v8 }
 0x38d   : > { %2566 = vmatprep.mubr.f32.mxu1 %v11995_v8  ;;  %v2601_v57 = vsel %vm274_vm4, %v10223_v58, %v10192_v51  ;;  %v2599_v15 = vsel %vm274_vm4, %v10193_v5, %v10222_v52  ;;  %v2598_v32 = vsel %vm274_vm4, %v10222_v52, %v10223_v58 }
 0x38e   : > { %9434 = vmatpush1.bf16.msra.mxu0 %v9433_v13  ;;  %v10231_v31 = vpop.permute.xlu0 %10230  ;;  %v10226_v46 = vpop.permute.xlu1 %10225 }
 0x38f   : > { %2440 = vmatprep.subr.mxu0 %v2400_v6  ;;  %9442 = vmatpush1.bf16.msra.mxu1 %v9441_v3  ;;  %v10233_v22 = vunpack.i.h.bf16 %v10231_v31  ;;  %v10232_v19 = vunpack.i.l.bf16 %v10231_v31  ;;  %v10228_v23 = vunpack.i.h.bf16 %v10226_v46  ;;  %v10227_v40 = vunpack.i.l.bf16 %v10226_v46 }
 0x390   : > { %2510 = vmatprep.subr.mxu1 %v2402_v47 }
 0x391   : > { %v2615_v60 = vsel %vm291_vm5, %v10198_v59, %v10227_v40  ;;  %v2617_v41 = vsel %vm291_vm5, %v10228_v23, %v10197_v27  ;;  %v2614_v1 = vsel %vm291_vm5, %v10227_v40, %v10228_v23  ;;  %v2635_v10 = vsel %vm312_vm6, %v10232_v19, %v10233_v22 }
 0x392   : > { %2441 = vmatpush1.msra.mxu0 %v2401_v61  ;;  %v10236_v16 = vpop.permute.xlu1 %10235  ;;  %v9445_v39 = vpack.c.bf16 %v2617_v41, %v2601_v57  ;;  %v9451_v0 = vpack.c.bf16 %v2614_v1, %v2598_v32  ;;  %v9447_v43 = vpack.c.bf16 %v2635_v10, %v11921_v18  ;;  %v9453_v7 = vpack.c.bf16 %v2615_v60, %v2599_v15  ;;  %v2645_v24 = vpop.permute.xlu0 %2644  ;;  %v2834_v57 = vld [vmem:[#allocation2 + $0x8] sm:$0xff]  ;;  %v2835_v15 = vld [vmem:[#allocation2 + $0x10] sm:$0xff]  ;;  %v15029_v1 = vld [vmem:[#allocation7_spill] sm:$0xff] }
 0x393   : > { %9235 = vmatmul.mubr.msk.f32.vlgmr.msra.gmra.mrb[8].mxu0 %vm482_vm8, %v2408_v55  ;;  %2511 = vmatpush1.msra.mxu1 %v2399_v42  ;;  %v10238_v54 = vunpack.i.h.bf16 %v10236_v16  ;;  %v10237_v28 = vunpack.i.l.bf16 %v10236_v16 }
 0x394   : > { %9444 = vmatprep.subr.bf16.mxu0 %v9443_v63  ;;  %9236 = vmatmul.mubr.msk.f32.vlgmr.msra.gmra.mrb[8].mxu1 %vm482_vm8, %v2408_v55 }
 0x395   : > { %v2634_v44 = vsel %vm312_vm6, %v10233_v22, %v10238_v54  ;;  %v2636_v2 = vsel %vm312_vm6, %v10237_v28, %v10232_v19  ;;  %9446 = vmatpush1.bf16.msra.mxu0 %v9445_v39  ;;  %9452 = vmatprep.subr.bf16.mxu1 %v9451_v0  ;;  %v2637_v18 = vsel %vm312_vm6, %v10238_v54, %v10237_v28 }
 0x396   : > { %9448 = vmatprep.subr.bf16.mxu0 %v9447_v43  ;;  %9454 = vmatpush1.bf16.msra.mxu1 %v9453_v7  ;;  %v2647_v37 = vpop.permute.xlu1 %2646  ;;  %v9449_v34 = vpack.c.bf16 %v2636_v2, %v11918_v20  ;;  %v9455_v53 = vpack.c.bf16 %v2637_v18, %v11966_v36  ;;  %v9457_v56 = vpack.c.bf16 %v2634_v44, %v11963_v12  ;;  %v2643_v50 = vpop.permute.xlu0 %2642  ;;  %v15030_v7 = vld [vmem:[#allocation8_spill] sm:$0xff] }
 0x397   : > { %v2651_v14 = vsel %vm329_vm7, %v2645_v24, %v2647_v37  ;;  %2747 = vmatprep.mubr.f32.mxu0 %v11995_v8  ;;  %2817 = vmatprep.mubr.f32.mxu1 %v11995_v8  ;;  %v2652_v36 = vsel %vm329_vm7, %v2643_v50, %v2645_v24 }
 0x398   : > { %9456 = vmatprep.subr.bf16.mxu1 %v9455_v53 }
 0x399   : > { %9450 = vmatpush1.bf16.msra.mxu0 %v9449_v34 }
 0x39a   : > { %2691 = vmatprep.subr.mxu0 %v2651_v14  ;;  %9458 = vmatpush1.bf16.msra.mxu1 %v9457_v56  ;;  %v2649_v30 = vpop.permute.xlu1 %2648  ;;  %v15031_v56 = vld [vmem:[#allocation15_spill] sm:$0xff] }
 0x39b   : > { %v2653_v20 = vsel %vm329_vm7, %v2649_v30, %v2643_v50  ;;  %v2650_v12 = vsel %vm329_vm7, %v2647_v37, %v2649_v30  ;;  %v15032_v50 = vld [vmem:[#allocation9_spill] sm:$0xff] }
 0x39c   : > { %2761 = vmatprep.subr.mxu1 %v2653_v20 }
 0x39d   : > { %2692 = vmatpush1.msra.mxu0 %v2652_v36 }
 0x39e   : > { %9237 = vmatmul.mubr.msk.f32.vlgmr.msra.gmra.mrb[10].mxu0 %vm482_vm8, %v2659_v49  ;;  %2762 = vmatpush1.msra.mxu1 %v2650_v12  ;;  %v2951_v40 = vpop.permute.xlu1 %2950 }
 0x39f   : > { %9238 = vmatmul.mubr.msk.f32.vlgmr.msra.gmra.mrb[10].mxu1 %vm482_vm8, %v2659_v49  ;;  %3123 = vmatprep.mubr.f32.mxu0 %v11995_v8 }
 0x3a0   : > { %3194 = vmatprep.mubr.f32.mxu1 %v11995_v8 }
 0x3a2   : > { %v2845_v0 = vpop.permute.xlu1 %2844 }
 0x3a6   : > { %v3586_v44 = vpop.permute.xlu1 %3585 }
 0x3a7   : > { %v2830_v31 = vpop.permute.xlu0 %2829 }
 0x3aa   : > { %v12365_v18 = vpop.permute.xlu1 %3840 }
 0x3ab   : > { %v2957_v47 = vpop.permute.xlu0 %2956 }
 0x3ac   : > { %v2961_v32 = vsel %vm367_vm0, %v2957_v47, %v2951_v40 }
 0x3ad   : > { %v12318_v10 = vmul.f32 %v2961_v32, %v15029_v1 }
 0x3af   : > { %v2851_v39 = vpop.permute.xlu0 %2850 }
 0x3b0   : > { %v2855_v43 = vsel %vm241_vm1, %v2851_v39, %v2845_v0 }
 0x3b1   : > { %v12332_v24 = vmul.f32 %v2855_v43, %v15030_v7 }
 0x3b3   : > { %v3592_v28 = vpop.permute.xlu0 %3591 }
 0x3b7   : > { %v12363_v2 = vpop.permute.xlu0 %3846 }
 0x444   : > { %v1871_v11 = vpop.f32.mrb[2].mxu0 }
 0x445   : > { %v1872_v5 = vpop.f32.mrb[3].mxu0 }
 0x447   : > { %v1941_v51 = vpop.f32.mrb[2].mxu1 }
 0x448   : > { %v1943_v26 = vpop.f32.mrb[3].mxu1 }
 0x449   : > { %v15033_v26 = vld [vmem:[#allocation18_spill] sm:$0xff] }
 0x451   : > { %v2084_v17 = vpop.f32.mrb[4].mxu1  ;;  %v2014_v62 = vpop.f32.mrb[4].mxu0 }
 0x452   : > { %v2085_v48 = vadd.f32 %v2084_v17, %v1941_v51  ;;  %v2086_v59 = vpop.f32.mrb[5].mxu1  ;;  %v2015_v27 = vpop.f32.mrb[5].mxu0  ;;  %v15034_v62 = vld [vmem:[#allocation10_spill] sm:$0xff] }
 0x453   : > { %v2016_v4 = vadd.f32 %v2015_v27, %v1872_v5 }
 0x45c   : > { %v2317_v33 = vpop.f32.mrb[6].mxu1  ;;  %v2247_v25 = vpop.f32.mrb[6].mxu0 }
 0x45d   : > { %v2322_v29 = vadd.f32 %v2317_v33, %v2085_v48  ;;  %v2248_v21 = vpop.f32.mrb[7].mxu0  ;;  %v2319_v35 = vpop.f32.mrb[7].mxu1 }
 0x45e   : > { %v2321_v45 = vadd.f32 %v2248_v21, %v2016_v4  ;;  %v3596_v4 = vsel %vm1020_vm2, %v3592_v28, %v3586_v44  ;;  %v15035_v21 = vld [vmem:[#allocation12_spill] sm:$0xff] }
 0x45f   : > { %v12411_v35 = vmul.f32 %v3596_v4, %v15035_v21 }
 0x466   : > { %v2498_v58 = vpop.f32.mrb[8].mxu0 }
 0x467   : > { %v2499_v52 = vpop.f32.mrb[9].mxu0  ;;  %v2568_v13 = vpop.f32.mrb[8].mxu1 }
 0x468   : > { %v2572_v3 = vadd.f32 %v2499_v52, %v2321_v45  ;;  %v2573_v38 = vadd.f32 %v2568_v13, %v2322_v29  ;;  %v2570_v6 = vpop.f32.mrb[9].mxu1  ;;  %v15036_v45 = vld [vmem:[#allocation22_spill] sm:$0xff] }
 0x471   : > { %v2749_v46 = vpop.f32.mrb[10].mxu0 }
 0x472   : > { %v2750_v61 = vpop.f32.mrb[11].mxu0  ;;  %v2819_v63 = vpop.f32.mrb[10].mxu1 }
 0x473   : > { %v2823_v22 = vadd.f32 %v2750_v61, %v2572_v3  ;;  %v2824_v19 = vadd.f32 %v2819_v63, %v2573_v38  ;;  %v2821_v23 = vpop.f32.mrb[11].mxu1  ;;  %v15037_v38 = vld [vmem:[#allocation14_spill] sm:$0xff] }
 0x475   : > { %v2832_v55 = vadd.f32 %v2830_v31, %v2823_v22  ;;  %v2833_v42 = vadd.f32 %v2830_v31, %v2824_v19  ;;  %v15038_v19 = vld [vmem:[#allocation17_spill] sm:$0xff] }
 0x477   : > { %v12311_v60 = vadd.f32 %v2834_v57, %v2832_v55  ;;  %v12313_v41 = vadd.f32 %v2835_v15, %v2833_v42  ;;  %v15040_v15 = vld [vmem:[#allocation19_spill] sm:$0xff] }
 0x479   : > { %2838 = vst [vmem:[#allocation2 + $0x8] sm:$0xff] %v12311_v60  ;;  %2839 = vst [vmem:[#allocation2 + $0x10] sm:$0xff] %v12313_v41  ;;  %2954 = vrot.lane.b32.xlu1 %v12313_v41, %s11040_s7  ;;  %2952 = vrot.lane.b32.xlu0 %v12311_v60, %s11040_s7  ;;  %v10239_v16 = vpack.i.bf16 %v11995_v8, %v12313_v41  ;;  %v10254_v54 = vpack.i.bf16 %v12311_v60, %v11995_v8 }
 0x47d   : > { %3018 = vrot.lane.b32.xlu1 %v12318_v10, %s11047_s20  ;;  %10240 = vrot.lane.b32.xlu0 %v10239_v16, %s11044_s17 }
 0x481   : > { %2848 = vrot.lane.b32.xlu1 %v12313_v41, %s11041_s8  ;;  %2846 = vrot.lane.b32.xlu0 %v12311_v60, %s11041_s8 }
 0x485   : > { %2912 = vrot.lane.b32.xlu1 %v12332_v24, %s11047_s20  ;;  %10245 = vrot.lane.b32.xlu0 %v10239_v16, %s11045_s18 }
 0x489   : > { %3589 = vrot.lane.b32.xlu1 %v12313_v41, %s11042_s13  ;;  %10250 = vrot.lane.b32.xlu0 %v10239_v16, %s11046_s19 }
 0x48d   : > { %3844 = vrot.lane.b32.xlu1 %v12313_v41, %s11043_s14  ;;  %3404 = vrot.lane.b32.xlu0 %v11995_v8, %s11047_s20 }
 0x491   : > { %3398 = vrot.lane.b32.xlu1 %v11995_v8, %s11047_s20  ;;  %3587 = vrot.lane.b32.xlu0 %v12311_v60, %s11042_s13 }
 0x495   : > { %3402 = vrot.lane.b32.xlu1 %v12313_v41, %s11047_s20  ;;  %3842 = vrot.lane.b32.xlu0 %v12311_v60, %s11043_s14 }
 0x499   : > { %10255 = vrot.lane.b32.xlu1 %v10254_v54, %s11044_s17  ;;  %3400 = vrot.lane.b32.xlu0 %v12311_v60, %s11047_s20 }
 0x49d   : > { %10260 = vrot.lane.b32.xlu1 %v10254_v54, %s11045_s18 }
 0x4a1   : > { %10265 = vrot.lane.b32.xlu1 %v10254_v54, %s11046_s19  ;;  %v15041_v54 = vld [vmem:[#allocation20_spill] sm:$0xff] }
 0x4eb   : > { %v2955_v37 = vpop.permute.xlu1 %2954  ;;  %v2953_v34 = vpop.permute.xlu0 %2952 }
 0x4ec   : > { %v2958_v8 = vsel %vm367_vm0, %v2955_v37, %v2957_v47  ;;  %v2960_v53 = vsel %vm367_vm0, %v2951_v40, %v2953_v34  ;;  %v2959_v3 = vsel %vm367_vm0, %v2953_v34, %v2955_v37  ;;  %v15039_v40 = vld [vmem:[#allocation16_spill] sm:$0xff] }
 0x4ed   : > { %v12372_v14 = vmul.f32 %v2958_v8, %v15031_v56  ;;  %v12375_v30 = vmul.f32 %v2960_v53, %v15032_v50  ;;  %v12426_v6 = vmul.f32 %v2959_v3, %v15037_v38  ;;  %v3851_v53 = vsel %vm1292_vm3, %v12363_v2, %v12365_v18 }
 0x4ef   : > { %v12377_v20 = vpop.permute.xlu1 %3018  ;;  %3024 = vrot.lane.b32.xlu0 %v12372_v14, %s11047_s20  ;;  %v12381_v49 = vpop.permute.xlu0 %10240  ;;  %v10279_v12 = vpack.i.bf16 %v12375_v30, %v12318_v10  ;;  %v10284_v46 = vpack.i.bf16 %v12372_v14, %v12426_v6 }
 0x4f1   : > { %10280 = vrot.lane.b32.xlu1 %v10279_v12, %s11044_s17 }
 0x4f3   : > { %v2849_v36 = vpop.permute.xlu1 %2848  ;;  %v2847_v11 = vpop.permute.xlu0 %2846 }
 0x4f4   : > { %v2852_v5 = vsel %vm241_vm1, %v2849_v36, %v2851_v39  ;;  %v2854_v51 = vsel %vm241_vm1, %v2845_v0, %v2847_v11  ;;  %v2853_v61 = vsel %vm241_vm1, %v2847_v11, %v2849_v36  ;;  %v15044_v11 = vld [vmem:[#allocation24_spill] sm:$0xff] }
 0x4f5   : > { %v12391_v17 = vmul.f32 %v2852_v5, %v15033_v26  ;;  %10290 = vrot.lane.b32.xlu1 %v10279_v12, %s11045_s18  ;;  %v12395_v48 = vmul.f32 %v2854_v51, %v15034_v62  ;;  %v12447_v23 = vmul.f32 %v2853_v61, %v15038_v19  ;;  %v12501_v5 = vmul.f32 %v3851_v53, %v15044_v11 }
 0x4f7   : > { %v12397_v59 = vpop.permute.xlu1 %2912  ;;  %2918 = vrot.lane.b32.xlu0 %v12391_v17, %s11047_s20  ;;  %v12401_v27 = vpop.permute.xlu0 %10245  ;;  %v10309_v25 = vpack.i.bf16 %v12395_v48, %v12332_v24  ;;  %v10314_v42 = vpack.i.bf16 %v12391_v17, %v12447_v23 }
 0x4f9   : > { %10300 = vrot.lane.b32.xlu1 %v10279_v12, %s11046_s19  ;;  %v15043_v12 = vld [vmem:[#allocation23_spill] sm:$0xff] }
 0x4fb   : > { %v3590_v33 = vpop.permute.xlu1 %3589  ;;  %v12416_v52 = vpop.permute.xlu0 %10250 }
 0x4fc   : > { %v3593_v29 = vsel %vm1020_vm2, %v3590_v33, %v3592_v28 }
 0x4fd   : > { %v12414_v58 = vmul.f32 %v3593_v29, %v15036_v45  ;;  %10310 = vrot.lane.b32.xlu1 %v10309_v25, %s11044_s17 }
 0x4ff   : > { %v10269_v13 = vpack.i.bf16 %v12411_v35, %v12414_v58  ;;  %v12428_v31 = vpop.permute.xlu0 %3404  ;;  %v3845_v39 = vpop.permute.xlu1 %3844 }
 0x500   : > { %v3848_v8 = vsel %vm1292_vm3, %v3845_v39, %v12363_v2  ;;  %v9250_v2 = vld [vmem:[%s14922_s2 + $0x10] sm:$0xff] }
 0x501   : > { %10270 = vrot.lane.b32.xlu0 %v10269_v13, %s11044_s17  ;;  %10320 = vrot.lane.b32.xlu1 %v10309_v25, %s11045_s18  ;;  %v12498_v36 = vmul.f32 %v3848_v8, %v15043_v12 }
 0x503   : > { %v3588_v47 = vpop.permute.xlu0 %3587  ;;  %v10344_v51 = vpack.i.bf16 %v12501_v5, %v12498_v36 }
 0x504   : > { %v3594_v63 = vsel %vm1020_vm2, %v3588_v47, %v3590_v33  ;;  %v3595_v22 = vsel %vm1020_vm2, %v3586_v44, %v3588_v47  ;;  %v15042_v44 = vld [vmem:[#allocation21_spill] sm:$0xff] }
 0x505   : > { %10275 = vrot.lane.b32.xlu0 %v10269_v13, %s11045_s18  ;;  %3022 = vrot.lane.b32.xlu1 %v12426_v6, %s11047_s20  ;;  %v12450_v57 = vmul.f32 %v3595_v22, %v15039_v40  ;;  %v12453_v55 = vmul.f32 %v3594_v63, %v15040_v15 }
 0x507   : > { %v10354_v32 = vpack.i.bf16 %v12453_v55, %v12450_v57  ;;  %v3843_v16 = vpop.permute.xlu0 %3842 }
 0x508   : > { %v3849_v0 = vsel %vm1292_vm3, %v3843_v16, %v3845_v39  ;;  %v3850_v43 = vsel %vm1292_vm3, %v12365_v18, %v3843_v16  ;;  %v12524_v18 = vpop.permute.xlu1 %3398 }
 0x509   : > { %10285 = vrot.lane.b32.xlu0 %v10284_v46, %s11044_s17  ;;  %10330 = vrot.lane.b32.xlu1 %v10309_v25, %s11046_s19  ;;  %v12475_v28 = vmul.f32 %v3850_v43, %v15041_v54  ;;  %v12478_v37 = vmul.f32 %v3849_v0, %v15042_v44 }
 0x50b   : > { %v10374_v34 = vpack.i.bf16 %v12478_v37, %v12475_v28  ;;  %v12534_v47 = vpop.permute.xlu0 %3400 }
 0x50c   : > { %v12526_v4 = vpop.permute.xlu1 %3402 }
 0x50d   : > { %10295 = vrot.lane.b32.xlu0 %v10284_v46, %s11045_s18  ;;  %3657 = vrot.lane.b32.xlu1 %v12414_v58, %s11047_s20 }
 0x510   : > { %v12528_v33 = vpop.permute.xlu1 %10255 }
 0x511   : > { %10305 = vrot.lane.b32.xlu0 %v10284_v46, %s11046_s19  ;;  %2916 = vrot.lane.b32.xlu1 %v12447_v23, %s11047_s20 }
 0x514   : > { %v12530_v25 = vpop.permute.xlu1 %10260 }
 0x515   : > { %10315 = vrot.lane.b32.xlu0 %v10314_v42, %s11044_s17  ;;  %10355 = vrot.lane.b32.xlu1 %v10354_v32, %s11044_s17 }
 0x518   : > { %v12532_v29 = vpop.permute.xlu1 %10265 }
 0x519   : > { %10325 = vrot.lane.b32.xlu0 %v10314_v42, %s11045_s18  ;;  %10360 = vrot.lane.b32.xlu1 %v10354_v32, %s11045_s18 }
 0x51d   : > { %3020 = vrot.lane.b32.xlu0 %v12375_v30, %s11047_s20  ;;  %10365 = vrot.lane.b32.xlu1 %v10354_v32, %s11046_s19 }
 0x521   : > { %10335 = vrot.lane.b32.xlu0 %v10314_v42, %s11046_s19  ;;  %3653 = vrot.lane.b32.xlu1 %v12450_v57, %s11047_s20 }
 0x525   : > { %2914 = vrot.lane.b32.xlu0 %v12395_v48, %s11047_s20  ;;  %10375 = vrot.lane.b32.xlu1 %v10374_v34, %s11044_s17 }
 0x529   : > { %10340 = vrot.lane.b32.xlu0 %v10269_v13, %s11046_s19  ;;  %10380 = vrot.lane.b32.xlu1 %v10374_v34, %s11045_s18 }
 0x52d   : > { %3659 = vrot.lane.b32.xlu0 %v12411_v35, %s11047_s20  ;;  %10385 = vrot.lane.b32.xlu1 %v10374_v34, %s11046_s19 }
 0x531   : > { %10345 = vrot.lane.b32.xlu0 %v10344_v51, %s11044_s17  ;;  %3908 = vrot.lane.b32.xlu1 %v12475_v28, %s11047_s20 }
 0x535   : > { %10350 = vrot.lane.b32.xlu0 %v10344_v51, %s11045_s18  ;;  %3912 = vrot.lane.b32.xlu1 %v12498_v36, %s11047_s20 }
 0x539   : > { %3655 = vrot.lane.b32.xlu0 %v12453_v55, %s11047_s20  ;;  %4099 = vperm.xlu1 %10389, %v9250_v2  }
 0x53d   : > { %10370 = vrot.lane.b32.xlu0 %v10344_v51, %s11046_s19 }
 0x541   : > { %3910 = vrot.lane.b32.xlu0 %v12478_v37, %s11047_s20 }
 0x545   : > { %3914 = vrot.lane.b32.xlu0 %v12501_v5, %s11047_s20 }
 0x561   : > { %v12540_v16 = vpop.permute.xlu0 %3024 }
 0x563   : > { %v10281_v13 = vpop.permute.xlu1 %10280 }
 0x564   : > { %v10283_v3 = vunpack.i.h.bf16 %v10281_v13  ;;  %v10282_v46 = vunpack.i.l.bf16 %v10281_v13 }
 0x566   : > { %v2976_v42 = vsel %vm274_vm4, %v10282_v46, %v10283_v3 }
 0x567   : > { %v10291_v61 = vpop.permute.xlu1 %10290 }
 0x568   : > { %v10293_v63 = vunpack.i.h.bf16 %v10291_v61  ;;  %v10292_v22 = vunpack.i.l.bf16 %v10291_v61 }
 0x569   : > { %v12542_v43 = vpop.permute.xlu0 %2918 }
 0x56a   : > { %v2992_v32 = vsel %vm291_vm5, %v10292_v22, %v10293_v63 }
 0x56b   : > { %v10301_v39 = vpop.permute.xlu1 %10300  ;;  %v9459_v0 = vpack.c.bf16 %v2992_v32, %v2976_v42 }
 0x56c   : > { %v10303_v54 = vunpack.i.h.bf16 %v10301_v39  ;;  %v10302_v21 = vunpack.i.l.bf16 %v10301_v39 }
 0x56d   : > { %9460 = vmatprep.subr.bf16.mxu0 %v9459_v0 }
 0x56f   : > { %v12544_v34 = vpop.permute.xlu1 %10310 }
 0x573   : > { %v12546_v8 = vpop.permute.xlu1 %10320  ;;  %v12548_v53 = vpop.permute.xlu0 %10270 }
 0x577   : > { %v12550_v51 = vpop.permute.xlu1 %3022  ;;  %v12552_v2 = vpop.permute.xlu0 %10275 }
 0x57b   : > { %v12554_v13 = vpop.permute.xlu1 %10330  ;;  %v10286_v61 = vpop.permute.xlu0 %10285 }
 0x57c   : > { %v10288_v11 = vunpack.i.h.bf16 %v10286_v61  ;;  %v10287_v12 = vunpack.i.l.bf16 %v10286_v61 }
 0x57e   : > { %v2977_v45 = vsel %vm274_vm4, %v10288_v11, %v10282_v46  ;;  %v2975_v15 = vsel %vm274_vm4, %v10283_v3, %v10287_v12  ;;  %v2974_v61 = vsel %vm274_vm4, %v10287_v12, %v10288_v11 }
 0x57f   : > { %v12556_v44 = vpop.permute.xlu1 %3657  ;;  %v10296_v42 = vpop.permute.xlu0 %10295 }
 0x580   : > { %v10298_v32 = vunpack.i.h.bf16 %v10296_v42  ;;  %v10297_v0 = vunpack.i.l.bf16 %v10296_v42 }
 0x582   : > { %v2993_v40 = vsel %vm291_vm5, %v10298_v32, %v10292_v22  ;;  %v2991_v19 = vsel %vm291_vm5, %v10293_v63, %v10297_v0  ;;  %v2990_v42 = vsel %vm291_vm5, %v10297_v0, %v10298_v32  ;;  %v3012_v22 = vsel %vm312_vm6, %v10302_v21, %v10303_v54 }
 0x583   : > { %v12570_v26 = vpop.permute.xlu1 %2916  ;;  %v10306_v39 = vpop.permute.xlu0 %10305  ;;  %v9461_v62 = vpack.c.bf16 %v2993_v40, %v2977_v45  ;;  %v9467_v46 = vpack.c.bf16 %v2990_v42, %v2974_v61  ;;  %v9469_v7 = vpack.c.bf16 %v2991_v19, %v2975_v15  ;;  %v3035_v42 = vld [vmem:[#allocation4 + $0x58] sm:$0xff] }
 0x584   : > { %v10308_v38 = vunpack.i.h.bf16 %v10306_v39  ;;  %v10307_v3 = vunpack.i.l.bf16 %v10306_v39 }
 0x585   : > { %9462 = vmatpush1.bf16.msra.mxu0 %v9461_v62  ;;  %9468 = vmatprep.subr.bf16.mxu1 %v9467_v46  ;;  %v9465_v62 = vpack.c.bf16 %v3012_v22, %v12318_v10  ;;  %v10312_v10 = vunpack.i.l.bf16 %v12544_v34 }
 0x586   : > { %v3010_v63 = vsel %vm312_vm6, %v10307_v3, %v10308_v38  ;;  %9470 = vmatpush1.bf16.msra.mxu1 %v9469_v7  ;;  %v3011_v12 = vsel %vm312_vm6, %v10303_v54, %v10307_v3  ;;  %v3013_v11 = vsel %vm312_vm6, %v10308_v38, %v10302_v21  ;;  %v10323_v7 = vunpack.i.h.bf16 %v12546_v8 }
 0x587   : > { %v10316_v45 = vpop.permute.xlu0 %10315  ;;  %v9463_v19 = vpack.c.bf16 %v3011_v12, %v12375_v30  ;;  %v9471_v40 = vpack.c.bf16 %v3013_v11, %v12372_v14  ;;  %v9473_v15 = vpack.c.bf16 %v3010_v63, %v12426_v6  ;;  %v12583_v32 = vpop.permute.xlu1 %10355  ;;  %v10322_v54 = vunpack.i.l.bf16 %v12546_v8 }
 0x588   : > { %v10317_v0 = vunpack.i.l.bf16 %v10316_v45  ;;  %v10318_v21 = vunpack.i.h.bf16 %v10316_v45  ;;  %v3029_v14 = vsel %vm329_vm7, %v12540_v16, %v12377_v20  ;;  %v10313_v30 = vunpack.i.h.bf16 %v12544_v34 }
 0x589   : > { %9464 = vmatprep.subr.bf16.mxu0 %v9463_v19  ;;  %9472 = vmatprep.subr.bf16.mxu1 %v9471_v40  ;;  %v3026_v3 = vsel %vm329_vm7, %v12550_v51, %v12540_v16  ;;  %v2886_v34 = vsel %vm291_vm5, %v10322_v54, %v10323_v7 }
 0x58a   : > { %9466 = vmatpush1.bf16.msra.mxu0 %v9465_v62  ;;  %9474 = vmatpush1.bf16.msra.mxu1 %v9473_v15  ;;  %v2869_v8 = vsel %vm274_vm4, %v10313_v30, %v10317_v0  ;;  %v2868_v63 = vsel %vm274_vm4, %v10317_v0, %v10318_v21  ;;  %v2870_v40 = vsel %vm274_vm4, %v10312_v10, %v10313_v30  ;;  %v10333_v15 = vunpack.i.h.bf16 %v12554_v13  ;;  %v12623_v0 = vld [vmem:[#allocation2 + $0x18] sm:$0xff] }
 0x58b   : > { %v10326_v38 = vpop.permute.xlu0 %10325  ;;  %3138 = vmatprep.subr.mxu1 %v3029_v14  ;;  %v12596_v39 = vpop.permute.xlu1 %10360  ;;  %v10332_v62 = vunpack.i.l.bf16 %v12554_v13  ;;  %v10242_v30 = vunpack.i.l.bf16 %v12381_v49 }
 0x58c   : > { %v10328_v6 = vunpack.i.h.bf16 %v10326_v38  ;;  %v10327_v61 = vunpack.i.l.bf16 %v10326_v38  ;;  %v10243_v38 = vunpack.i.h.bf16 %v12381_v49  ;;  %v10258_v49 = vunpack.i.h.bf16 %v12528_v33 }
 0x58e   : > { %v2885_v46 = vsel %vm291_vm5, %v10323_v7, %v10327_v61  ;;  %3139 = vmatpush1.msra.mxu1 %v3026_v3  ;;  %v2884_v12 = vsel %vm291_vm5, %v10327_v61, %v10328_v6  ;;  %v2887_v45 = vsel %vm291_vm5, %v10328_v6, %v10322_v54  ;;  %v9475_v54 = vpack.c.bf16 %v2886_v34, %v2870_v40 }
 0x58f   : > { %v3021_v22 = vpop.permute.xlu0 %3020  ;;  %v9485_v11 = vpack.c.bf16 %v2885_v46, %v2869_v8  ;;  %v9483_v16 = vpack.c.bf16 %v2884_v12, %v2868_v63  ;;  %9241 = vmatmul.mubr.msk.f32.vlgmr.msra.gmra.mrb[12].mxu1 %vm482_vm8, %v3035_v42  ;;  %v12631_v6 = vpop.permute.xlu1 %10365  ;;  %v10262_v46 = vunpack.i.l.bf16 %v12530_v25  ;;  %v2906_v3 = vsel %vm312_vm6, %v10332_v62, %v10333_v15 }
 0x590   : > { %v3027_v19 = vsel %vm329_vm7, %v3021_v22, %v12550_v51  ;;  %v3028_v7 = vsel %vm329_vm7, %v12377_v20, %v3021_v22  ;;  %3339 = vmatprep.mubr.f32.mxu1 %v12623_v0  ;;  %v2871_v51 = vsel %vm274_vm4, %v10318_v21, %v10312_v10  ;;  %v10248_v20 = vunpack.i.h.bf16 %v12401_v27 }
 0x591   : > { %3067 = vmatprep.subr.mxu0 %v3027_v19  ;;  %9484 = vmatprep.subr.bf16.mxu1 %v9483_v16  ;;  %v9477_v13 = vpack.c.bf16 %v2887_v45, %v2871_v51  ;;  %v10247_v21 = vunpack.i.l.bf16 %v12401_v27  ;;  %v10263_v10 = vunpack.i.h.bf16 %v12530_v25  ;;  %v10257_v22 = vunpack.i.l.bf16 %v12528_v33 }
 0x592   : > { %3068 = vmatpush1.msra.mxu0 %v3028_v7  ;;  %9486 = vmatpush1.bf16.msra.mxu1 %v9485_v11  ;;  %v9481_v45 = vpack.c.bf16 %v2906_v3, %v12332_v24  ;;  %v10268_v19 = vunpack.i.h.bf16 %v12532_v29  ;;  %v10267_v16 = vunpack.i.l.bf16 %v12532_v29 }
 0x593   : > { %v10336_v14 = vpop.permute.xlu0 %10335  ;;  %9476 = vmatprep.subr.bf16.mxu0 %v9475_v54  ;;  %9240 = vmatmul.mubr.msk.f32.vlgmr.msra.gmra.mrb[12].mxu0 %vm482_vm8, %v3035_v42  ;;  %v3372_v40 = vsel %vm291_vm5, %v10262_v46, %v10263_v10  ;;  %v3370_v33 = vsel %vm291_vm5, %v10247_v21, %v10248_v20  ;;  %v3371_v7 = vsel %vm291_vm5, %v10263_v10, %v10247_v21 }
 0x594   : > { %v10338_v61 = vunpack.i.h.bf16 %v10336_v14  ;;  %v10337_v8 = vunpack.i.l.bf16 %v10336_v14  ;;  %9478 = vmatpush1.bf16.msra.mxu0 %v9477_v13  ;;  %3268 = vmatprep.mubr.f32.mxu0 %v12623_v0  ;;  %v3373_v54 = vsel %vm291_vm5, %v10248_v20, %v10262_v46  ;;  %v3355_v10 = vsel %vm274_vm4, %v10258_v49, %v10242_v30 }
 0x596   : > { %v2904_v34 = vsel %vm312_vm6, %v10337_v8, %v10338_v61  ;;  %v2905_v42 = vsel %vm312_vm6, %v10333_v15, %v10337_v8  ;;  %v2907_v27 = vsel %vm312_vm6, %v10338_v61, %v10332_v62  ;;  %v12660_v15 = vpop.permute.xlu1 %3653  ;;  %v3354_v62 = vsel %vm274_vm4, %v10242_v30, %v10243_v38  ;;  %v2929_v8 = vld [vmem:[#allocation4 + $0x50] sm:$0xff] }
 0x597   : > { %v2915_v25 = vpop.permute.xlu0 %2914  ;;  %v9479_v63 = vpack.c.bf16 %v2905_v42, %v12395_v48  ;;  %v9487_v12 = vpack.c.bf16 %v2907_v27, %v12391_v17  ;;  %v9489_v11 = vpack.c.bf16 %v2904_v34, %v12447_v23  ;;  %v10253_v48 = vunpack.i.h.bf16 %v12416_v52 }
 0x598   : > { %v10252_v17 = vunpack.i.l.bf16 %v12416_v52  ;;  %v2921_v24 = vsel %vm329_vm7, %v2915_v25, %v12570_v26  ;;  %v2923_v23 = vsel %vm329_vm7, %v12542_v43, %v12397_v59  ;;  %v3356_v52 = vsel %vm274_vm4, %v10257_v22, %v10258_v49 }
 0x599   : > { %9480 = vmatprep.subr.bf16.mxu0 %v9479_v63  ;;  %9488 = vmatprep.subr.bf16.mxu1 %v9487_v12  ;;  %v9491_v51 = vpack.c.bf16 %v3372_v40, %v3356_v52  ;;  %v9499_v14 = vpack.c.bf16 %v3370_v33, %v3354_v62  ;;  %v2922_v13 = vsel %vm329_vm7, %v12397_v59, %v2915_v25  ;;  %v10278_v49 = vunpack.i.h.bf16 %v12552_v2 }
 0x59a   : > { %9482 = vmatpush1.bf16.msra.mxu0 %v9481_v45  ;;  %9490 = vmatpush1.bf16.msra.mxu1 %v9489_v11  ;;  %v2920_v61 = vsel %vm329_vm7, %v12570_v26, %v12542_v43  ;;  %v3391_v3 = vsel %vm312_vm6, %v10268_v19, %v10252_v17  ;;  %v3393_v21 = vsel %vm312_vm6, %v10253_v48, %v10267_v16  ;;  %v12700_v42 = vpop.permute.xlu1 %10375  ;;  %v10277_v27 = vunpack.i.l.bf16 %v12552_v2 }
 0x59b   : > { %v12669_v29 = vpop.permute.xlu0 %10340  ;;  %3212 = vmatprep.subr.mxu0 %v2921_v24  ;;  %3283 = vmatprep.subr.mxu1 %v2923_v23  ;;  %v3390_v20 = vsel %vm312_vm6, %v10252_v17, %v10253_v48  ;;  %v3357_v59 = vsel %vm274_vm4, %v10243_v38, %v10257_v22  ;;  %v3392_v26 = vsel %vm312_vm6, %v10267_v16, %v10268_v19  ;;  %v10363_v22 = vunpack.i.h.bf16 %v12596_v39 }
 0x59c   : > { %v9493_v46 = vpack.c.bf16 %v3373_v54, %v3357_v59  ;;  %v9501_v34 = vpack.c.bf16 %v3371_v7, %v3355_v10  ;;  %v9495_v30 = vpack.c.bf16 %v3391_v3, %v12311_v60  ;;  %v9503_v38 = vpack.c.bf16 %v3393_v21, %v12623_v0 }
 0x59d   : > { %v10362_v25 = vunpack.i.l.bf16 %v12596_v39  ;;  %v9497_v63 = vpack.c.bf16 %v3392_v26, %v12623_v0  ;;  %v9505_v12 = vpack.c.bf16 %v3390_v20, %v12313_v41  ;;  %v10273_v60 = vunpack.i.h.bf16 %v12548_v53 }
 0x59e   : > { %3213 = vmatpush1.msra.mxu0 %v2922_v13  ;;  %3284 = vmatpush1.msra.mxu1 %v2920_v61  ;;  %v10272_v11 = vunpack.i.l.bf16 %v12548_v53  ;;  %v10358_v45 = vunpack.i.h.bf16 %v12583_v32  ;;  %v10357_v2 = vunpack.i.l.bf16 %v12583_v32  ;;  %v10343_v39 = vunpack.i.h.bf16 %v12669_v29  ;;  %v12736_v17 = vpop.permute.xlu1 %10380 }
 0x59f   : > { %v12698_v43 = vpop.permute.xlu0 %3659  ;;  %9492 = vmatprep.subr.bf16.mxu0 %v9491_v51  ;;  %9500 = vmatprep.subr.bf16.mxu1 %v9499_v14  ;;  %v10342_v16 = vunpack.i.l.bf16 %v12669_v29  ;;  %v3409_v41 = vsel %vm329_vm7, %v12428_v31, %v12524_v18  ;;  %v3407_v53 = vsel %vm329_vm7, %v12534_v47, %v12526_v4  ;;  %v3627_v32 = vsel %vm291_vm5, %v10362_v25, %v10363_v22 }
 0x5a0   : > { %9242 = vmatmul.mubr.msk.f32.vlgmr.msra.gmra.mrb[12].mxu0 %vm482_vm8, %v2929_v8  ;;  %9243 = vmatmul.mubr.msk.f32.vlgmr.msra.gmra.mrb[12].mxu1 %vm482_vm8, %v2929_v8  ;;  %v3625_v40 = vsel %vm291_vm5, %v10277_v27, %v10278_v49  ;;  %v10368_v33 = vunpack.i.h.bf16 %v12631_v6  ;;  %v10367_v48 = vunpack.i.l.bf16 %v12631_v6  ;;  %v3408_v24 = vsel %vm329_vm7, %v12524_v18, %v12534_v47  ;;  %v3415_v47 = vld [vmem:[#allocation4 + $0x60] sm:$0xff] }
 0x5a1   : > { %9494 = vmatpush1.bf16.msra.mxu0 %v9493_v46  ;;  %9502 = vmatpush1.bf16.msra.mxu1 %v9501_v34  ;;  %v3406_v23 = vsel %vm329_vm7, %v12526_v4, %v12428_v31  ;;  %v3626_v29 = vsel %vm291_vm5, %v10363_v22, %v10277_v27  ;;  %v3628_v6 = vsel %vm291_vm5, %v10278_v49, %v10362_v25  ;;  %v10383_v61 = vunpack.i.h.bf16 %v12736_v17 }
 0x5a2   : > { %9496 = vmatprep.subr.bf16.mxu0 %v9495_v30  ;;  %9504 = vmatprep.subr.bf16.mxu1 %v9503_v38  ;;  %v3611_v62 = vsel %vm274_vm4, %v10357_v2, %v10358_v45  ;;  %v3609_v7 = vsel %vm274_vm4, %v10272_v11, %v10273_v60  ;;  %v3646_v51 = vsel %vm312_vm6, %v10368_v33, %v10342_v16  ;;  %v10382_v21 = vunpack.i.l.bf16 %v12736_v17  ;;  %v10386_v46 = vpop.permute.xlu1 %10385  ;;  %v3670_v17 = vld [vmem:[#allocation4 + $0x68] sm:$0xff] }
 0x5a3   : > { %v12716_v19 = vpop.permute.xlu0 %10345  ;;  %3503 = vmatprep.mubr.f32.mxu0 %v12623_v0  ;;  %3574 = vmatprep.mubr.f32.mxu1 %v12623_v0  ;;  %v9507_v54 = vpack.c.bf16 %v3627_v32, %v3611_v62  ;;  %v9515_v18 = vpack.c.bf16 %v3625_v40, %v3609_v7  ;;  %v3648_v31 = vsel %vm312_vm6, %v10343_v39, %v10367_v48  ;;  %v10378_v38 = vunpack.i.h.bf16 %v12700_v42 }
 0x5a4   : > { %v3610_v4 = vsel %vm274_vm4, %v10358_v45, %v10272_v11  ;;  %v3612_v14 = vsel %vm274_vm4, %v10273_v60, %v10357_v2  ;;  %v3647_v13 = vsel %vm312_vm6, %v10367_v48, %v10368_v33  ;;  %v3645_v20 = vsel %vm312_vm6, %v10342_v16, %v10343_v39 }
 0x5a5   : > { %9498 = vmatpush1.bf16.msra.mxu0 %v9497_v63  ;;  %9506 = vmatpush1.bf16.msra.mxu1 %v9505_v12  ;;  %v9509_v8 = vpack.c.bf16 %v3628_v6, %v3612_v14  ;;  %v9517_v3 = vpack.c.bf16 %v3626_v29, %v3610_v4  ;;  %v9511_v59 = vpack.c.bf16 %v3646_v51, %v12453_v55  ;;  %v10377_v49 = vunpack.i.l.bf16 %v12700_v42 }
 0x5a6   : > { %3447 = vmatprep.subr.mxu0 %v3407_v53  ;;  %3518 = vmatprep.subr.mxu1 %v3409_v41  ;;  %v9519_v26 = vpack.c.bf16 %v3648_v31, %v12411_v35  ;;  %v10348_v27 = vunpack.i.h.bf16 %v12716_v19  ;;  %v10347_v22 = vunpack.i.l.bf16 %v12716_v19  ;;  %v9513_v25 = vpack.c.bf16 %v3647_v13, %v12450_v57  ;;  %v3925_v31 = vld [vmem:[#allocation4 + $0x70] sm:$0xff] }
 0x5a7   : > { %v10351_v52 = vpop.permute.xlu0 %10350  ;;  %v9521_v55 = vpack.c.bf16 %v3645_v20, %v12414_v58  ;;  %v10388_v35 = vunpack.i.h.bf16 %v10386_v46  ;;  %v10387_v63 = vunpack.i.l.bf16 %v10386_v46  ;;  %v3664_v42 = vsel %vm329_vm7, %v12698_v43, %v12660_v15  ;;  %v15046_v46 = vld [vmem:[#allocation13_spill] sm:$0xff] }
 0x5a8   : > { %v10353_v34 = vunpack.i.h.bf16 %v10351_v52  ;;  %v10352_v30 = vunpack.i.l.bf16 %v10351_v52  ;;  %v3882_v60 = vsel %vm291_vm5, %v10382_v21, %v10383_v61  ;;  %v3661_v2 = vsel %vm329_vm7, %v12556_v44, %v12698_v43 }
 0x5a9   : > { %3448 = vmatpush1.msra.mxu0 %v3408_v24  ;;  %3519 = vmatpush1.msra.mxu1 %v3406_v23  ;;  %v3866_v19 = vsel %vm274_vm4, %v10377_v49, %v10378_v38  ;;  %v3864_v39 = vsel %vm274_vm4, %v10347_v22, %v10348_v27  ;;  %v3909_v24 = vpop.permute.xlu1 %3908  ;;  %v3865_v23 = vsel %vm274_vm4, %v10378_v38, %v10347_v22 }
 0x5aa   : > { %9508 = vmatprep.subr.bf16.mxu0 %v9507_v54  ;;  %9516 = vmatprep.subr.bf16.mxu1 %v9515_v18  ;;  %v3880_v45 = vsel %vm291_vm5, %v10352_v30, %v10353_v34  ;;  %v3883_v16 = vsel %vm291_vm5, %v10353_v34, %v10382_v21  ;;  %v3881_v41 = vsel %vm291_vm5, %v10383_v61, %v10352_v30 }
 0x5ab   : > { %9244 = vmatmul.mubr.msk.f32.vlgmr.msra.gmra.mrb[12].mxu0 %vm482_vm8, %v3415_v47  ;;  %9245 = vmatmul.mubr.msk.f32.vlgmr.msra.gmra.mrb[12].mxu1 %vm482_vm8, %v3415_v47  ;;  %v3656_v10 = vpop.permute.xlu0 %3655  ;;  %v9523_v33 = vpack.c.bf16 %v3882_v60, %v3866_v19  ;;  %v9531_v48 = vpack.c.bf16 %v3880_v45, %v3864_v39  ;;  %v9533_v62 = vpack.c.bf16 %v3881_v41, %v3865_v23 }
 0x5ac   : > { %9510 = vmatpush1.bf16.msra.mxu0 %v9509_v8  ;;  %9518 = vmatpush1.bf16.msra.mxu1 %v9517_v3  ;;  %v3662_v58 = vsel %vm329_vm7, %v3656_v10, %v12556_v44  ;;  %v3867_v44 = vsel %vm274_vm4, %v10348_v27, %v10377_v49  ;;  %v3663_v43 = vsel %vm329_vm7, %v12660_v15, %v3656_v10  ;;  %v15047_v49 = vld [vmem:[#allocation26_spill] sm:$0xff] }
 0x5ad   : > { %9512 = vmatprep.subr.bf16.mxu0 %v9511_v59  ;;  %9520 = vmatprep.subr.bf16.mxu1 %v9519_v26  ;;  %v9525_v52 = vpack.c.bf16 %v3883_v16, %v3867_v44  ;;  %v3902_v15 = vsel %vm312_vm6, %v10387_v63, %v10388_v35  ;;  %v3913_v47 = vpop.permute.xlu1 %3912  ;;  %v15045_v59 = vld [vmem:[#allocation25_spill] sm:$0xff] }
 0x5ae   : > { %3758 = vmatprep.mubr.f32.mxu0 %v12623_v0  ;;  %3829 = vmatprep.mubr.f32.mxu1 %v12623_v0 }
 0x5af   : > { %v10371_v12 = vpop.permute.xlu0 %10370 }
 0x5b0   : > { %9514 = vmatpush1.bf16.msra.mxu0 %v9513_v25  ;;  %9522 = vmatpush1.bf16.msra.mxu1 %v9521_v55  ;;  %v10373_v57 = vunpack.i.h.bf16 %v10371_v12  ;;  %v10372_v11 = vunpack.i.l.bf16 %v10371_v12  ;;  %v15048_v55 = vld [vmem:[#allocation11_spill] sm:$0xff] }
 0x5b1   : > { %3702 = vmatprep.subr.mxu0 %v3662_v58  ;;  %3773 = vmatprep.subr.mxu1 %v3664_v42 }
 0x5b2   : > { %v3901_v53 = vsel %vm312_vm6, %v10388_v35, %v10372_v11  ;;  %v3903_v32 = vsel %vm312_vm6, %v10373_v57, %v10387_v63  ;;  %v3900_v7 = vsel %vm312_vm6, %v10372_v11, %v10373_v57 }
 0x5b3   : > { %v3911_v40 = vpop.permute.xlu0 %3910  ;;  %v9527_v29 = vpack.c.bf16 %v3901_v53, %v12478_v37  ;;  %v9535_v6 = vpack.c.bf16 %v3903_v32, %v12501_v5  ;;  %v9529_v37 = vpack.c.bf16 %v3902_v15, %v12475_v28  ;;  %v9537_v5 = vpack.c.bf16 %v3900_v7, %v12498_v36  ;;  %v15050_v7 = vld [vmem:[#allocation8_spill] sm:$0xff] }
 0x5b4   : > { %3703 = vmatpush1.msra.mxu0 %v3663_v43  ;;  %3774 = vmatpush1.msra.mxu1 %v3661_v2  ;;  %v3917_v51 = vsel %vm329_vm7, %v3911_v40, %v3913_v47  ;;  %v3918_v28 = vsel %vm329_vm7, %v3909_v24, %v3911_v40 }
 0x5b5   : > { %9524 = vmatprep.subr.bf16.mxu0 %v9523_v33  ;;  %9532 = vmatprep.subr.bf16.mxu1 %v9531_v48 }
 0x5b6   : > { %9246 = vmatmul.mubr.msk.f32.vlgmr.msra.gmra.mrb[12].mxu0 %vm482_vm8, %v3670_v17  ;;  %9247 = vmatmul.mubr.msk.f32.vlgmr.msra.gmra.mrb[12].mxu1 %vm482_vm8, %v3670_v17 }
 0x5b7   : > { %9526 = vmatpush1.bf16.msra.mxu0 %v9525_v52  ;;  %9534 = vmatpush1.bf16.msra.mxu1 %v9533_v62  ;;  %v3915_v54 = vpop.permute.xlu0 %3914 }
 0x5b8   : > { %9528 = vmatprep.subr.bf16.mxu0 %v9527_v29  ;;  %9536 = vmatprep.subr.bf16.mxu1 %v9535_v6  ;;  %v3919_v18 = vsel %vm329_vm7, %v3915_v54, %v3909_v24  ;;  %v3916_v36 = vsel %vm329_vm7, %v3913_v47, %v3915_v54  ;;  %v4100_v4 = vpop.permute.xlu1 %4099  ;;  %v15049_v24 = vld [vmem:[#allocation14_spill] sm:$0xff] }
 0x5b9   : > { %4013 = vmatprep.mubr.f32.mxu0 %v12623_v0  ;;  %4084 = vmatprep.mubr.f32.mxu1 %v12623_v0 }
 0x5bb   : > { %9530 = vmatpush1.bf16.msra.mxu0 %v9529_v37  ;;  %9538 = vmatpush1.bf16.msra.mxu1 %v9537_v5 }
 0x5bc   : > { %3957 = vmatprep.subr.mxu0 %v3917_v51  ;;  %4028 = vmatprep.subr.mxu1 %v3919_v18  ;;  %v15051_v18 = vld [vmem:[#allocation10_spill] sm:$0xff] }
 0x5bf   : > { %3958 = vmatpush1.msra.mxu0 %v3918_v28  ;;  %4029 = vmatpush1.msra.mxu1 %v3916_v36  ;;  %v15052_v36 = vld [vmem:[#allocation18_spill] sm:$0xff] }
 0x5c0   : > { %9248 = vmatmul.mubr.msk.f32.vlgmr.msra.gmra.mrb[12].mxu0 %vm482_vm8, %v3925_v31  ;;  %9249 = vmatmul.mubr.msk.f32.vlgmr.msra.gmra.mrb[12].mxu1 %vm482_vm8, %v3925_v31 }
 0x5c1   : > { %4393 = vmatprep.mubr.f32.mxu0 %v12623_v0  ;;  %4463 = vmatprep.mubr.f32.mxu1 %v12623_v0 }
 0x693   : > { %v4015_v14 = vpop.f32.mrb[12].mxu0  ;;  %v4086_v13 = vpop.f32.mrb[12].mxu1 }
 0x694   : > { %v4102_v61 = vadd.f32 %v4100_v4, %v4015_v14  ;;  %v4104_v8 = vadd.f32 %v4100_v4, %v4086_v13  ;;  %v4017_v3 = vpop.f32.mrb[13].mxu0  ;;  %v4088_v21 = vpop.f32.mrb[13].mxu1  ;;  %v15053_v14 = vld [vmem:[#allocation17_spill] sm:$0xff] }
 0x695   : > { %v4103_v30 = vadd.f32 %v4100_v4, %v4017_v3  ;;  %v4105_v22 = vadd.f32 %v4100_v4, %v4088_v21 }
 0x696   : > { %v4106_v20 = vmax.f32 %v4102_v61, 0.0  ;;  %v4108_v10 = vmax.f32 %v4104_v8, 0.0 }
 0x697   : > { %v4107_v38 = vmax.f32 %v4103_v30, 0.0  ;;  %v4109_v25 = vmax.f32 %v4105_v22, 0.0  ;;  %v15054_v22 = vld [vmem:[#allocation16_spill] sm:$0xff] }
 0x698   : > { %v12839_v26 = vmul.f32 %v4106_v20, %v15045_v59  ;;  %v12842_v34 = vmul.f32 %v4108_v10, %v15046_v46 }
 0x699   : > { %v12853_v27 = vmul.f32 %v4107_v38, %v15047_v49  ;;  %v12864_v35 = vmul.f32 %v4109_v25, %v15048_v55 }
 0x69a   : > { %4220 = vrot.lane.b32.xlu0 %v12839_v26, %s11040_s7  ;;  %4224 = vrot.lane.b32.xlu1 %v12842_v34, %s11040_s7 }
 0x69b   : > { %v10395_v63 = vpack.i.bf16 %v12853_v27, %v12839_v26  ;;  %v10405_v12 = vpack.i.bf16 %v12864_v35, %v12842_v34  ;;  %v10415_v42 = vpack.i.bf16 %v12864_v35, %v12839_v26  ;;  %v10410_v60 = vpack.i.bf16 %v12842_v34, %v12853_v27 }
 0x69e   : > { %4114 = vrot.lane.b32.xlu0 %v12839_v26, %s11041_s8  ;;  %4118 = vrot.lane.b32.xlu1 %v12842_v34, %s11041_s8 }
 0x6a2   : > { %4847 = vrot.lane.b32.xlu0 %v12839_v26, %s11042_s13  ;;  %4222 = vrot.lane.b32.xlu1 %v12853_v27, %s11040_s7 }
 0x6a6   : > { %4851 = vrot.lane.b32.xlu0 %v12842_v34, %s11042_s13  ;;  %4116 = vrot.lane.b32.xlu1 %v12853_v27, %s11041_s8 }
 0x6aa   : > { %4668 = vrot.lane.b32.xlu1 %v12842_v34, %s11047_s20  ;;  %4226 = vrot.lane.b32.xlu0 %v12864_v35, %s11040_s7 }
 0x6ae   : > { %4849 = vrot.lane.b32.xlu1 %v12853_v27, %s11042_s13  ;;  %5098 = vrot.lane.b32.xlu0 %v12839_v26, %s11043_s14 }
 0x6b2   : > { %4853 = vrot.lane.b32.xlu1 %v12864_v35, %s11042_s13  ;;  %4120 = vrot.lane.b32.xlu0 %v12864_v35, %s11041_s8 }
 0x6b6   : > { %5100 = vrot.lane.b32.xlu1 %v12853_v27, %s11043_s14  ;;  %5102 = vrot.lane.b32.xlu0 %v12842_v34, %s11043_s14 }
 0x6ba   : > { %5104 = vrot.lane.b32.xlu1 %v12864_v35, %s11043_s14  ;;  %4664 = vrot.lane.b32.xlu0 %v12839_v26, %s11047_s20 }
 0x6be   : > { %10396 = vrot.lane.b32.xlu1 %v10395_v63, %s11045_s18  ;;  %10391 = vrot.lane.b32.xlu0 %v10395_v63, %s11044_s17  ;;  %v15055_v63 = vld [vmem:[#allocation19_spill] sm:$0xff] }
 0x6c2   : > { %10406 = vrot.lane.b32.xlu1 %v10405_v12, %s11045_s18  ;;  %10401 = vrot.lane.b32.xlu0 %v10405_v12, %s11044_s17 }
 0x6c6   : > { %10416 = vrot.lane.b32.xlu1 %v10415_v42, %s11046_s19  ;;  %10411 = vrot.lane.b32.xlu0 %v10410_v60, %s11046_s19 }
 0x6ca   : > { %4670 = vrot.lane.b32.xlu1 %v12864_v35, %s11047_s20  ;;  %4666 = vrot.lane.b32.xlu0 %v12853_v27, %s11047_s20 }
 0x70c   : > { %v4221_v57 = vpop.permute.xlu0 %4220  ;;  %v4225_v11 = vpop.permute.xlu1 %4224 }
 0x710   : > { %v4115_v58 = vpop.permute.xlu0 %4114  ;;  %v4119_v45 = vpop.permute.xlu1 %4118 }
 0x714   : > { %v4848_v2 = vpop.permute.xlu0 %4847  ;;  %v4223_v19 = vpop.permute.xlu1 %4222 }
 0x715   : > { %v4230_v16 = vsel %vm367_vm0, %v4221_v57, %v4223_v19  ;;  %v4229_v40 = vsel %vm367_vm0, %v4223_v19, %v4225_v11 }
 0x716   : > { %v12911_v44 = vmul.f32 %v4230_v16, %v15032_v50  ;;  %v12926_v23 = vmul.f32 %v4229_v40, %v15049_v24 }
 0x718   : > { %v4852_v39 = vpop.permute.xlu0 %4851  ;;  %v4117_v29 = vpop.permute.xlu1 %4116  ;;  %v10440_v5 = vpack.i.bf16 %v12926_v23, %v12911_v44 }
 0x719   : > { %v4124_v15 = vsel %vm241_vm1, %v4115_v58, %v4117_v29  ;;  %v4123_v28 = vsel %vm241_vm1, %v4117_v29, %v4119_v45 }
 0x71a   : > { %v12946_v47 = vmul.f32 %v4124_v15, %v15051_v18  ;;  %v12962_v13 = vmul.f32 %v4123_v28, %v15053_v14  ;;  %v15061_v28 = vld [vmem:[#allocation24_spill] sm:$0xff] }
 0x71c   : > { %v4227_v41 = vpop.permute.xlu0 %4226  ;;  %v12970_v8 = vpop.permute.xlu1 %4668  ;;  %v10470_v20 = vpack.i.bf16 %v12962_v13, %v12946_v47 }
 0x71d   : > { %v4228_v53 = vsel %vm367_vm0, %v4225_v11, %v4227_v41  ;;  %v4231_v32 = vsel %vm367_vm0, %v4227_v41, %v4221_v57  ;;  %v15056_v57 = vld [vmem:[#allocation22_spill] sm:$0xff] }
 0x71e   : > { %v12914_v43 = vmul.f32 %v4231_v32, %v15029_v1  ;;  %v12919_v33 = vmul.f32 %v4228_v53, %v15031_v56 }
 0x720   : > { %v12921_v48 = vpop.permute.xlu0 %5098  ;;  %v10425_v17 = vpack.i.bf16 %v12911_v44, %v12914_v43  ;;  %v10435_v52 = vpack.i.bf16 %v12919_v33, %v12926_v23  ;;  %v10445_v37 = vpack.i.bf16 %v12919_v33, %v12914_v43  ;;  %v4850_v3 = vpop.permute.xlu1 %4849 }
 0x721   : > { %v4856_v10 = vsel %vm1020_vm2, %v4850_v3, %v4852_v39  ;;  %v4857_v30 = vsel %vm1020_vm2, %v4848_v2, %v4850_v3 }
 0x722   : > { %10426 = vrot.lane.b32.xlu1 %v10425_v17, %s11045_s18  ;;  %10421 = vrot.lane.b32.xlu0 %v10425_v17, %s11044_s17  ;;  %v12993_v25 = vmul.f32 %v4857_v30, %v15054_v22  ;;  %v12996_v12 = vmul.f32 %v4856_v10, %v15055_v63  ;;  %v15058_v17 = vld [vmem:[#allocation20_spill] sm:$0xff] }
 0x724   : > { %v4121_v6 = vpop.permute.xlu0 %4120  ;;  %v4854_v38 = vpop.permute.xlu1 %4853  ;;  %v10485_v19 = vpack.i.bf16 %v12996_v12, %v12993_v25 }
 0x725   : > { %v4125_v62 = vsel %vm241_vm1, %v4121_v6, %v4115_v58  ;;  %v4122_v31 = vsel %vm241_vm1, %v4119_v45, %v4121_v6  ;;  %v4855_v42 = vsel %vm1020_vm2, %v4852_v39, %v4854_v38  ;;  %v4858_v60 = vsel %vm1020_vm2, %v4854_v38, %v4848_v2  ;;  %v15057_v58 = vld [vmem:[#allocation12_spill] sm:$0xff]  ;;  %v15059_v6 = vld [vmem:[#allocation21_spill] sm:$0xff] }
 0x726   : > { %10436 = vrot.lane.b32.xlu1 %v10435_v52, %s11045_s18  ;;  %10431 = vrot.lane.b32.xlu0 %v10435_v52, %s11044_s17  ;;  %v12939_v54 = vmul.f32 %v4125_v62, %v15050_v7  ;;  %v12959_v4 = vmul.f32 %v4122_v31, %v15052_v36  ;;  %v13007_v11 = vmul.f32 %v4855_v42, %v15056_v57 }
 0x727   : > { %v13010_v45 = vmul.f32 %v4858_v60, %v15057_v58 }
 0x728   : > { %v10455_v51 = vpack.i.bf16 %v12946_v47, %v12939_v54  ;;  %v10465_v61 = vpack.i.bf16 %v12959_v4, %v12962_v13  ;;  %v10475_v21 = vpack.i.bf16 %v12959_v4, %v12939_v54  ;;  %v5101_v39 = vpop.permute.xlu1 %5100  ;;  %v5103_v16 = vpop.permute.xlu0 %5102  ;;  %v10500_v40 = vpack.i.bf16 %v13007_v11, %v12996_v12 }
 0x729   : > { %v10495_v2 = vpack.i.bf16 %v13010_v45, %v13007_v11  ;;  %v10505_v41 = vpack.i.bf16 %v13010_v45, %v12993_v25  ;;  %v5108_v53 = vsel %vm1292_vm3, %v12921_v48, %v5101_v39  ;;  %v5107_v32 = vsel %vm1292_vm3, %v5101_v39, %v5103_v16 }
 0x72a   : > { %10446 = vrot.lane.b32.xlu1 %v10445_v37, %s11046_s19  ;;  %10441 = vrot.lane.b32.xlu0 %v10440_v5, %s11046_s19  ;;  %v13032_v29 = vmul.f32 %v5108_v53, %v15058_v17  ;;  %v13035_v52 = vmul.f32 %v5107_v32, %v15059_v6 }
 0x72c   : > { %v5105_v62 = vpop.permute.xlu1 %5104  ;;  %v10515_v15 = vpack.i.bf16 %v13035_v52, %v13032_v29  ;;  %v13087_v10 = vpop.permute.xlu0 %4664 }
 0x72d   : > { %v5106_v37 = vsel %vm1292_vm3, %v5103_v16, %v5105_v62  ;;  %v5109_v5 = vsel %vm1292_vm3, %v5105_v62, %v12921_v48 }
 0x72e   : > { %10456 = vrot.lane.b32.xlu1 %v10455_v51, %s11045_s18  ;;  %10451 = vrot.lane.b32.xlu0 %v10455_v51, %s11044_s17  ;;  %v15060_v51 = vld [vmem:[#allocation23_spill] sm:$0xff] }
 0x72f   : > { %v13051_v31 = vmul.f32 %v5106_v37, %v15060_v51 }
 0x730   : > { %v13093_v30 = vpop.permute.xlu1 %10396  ;;  %v13095_v38 = vpop.permute.xlu0 %10391 }
 0x732   : > { %4292 = vrot.lane.b32.xlu1 %v12926_v23, %s11047_s20  ;;  %4290 = vrot.lane.b32.xlu0 %v12911_v44, %s11047_s20 }
 0x734   : > { %v13103_v42 = vpop.permute.xlu1 %10406  ;;  %v13105_v60 = vpop.permute.xlu0 %10401 }
 0x736   : > { %10466 = vrot.lane.b32.xlu1 %v10465_v61, %s11045_s18  ;;  %10461 = vrot.lane.b32.xlu0 %v10465_v61, %s11044_s17  ;;  %v13054_v61 = vmul.f32 %v5109_v5, %v15061_v28 }
 0x738   : > { %v10525_v3 = vpack.i.bf16 %v13054_v61, %v13051_v31  ;;  %v10535_v48 = vpack.i.bf16 %v13054_v61, %v13032_v29 }
 0x73a   : > { %4294 = vrot.lane.b32.xlu1 %v12919_v33, %s11047_s20  ;;  %4288 = vrot.lane.b32.xlu0 %v12914_v43, %s11047_s20 }
 0x73e   : > { %10476 = vrot.lane.b32.xlu1 %v10475_v21, %s11046_s19  ;;  %10471 = vrot.lane.b32.xlu0 %v10470_v20, %s11046_s19  ;;  %v10530_v21 = vpack.i.bf16 %v13051_v31, %v13035_v52  ;;  %v9261_v20 = vld [vmem:[%s14922_s2 + $0x18] sm:$0xff] }
 0x742   : > { %4186 = vrot.lane.b32.xlu1 %v12962_v13, %s11047_s20  ;;  %4184 = vrot.lane.b32.xlu0 %v12946_v47, %s11047_s20 }
 0x746   : > { %4188 = vrot.lane.b32.xlu1 %v12959_v4, %s11047_s20  ;;  %4182 = vrot.lane.b32.xlu0 %v12939_v54, %s11047_s20 }
 0x74a   : > { %10486 = vrot.lane.b32.xlu1 %v10485_v19, %s11045_s18  ;;  %10481 = vrot.lane.b32.xlu0 %v10485_v19, %s11044_s17  ;;  %v13107_v19 = vpop.permute.xlu1 %10416 }
 0x74e   : > { %10496 = vrot.lane.b32.xlu1 %v10495_v2, %s11045_s18  ;;  %10491 = vrot.lane.b32.xlu0 %v10495_v2, %s11044_s17  ;;  %v13109_v2 = vpop.permute.xlu0 %10411  ;;  %v13111_v39 = vpop.permute.xlu1 %4670 }
 0x752   : > { %10506 = vrot.lane.b32.xlu1 %v10505_v41, %s11046_s19  ;;  %10501 = vrot.lane.b32.xlu0 %v10500_v40, %s11046_s19  ;;  %v13113_v16 = vpop.permute.xlu0 %4666 }
 0x756   : > { %4919 = vrot.lane.b32.xlu1 %v13007_v11, %s11047_s20  ;;  %4917 = vrot.lane.b32.xlu0 %v12996_v12, %s11047_s20 }
 0x75a   : > { %10516 = vrot.lane.b32.xlu1 %v10515_v15, %s11045_s18  ;;  %10511 = vrot.lane.b32.xlu0 %v10515_v15, %s11044_s17 }
 0x75e   : > { %4921 = vrot.lane.b32.xlu1 %v13010_v45, %s11047_s20  ;;  %4915 = vrot.lane.b32.xlu0 %v12993_v25, %s11047_s20 }
 0x762   : > { %10526 = vrot.lane.b32.xlu1 %v10525_v3, %s11045_s18  ;;  %10521 = vrot.lane.b32.xlu0 %v10525_v3, %s11044_s17 }
 0x766   : > { %10536 = vrot.lane.b32.xlu1 %v10535_v48, %s11046_s19  ;;  %10531 = vrot.lane.b32.xlu0 %v10530_v21, %s11046_s19 }
 0x76a   : > { %5170 = vrot.lane.b32.xlu1 %v13051_v31, %s11047_s20  ;;  %5168 = vrot.lane.b32.xlu0 %v13035_v52, %s11047_s20 }
 0x76e   : > { %5172 = vrot.lane.b32.xlu1 %v13054_v61, %s11047_s20  ;;  %5166 = vrot.lane.b32.xlu0 %v13032_v29, %s11047_s20 }
 0x772   : > { %5474 = vrot.lane.b32.xlu1 %v12623_v0, %s11040_s7  ;;  %5353 = vperm.xlu0 %10088, %v9261_v20  }
 0x776   : > { %5368 = vrot.lane.b32.xlu1 %v12623_v0, %s11041_s8  ;;  %5480 = vrot.lane.b32.xlu0 %v12623_v0, %s11040_s7 }
 0x77a   : > { %6109 = vrot.lane.b32.xlu1 %v12623_v0, %s11042_s13  ;;  %5374 = vrot.lane.b32.xlu0 %v12623_v0, %s11041_s8 }
 0x77e   : > { %6364 = vrot.lane.b32.xlu1 %v12623_v0, %s11043_s14  ;;  %6115 = vrot.lane.b32.xlu0 %v12623_v0, %s11042_s13 }
 0x782   : > { %6370 = vrot.lane.b32.xlu0 %v12623_v0, %s11043_s14 }
 0x794   : > { %v10427_v41 = vpop.permute.xlu1 %10426  ;;  %v10422_v53 = vpop.permute.xlu0 %10421 }
 0x795   : > { %v10429_v32 = vunpack.i.h.bf16 %v10427_v41  ;;  %v10428_v40 = vunpack.i.l.bf16 %v10427_v41  ;;  %v10424_v62 = vunpack.i.h.bf16 %v10422_v53  ;;  %v10423_v15 = vunpack.i.l.bf16 %v10422_v53 }
 0x797   : > { %v4246_v37 = vsel %vm274_vm4, %v10423_v15, %v10424_v62  ;;  %v4262_v5 = vsel %vm291_vm5, %v10428_v40, %v10429_v32 }
 0x798   : > { %v10437_v3 = vpop.permute.xlu1 %10436  ;;  %v9539_v48 = vpack.c.bf16 %v4262_v5, %v4246_v37  ;;  %v10432_v55 = vpop.permute.xlu0 %10431 }
 0x799   : > { %v10439_v21 = vunpack.i.h.bf16 %v10437_v3  ;;  %v10438_v20 = vunpack.i.l.bf16 %v10437_v3  ;;  %v10434_v49 = vunpack.i.h.bf16 %v10432_v55  ;;  %v10433_v46 = vunpack.i.l.bf16 %v10432_v55 }
 0x79a   : > { %9540 = vmatprep.subr.bf16.mxu0 %v9539_v48 }
 0x79b   : > { %v4263_v59 = vsel %vm291_vm5, %v10439_v21, %v10428_v40  ;;  %v4261_v41 = vsel %vm291_vm5, %v10429_v32, %v10438_v20  ;;  %v4260_v53 = vsel %vm291_vm5, %v10438_v20, %v10439_v21  ;;  %v4245_v28 = vsel %vm274_vm4, %v10424_v62, %v10433_v46 }
 0x79c   : > { %v4247_v37 = vsel %vm274_vm4, %v10434_v49, %v10423_v15  ;;  %v10447_v5 = vpop.permute.xlu1 %10446  ;;  %v4244_v55 = vsel %vm274_vm4, %v10433_v46, %v10434_v49  ;;  %v10442_v51 = vpop.permute.xlu0 %10441  ;;  %v9549_v63 = vpack.c.bf16 %v4261_v41, %v4245_v28 }
 0x79d   : > { %v10449_v3 = vunpack.i.h.bf16 %v10447_v5  ;;  %v10448_v48 = vunpack.i.l.bf16 %v10447_v5  ;;  %v9541_v40 = vpack.c.bf16 %v4263_v59, %v4247_v37  ;;  %v9547_v6 = vpack.c.bf16 %v4260_v53, %v4244_v55 }
 0x79e   : > { %v10444_v17 = vunpack.i.h.bf16 %v10442_v51  ;;  %v10443_v32 = vunpack.i.l.bf16 %v10442_v51 }
 0x79f   : > { %9542 = vmatpush1.bf16.msra.mxu0 %v9541_v40  ;;  %9548 = vmatprep.subr.bf16.mxu1 %v9547_v6  ;;  %v4283_v62 = vsel %vm312_vm6, %v10449_v3, %v10448_v48 }
 0x7a0   : > { %v4280_v15 = vsel %vm312_vm6, %v10444_v17, %v10449_v3  ;;  %v4282_v21 = vsel %vm312_vm6, %v10448_v48, %v10443_v32  ;;  %9550 = vmatpush1.bf16.msra.mxu1 %v9549_v63  ;;  %v10457_v46 = vpop.permute.xlu1 %10456  ;;  %v4281_v59 = vsel %vm312_vm6, %v10443_v32, %v10444_v17  ;;  %v9551_v49 = vpack.c.bf16 %v4283_v62, %v12919_v33  ;;  %v10452_v51 = vpop.permute.xlu0 %10451 }
 0x7a1   : > { %v9543_v28 = vpack.c.bf16 %v4281_v59, %v12911_v44  ;;  %v9545_v6 = vpack.c.bf16 %v4282_v21, %v12914_v43  ;;  %v9553_v20 = vpack.c.bf16 %v4280_v15, %v12926_v23  ;;  %v10459_v53 = vunpack.i.h.bf16 %v10457_v46 }
 0x7a2   : > { %9552 = vmatprep.subr.bf16.mxu1 %v9551_v49  ;;  %v10458_v37 = vunpack.i.l.bf16 %v10457_v46  ;;  %v10454_v5 = vunpack.i.h.bf16 %v10452_v51  ;;  %v10453_v55 = vunpack.i.l.bf16 %v10452_v51 }
 0x7a3   : > { %9544 = vmatprep.subr.bf16.mxu0 %v9543_v28 }
 0x7a4   : > { %9546 = vmatpush1.bf16.msra.mxu0 %v9545_v6  ;;  %9554 = vmatpush1.bf16.msra.mxu1 %v9553_v20  ;;  %v4293_v41 = vpop.permute.xlu1 %4292  ;;  %v4291_v63 = vpop.permute.xlu0 %4290  ;;  %v4140_v23 = vsel %vm274_vm4, %v10453_v55, %v10454_v5  ;;  %v4156_v32 = vsel %vm291_vm5, %v10458_v37, %v10459_v53 }
 0x7a5   : > { %v4297_v33 = vsel %vm329_vm7, %v4291_v63, %v4293_v41  ;;  %v9555_v28 = vpack.c.bf16 %v4156_v32, %v4140_v23  ;;  %v10393_v23 = vunpack.i.l.bf16 %v13095_v38  ;;  %v10409_v32 = vunpack.i.h.bf16 %v13103_v42 }
 0x7a6   : > { %4337 = vmatprep.subr.mxu0 %v4297_v33 }
 0x7a8   : > { %v10467_v17 = vpop.permute.xlu1 %10466  ;;  %v10462_v43 = vpop.permute.xlu0 %10461 }
 0x7a9   : > { %v10469_v44 = vunpack.i.h.bf16 %v10467_v17  ;;  %v10468_v3 = vunpack.i.l.bf16 %v10467_v17  ;;  %v10464_v48 = vunpack.i.h.bf16 %v10462_v43  ;;  %v10463_v40 = vunpack.i.l.bf16 %v10462_v43  ;;  %v4305_v17 = vld [vmem:[#allocation4 + $0x80] sm:$0xff] }
 0x7ab   : > { %v4138_v15 = vsel %vm274_vm4, %v10463_v40, %v10464_v48  ;;  %v4154_v21 = vsel %vm291_vm5, %v10468_v3, %v10469_v44  ;;  %v4157_v46 = vsel %vm291_vm5, %v10469_v44, %v10458_v37  ;;  %v4141_v59 = vsel %vm274_vm4, %v10464_v48, %v10453_v55 }
 0x7ac   : > { %v4295_v62 = vpop.permute.xlu1 %4294  ;;  %v4289_v49 = vpop.permute.xlu0 %4288  ;;  %v4155_v6 = vsel %vm291_vm5, %v10459_v53, %v10468_v3  ;;  %v4139_v20 = vsel %vm274_vm4, %v10454_v5, %v10463_v40  ;;  %v9563_v55 = vpack.c.bf16 %v4154_v21, %v4138_v15  ;;  %v10399_v44 = vunpack.i.h.bf16 %v13093_v30 }
 0x7ad   : > { %v4296_v51 = vsel %vm329_vm7, %v4293_v41, %v4295_v62  ;;  %v4298_v33 = vsel %vm329_vm7, %v4289_v49, %v4291_v63  ;;  %v4299_v37 = vsel %vm329_vm7, %v4295_v62, %v4289_v49  ;;  %v10398_v41 = vunpack.i.l.bf16 %v13093_v30 }
 0x7ae   : > { %4338 = vmatpush1.msra.mxu0 %v4298_v33  ;;  %4407 = vmatprep.subr.mxu1 %v4299_v37  ;;  %v9557_v3 = vpack.c.bf16 %v4157_v46, %v4141_v59  ;;  %v10394_v5 = vunpack.i.h.bf16 %v13095_v38  ;;  %v9565_v40 = vpack.c.bf16 %v4155_v6, %v4139_v20  ;;  %v10408_v30 = vunpack.i.l.bf16 %v13103_v42 }
 0x7af   : > { %4408 = vmatpush1.msra.mxu1 %v4296_v51  ;;  %9556 = vmatprep.subr.bf16.mxu0 %v9555_v28  ;;  %v10404_v21 = vunpack.i.h.bf16 %v13105_v60  ;;  %v10403_v46 = vunpack.i.l.bf16 %v13105_v60  ;;  %v10419_v37 = vunpack.i.h.bf16 %v13107_v19 }
 0x7b0   : > { %v10477_v53 = vpop.permute.xlu1 %10476  ;;  %v10472_v63 = vpop.permute.xlu0 %10471  ;;  %9251 = vmatmul.mubr.msk.f32.vlgmr.msra.gmra.mrb[14].mxu0 %vm482_vm8, %v4305_v17  ;;  %9564 = vmatprep.subr.bf16.mxu1 %v9563_v55  ;;  %v10414_v55 = vunpack.i.h.bf16 %v13109_v2 }
 0x7b1   : > { %v10479_v43 = vunpack.i.h.bf16 %v10477_v53  ;;  %v10478_v48 = vunpack.i.l.bf16 %v10477_v53  ;;  %v10474_v62 = vunpack.i.h.bf16 %v10472_v63  ;;  %v10473_v15 = vunpack.i.l.bf16 %v10472_v63  ;;  %9558 = vmatpush1.bf16.msra.mxu0 %v9557_v3  ;;  %9252 = vmatmul.mubr.msk.f32.vlgmr.msra.gmra.mrb[14].mxu1 %vm482_vm8, %v4305_v17 }
 0x7b2   : > { %9566 = vmatpush1.bf16.msra.mxu1 %v9565_v40  ;;  %4536 = vmatprep.mubr.f32.mxu0 %v12623_v0  ;;  %v10418_v17 = vunpack.i.l.bf16 %v13107_v19  ;;  %v10413_v53 = vunpack.i.l.bf16 %v13109_v2  ;;  %v4620_v19 = vsel %vm274_vm4, %v10403_v46, %v10404_v21  ;;  %v4636_v2 = vsel %vm291_vm5, %v10408_v30, %v10409_v32 }
 0x7b3   : > { %v4177_v59 = vsel %vm312_vm6, %v10479_v43, %v10478_v48  ;;  %v4174_v38 = vsel %vm312_vm6, %v10474_v62, %v10479_v43  ;;  %v4176_v49 = vsel %vm312_vm6, %v10478_v48, %v10473_v15  ;;  %v4175_v42 = vsel %vm312_vm6, %v10473_v15, %v10474_v62  ;;  %4606 = vmatprep.mubr.f32.mxu1 %v12623_v0  ;;  %v4199_v15 = vld [vmem:[#allocation4 + $0x78] sm:$0xff] }
 0x7b4   : > { %v4187_v51 = vpop.permute.xlu1 %4186  ;;  %v9567_v28 = vpack.c.bf16 %v4177_v59, %v12959_v4  ;;  %v4185_v60 = vpop.permute.xlu0 %4184  ;;  %v9559_v6 = vpack.c.bf16 %v4175_v42, %v12946_v47  ;;  %v9561_v20 = vpack.c.bf16 %v4176_v49, %v12939_v54  ;;  %v9569_v33 = vpack.c.bf16 %v4174_v38, %v12962_v13 }
 0x7b5   : > { %v4622_v0 = vsel %vm274_vm4, %v10393_v23, %v10394_v5  ;;  %v4638_v47 = vsel %vm291_vm5, %v10398_v41, %v10399_v44  ;;  %v4637_v54 = vsel %vm291_vm5, %v10399_v44, %v10408_v30  ;;  %v4191_v13 = vsel %vm329_vm7, %v4185_v60, %v4187_v51 }
 0x7b6   : > { %9568 = vmatprep.subr.bf16.mxu1 %v9567_v28  ;;  %9560 = vmatprep.subr.bf16.mxu0 %v9559_v6  ;;  %v4639_v3 = vsel %vm291_vm5, %v10409_v32, %v10398_v41  ;;  %v4621_v43 = vsel %vm274_vm4, %v10394_v5, %v10403_v46  ;;  %v4623_v44 = vsel %vm274_vm4, %v10404_v21, %v10393_v23 }
 0x7b7   : > { %9570 = vmatpush1.bf16.msra.mxu1 %v9569_v33  ;;  %9562 = vmatpush1.bf16.msra.mxu0 %v9561_v20  ;;  %v4657_v41 = vsel %vm312_vm6, %v10413_v53, %v10414_v55  ;;  %v4659_v5 = vsel %vm312_vm6, %v10419_v37, %v10418_v17  ;;  %v9571_v32 = vpack.c.bf16 %v4638_v47, %v4622_v0  ;;  %v13249_v47 = vld [vmem:[#allocation2 + $0x18] sm:$0xff] }
 0x7b8   : > { %v4189_v4 = vpop.permute.xlu1 %4188  ;;  %v4183_v48 = vpop.permute.xlu0 %4182  ;;  %4480 = vmatprep.subr.mxu0 %v4191_v13  ;;  %v9579_v23 = vpack.c.bf16 %v4636_v2, %v4620_v19  ;;  %v4658_v30 = vsel %vm312_vm6, %v10418_v17, %v10413_v53  ;;  %v9573_v46 = vpack.c.bf16 %v4639_v3, %v4623_v44  ;;  %v9581_v59 = vpack.c.bf16 %v4637_v54, %v4621_v43 }
 0x7b9   : > { %v4190_v63 = vsel %vm329_vm7, %v4187_v51, %v4189_v4  ;;  %v4193_v40 = vsel %vm329_vm7, %v4189_v4, %v4183_v48  ;;  %v4192_v62 = vsel %vm329_vm7, %v4183_v48, %v4185_v60  ;;  %v4656_v38 = vsel %vm312_vm6, %v10414_v55, %v10419_v37 }
 0x7ba   : > { %4550 = vmatprep.subr.mxu1 %v4193_v40  ;;  %v9575_v51 = vpack.c.bf16 %v4657_v41, %v12853_v27  ;;  %v9583_v42 = vpack.c.bf16 %v4659_v5, %v12864_v35  ;;  %v9577_v33 = vpack.c.bf16 %v4658_v30, %v12839_v26  ;;  %v9585_v17 = vpack.c.bf16 %v4656_v38, %v12842_v34  ;;  %v4681_v40 = vld [vmem:[#allocation4 + $0x88] sm:$0xff] }
 0x7bb   : > { %4481 = vmatpush1.msra.mxu0 %v4192_v62  ;;  %4551 = vmatpush1.msra.mxu1 %v4190_v63  ;;  %v4673_v27 = vsel %vm329_vm7, %v13113_v16, %v12970_v8  ;;  %v4675_v35 = vsel %vm329_vm7, %v13111_v39, %v13087_v10  ;;  %v4674_v26 = vsel %vm329_vm7, %v13087_v10, %v13113_v16 }
 0x7bc   : > { %v10487_v21 = vpop.permute.xlu1 %10486  ;;  %v10482_v49 = vpop.permute.xlu0 %10481  ;;  %9572 = vmatprep.subr.bf16.mxu0 %v9571_v32  ;;  %9580 = vmatprep.subr.bf16.mxu1 %v9579_v23  ;;  %v4672_v34 = vsel %vm329_vm7, %v12970_v8, %v13111_v39 }
 0x7bd   : > { %v10489_v28 = vunpack.i.h.bf16 %v10487_v21  ;;  %v10488_v60 = vunpack.i.l.bf16 %v10487_v21  ;;  %v10484_v6 = vunpack.i.h.bf16 %v10482_v49  ;;  %v10483_v20 = vunpack.i.l.bf16 %v10482_v49  ;;  %9253 = vmatmul.mubr.msk.f32.vlgmr.msra.gmra.mrb[16].mxu0 %vm482_vm8, %v4199_v15  ;;  %9254 = vmatmul.mubr.msk.f32.vlgmr.msra.gmra.mrb[16].mxu1 %vm482_vm8, %v4199_v15 }
 0x7be   : > { %9574 = vmatpush1.bf16.msra.mxu0 %v9573_v46  ;;  %9582 = vmatpush1.bf16.msra.mxu1 %v9581_v59 }
 0x7bf   : > { %9576 = vmatprep.subr.bf16.mxu0 %v9575_v51  ;;  %9584 = vmatprep.subr.bf16.mxu1 %v9583_v42  ;;  %v4873_v13 = vsel %vm274_vm4, %v10483_v20, %v10484_v6  ;;  %v4889_v19 = vsel %vm291_vm5, %v10488_v60, %v10489_v28 }
 0x7c0   : > { %v10497_v37 = vpop.permute.xlu1 %10496  ;;  %v10492_v0 = vpop.permute.xlu0 %10491  ;;  %4839 = vmatprep.mubr.f32.mxu1 %v13249_v47  ;;  %4769 = vmatprep.mubr.f32.mxu0 %v13249_v47  ;;  %v9587_v62 = vpack.c.bf16 %v4889_v19, %v4873_v13 }
 0x7c1   : > { %v10499_v55 = vunpack.i.h.bf16 %v10497_v37  ;;  %v10498_v53 = vunpack.i.l.bf16 %v10497_v37  ;;  %v10494_v54 = vunpack.i.h.bf16 %v10492_v0  ;;  %v10493_v4 = vunpack.i.l.bf16 %v10492_v0 }
 0x7c2   : > { %9578 = vmatpush1.bf16.msra.mxu0 %v9577_v33  ;;  %9586 = vmatpush1.bf16.msra.mxu1 %v9585_v17 }
 0x7c3   : > { %v4888_v10 = vsel %vm291_vm5, %v10489_v28, %v10498_v53  ;;  %v4890_v8 = vsel %vm291_vm5, %v10499_v55, %v10488_v60  ;;  %v4887_v39 = vsel %vm291_vm5, %v10498_v53, %v10499_v55  ;;  %v4872_v16 = vsel %vm274_vm4, %v10484_v6, %v10493_v4  ;;  %4713 = vmatprep.subr.mxu0 %v4673_v27  ;;  %v4932_v55 = vld [vmem:[#allocation4 + $0x90] sm:$0xff] }
 0x7c4   : > { %v4874_v2 = vsel %vm274_vm4, %v10494_v54, %v10483_v20  ;;  %4783 = vmatprep.subr.mxu1 %v4675_v35  ;;  %v10507_v3 = vpop.permute.xlu1 %10506  ;;  %v4871_v43 = vsel %vm274_vm4, %v10493_v4, %v10494_v54  ;;  %v10502_v63 = vpop.permute.xlu0 %10501  ;;  %v9597_v15 = vpack.c.bf16 %v4888_v10, %v4872_v16 }
 0x7c5   : > { %v10509_v44 = vunpack.i.h.bf16 %v10507_v3  ;;  %v10508_v48 = vunpack.i.l.bf16 %v10507_v3  ;;  %v9595_v41 = vpack.c.bf16 %v4887_v39, %v4871_v43  ;;  %v10504_v5 = vunpack.i.h.bf16 %v10502_v63 }
 0x7c6   : > { %v10503_v32 = vunpack.i.l.bf16 %v10502_v63  ;;  %v9589_v23 = vpack.c.bf16 %v4890_v8, %v4874_v2  ;;  %4714 = vmatpush1.msra.mxu0 %v4674_v26  ;;  %4784 = vmatpush1.msra.mxu1 %v4672_v34 }
 0x7c7   : > { %v4910_v30 = vsel %vm312_vm6, %v10509_v44, %v10508_v48  ;;  %v4907_v21 = vsel %vm312_vm6, %v10504_v5, %v10509_v44  ;;  %9256 = vmatmul.mubr.msk.f32.vlgmr.msra.gmra.mrb[18].mxu1 %vm482_vm8, %v4681_v40  ;;  %9588 = vmatprep.subr.bf16.mxu0 %v9587_v62 }
 0x7c8   : > { %v4909_v46 = vsel %vm312_vm6, %v10508_v48, %v10503_v32  ;;  %v4920_v59 = vpop.permute.xlu1 %4919  ;;  %v4908_v38 = vsel %vm312_vm6, %v10503_v32, %v10504_v5  ;;  %9596 = vmatprep.subr.bf16.mxu1 %v9595_v41  ;;  %9255 = vmatmul.mubr.msk.f32.vlgmr.msra.gmra.mrb[18].mxu0 %vm482_vm8, %v4681_v40  ;;  %v4918_v49 = vpop.permute.xlu0 %4917  ;;  %v9599_v42 = vpack.c.bf16 %v4910_v30, %v13010_v45 }
 0x7c9   : > { %v9591_v51 = vpack.c.bf16 %v4908_v38, %v12996_v12  ;;  %9590 = vmatpush1.bf16.msra.mxu0 %v9589_v23  ;;  %9598 = vmatpush1.bf16.msra.mxu1 %v9597_v15  ;;  %v9593_v28 = vpack.c.bf16 %v4909_v46, %v12993_v25  ;;  %v9601_v60 = vpack.c.bf16 %v4907_v21, %v13007_v11 }
 0x7ca   : > { %9600 = vmatprep.subr.bf16.mxu1 %v9599_v42  ;;  %5020 = vmatprep.mubr.f32.mxu0 %v13249_v47  ;;  %v4924_v17 = vsel %vm329_vm7, %v4918_v49, %v4920_v59 }
 0x7cb   : > { %9592 = vmatprep.subr.bf16.mxu0 %v9591_v51  ;;  %5090 = vmatprep.mubr.f32.mxu1 %v13249_v47 }
 0x7cc   : > { %v10517_v6 = vpop.permute.xlu1 %10516  ;;  %v10512_v37 = vpop.permute.xlu0 %10511 }
 0x7cd   : > { %v10519_v20 = vunpack.i.h.bf16 %v10517_v6  ;;  %v10518_v33 = vunpack.i.l.bf16 %v10517_v6  ;;  %9594 = vmatpush1.bf16.msra.mxu0 %v9593_v28  ;;  %9602 = vmatpush1.bf16.msra.mxu1 %v9601_v60  ;;  %v10514_v12 = vunpack.i.h.bf16 %v10512_v37  ;;  %v10513_v45 = vunpack.i.l.bf16 %v10512_v37 }
 0x7ce   : > { %4964 = vmatprep.subr.mxu0 %v4924_v17 }
 0x7cf   : > { %v5140_v25 = vsel %vm291_vm5, %v10518_v33, %v10519_v20  ;;  %v5124_v27 = vsel %vm274_vm4, %v10513_v45, %v10514_v12 }
 0x7d0   : > { %v4922_v11 = vpop.permute.xlu1 %4921  ;;  %v4916_v35 = vpop.permute.xlu0 %4915  ;;  %v9603_v0 = vpack.c.bf16 %v5140_v25, %v5124_v27 }
 0x7d1   : > { %v4923_v53 = vsel %vm329_vm7, %v4920_v59, %v4922_v11  ;;  %v4925_v26 = vsel %vm329_vm7, %v4916_v35, %v4918_v49  ;;  %v4926_v34 = vsel %vm329_vm7, %v4922_v11, %v4916_v35 }
 0x7d2   : > { %4965 = vmatpush1.msra.mxu0 %v4925_v26  ;;  %5034 = vmatprep.subr.mxu1 %v4926_v34 }
 0x7d3   : > { %9257 = vmatmul.mubr.msk.f32.vlgmr.msra.gmra.mrb[20].mxu0 %vm482_vm8, %v4932_v55  ;;  %5035 = vmatpush1.msra.mxu1 %v4923_v53 }
 0x7d4   : > { %v10527_v54 = vpop.permute.xlu1 %10526  ;;  %9604 = vmatprep.subr.bf16.mxu0 %v9603_v0  ;;  %v10522_v19 = vpop.permute.xlu0 %10521  ;;  %9258 = vmatmul.mubr.msk.f32.vlgmr.msra.gmra.mrb[20].mxu1 %vm482_vm8, %v4932_v55 }
 0x7d5   : > { %v10529_v4 = vunpack.i.h.bf16 %v10527_v54  ;;  %v10528_v13 = vunpack.i.l.bf16 %v10527_v54  ;;  %v10524_v10 = vunpack.i.h.bf16 %v10522_v19  ;;  %v10523_v8 = vunpack.i.l.bf16 %v10522_v19  ;;  %5271 = vmatprep.mubr.f32.mxu0 %v13249_v47  ;;  %5341 = vmatprep.mubr.f32.mxu1 %v13249_v47 }
 0x7d7   : > { %v5141_v39 = vsel %vm291_vm5, %v10529_v4, %v10518_v33  ;;  %v5139_v16 = vsel %vm291_vm5, %v10519_v20, %v10528_v13  ;;  %v5138_v2 = vsel %vm291_vm5, %v10528_v13, %v10529_v4  ;;  %v5123_v3 = vsel %vm274_vm4, %v10514_v12, %v10523_v8 }
 0x7d8   : > { %v5125_v43 = vsel %vm274_vm4, %v10524_v10, %v10513_v45  ;;  %v10537_v44 = vpop.permute.xlu1 %10536  ;;  %v5122_v48 = vsel %vm274_vm4, %v10523_v8, %v10524_v10  ;;  %v10532_v62 = vpop.permute.xlu0 %10531  ;;  %v9613_v15 = vpack.c.bf16 %v5139_v16, %v5123_v3 }
 0x7d9   : > { %v10539_v63 = vunpack.i.h.bf16 %v10537_v44  ;;  %v10538_v40 = vunpack.i.l.bf16 %v10537_v44  ;;  %v9605_v41 = vpack.c.bf16 %v5141_v39, %v5125_v43  ;;  %v9611_v5 = vpack.c.bf16 %v5138_v2, %v5122_v48 }
 0x7da   : > { %v10534_v32 = vunpack.i.h.bf16 %v10532_v62  ;;  %v10533_v23 = vunpack.i.l.bf16 %v10532_v62 }
 0x7db   : > { %9606 = vmatpush1.bf16.msra.mxu0 %v9605_v41  ;;  %9612 = vmatprep.subr.bf16.mxu1 %v9611_v5  ;;  %v5161_v30 = vsel %vm312_vm6, %v10539_v63, %v10538_v40 }
 0x7dc   : > { %v5158_v21 = vsel %vm312_vm6, %v10534_v32, %v10539_v63  ;;  %v5160_v46 = vsel %vm312_vm6, %v10538_v40, %v10533_v23  ;;  %9614 = vmatpush1.bf16.msra.mxu1 %v9613_v15  ;;  %v5171_v59 = vpop.permute.xlu1 %5170  ;;  %v5159_v38 = vsel %vm312_vm6, %v10533_v23, %v10534_v32  ;;  %v9615_v49 = vpack.c.bf16 %v5161_v30, %v13054_v61  ;;  %v5169_v51 = vpop.permute.xlu0 %5168  ;;  %v5359_v23 = vld [vmem:[#allocation2 + $0x10] sm:$0xff] }
 0x7dd   : > { %v9607_v42 = vpack.c.bf16 %v5159_v38, %v13035_v52  ;;  %v9609_v28 = vpack.c.bf16 %v5160_v46, %v13032_v29  ;;  %v9617_v60 = vpack.c.bf16 %v5158_v21, %v13051_v31  ;;  %v5175_v20 = vsel %vm329_vm7, %v5169_v51, %v5171_v59  ;;  %v5183_v31 = vld [vmem:[#allocation4 + $0x98] sm:$0xff]  ;;  %v5358_v46 = vld [vmem:[#allocation2 + $0x8] sm:$0xff] }
 0x7de   : > { %9616 = vmatprep.subr.bf16.mxu1 %v9615_v49 }
 0x7df   : > { %9608 = vmatprep.subr.bf16.mxu0 %v9607_v42 }
 0x7e0   : > { %9610 = vmatpush1.bf16.msra.mxu0 %v9609_v28  ;;  %9618 = vmatpush1.bf16.msra.mxu1 %v9617_v60  ;;  %v5173_v6 = vpop.permute.xlu1 %5172  ;;  %v5167_v33 = vpop.permute.xlu0 %5166 }
 0x7e1   : > { %5215 = vmatprep.subr.mxu0 %v5175_v20  ;;  %v5174_v61 = vsel %vm329_vm7, %v5171_v59, %v5173_v6  ;;  %v5177_v52 = vsel %vm329_vm7, %v5173_v6, %v5167_v33  ;;  %v5176_v29 = vsel %vm329_vm7, %v5167_v33, %v5169_v51 }
 0x7e2   : > { %5285 = vmatprep.subr.mxu1 %v5177_v52 }
 0x7e4   : > { %5216 = vmatpush1.msra.mxu0 %v5176_v29  ;;  %5286 = vmatpush1.msra.mxu1 %v5174_v61  ;;  %v5475_v43 = vpop.permute.xlu1 %5474 }
 0x7e5   : > { %9259 = vmatmul.mubr.msk.f32.vlgmr.msra.gmra.mrb[22].mxu0 %vm482_vm8, %v5183_v31  ;;  %9260 = vmatmul.mubr.msk.f32.vlgmr.msra.gmra.mrb[22].mxu1 %vm482_vm8, %v5183_v31 }
 0x7e6   : > { %5718 = vmatprep.mubr.f32.mxu1 %v13249_v47  ;;  %5647 = vmatprep.mubr.f32.mxu0 %v13249_v47 }
 0x7e8   : > { %v5369_v49 = vpop.permute.xlu1 %5368 }
 0x7ec   : > { %v6110_v20 = vpop.permute.xlu1 %6109 }
 0x7f0   : > { %v13391_v61 = vpop.permute.xlu1 %6364 }
 0x7f1   : > { %v5354_v3 = vpop.permute.xlu0 %5353 }
 0x7f5   : > { %v5481_v44 = vpop.permute.xlu0 %5480 }
 0x7f6   : > { %v5485_v30 = vsel %vm367_vm0, %v5481_v44, %v5475_v43 }
 0x7f7   : > { %v13345_v38 = vmul.f32 %v5485_v30, %v15029_v1 }
 0x7f9   : > { %v5375_v51 = vpop.permute.xlu0 %5374 }
 0x7fa   : > { %v5379_v28 = vsel %vm241_vm1, %v5375_v51, %v5369_v49 }
 0x7fb   : > { %v13360_v60 = vmul.f32 %v5379_v28, %v15050_v7 }
 0x7fd   : > { %v6116_v33 = vpop.permute.xlu0 %6115 }
 0x801   : > { %v13393_v52 = vpop.permute.xlu0 %6370 }
 0x883   : > { %v4395_v37 = vpop.f32.mrb[14].mxu0 }
 0x884   : > { %v4465_v12 = vpop.f32.mrb[14].mxu1  ;;  %v4396_v45 = vpop.f32.mrb[15].mxu0 }
 0x885   : > { %v4467_v17 = vpop.f32.mrb[15].mxu1 }
 0x890   : > { %v4608_v25 = vpop.f32.mrb[16].mxu1  ;;  %v4538_v11 = vpop.f32.mrb[16].mxu0 }
 0x891   : > { %v4609_v27 = vadd.f32 %v4608_v25, %v4465_v12  ;;  %v4610_v35 = vpop.f32.mrb[17].mxu1  ;;  %v4539_v55 = vpop.f32.mrb[17].mxu0 }
 0x892   : > { %v4540_v53 = vadd.f32 %v4539_v55, %v4396_v45 }
 0x89a   : > { %v4841_v0 = vpop.f32.mrb[18].mxu1 }
 0x89b   : > { %v4846_v26 = vadd.f32 %v4841_v0, %v4609_v27  ;;  %v4771_v34 = vpop.f32.mrb[18].mxu0  ;;  %v4843_v54 = vpop.f32.mrb[19].mxu1 }
 0x89c   : > { %v4772_v4 = vpop.f32.mrb[19].mxu0 }
 0x89d   : > { %v4845_v13 = vadd.f32 %v4772_v4, %v4540_v53 }
 0x8a6   : > { %v5022_v19 = vpop.f32.mrb[20].mxu0 }
 0x8a7   : > { %v5023_v10 = vpop.f32.mrb[21].mxu0  ;;  %v5092_v8 = vpop.f32.mrb[20].mxu1 }
 0x8a8   : > { %v5096_v39 = vadd.f32 %v5023_v10, %v4845_v13  ;;  %v5097_v16 = vadd.f32 %v5092_v8, %v4846_v26  ;;  %v5094_v2 = vpop.f32.mrb[21].mxu1  ;;  %v6120_v13 = vsel %vm1020_vm2, %v6116_v33, %v6110_v20 }
 0x8b8   : > { %v5273_v48 = vpop.f32.mrb[22].mxu0  ;;  %v5343_v63 = vpop.f32.mrb[22].mxu1 }
 0x8b9   : > { %v5348_v40 = vadd.f32 %v5343_v63, %v5097_v16  ;;  %v5274_v62 = vpop.f32.mrb[23].mxu0  ;;  %v5345_v41 = vpop.f32.mrb[23].mxu1 }
 0x8ba   : > { %v5347_v5 = vadd.f32 %v5274_v62, %v5096_v39  ;;  %v13439_v39 = vmul.f32 %v6120_v13, %v15057_v58 }
 0x8bb   : > { %v5357_v32 = vadd.f32 %v5354_v3, %v5348_v40 }
 0x8bc   : > { %v5356_v15 = vadd.f32 %v5354_v3, %v5347_v5 }
 0x8bd   : > { %v13339_v21 = vadd.f32 %v5359_v23, %v5357_v32 }
 0x8be   : > { %v13341_v59 = vadd.f32 %v5358_v46, %v5356_v15  ;;  %v15062_v15 = vld [vmem:[#allocation19_spill] sm:$0xff] }
 0x8bf   : > { %5363 = vst [vmem:[#allocation2 + $0x10] sm:$0xff] %v13339_v21  ;;  %5478 = vrot.lane.b32.xlu1 %v13339_v21, %s11040_s7  ;;  %v10540_v42 = vpack.i.bf16 %v13249_v47, %v13339_v21 }
 0x8c0   : > { %5362 = vst [vmem:[#allocation2 + $0x8] sm:$0xff] %v13341_v59  ;;  %5476 = vrot.lane.b32.xlu0 %v13341_v59, %s11040_s7  ;;  %v10555_v6 = vpack.i.bf16 %v13341_v59, %v13249_v47 }
 0x8c3   : > { %5542 = vrot.lane.b32.xlu1 %v13345_v38, %s11047_s20 }
 0x8c4   : > { %10541 = vrot.lane.b32.xlu0 %v10540_v42, %s11044_s17 }
 0x8c7   : > { %5372 = vrot.lane.b32.xlu1 %v13339_v21, %s11041_s8 }
 0x8c8   : > { %5370 = vrot.lane.b32.xlu0 %v13341_v59, %s11041_s8 }
 0x8cb   : > { %5436 = vrot.lane.b32.xlu1 %v13360_v60, %s11047_s20 }
 0x8cc   : > { %10546 = vrot.lane.b32.xlu0 %v10540_v42, %s11045_s18 }
 0x8cf   : > { %6113 = vrot.lane.b32.xlu1 %v13339_v21, %s11042_s13 }
 0x8d0   : > { %10551 = vrot.lane.b32.xlu0 %v10540_v42, %s11046_s19 }
 0x8d3   : > { %6368 = vrot.lane.b32.xlu1 %v13339_v21, %s11043_s14 }
 0x8d4   : > { %5928 = vrot.lane.b32.xlu0 %v13249_v47, %s11047_s20 }
 0x8d7   : > { %5922 = vrot.lane.b32.xlu1 %v13249_v47, %s11047_s20 }
 0x8d8   : > { %6111 = vrot.lane.b32.xlu0 %v13341_v59, %s11042_s13 }
 0x8db   : > { %5926 = vrot.lane.b32.xlu1 %v13339_v21, %s11047_s20 }
 0x8dc   : > { %6366 = vrot.lane.b32.xlu0 %v13341_v59, %s11043_s14 }
 0x8df   : > { %10556 = vrot.lane.b32.xlu1 %v10555_v6, %s11044_s17 }
 0x8e0   : > { %5924 = vrot.lane.b32.xlu0 %v13341_v59, %s11047_s20 }
 0x8e3   : > { %10561 = vrot.lane.b32.xlu1 %v10555_v6, %s11045_s18 }
 0x8e7   : > { %10566 = vrot.lane.b32.xlu1 %v10555_v6, %s11046_s19 }
 0x931   : > { %v5479_v29 = vpop.permute.xlu1 %5478 }
 0x932   : > { %v5482_v31 = vsel %vm367_vm0, %v5479_v29, %v5481_v44  ;;  %v5477_v37 = vpop.permute.xlu0 %5476 }
 0x933   : > { %v13398_v12 = vmul.f32 %v5482_v31, %v15031_v56  ;;  %v5484_v45 = vsel %vm367_vm0, %v5475_v43, %v5477_v37  ;;  %v5483_v43 = vsel %vm367_vm0, %v5477_v37, %v5479_v29  ;;  %v15064_v29 = vld [vmem:[#allocation21_spill] sm:$0xff] }
 0x934   : > { %v13403_v17 = vmul.f32 %v5484_v45, %v15032_v50  ;;  %v13454_v44 = vmul.f32 %v5483_v43, %v15049_v24 }
 0x935   : > { %v13405_v25 = vpop.permute.xlu1 %5542  ;;  %5548 = vrot.lane.b32.xlu0 %v13398_v12, %s11047_s20 }
 0x936   : > { %v13409_v11 = vpop.permute.xlu0 %10541  ;;  %v10580_v27 = vpack.i.bf16 %v13403_v17, %v13345_v38  ;;  %v10585_v63 = vpack.i.bf16 %v13398_v12, %v13454_v44 }
 0x938   : > { %10581 = vrot.lane.b32.xlu1 %v10580_v27, %s11044_s17 }
 0x939   : > { %v5373_v35 = vpop.permute.xlu1 %5372 }
 0x93a   : > { %v5376_v55 = vsel %vm241_vm1, %v5373_v35, %v5375_v51  ;;  %v5371_v53 = vpop.permute.xlu0 %5370 }
 0x93b   : > { %v13417_v0 = vmul.f32 %v5376_v55, %v15052_v36  ;;  %v5378_v26 = vsel %vm241_vm1, %v5369_v49, %v5371_v53  ;;  %v5377_v62 = vsel %vm241_vm1, %v5371_v53, %v5373_v35  ;;  %v15065_v35 = vld [vmem:[#allocation23_spill] sm:$0xff]  ;;  %v15066_v53 = vld [vmem:[#allocation24_spill] sm:$0xff] }
 0x93c   : > { %10591 = vrot.lane.b32.xlu1 %v10580_v27, %s11045_s18  ;;  %v13427_v54 = vmul.f32 %v5378_v26, %v15051_v18  ;;  %v13475_v32 = vmul.f32 %v5377_v62, %v15053_v14 }
 0x93d   : > { %v13422_v34 = vpop.permute.xlu1 %5436  ;;  %5442 = vrot.lane.b32.xlu0 %v13417_v0, %s11047_s20 }
 0x93e   : > { %v13429_v4 = vpop.permute.xlu0 %10546  ;;  %v10610_v8 = vpack.i.bf16 %v13427_v54, %v13360_v60  ;;  %v10615_v46 = vpack.i.bf16 %v13417_v0, %v13475_v32 }
 0x940   : > { %10601 = vrot.lane.b32.xlu1 %v10580_v27, %s11046_s19  ;;  %v6375_v27 = vsel %vm1292_vm3, %v13393_v52, %v13391_v61 }
 0x941   : > { %v6114_v19 = vpop.permute.xlu1 %6113  ;;  %v13529_v26 = vmul.f32 %v6375_v27, %v15066_v53 }
 0x942   : > { %v6117_v10 = vsel %vm1020_vm2, %v6114_v19, %v6116_v33  ;;  %v13444_v2 = vpop.permute.xlu0 %10551 }
 0x943   : > { %v13442_v16 = vmul.f32 %v6117_v10, %v15056_v57 }
 0x944   : > { %10611 = vrot.lane.b32.xlu1 %v10610_v8, %s11044_s17 }
 0x945   : > { %v10570_v3 = vpack.i.bf16 %v13439_v39, %v13442_v16  ;;  %v6369_v42 = vpop.permute.xlu1 %6368 }
 0x946   : > { %v13456_v48 = vpop.permute.xlu0 %5928  ;;  %v6372_v45 = vsel %vm1292_vm3, %v6369_v42, %v13393_v52 }
 0x947   : > { %10571 = vrot.lane.b32.xlu0 %v10570_v3, %s11044_s17  ;;  %v13526_v55 = vmul.f32 %v6372_v45, %v15065_v35 }
 0x948   : > { %10621 = vrot.lane.b32.xlu1 %v10610_v8, %s11045_s18 }
 0x949   : > { %v10645_v13 = vpack.i.bf16 %v13529_v26, %v13526_v55  ;;  %v13552_v52 = vpop.permute.xlu1 %5922 }
 0x94a   : > { %v6112_v40 = vpop.permute.xlu0 %6111 }
 0x94b   : > { %10576 = vrot.lane.b32.xlu0 %v10570_v3, %s11045_s18  ;;  %v6118_v41 = vsel %vm1020_vm2, %v6112_v40, %v6114_v19  ;;  %v6119_v5 = vsel %vm1020_vm2, %v6110_v20, %v6112_v40  ;;  %v15063_v20 = vld [vmem:[#allocation20_spill] sm:$0xff] }
 0x94c   : > { %5546 = vrot.lane.b32.xlu1 %v13454_v44, %s11047_s20  ;;  %v13478_v23 = vmul.f32 %v6119_v5, %v15054_v22  ;;  %v13481_v30 = vmul.f32 %v6118_v41, %v15062_v15 }
 0x94d   : > { %v13554_v19 = vpop.permute.xlu1 %5926 }
 0x94e   : > { %v10655_v49 = vpack.i.bf16 %v13481_v30, %v13478_v23  ;;  %v6367_v51 = vpop.permute.xlu0 %6366 }
 0x94f   : > { %10586 = vrot.lane.b32.xlu0 %v10585_v63, %s11044_s17  ;;  %v6373_v28 = vsel %vm1292_vm3, %v6367_v51, %v6369_v42  ;;  %v6374_v6 = vsel %vm1292_vm3, %v13391_v61, %v6367_v51  ;;  %v9272_v61 = vld [vmem:[%s14922_s2 + $0x20] sm:$0xff] }
 0x950   : > { %10631 = vrot.lane.b32.xlu1 %v10610_v8, %s11046_s19  ;;  %v13503_v33 = vmul.f32 %v6374_v6, %v15063_v20  ;;  %v13506_v31 = vmul.f32 %v6373_v28, %v15064_v29 }
 0x951   : > { %v13556_v10 = vpop.permute.xlu1 %10556 }
 0x952   : > { %v10675_v37 = vpack.i.bf16 %v13506_v31, %v13503_v33 }
 0x953   : > { %10596 = vrot.lane.b32.xlu0 %v10585_v63, %s11045_s18 }
 0x954   : > { %6181 = vrot.lane.b32.xlu1 %v13442_v16, %s11047_s20 }
 0x955   : > { %v13558_v8 = vpop.permute.xlu1 %10561 }
 0x957   : > { %10606 = vrot.lane.b32.xlu0 %v10585_v63, %s11046_s19  ;;  %v13562_v63 = vpop.permute.xlu0 %5924 }
 0x958   : > { %5440 = vrot.lane.b32.xlu1 %v13475_v32, %s11047_s20 }
 0x95b   : > { %10616 = vrot.lane.b32.xlu0 %v10615_v46, %s11044_s17 }
 0x95c   : > { %10656 = vrot.lane.b32.xlu1 %v10655_v49, %s11044_s17 }
 0x95f   : > { %10626 = vrot.lane.b32.xlu0 %v10615_v46, %s11045_s18 }
 0x960   : > { %10661 = vrot.lane.b32.xlu1 %v10655_v49, %s11045_s18 }
 0x963   : > { %5544 = vrot.lane.b32.xlu0 %v13403_v17, %s11047_s20 }
 0x964   : > { %10666 = vrot.lane.b32.xlu1 %v10655_v49, %s11046_s19 }
 0x967   : > { %10636 = vrot.lane.b32.xlu0 %v10615_v46, %s11046_s19 }
 0x968   : > { %6177 = vrot.lane.b32.xlu1 %v13478_v23, %s11047_s20 }
 0x96b   : > { %5438 = vrot.lane.b32.xlu0 %v13427_v54, %s11047_s20 }
 0x96c   : > { %10676 = vrot.lane.b32.xlu1 %v10675_v37, %s11044_s17 }
 0x96f   : > { %10641 = vrot.lane.b32.xlu0 %v10570_v3, %s11046_s19  ;;  %v13560_v3 = vpop.permute.xlu1 %10566 }
 0x970   : > { %10681 = vrot.lane.b32.xlu1 %v10675_v37, %s11045_s18 }
 0x973   : > { %6183 = vrot.lane.b32.xlu0 %v13439_v39, %s11047_s20 }
 0x974   : > { %10686 = vrot.lane.b32.xlu1 %v10675_v37, %s11046_s19 }
 0x977   : > { %10646 = vrot.lane.b32.xlu0 %v10645_v13, %s11044_s17 }
 0x978   : > { %6432 = vrot.lane.b32.xlu1 %v13503_v33, %s11047_s20 }
 0x97b   : > { %10651 = vrot.lane.b32.xlu0 %v10645_v13, %s11045_s18 }
 0x97c   : > { %6436 = vrot.lane.b32.xlu1 %v13526_v55, %s11047_s20 }
 0x97f   : > { %6179 = vrot.lane.b32.xlu0 %v13481_v30, %s11047_s20 }
 0x980   : > { %6623 = vperm.xlu1 %10389, %v9272_v61  }
 0x983   : > { %10671 = vrot.lane.b32.xlu0 %v10645_v13, %s11046_s19 }
 0x987   : > { %6434 = vrot.lane.b32.xlu0 %v13506_v31, %s11047_s20 }
 0x98b   : > { %6438 = vrot.lane.b32.xlu0 %v13529_v26, %s11047_s20 }
 0x9a7   : > { %v13564_v49 = vpop.permute.xlu0 %5548 }
 0x9aa   : > { %v10582_v43 = vpop.permute.xlu1 %10581 }
 0x9ab   : > { %v10584_v40 = vunpack.i.h.bf16 %v10582_v43  ;;  %v10583_v62 = vunpack.i.l.bf16 %v10582_v43 }
 0x9ad   : > { %v5500_v51 = vsel %vm274_vm4, %v10583_v62, %v10584_v40 }
 0x9ae   : > { %v10592_v41 = vpop.permute.xlu1 %10591 }
 0x9af   : > { %v10594_v5 = vunpack.i.h.bf16 %v10592_v41  ;;  %v10593_v46 = vunpack.i.l.bf16 %v10592_v41  ;;  %v13570_v37 = vpop.permute.xlu0 %5442 }
 0x9b1   : > { %v5516_v42 = vsel %vm291_vm5, %v10593_v46, %v10594_v5 }
 0x9b2   : > { %v10602_v28 = vpop.permute.xlu1 %10601  ;;  %v9619_v6 = vpack.c.bf16 %v5516_v42, %v5500_v51 }
 0x9b3   : > { %v10604_v58 = vunpack.i.h.bf16 %v10602_v28  ;;  %v10603_v57 = vunpack.i.l.bf16 %v10602_v28 }
 0x9b4   : > { %9620 = vmatprep.subr.bf16.mxu0 %v9619_v6 }
 0x9b6   : > { %v13572_v45 = vpop.permute.xlu1 %10611 }
 0x9b9   : > { %v13574_v27 = vpop.permute.xlu0 %10571 }
 0x9ba   : > { %v13576_v13 = vpop.permute.xlu1 %10621 }
 0x9bd   : > { %v13578_v61 = vpop.permute.xlu0 %10576 }
 0x9be   : > { %v13580_v43 = vpop.permute.xlu1 %5546 }
 0x9c1   : > { %v10587_v41 = vpop.permute.xlu0 %10586 }
 0x9c2   : > { %v13582_v53 = vpop.permute.xlu1 %10631  ;;  %v10589_v35 = vunpack.i.h.bf16 %v10587_v41  ;;  %v10588_v29 = vunpack.i.l.bf16 %v10587_v41 }
 0x9c4   : > { %v5501_v15 = vsel %vm274_vm4, %v10589_v35, %v10583_v62  ;;  %v5499_v22 = vsel %vm274_vm4, %v10584_v40, %v10588_v29  ;;  %v5498_v41 = vsel %vm274_vm4, %v10588_v29, %v10589_v35  ;;  %v5536_v40 = vsel %vm312_vm6, %v10603_v57, %v10604_v58 }
 0x9c5   : > { %v10597_v20 = vpop.permute.xlu0 %10596 }
 0x9c6   : > { %v10599_v51 = vunpack.i.h.bf16 %v10597_v20  ;;  %v10598_v42 = vunpack.i.l.bf16 %v10597_v20  ;;  %v13584_v6 = vpop.permute.xlu1 %6181 }
 0x9c8   : > { %v5517_v14 = vsel %vm291_vm5, %v10599_v51, %v10593_v46  ;;  %v5515_v36 = vsel %vm291_vm5, %v10594_v5, %v10598_v42  ;;  %v5514_v20 = vsel %vm291_vm5, %v10598_v42, %v10599_v51  ;;  %v10624_v46 = vunpack.i.h.bf16 %v13576_v13 }
 0x9c9   : > { %v10607_v18 = vpop.permute.xlu0 %10606  ;;  %v9621_v28 = vpack.c.bf16 %v5517_v14, %v5501_v15  ;;  %v9627_v7 = vpack.c.bf16 %v5514_v20, %v5498_v41  ;;  %v9629_v24 = vpack.c.bf16 %v5515_v36, %v5499_v22  ;;  %v5550_v42 = vsel %vm329_vm7, %v13580_v43, %v13564_v49 }
 0x9ca   : > { %v10609_v62 = vunpack.i.h.bf16 %v10607_v18  ;;  %v10608_v56 = vunpack.i.l.bf16 %v10607_v18  ;;  %v13598_v1 = vpop.permute.xlu1 %5440 }
 0x9cb   : > { %9622 = vmatpush1.bf16.msra.mxu0 %v9621_v28  ;;  %9628 = vmatprep.subr.bf16.mxu1 %v9627_v7  ;;  %v9625_v7 = vpack.c.bf16 %v5536_v40, %v13345_v38  ;;  %v10613_v38 = vunpack.i.l.bf16 %v13572_v45 }
 0x9cc   : > { %v5534_v5 = vsel %vm312_vm6, %v10608_v56, %v10609_v62  ;;  %9630 = vmatpush1.bf16.msra.mxu1 %v9629_v24  ;;  %v5535_v29 = vsel %vm312_vm6, %v10604_v58, %v10608_v56  ;;  %v5537_v14 = vsel %vm312_vm6, %v10609_v62, %v10603_v57  ;;  %v10623_v24 = vunpack.i.l.bf16 %v13576_v13  ;;  %v5559_v13 = vld [vmem:[#allocation4 + $0xa8] sm:$0xff] }
 0x9cd   : > { %v10617_v36 = vpop.permute.xlu0 %10616  ;;  %v9623_v18 = vpack.c.bf16 %v5535_v29, %v13403_v17  ;;  %v9631_v22 = vpack.c.bf16 %v5537_v14, %v13398_v12  ;;  %v9633_v15 = vpack.c.bf16 %v5534_v5, %v13454_v44  ;;  %v5553_v57 = vsel %vm329_vm7, %v13564_v49, %v13405_v25 }
 0x9ce   : > { %v13611_v35 = vpop.permute.xlu1 %10656  ;;  %v10619_v56 = vunpack.i.h.bf16 %v10617_v36  ;;  %v10618_v58 = vunpack.i.l.bf16 %v10617_v36  ;;  %v10614_v17 = vunpack.i.h.bf16 %v13572_v45  ;;  %v5410_v41 = vsel %vm291_vm5, %v10623_v24, %v10624_v46 }
 0x9cf   : > { %9624 = vmatprep.subr.bf16.mxu0 %v9623_v18  ;;  %9632 = vmatprep.subr.bf16.mxu1 %v9631_v22 }
 0x9d0   : > { %9626 = vmatpush1.bf16.msra.mxu0 %v9625_v7  ;;  %9634 = vmatpush1.bf16.msra.mxu1 %v9633_v15  ;;  %v5393_v20 = vsel %vm274_vm4, %v10614_v17, %v10618_v58  ;;  %v5392_v45 = vsel %vm274_vm4, %v10618_v58, %v10619_v56  ;;  %v5394_v22 = vsel %vm274_vm4, %v10613_v38, %v10614_v17  ;;  %v10634_v15 = vunpack.i.h.bf16 %v13582_v53 }
 0x9d1   : > { %v10627_v12 = vpop.permute.xlu0 %10626  ;;  %5662 = vmatprep.subr.mxu1 %v5553_v57  ;;  %v10633_v7 = vunpack.i.l.bf16 %v13582_v53  ;;  %v10543_v57 = vunpack.i.l.bf16 %v13409_v11 }
 0x9d2   : > { %v10629_v44 = vunpack.i.h.bf16 %v10627_v12  ;;  %v10628_v51 = vunpack.i.l.bf16 %v10627_v12  ;;  %v13632_v62 = vpop.permute.xlu1 %10661  ;;  %v10549_v12 = vunpack.i.h.bf16 %v13429_v4 }
 0x9d4   : > { %v5409_v28 = vsel %vm291_vm5, %v10624_v46, %v10628_v51  ;;  %5663 = vmatpush1.msra.mxu1 %v5550_v42  ;;  %v5408_v40 = vsel %vm291_vm5, %v10628_v51, %v10629_v44  ;;  %v5411_v49 = vsel %vm291_vm5, %v10629_v44, %v10623_v24  ;;  %v5395_v46 = vsel %vm274_vm4, %v10619_v56, %v10613_v38 }
 0x9d5   : > { %v5545_v5 = vpop.permute.xlu0 %5544  ;;  %v9643_v29 = vpack.c.bf16 %v5408_v40, %v5392_v45  ;;  %9263 = vmatmul.mubr.msk.f32.vlgmr.msra.gmra.mrb[24].mxu1 %vm482_vm8, %v5559_v13  ;;  %v9645_v14 = vpack.c.bf16 %v5409_v28, %v5393_v20  ;;  %v9635_v24 = vpack.c.bf16 %v5410_v41, %v5394_v22  ;;  %v10548_v38 = vunpack.i.l.bf16 %v13429_v4 }
 0x9d6   : > { %v5551_v36 = vsel %vm329_vm7, %v5545_v5, %v13580_v43  ;;  %v5552_v18 = vsel %vm329_vm7, %v13405_v25, %v5545_v5  ;;  %5863 = vmatprep.mubr.f32.mxu1 %v13249_v47  ;;  %v9637_v43 = vpack.c.bf16 %v5411_v49, %v5395_v46  ;;  %v10544_v25 = vunpack.i.h.bf16 %v13409_v11  ;;  %v13658_v53 = vpop.permute.xlu1 %10666 }
 0x9d7   : > { %5591 = vmatprep.subr.mxu0 %v5551_v36  ;;  %9644 = vmatprep.subr.bf16.mxu1 %v9643_v29  ;;  %v10564_v44 = vunpack.i.h.bf16 %v13558_v8  ;;  %v10563_v51 = vunpack.i.l.bf16 %v13558_v8  ;;  %v10559_v11 = vunpack.i.h.bf16 %v13556_v10  ;;  %v10558_v4 = vunpack.i.l.bf16 %v13556_v10 }
 0x9d8   : > { %5592 = vmatpush1.msra.mxu0 %v5552_v18  ;;  %9646 = vmatpush1.bf16.msra.mxu1 %v9645_v14  ;;  %v10569_v5 = vunpack.i.h.bf16 %v13560_v3  ;;  %v10568_v29 = vunpack.i.l.bf16 %v13560_v3  ;;  %v5894_v10 = vsel %vm291_vm5, %v10548_v38, %v10549_v12  ;;  %v5878_v18 = vsel %vm274_vm4, %v10543_v57, %v10544_v25 }
 0x9d9   : > { %v10637_v58 = vpop.permute.xlu0 %10636  ;;  %9636 = vmatprep.subr.bf16.mxu0 %v9635_v24  ;;  %9262 = vmatmul.mubr.msk.f32.vlgmr.msra.gmra.mrb[24].mxu0 %vm482_vm8, %v5559_v13  ;;  %v5430_v13 = vsel %vm312_vm6, %v10633_v7, %v10634_v15  ;;  %v5896_v14 = vsel %vm291_vm5, %v10563_v51, %v10564_v44  ;;  %v5895_v22 = vsel %vm291_vm5, %v10564_v44, %v10548_v38 }
 0x9da   : > { %v10639_v17 = vunpack.i.h.bf16 %v10637_v58  ;;  %v10638_v56 = vunpack.i.l.bf16 %v10637_v58  ;;  %9638 = vmatpush1.bf16.msra.mxu0 %v9637_v43  ;;  %5792 = vmatprep.mubr.f32.mxu0 %v13249_v47  ;;  %v9641_v49 = vpack.c.bf16 %v5430_v13, %v13360_v60  ;;  %v13686_v36 = vpop.permute.xlu1 %6177  ;;  %v9659_v46 = vpack.c.bf16 %v5894_v10, %v5878_v18  ;;  %v5453_v58 = vld [vmem:[#allocation4 + $0xa0] sm:$0xff] }
 0x9db   : > { %v5444_v43 = vsel %vm329_vm7, %v13598_v1, %v13570_v37  ;;  %v5879_v38 = vsel %vm274_vm4, %v10559_v11, %v10543_v57  ;;  %v5932_v10 = vsel %vm329_vm7, %v13552_v52, %v13562_v63 }
 0x9dc   : > { %v5428_v42 = vsel %vm312_vm6, %v10638_v56, %v10639_v17  ;;  %v5429_v41 = vsel %vm312_vm6, %v10634_v15, %v10638_v56  ;;  %v5431_v20 = vsel %vm312_vm6, %v10639_v17, %v10633_v7  ;;  %v5897_v15 = vsel %vm291_vm5, %v10549_v12, %v10563_v51 }
 0x9dd   : > { %v5439_v28 = vpop.permute.xlu0 %5438  ;;  %v9639_v45 = vpack.c.bf16 %v5429_v41, %v13427_v54  ;;  %v9647_v8 = vpack.c.bf16 %v5431_v20, %v13417_v0  ;;  %v9649_v40 = vpack.c.bf16 %v5428_v42, %v13475_v32  ;;  %v10554_v54 = vunpack.i.h.bf16 %v13444_v2 }
 0x9de   : > { %v10553_v0 = vunpack.i.l.bf16 %v13444_v2  ;;  %v5445_v60 = vsel %vm329_vm7, %v5439_v28, %v13598_v1  ;;  %v5447_v32 = vsel %vm329_vm7, %v13570_v37, %v13422_v34  ;;  %v5880_v2 = vsel %vm274_vm4, %v10558_v4, %v10559_v11  ;;  %v13726_v13 = vpop.permute.xlu1 %10676 }
 0x9df   : > { %9640 = vmatprep.subr.bf16.mxu0 %v9639_v45  ;;  %9648 = vmatprep.subr.bf16.mxu1 %v9647_v8  ;;  %v9651_v7 = vpack.c.bf16 %v5896_v14, %v5880_v2  ;;  %v5446_v24 = vsel %vm329_vm7, %v13422_v34, %v5439_v28  ;;  %v5917_v56 = vsel %vm312_vm6, %v10554_v54, %v10568_v29  ;;  %v10579_v11 = vunpack.i.h.bf16 %v13578_v61 }
 0x9e0   : > { %9642 = vmatpush1.bf16.msra.mxu0 %v9641_v49  ;;  %9650 = vmatpush1.bf16.msra.mxu1 %v9649_v40  ;;  %v5915_v17 = vsel %vm312_vm6, %v10569_v5, %v10553_v0  ;;  %v5914_v12 = vsel %vm312_vm6, %v10553_v0, %v10554_v54  ;;  %v5881_v34 = vsel %vm274_vm4, %v10544_v25, %v10558_v4  ;;  %v10578_v42 = vunpack.i.l.bf16 %v13578_v61 }
 0x9e1   : > { %v13695_v3 = vpop.permute.xlu0 %10641  ;;  %5736 = vmatprep.subr.mxu0 %v5445_v60  ;;  %5807 = vmatprep.subr.mxu1 %v5447_v32  ;;  %v5916_v1 = vsel %vm312_vm6, %v10568_v29, %v10569_v5  ;;  %v9653_v44 = vpack.c.bf16 %v5897_v15, %v5881_v34  ;;  %v9661_v51 = vpack.c.bf16 %v5895_v22, %v5879_v38  ;;  %v10664_v41 = vunpack.i.h.bf16 %v13632_v62 }
 0x9e2   : > { %v9655_v57 = vpack.c.bf16 %v5915_v17, %v13341_v59  ;;  %v9663_v25 = vpack.c.bf16 %v5917_v56, %v13249_v47  ;;  %v10663_v20 = vunpack.i.l.bf16 %v13632_v62  ;;  %v9657_v4 = vpack.c.bf16 %v5916_v1, %v13249_v47  ;;  %v13762_v14 = vpop.permute.xlu1 %10681 }
 0x9e3   : > { %v9665_v28 = vpack.c.bf16 %v5914_v12, %v13339_v21  ;;  %v10574_v59 = vunpack.i.h.bf16 %v13574_v27  ;;  %v10573_v45 = vunpack.i.l.bf16 %v13574_v27  ;;  %v10659_v8 = vunpack.i.h.bf16 %v13611_v35 }
 0x9e4   : > { %5737 = vmatpush1.msra.mxu0 %v5446_v24  ;;  %5808 = vmatpush1.msra.mxu1 %v5444_v43  ;;  %v10658_v61 = vunpack.i.l.bf16 %v13611_v35  ;;  %v10644_v62 = vunpack.i.h.bf16 %v13695_v3  ;;  %v10643_v49 = vunpack.i.l.bf16 %v13695_v3  ;;  %v5933_v21 = vsel %vm329_vm7, %v13456_v48, %v13552_v52 }
 0x9e5   : > { %v13724_v37 = vpop.permute.xlu0 %6183  ;;  %9652 = vmatprep.subr.bf16.mxu0 %v9651_v7  ;;  %9660 = vmatprep.subr.bf16.mxu1 %v9659_v46  ;;  %v5931_v27 = vsel %vm329_vm7, %v13562_v63, %v13554_v19  ;;  %v6151_v35 = vsel %vm291_vm5, %v10663_v20, %v10664_v41  ;;  %v10669_v5 = vunpack.i.h.bf16 %v13658_v53  ;;  %v10668_v29 = vunpack.i.l.bf16 %v13658_v53  ;;  %v5939_v63 = vld [vmem:[#allocation4 + $0xb0] sm:$0xff] }
 0x9e6   : > { %9264 = vmatmul.mubr.msk.f32.vlgmr.msra.gmra.mrb[24].mxu0 %vm482_vm8, %v5453_v58  ;;  %9265 = vmatmul.mubr.msk.f32.vlgmr.msra.gmra.mrb[24].mxu1 %vm482_vm8, %v5453_v58  ;;  %v5930_v54 = vsel %vm329_vm7, %v13554_v19, %v13456_v48  ;;  %v6150_v0 = vsel %vm291_vm5, %v10664_v41, %v10578_v42  ;;  %v6152_v53 = vsel %vm291_vm5, %v10579_v11, %v10663_v20  ;;  %v10684_v7 = vunpack.i.h.bf16 %v13762_v14  ;;  %v10687_v38 = vpop.permute.xlu1 %10686 }
 0x9e7   : > { %9654 = vmatpush1.bf16.msra.mxu0 %v9653_v44  ;;  %9662 = vmatpush1.bf16.msra.mxu1 %v9661_v51  ;;  %v6135_v32 = vsel %vm274_vm4, %v10658_v61, %v10659_v8  ;;  %v6133_v3 = vsel %vm274_vm4, %v10573_v45, %v10574_v59  ;;  %v6170_v18 = vsel %vm312_vm6, %v10669_v5, %v10643_v49  ;;  %v10683_v58 = vunpack.i.l.bf16 %v13762_v14 }
 0x9e8   : > { %9656 = vmatprep.subr.bf16.mxu0 %v9655_v57  ;;  %9664 = vmatprep.subr.bf16.mxu1 %v9663_v25  ;;  %v9667_v2 = vpack.c.bf16 %v6151_v35, %v6135_v32  ;;  %v6172_v48 = vsel %vm312_vm6, %v10644_v62, %v10668_v29  ;;  %v6134_v19 = vsel %vm274_vm4, %v10659_v8, %v10573_v45  ;;  %v10679_v44 = vunpack.i.h.bf16 %v13726_v13 }
 0x9e9   : > { %v13742_v40 = vpop.permute.xlu0 %10646  ;;  %6027 = vmatprep.mubr.f32.mxu0 %v13249_v47  ;;  %6098 = vmatprep.mubr.f32.mxu1 %v13249_v47  ;;  %v6149_v47 = vsel %vm291_vm5, %v10578_v42, %v10579_v11  ;;  %v6136_v22 = vsel %vm274_vm4, %v10574_v59, %v10658_v61  ;;  %v6171_v15 = vsel %vm312_vm6, %v10668_v29, %v10669_v5  ;;  %v10678_v51 = vunpack.i.l.bf16 %v13726_v13  ;;  %v6194_v5 = vld [vmem:[#allocation4 + $0xb8] sm:$0xff] }
 0x9ea   : > { %v9675_v52 = vpack.c.bf16 %v6149_v47, %v6133_v3  ;;  %v9669_v46 = vpack.c.bf16 %v6152_v53, %v6136_v22  ;;  %v9677_v24 = vpack.c.bf16 %v6150_v0, %v6134_v19  ;;  %v6169_v43 = vsel %vm312_vm6, %v10643_v49, %v10644_v62  ;;  %v6433_v14 = vpop.permute.xlu1 %6432 }
 0x9eb   : > { %9658 = vmatpush1.bf16.msra.mxu0 %v9657_v4  ;;  %9666 = vmatpush1.bf16.msra.mxu1 %v9665_v28  ;;  %v9671_v56 = vpack.c.bf16 %v6170_v18, %v13481_v30  ;;  %v9679_v12 = vpack.c.bf16 %v6172_v48, %v13439_v39  ;;  %v10649_v57 = vunpack.i.h.bf16 %v13742_v40  ;;  %v10648_v25 = vunpack.i.l.bf16 %v13742_v40  ;;  %v13804_v39 = vld [vmem:[#allocation2 + $0x18] sm:$0xff] }
 0x9ec   : > { %5971 = vmatprep.subr.mxu0 %v5931_v27  ;;  %6042 = vmatprep.subr.mxu1 %v5933_v21  ;;  %v9673_v11 = vpack.c.bf16 %v6171_v15, %v13478_v23  ;;  %v9681_v30 = vpack.c.bf16 %v6169_v43, %v13442_v16  ;;  %v10689_v42 = vunpack.i.h.bf16 %v10687_v38  ;;  %v10688_v41 = vunpack.i.l.bf16 %v10687_v38 }
 0x9ed   : > { %v10652_v60 = vpop.permute.xlu0 %10651  ;;  %v6188_v13 = vsel %vm329_vm7, %v13724_v37, %v13686_v36  ;;  %v6406_v4 = vsel %vm291_vm5, %v10683_v58, %v10684_v7  ;;  %v6185_v45 = vsel %vm329_vm7, %v13584_v6, %v13724_v37  ;;  %v6390_v8 = vsel %vm274_vm4, %v10678_v51, %v10679_v44 }
 0x9ee   : > { %v10654_v34 = vunpack.i.h.bf16 %v10652_v60  ;;  %v10653_v1 = vunpack.i.l.bf16 %v10652_v60  ;;  %v6388_v61 = vsel %vm274_vm4, %v10648_v25, %v10649_v57  ;;  %v9683_v35 = vpack.c.bf16 %v6406_v4, %v6390_v8 }
 0x9ef   : > { %5972 = vmatpush1.msra.mxu0 %v5932_v10  ;;  %6043 = vmatpush1.msra.mxu1 %v5930_v54  ;;  %v6389_v29 = vsel %vm274_vm4, %v10679_v44, %v10648_v25  ;;  %v15070_v25 = vld [vmem:[#allocation11_spill] sm:$0xff] }
 0x9f0   : > { %9668 = vmatprep.subr.bf16.mxu0 %v9667_v2  ;;  %9676 = vmatprep.subr.bf16.mxu1 %v9675_v52  ;;  %v6404_v59 = vsel %vm291_vm5, %v10653_v1, %v10654_v34  ;;  %v6407_v40 = vsel %vm291_vm5, %v10654_v34, %v10683_v58  ;;  %v6405_v62 = vsel %vm291_vm5, %v10684_v7, %v10653_v1  ;;  %v6437_v2 = vpop.permute.xlu1 %6436  ;;  %v15067_v58 = vld [vmem:[#allocation25_spill] sm:$0xff]  ;;  %v15069_v1 = vld [vmem:[#allocation26_spill] sm:$0xff] }
 0x9f1   : > { %9266 = vmatmul.mubr.msk.f32.vlgmr.msra.gmra.mrb[24].mxu0 %vm482_vm8, %v5939_v63  ;;  %9267 = vmatmul.mubr.msk.f32.vlgmr.msra.gmra.mrb[24].mxu1 %vm482_vm8, %v5939_v63  ;;  %v6180_v17 = vpop.permute.xlu0 %6179  ;;  %v9691_v47 = vpack.c.bf16 %v6404_v59, %v6388_v61  ;;  %v9693_v53 = vpack.c.bf16 %v6405_v62, %v6389_v29  ;;  %v6449_v63 = vld [vmem:[#allocation4 + $0xc0] sm:$0xff]  ;;  %v15073_v29 = vld [vmem:[#allocation14_spill] sm:$0xff] }
 0x9f2   : > { %9670 = vmatpush1.bf16.msra.mxu0 %v9669_v46  ;;  %9678 = vmatpush1.bf16.msra.mxu1 %v9677_v24  ;;  %v6186_v28 = vsel %vm329_vm7, %v6180_v17, %v13584_v6  ;;  %v6391_v6 = vsel %vm274_vm4, %v10649_v57, %v10678_v51  ;;  %v6187_v37 = vsel %vm329_vm7, %v13686_v36, %v6180_v17 }
 0x9f3   : > { %9672 = vmatprep.subr.bf16.mxu0 %v9671_v56  ;;  %9680 = vmatprep.subr.bf16.mxu1 %v9679_v12  ;;  %v9685_v0 = vpack.c.bf16 %v6407_v40, %v6391_v6  ;;  %v6426_v36 = vsel %vm312_vm6, %v10688_v41, %v10689_v42  ;;  %v15068_v56 = vld [vmem:[#allocation13_spill] sm:$0xff] }
 0x9f4   : > { %6282 = vmatprep.mubr.f32.mxu0 %v13804_v39  ;;  %6353 = vmatprep.mubr.f32.mxu1 %v13804_v39 }
 0x9f5   : > { %v10672_v20 = vpop.permute.xlu0 %10671 }
 0x9f6   : > { %9674 = vmatpush1.bf16.msra.mxu0 %v9673_v11  ;;  %9682 = vmatpush1.bf16.msra.mxu1 %v9681_v30  ;;  %v10674_v16 = vunpack.i.h.bf16 %v10672_v20  ;;  %v10673_v23 = vunpack.i.l.bf16 %v10672_v20 }
 0x9f7   : > { %6226 = vmatprep.subr.mxu0 %v6186_v28  ;;  %6297 = vmatprep.subr.mxu1 %v6188_v13 }
 0x9f8   : > { %v6425_v49 = vsel %vm312_vm6, %v10689_v42, %v10673_v23  ;;  %v6427_v21 = vsel %vm312_vm6, %v10674_v16, %v10688_v41  ;;  %v6424_v60 = vsel %vm312_vm6, %v10673_v23, %v10674_v16 }
 0x9f9   : > { %v6435_v27 = vpop.permute.xlu0 %6434  ;;  %v9687_v10 = vpack.c.bf16 %v6425_v49, %v13506_v31  ;;  %v9695_v54 = vpack.c.bf16 %v6427_v21, %v13529_v26  ;;  %v9689_v31 = vpack.c.bf16 %v6426_v36, %v13503_v33  ;;  %v9697_v26 = vpack.c.bf16 %v6424_v60, %v13526_v55  ;;  %v15071_v21 = vld [vmem:[#allocation7_spill] sm:$0xff]  ;;  %v15074_v60 = vld [vmem:[#allocation8_spill] sm:$0xff] }
 0x9fa   : > { %6227 = vmatpush1.msra.mxu0 %v6187_v37  ;;  %6298 = vmatpush1.msra.mxu1 %v6185_v45  ;;  %v6441_v52 = vsel %vm329_vm7, %v6435_v27, %v6437_v2  ;;  %v6442_v33 = vsel %vm329_vm7, %v6433_v14, %v6435_v27  ;;  %v15072_v27 = vld [vmem:[#allocation15_spill] sm:$0xff] }
 0x9fb   : > { %9684 = vmatprep.subr.bf16.mxu0 %v9683_v35  ;;  %9692 = vmatprep.subr.bf16.mxu1 %v9691_v47 }
 0x9fc   : > { %9268 = vmatmul.mubr.msk.f32.vlgmr.msra.gmra.mrb[24].mxu0 %vm482_vm8, %v6194_v5  ;;  %9269 = vmatmul.mubr.msk.f32.vlgmr.msra.gmra.mrb[24].mxu1 %vm482_vm8, %v6194_v5 }
 0x9fd   : > { %9686 = vmatpush1.bf16.msra.mxu0 %v9685_v0  ;;  %9694 = vmatpush1.bf16.msra.mxu1 %v9693_v53  ;;  %v6439_v32 = vpop.permute.xlu0 %6438 }
 0x9fe   : > { %9688 = vmatprep.subr.bf16.mxu0 %v9687_v10  ;;  %9696 = vmatprep.subr.bf16.mxu1 %v9695_v54  ;;  %v6443_v3 = vsel %vm329_vm7, %v6439_v32, %v6433_v14  ;;  %v6440_v55 = vsel %vm329_vm7, %v6437_v2, %v6439_v32 }
 0x9ff   : > { %6537 = vmatprep.mubr.f32.mxu0 %v13804_v39  ;;  %6608 = vmatprep.mubr.f32.mxu1 %v13804_v39  ;;  %v6624_v18 = vpop.permute.xlu1 %6623 }
 0xa01   : > { %9690 = vmatpush1.bf16.msra.mxu0 %v9689_v31  ;;  %9698 = vmatpush1.bf16.msra.mxu1 %v9697_v26 }
 0xa02   : > { %6481 = vmatprep.subr.mxu0 %v6441_v52  ;;  %6552 = vmatprep.subr.mxu1 %v6443_v3  ;;  %v15075_v3 = vld [vmem:[#allocation10_spill] sm:$0xff] }
 0xa05   : > { %6482 = vmatpush1.msra.mxu0 %v6442_v33  ;;  %6553 = vmatpush1.msra.mxu1 %v6440_v55  ;;  %v15076_v55 = vld [vmem:[#allocation18_spill] sm:$0xff] }
 0xa06   : > { %9270 = vmatmul.mubr.msk.f32.vlgmr.msra.gmra.mrb[24].mxu0 %vm482_vm8, %v6449_v63  ;;  %9271 = vmatmul.mubr.msk.f32.vlgmr.msra.gmra.mrb[24].mxu1 %vm482_vm8, %v6449_v63 }
 0xa07   : > { %6917 = vmatprep.mubr.f32.mxu0 %v13804_v39  ;;  %6987 = vmatprep.mubr.f32.mxu1 %v13804_v39 }
 0xad9   : > { %v6539_v48 = vpop.f32.mrb[24].mxu0  ;;  %v6610_v19 = vpop.f32.mrb[24].mxu1 }
 0xada   : > { %v6626_v22 = vadd.f32 %v6624_v18, %v6539_v48  ;;  %v6628_v15 = vadd.f32 %v6624_v18, %v6610_v19  ;;  %v6541_v7 = vpop.f32.mrb[25].mxu0  ;;  %v6612_v46 = vpop.f32.mrb[25].mxu1  ;;  %v15077_v48 = vld [vmem:[#allocation17_spill] sm:$0xff] }
 0xadb   : > { %v6627_v38 = vadd.f32 %v6624_v18, %v6541_v7  ;;  %v6629_v51 = vadd.f32 %v6624_v18, %v6612_v46 }
 0xadc   : > { %v6630_v24 = vmax.f32 %v6626_v22, 0.0  ;;  %v6632_v43 = vmax.f32 %v6628_v15, 0.0 }
 0xadd   : > { %v6631_v34 = vmax.f32 %v6627_v38, 0.0  ;;  %v6633_v57 = vmax.f32 %v6629_v51, 0.0  ;;  %v15078_v38 = vld [vmem:[#allocation16_spill] sm:$0xff] }
 0xade   : > { %v13867_v17 = vmul.f32 %v6630_v24, %v15067_v58  ;;  %v13870_v12 = vmul.f32 %v6632_v43, %v15068_v56 }
 0xadf   : > { %v13881_v44 = vmul.f32 %v6631_v34, %v15069_v1  ;;  %v13892_v11 = vmul.f32 %v6633_v57, %v15070_v25  ;;  %v15079_v1 = vld [vmem:[#allocation19_spill] sm:$0xff] }
 0xae0   : > { %6744 = vrot.lane.b32.xlu0 %v13867_v17, %s11040_s7  ;;  %6748 = vrot.lane.b32.xlu1 %v13870_v12, %s11040_s7 }
 0xae1   : > { %v10695_v30 = vpack.i.bf16 %v13881_v44, %v13867_v17  ;;  %v10700_v42 = vpack.i.bf16 %v13870_v12, %v13892_v11  ;;  %v10715_v41 = vpack.i.bf16 %v13892_v11, %v13867_v17  ;;  %v10710_v20 = vpack.i.bf16 %v13870_v12, %v13881_v44 }
 0xae4   : > { %6638 = vrot.lane.b32.xlu0 %v13867_v17, %s11041_s8  ;;  %6642 = vrot.lane.b32.xlu1 %v13870_v12, %s11041_s8 }
 0xae8   : > { %7371 = vrot.lane.b32.xlu0 %v13867_v17, %s11042_s13  ;;  %6746 = vrot.lane.b32.xlu1 %v13881_v44, %s11040_s7 }
 0xaec   : > { %7375 = vrot.lane.b32.xlu0 %v13870_v12, %s11042_s13  ;;  %6640 = vrot.lane.b32.xlu1 %v13881_v44, %s11041_s8 }
 0xaf0   : > { %7192 = vrot.lane.b32.xlu1 %v13870_v12, %s11047_s20  ;;  %6750 = vrot.lane.b32.xlu0 %v13892_v11, %s11040_s7 }
 0xaf4   : > { %7373 = vrot.lane.b32.xlu1 %v13881_v44, %s11042_s13  ;;  %7622 = vrot.lane.b32.xlu0 %v13867_v17, %s11043_s14 }
 0xaf8   : > { %7377 = vrot.lane.b32.xlu1 %v13892_v11, %s11042_s13  ;;  %6644 = vrot.lane.b32.xlu0 %v13892_v11, %s11041_s8 }
 0xafc   : > { %7624 = vrot.lane.b32.xlu1 %v13881_v44, %s11043_s14  ;;  %7626 = vrot.lane.b32.xlu0 %v13870_v12, %s11043_s14 }
 0xb00   : > { %7628 = vrot.lane.b32.xlu1 %v13892_v11, %s11043_s14  ;;  %7188 = vrot.lane.b32.xlu0 %v13867_v17, %s11047_s20 }
 0xb04   : > { %10696 = vrot.lane.b32.xlu1 %v10695_v30, %s11045_s18  ;;  %10691 = vrot.lane.b32.xlu0 %v10695_v30, %s11044_s17  ;;  %v15080_v30 = vld [vmem:[#allocation22_spill] sm:$0xff] }
 0xb08   : > { %10701 = vrot.lane.b32.xlu1 %v10700_v42, %s11044_s17  ;;  %10706 = vrot.lane.b32.xlu0 %v10700_v42, %s11045_s18 }
 0xb0c   : > { %10716 = vrot.lane.b32.xlu1 %v10715_v41, %s11046_s19  ;;  %10711 = vrot.lane.b32.xlu0 %v10710_v20, %s11046_s19  ;;  %v15081_v41 = vld [vmem:[#allocation12_spill] sm:$0xff] }
 0xb10   : > { %7194 = vrot.lane.b32.xlu1 %v13892_v11, %s11047_s20  ;;  %7190 = vrot.lane.b32.xlu0 %v13881_v44, %s11047_s20 }
 0xb52   : > { %v6745_v13 = vpop.permute.xlu0 %6744  ;;  %v6749_v4 = vpop.permute.xlu1 %6748 }
 0xb56   : > { %v6639_v16 = vpop.permute.xlu0 %6638  ;;  %v6643_v23 = vpop.permute.xlu1 %6642 }
 0xb5a   : > { %v7372_v28 = vpop.permute.xlu0 %7371  ;;  %v6747_v59 = vpop.permute.xlu1 %6746 }
 0xb5b   : > { %v6754_v8 = vsel %vm367_vm0, %v6745_v13, %v6747_v59  ;;  %v6753_v37 = vsel %vm367_vm0, %v6747_v59, %v6749_v4 }
 0xb5c   : > { %v13939_v49 = vmul.f32 %v6754_v8, %v15032_v50  ;;  %v13954_v14 = vmul.f32 %v6753_v37, %v15073_v29  ;;  %v15083_v37 = vld [vmem:[#allocation21_spill] sm:$0xff] }
 0xb5e   : > { %v7376_v45 = vpop.permute.xlu0 %7375  ;;  %v6641_v10 = vpop.permute.xlu1 %6640  ;;  %v10740_v26 = vpack.i.bf16 %v13954_v14, %v13939_v49 }
 0xb5f   : > { %v6648_v36 = vsel %vm241_vm1, %v6639_v16, %v6641_v10  ;;  %v6647_v33 = vsel %vm241_vm1, %v6641_v10, %v6643_v23 }
 0xb60   : > { %v13974_v2 = vmul.f32 %v6648_v36, %v15075_v3  ;;  %v13990_v19 = vmul.f32 %v6647_v33, %v15077_v48  ;;  %v15085_v36 = vld [vmem:[#allocation24_spill] sm:$0xff]  ;;  %v9283_v33 = vld [vmem:[%s14922_s2 + $0x28] sm:$0xff] }
 0xb62   : > { %v6751_v61 = vpop.permute.xlu0 %6750  ;;  %v13998_v15 = vpop.permute.xlu1 %7192  ;;  %v10770_v24 = vpack.i.bf16 %v13990_v19, %v13974_v2 }
 0xb63   : > { %v6752_v40 = vsel %vm367_vm0, %v6749_v4, %v6751_v61  ;;  %v6755_v62 = vsel %vm367_vm0, %v6751_v61, %v6745_v13 }
 0xb64   : > { %v13942_v6 = vmul.f32 %v6755_v62, %v15071_v21  ;;  %v13947_v35 = vmul.f32 %v6752_v40, %v15072_v27  ;;  %v15082_v40 = vld [vmem:[#allocation20_spill] sm:$0xff] }
 0xb66   : > { %v13949_v47 = vpop.permute.xlu0 %7622  ;;  %v10725_v5 = vpack.i.bf16 %v13939_v49, %v13942_v6  ;;  %v10735_v0 = vpack.i.bf16 %v13954_v14, %v13947_v35  ;;  %v10745_v31 = vpack.i.bf16 %v13947_v35, %v13942_v6  ;;  %v7374_v7 = vpop.permute.xlu1 %7373 }
 0xb67   : > { %v7380_v43 = vsel %vm1020_vm2, %v7374_v7, %v7376_v45  ;;  %v7381_v58 = vsel %vm1020_vm2, %v7372_v28, %v7374_v7 }
 0xb68   : > { %10726 = vrot.lane.b32.xlu1 %v10725_v5, %s11045_s18  ;;  %10721 = vrot.lane.b32.xlu0 %v10725_v5, %s11044_s17  ;;  %v14021_v34 = vmul.f32 %v7381_v58, %v15078_v38  ;;  %v14024_v51 = vmul.f32 %v7380_v43, %v15079_v1 }
 0xb6a   : > { %v6645_v54 = vpop.permute.xlu0 %6644  ;;  %v7378_v56 = vpop.permute.xlu1 %7377  ;;  %v10785_v13 = vpack.i.bf16 %v14024_v51, %v14021_v34 }
 0xb6b   : > { %v6649_v53 = vsel %vm241_vm1, %v6645_v54, %v6639_v16  ;;  %v6646_v63 = vsel %vm241_vm1, %v6643_v23, %v6645_v54  ;;  %v7379_v57 = vsel %vm1020_vm2, %v7376_v45, %v7378_v56  ;;  %v7382_v25 = vsel %vm1020_vm2, %v7378_v56, %v7372_v28 }
 0xb6c   : > { %10736 = vrot.lane.b32.xlu1 %v10735_v0, %s11045_s18  ;;  %10731 = vrot.lane.b32.xlu0 %v10735_v0, %s11044_s17  ;;  %v13967_v32 = vmul.f32 %v6649_v53, %v15074_v60  ;;  %v13987_v18 = vmul.f32 %v6646_v63, %v15076_v55  ;;  %v14035_v42 = vmul.f32 %v7379_v57, %v15080_v30  ;;  %v15084_v0 = vld [vmem:[#allocation23_spill] sm:$0xff] }
 0xb6d   : > { %v14038_v20 = vmul.f32 %v7382_v25, %v15081_v41 }
 0xb6e   : > { %v10755_v52 = vpack.i.bf16 %v13974_v2, %v13967_v32  ;;  %v10765_v22 = vpack.i.bf16 %v13990_v19, %v13987_v18  ;;  %v10775_v46 = vpack.i.bf16 %v13987_v18, %v13967_v32  ;;  %v7625_v4 = vpop.permute.xlu1 %7624  ;;  %v7627_v23 = vpop.permute.xlu0 %7626  ;;  %v10800_v8 = vpack.i.bf16 %v14035_v42, %v14024_v51 }
 0xb6f   : > { %v10790_v16 = vpack.i.bf16 %v14035_v42, %v14038_v20  ;;  %v10805_v28 = vpack.i.bf16 %v14038_v20, %v14021_v34  ;;  %v7632_v59 = vsel %vm1292_vm3, %v13949_v47, %v7625_v4  ;;  %v7631_v45 = vsel %vm1292_vm3, %v7625_v4, %v7627_v23 }
 0xb70   : > { %10746 = vrot.lane.b32.xlu1 %v10745_v31, %s11046_s19  ;;  %10741 = vrot.lane.b32.xlu0 %v10740_v26, %s11046_s19  ;;  %v14060_v62 = vmul.f32 %v7632_v59, %v15082_v40  ;;  %v14063_v5 = vmul.f32 %v7631_v45, %v15083_v37 }
 0xb72   : > { %v7629_v61 = vpop.permute.xlu1 %7628  ;;  %v10815_v26 = vpack.i.bf16 %v14063_v5, %v14060_v62 }
 0xb73   : > { %v7630_v10 = vsel %vm1292_vm3, %v7627_v23, %v7629_v61  ;;  %v7633_v54 = vsel %vm1292_vm3, %v7629_v61, %v13949_v47 }
 0xb74   : > { %10756 = vrot.lane.b32.xlu1 %v10755_v52, %s11045_s18  ;;  %10751 = vrot.lane.b32.xlu0 %v10755_v52, %s11044_s17  ;;  %v14075_v53 = vmul.f32 %v7630_v10, %v15084_v0  ;;  %v14078_v31 = vmul.f32 %v7633_v54, %v15085_v36 }
 0xb76   : > { %v10820_v47 = vpack.i.bf16 %v14075_v53, %v14078_v31  ;;  %v10835_v52 = vpack.i.bf16 %v14078_v31, %v14060_v62  ;;  %v10830_v63 = vpack.i.bf16 %v14075_v53, %v14063_v5  ;;  %v14121_v7 = vpop.permute.xlu1 %10696 }
 0xb78   : > { %6816 = vrot.lane.b32.xlu1 %v13954_v14, %s11047_s20  ;;  %6814 = vrot.lane.b32.xlu0 %v13939_v49, %s11047_s20 }
 0xb7c   : > { %10766 = vrot.lane.b32.xlu1 %v10765_v22, %s11045_s18  ;;  %10761 = vrot.lane.b32.xlu0 %v10765_v22, %s11044_s17  ;;  %v14115_v22 = vpop.permute.xlu0 %7188 }
 0xb80   : > { %6818 = vrot.lane.b32.xlu1 %v13947_v35, %s11047_s20  ;;  %6812 = vrot.lane.b32.xlu0 %v13942_v6, %s11047_s20 }
 0xb84   : > { %10776 = vrot.lane.b32.xlu1 %v10775_v46, %s11046_s19  ;;  %10771 = vrot.lane.b32.xlu0 %v10770_v24, %s11046_s19  ;;  %v14123_v46 = vpop.permute.xlu0 %10691  ;;  %v14129_v24 = vpop.permute.xlu1 %10701 }
 0xb88   : > { %6710 = vrot.lane.b32.xlu1 %v13990_v19, %s11047_s20  ;;  %6708 = vrot.lane.b32.xlu0 %v13974_v2, %s11047_s20  ;;  %v14131_v43 = vpop.permute.xlu0 %10706  ;;  %v14135_v58 = vpop.permute.xlu1 %10716 }
 0xb8c   : > { %6712 = vrot.lane.b32.xlu1 %v13987_v18, %s11047_s20  ;;  %6706 = vrot.lane.b32.xlu0 %v13967_v32, %s11047_s20  ;;  %v14137_v56 = vpop.permute.xlu0 %10711  ;;  %v14139_v57 = vpop.permute.xlu1 %7194 }
 0xb90   : > { %10786 = vrot.lane.b32.xlu1 %v10785_v13, %s11045_s18  ;;  %10781 = vrot.lane.b32.xlu0 %v10785_v13, %s11044_s17  ;;  %v14141_v25 = vpop.permute.xlu0 %7190 }
 0xb94   : > { %10791 = vrot.lane.b32.xlu1 %v10790_v16, %s11044_s17  ;;  %10796 = vrot.lane.b32.xlu0 %v10790_v16, %s11045_s18 }
 0xb98   : > { %10806 = vrot.lane.b32.xlu1 %v10805_v28, %s11046_s19  ;;  %10801 = vrot.lane.b32.xlu0 %v10800_v8, %s11046_s19 }
 0xb9c   : > { %7443 = vrot.lane.b32.xlu1 %v14035_v42, %s11047_s20  ;;  %7441 = vrot.lane.b32.xlu0 %v14024_v51, %s11047_s20 }
 0xba0   : > { %10816 = vrot.lane.b32.xlu1 %v10815_v26, %s11045_s18  ;;  %10811 = vrot.lane.b32.xlu0 %v10815_v26, %s11044_s17 }
 0xba4   : > { %10821 = vrot.lane.b32.xlu1 %v10820_v47, %s11044_s17  ;;  %7439 = vrot.lane.b32.xlu0 %v14021_v34, %s11047_s20 }
 0xba8   : > { %7445 = vrot.lane.b32.xlu1 %v14038_v20, %s11047_s20  ;;  %10826 = vrot.lane.b32.xlu0 %v10820_v47, %s11045_s18 }
 0xbac   : > { %10836 = vrot.lane.b32.xlu1 %v10835_v52, %s11046_s19  ;;  %10831 = vrot.lane.b32.xlu0 %v10830_v63, %s11046_s19 }
 0xbb0   : > { %7694 = vrot.lane.b32.xlu1 %v14075_v53, %s11047_s20  ;;  %7692 = vrot.lane.b32.xlu0 %v14063_v5, %s11047_s20 }
 0xbb4   : > { %7696 = vrot.lane.b32.xlu1 %v14078_v31, %s11047_s20  ;;  %7690 = vrot.lane.b32.xlu0 %v14060_v62, %s11047_s20 }
 0xbb8   : > { %7998 = vrot.lane.b32.xlu1 %v13804_v39, %s11040_s7  ;;  %7877 = vperm.xlu0 %10088, %v9283_v33  }
 0xbbc   : > { %8004 = vrot.lane.b32.xlu1 %v13804_v39, %s11040_s7  ;;  %8631 = vrot.lane.b32.xlu0 %v13804_v39, %s11042_s13 }
 0xbc0   : > { %7892 = vrot.lane.b32.xlu1 %v13804_v39, %s11041_s8  ;;  %8882 = vrot.lane.b32.xlu0 %v13804_v39, %s11043_s14 }
 0xbc4   : > { %7898 = vrot.lane.b32.xlu1 %v13804_v39, %s11041_s8 }
 0xbc8   : > { %8625 = vrot.lane.b32.xlu1 %v13804_v39, %s11042_s13 }
 0xbcc   : > { %8876 = vrot.lane.b32.xlu1 %v13804_v39, %s11043_s14 }
 0xbda   : > { %v10727_v13 = vpop.permute.xlu1 %10726  ;;  %v10722_v4 = vpop.permute.xlu0 %10721 }
 0xbdb   : > { %v10729_v16 = vunpack.i.h.bf16 %v10727_v13  ;;  %v10728_v23 = vunpack.i.l.bf16 %v10727_v13  ;;  %v10724_v28 = vunpack.i.h.bf16 %v10722_v4  ;;  %v10723_v59 = vunpack.i.l.bf16 %v10722_v4 }
 0xbdd   : > { %v6770_v45 = vsel %vm274_vm4, %v10723_v59, %v10724_v28  ;;  %v6786_v8 = vsel %vm291_vm5, %v10728_v23, %v10729_v16 }
 0xbde   : > { %v10737_v61 = vpop.permute.xlu1 %10736  ;;  %v9699_v10 = vpack.c.bf16 %v6786_v8, %v6770_v45  ;;  %v10732_v47 = vpop.permute.xlu0 %10731 }
 0xbdf   : > { %v10739_v54 = vunpack.i.h.bf16 %v10737_v61  ;;  %v10738_v26 = vunpack.i.l.bf16 %v10737_v61  ;;  %v10734_v52 = vunpack.i.h.bf16 %v10732_v47  ;;  %v10733_v63 = vunpack.i.l.bf16 %v10732_v47 }
 0xbe0   : > { %9700 = vmatprep.subr.bf16.mxu0 %v9699_v10 }
 0xbe1   : > { %v6785_v33 = vsel %vm291_vm5, %v10729_v16, %v10739_v54  ;;  %v6787_v13 = vsel %vm291_vm5, %v10738_v26, %v10728_v23  ;;  %v6784_v4 = vsel %vm291_vm5, %v10739_v54, %v10738_v26  ;;  %v6769_v37 = vsel %vm274_vm4, %v10724_v28, %v10734_v52 }
 0xbe2   : > { %v6771_v45 = vsel %vm274_vm4, %v10733_v63, %v10723_v59  ;;  %v10747_v8 = vpop.permute.xlu1 %10746  ;;  %v6768_v61 = vsel %vm274_vm4, %v10734_v52, %v10733_v63  ;;  %v10742_v40 = vpop.permute.xlu0 %10741  ;;  %v9709_v36 = vpack.c.bf16 %v6785_v33, %v6769_v37 }
 0xbe3   : > { %v10749_v10 = vunpack.i.h.bf16 %v10747_v8  ;;  %v10748_v47 = vunpack.i.l.bf16 %v10747_v8  ;;  %v9701_v16 = vpack.c.bf16 %v6787_v13, %v6771_v45  ;;  %v9707_v1 = vpack.c.bf16 %v6784_v4, %v6768_v61 }
 0xbe4   : > { %v10744_v38 = vunpack.i.h.bf16 %v10742_v40  ;;  %v10743_v23 = vunpack.i.l.bf16 %v10742_v40 }
 0xbe5   : > { %9702 = vmatpush1.bf16.msra.mxu0 %v9701_v16  ;;  %9708 = vmatprep.subr.bf16.mxu1 %v9707_v1  ;;  %v6807_v28 = vsel %vm312_vm6, %v10749_v10, %v10748_v47 }
 0xbe6   : > { %v6804_v59 = vsel %vm312_vm6, %v10744_v38, %v10749_v10  ;;  %v6806_v54 = vsel %vm312_vm6, %v10748_v47, %v10743_v23  ;;  %9710 = vmatpush1.bf16.msra.mxu1 %v9709_v36  ;;  %v10757_v26 = vpop.permute.xlu1 %10756  ;;  %v6805_v52 = vsel %vm312_vm6, %v10743_v23, %v10744_v38  ;;  %v9711_v63 = vpack.c.bf16 %v6807_v28, %v13947_v35  ;;  %v10752_v40 = vpop.permute.xlu0 %10751 }
 0xbe7   : > { %v9703_v37 = vpack.c.bf16 %v6805_v52, %v13939_v49  ;;  %v9705_v1 = vpack.c.bf16 %v6806_v54, %v13942_v6  ;;  %v9713_v33 = vpack.c.bf16 %v6804_v59, %v13954_v14  ;;  %v10759_v4 = vunpack.i.h.bf16 %v10757_v26 }
 0xbe8   : > { %9712 = vmatprep.subr.bf16.mxu1 %v9711_v63  ;;  %v10758_v45 = vunpack.i.l.bf16 %v10757_v26  ;;  %v10754_v8 = vunpack.i.h.bf16 %v10752_v40  ;;  %v10753_v61 = vunpack.i.l.bf16 %v10752_v40 }
 0xbe9   : > { %9704 = vmatprep.subr.bf16.mxu0 %v9703_v37 }
 0xbea   : > { %9706 = vmatpush1.bf16.msra.mxu0 %v9705_v1  ;;  %9714 = vmatpush1.bf16.msra.mxu1 %v9713_v33  ;;  %v6817_v13 = vpop.permute.xlu1 %6816  ;;  %v6815_v36 = vpop.permute.xlu0 %6814  ;;  %v6664_v14 = vsel %vm274_vm4, %v10753_v61, %v10754_v8  ;;  %v6680_v23 = vsel %vm291_vm5, %v10758_v45, %v10759_v4 }
 0xbeb   : > { %v6821_v35 = vsel %vm329_vm7, %v6815_v36, %v6817_v13  ;;  %v9715_v37 = vpack.c.bf16 %v6680_v23, %v6664_v14  ;;  %v10693_v14 = vunpack.i.l.bf16 %v14123_v46  ;;  %v10704_v23 = vunpack.i.h.bf16 %v14129_v24 }
 0xbec   : > { %6861 = vmatprep.subr.mxu0 %v6821_v35 }
 0xbee   : > { %v10767_v38 = vpop.permute.xlu1 %10766  ;;  %v10762_v6 = vpop.permute.xlu0 %10761 }
 0xbef   : > { %v10769_v49 = vunpack.i.h.bf16 %v10767_v38  ;;  %v10768_v10 = vunpack.i.l.bf16 %v10767_v38  ;;  %v10764_v47 = vunpack.i.h.bf16 %v10762_v6  ;;  %v10763_v16 = vunpack.i.l.bf16 %v10762_v6  ;;  %v6829_v38 = vld [vmem:[#allocation4 + $0xd0] sm:$0xff] }
 0xbf1   : > { %v6662_v59 = vsel %vm274_vm4, %v10764_v47, %v10763_v16  ;;  %v6678_v54 = vsel %vm291_vm5, %v10769_v49, %v10768_v10  ;;  %v6681_v26 = vsel %vm291_vm5, %v10768_v10, %v10758_v45  ;;  %v6665_v52 = vsel %vm274_vm4, %v10763_v16, %v10753_v61 }
 0xbf2   : > { %v6819_v28 = vpop.permute.xlu1 %6818  ;;  %v6813_v40 = vpop.permute.xlu0 %6812  ;;  %v6679_v1 = vsel %vm291_vm5, %v10759_v4, %v10769_v49  ;;  %v6663_v33 = vsel %vm274_vm4, %v10754_v8, %v10764_v47  ;;  %v9723_v61 = vpack.c.bf16 %v6678_v54, %v6662_v59  ;;  %v10698_v10 = vunpack.i.l.bf16 %v14121_v7 }
 0xbf3   : > { %v6820_v63 = vsel %vm329_vm7, %v6817_v13, %v6819_v28  ;;  %v6822_v35 = vsel %vm329_vm7, %v6813_v40, %v6815_v36  ;;  %v6823_v45 = vsel %vm329_vm7, %v6819_v28, %v6813_v40  ;;  %v10699_v13 = vunpack.i.h.bf16 %v14121_v7 }
 0xbf4   : > { %6862 = vmatpush1.msra.mxu0 %v6822_v35  ;;  %6931 = vmatprep.subr.mxu1 %v6823_v45  ;;  %v9717_v6 = vpack.c.bf16 %v6681_v26, %v6665_v52  ;;  %v10694_v8 = vunpack.i.h.bf16 %v14123_v46  ;;  %v9725_v49 = vpack.c.bf16 %v6679_v1, %v6663_v33  ;;  %v10703_v7 = vunpack.i.l.bf16 %v14129_v24 }
 0xbf5   : > { %6932 = vmatpush1.msra.mxu1 %v6820_v63  ;;  %9716 = vmatprep.subr.bf16.mxu0 %v9715_v37  ;;  %v10709_v54 = vunpack.i.h.bf16 %v14131_v43  ;;  %v10708_v26 = vunpack.i.l.bf16 %v14131_v43  ;;  %v10719_v45 = vunpack.i.h.bf16 %v14135_v58 }
 0xbf6   : > { %v10777_v4 = vpop.permute.xlu1 %10776  ;;  %v10772_v16 = vpop.permute.xlu0 %10771  ;;  %9273 = vmatmul.mubr.msk.f32.vlgmr.msra.gmra.mrb[26].mxu0 %vm482_vm8, %v6829_v38  ;;  %9724 = vmatprep.subr.bf16.mxu1 %v9723_v61  ;;  %v10714_v61 = vunpack.i.h.bf16 %v14137_v56 }
 0xbf7   : > { %v10779_v47 = vunpack.i.h.bf16 %v10777_v4  ;;  %v10778_v36 = vunpack.i.l.bf16 %v10777_v4  ;;  %v10774_v28 = vunpack.i.h.bf16 %v10772_v16  ;;  %v10773_v59 = vunpack.i.l.bf16 %v10772_v16  ;;  %9718 = vmatpush1.bf16.msra.mxu0 %v9717_v6  ;;  %9274 = vmatmul.mubr.msk.f32.vlgmr.msra.gmra.mrb[26].mxu1 %vm482_vm8, %v6829_v38 }
 0xbf8   : > { %9726 = vmatpush1.bf16.msra.mxu1 %v9725_v49  ;;  %7060 = vmatprep.mubr.f32.mxu0 %v13804_v39  ;;  %v10718_v38 = vunpack.i.l.bf16 %v14135_v58  ;;  %v10713_v6 = vunpack.i.l.bf16 %v14137_v56  ;;  %v7144_v56 = vsel %vm274_vm4, %v10704_v23, %v10703_v7  ;;  %v7160_v4 = vsel %vm291_vm5, %v10709_v54, %v10708_v26 }
 0xbf9   : > { %v6701_v52 = vsel %vm312_vm6, %v10779_v47, %v10778_v36  ;;  %v6698_v46 = vsel %vm312_vm6, %v10774_v28, %v10779_v47  ;;  %v6700_v63 = vsel %vm312_vm6, %v10778_v36, %v10773_v59  ;;  %v6699_v24 = vsel %vm312_vm6, %v10773_v59, %v10774_v28  ;;  %7130 = vmatprep.mubr.f32.mxu1 %v13804_v39 }
 0xbfa   : > { %v6711_v40 = vpop.permute.xlu1 %6710  ;;  %v9727_v37 = vpack.c.bf16 %v6701_v52, %v13987_v18  ;;  %v9729_v43 = vpack.c.bf16 %v6698_v46, %v13990_v19  ;;  %v9721_v1 = vpack.c.bf16 %v6700_v63, %v13967_v32  ;;  %v6709_v33 = vpop.permute.xlu0 %6708  ;;  %v9719_v35 = vpack.c.bf16 %v6699_v24, %v13974_v2 }
 0xbfb   : > { %v7146_v18 = vsel %vm274_vm4, %v10693_v14, %v10694_v8  ;;  %v7162_v32 = vsel %vm291_vm5, %v10698_v10, %v10699_v13  ;;  %v7145_v2 = vsel %vm274_vm4, %v10694_v8, %v10704_v23  ;;  %v6715_v58 = vsel %vm329_vm7, %v6709_v33, %v6711_v40 }
 0xbfc   : > { %9728 = vmatprep.subr.bf16.mxu1 %v9727_v37  ;;  %9720 = vmatprep.subr.bf16.mxu0 %v9719_v35  ;;  %v7147_v49 = vsel %vm274_vm4, %v10703_v7, %v10693_v14  ;;  %v7161_v47 = vsel %vm291_vm5, %v10699_v13, %v10709_v54  ;;  %v7163_v8 = vsel %vm291_vm5, %v10708_v26, %v10698_v10  ;;  %v6723_v7 = vld [vmem:[#allocation4 + $0xc8] sm:$0xff] }
 0xbfd   : > { %9730 = vmatpush1.bf16.msra.mxu1 %v9729_v43  ;;  %9722 = vmatpush1.bf16.msra.mxu0 %v9721_v1  ;;  %v7181_v14 = vsel %vm312_vm6, %v10713_v6, %v10714_v61  ;;  %v7183_v13 = vsel %vm312_vm6, %v10719_v45, %v10718_v38  ;;  %v9731_v59 = vpack.c.bf16 %v7162_v32, %v7146_v18 }
 0xbfe   : > { %v6713_v19 = vpop.permute.xlu1 %6712  ;;  %v6707_v16 = vpop.permute.xlu0 %6706  ;;  %7004 = vmatprep.subr.mxu0 %v6715_v58  ;;  %v9739_v10 = vpack.c.bf16 %v7160_v4, %v7144_v56  ;;  %v7182_v54 = vsel %vm312_vm6, %v10718_v38, %v10713_v6  ;;  %v9733_v52 = vpack.c.bf16 %v7163_v8, %v7147_v49  ;;  %v9741_v46 = vpack.c.bf16 %v7161_v47, %v7145_v2 }
 0xbff   : > { %v6714_v36 = vsel %vm329_vm7, %v6711_v40, %v6713_v19  ;;  %v6716_v23 = vsel %vm329_vm7, %v6707_v16, %v6709_v33  ;;  %v6717_v28 = vsel %vm329_vm7, %v6713_v19, %v6707_v16  ;;  %v7180_v63 = vsel %vm312_vm6, %v10714_v61, %v10719_v45 }
 0xc00   : > { %7074 = vmatprep.subr.mxu1 %v6717_v28  ;;  %v9735_v24 = vpack.c.bf16 %v7181_v14, %v13881_v44  ;;  %v9743_v37 = vpack.c.bf16 %v7183_v13, %v13892_v11  ;;  %v9737_v38 = vpack.c.bf16 %v7182_v54, %v13867_v17  ;;  %v9745_v61 = vpack.c.bf16 %v7180_v63, %v13870_v12  ;;  %v7205_v28 = vld [vmem:[#allocation4 + $0xd8] sm:$0xff] }
 0xc01   : > { %7005 = vmatpush1.msra.mxu0 %v6716_v23  ;;  %7075 = vmatpush1.msra.mxu1 %v6714_v36  ;;  %v7197_v44 = vsel %vm329_vm7, %v14141_v25, %v13998_v15  ;;  %v7199_v11 = vsel %vm329_vm7, %v14139_v57, %v14115_v22  ;;  %v7198_v17 = vsel %vm329_vm7, %v14115_v22, %v14141_v25 }
 0xc02   : > { %v10787_v26 = vpop.permute.xlu1 %10786  ;;  %v10782_v40 = vpop.permute.xlu0 %10781  ;;  %9732 = vmatprep.subr.bf16.mxu0 %v9731_v59  ;;  %9740 = vmatprep.subr.bf16.mxu1 %v9739_v10  ;;  %v7196_v12 = vsel %vm329_vm7, %v13998_v15, %v14139_v57 }
 0xc03   : > { %v10789_v43 = vunpack.i.h.bf16 %v10787_v26  ;;  %v10788_v1 = vunpack.i.l.bf16 %v10787_v26  ;;  %v10784_v33 = vunpack.i.h.bf16 %v10782_v40  ;;  %v10783_v35 = vunpack.i.l.bf16 %v10782_v40  ;;  %9275 = vmatmul.mubr.msk.f32.vlgmr.msra.gmra.mrb[28].mxu0 %vm482_vm8, %v6723_v7  ;;  %9276 = vmatmul.mubr.msk.f32.vlgmr.msra.gmra.mrb[28].mxu1 %vm482_vm8, %v6723_v7 }
 0xc04   : > { %9734 = vmatpush1.bf16.msra.mxu0 %v9733_v52  ;;  %9742 = vmatpush1.bf16.msra.mxu1 %v9741_v46 }
 0xc05   : > { %9736 = vmatprep.subr.bf16.mxu0 %v9735_v24  ;;  %9744 = vmatprep.subr.bf16.mxu1 %v9743_v37  ;;  %v7397_v58 = vsel %vm274_vm4, %v10783_v35, %v10784_v33  ;;  %v7413_v56 = vsel %vm291_vm5, %v10788_v1, %v10789_v43 }
 0xc06   : > { %v10792_v45 = vpop.permute.xlu1 %10791  ;;  %v10797_v32 = vpop.permute.xlu0 %10796  ;;  %7363 = vmatprep.mubr.f32.mxu1 %v13804_v39  ;;  %7293 = vmatprep.mubr.f32.mxu0 %v13804_v39  ;;  %v9747_v14 = vpack.c.bf16 %v7413_v56, %v7397_v58 }
 0xc07   : > { %v10794_v6 = vunpack.i.h.bf16 %v10792_v45  ;;  %v10793_v18 = vunpack.i.l.bf16 %v10792_v45  ;;  %v10799_v2 = vunpack.i.h.bf16 %v10797_v32  ;;  %v10798_v19 = vunpack.i.l.bf16 %v10797_v32 }
 0xc08   : > { %9738 = vmatpush1.bf16.msra.mxu0 %v9737_v38  ;;  %9746 = vmatpush1.bf16.msra.mxu1 %v9745_v61 }
 0xc09   : > { %v7396_v22 = vsel %vm274_vm4, %v10784_v33, %v10794_v6  ;;  %v7398_v25 = vsel %vm274_vm4, %v10793_v18, %v10783_v35  ;;  %v7395_v15 = vsel %vm274_vm4, %v10794_v6, %v10793_v18  ;;  %v7412_v57 = vsel %vm291_vm5, %v10789_v43, %v10799_v2  ;;  %7237 = vmatprep.subr.mxu0 %v7197_v44  ;;  %v7456_v6 = vld [vmem:[#allocation4 + $0xe0] sm:$0xff] }
 0xc0a   : > { %v7414_v4 = vsel %vm291_vm5, %v10798_v19, %v10788_v1  ;;  %7307 = vmatprep.subr.mxu1 %v7199_v11  ;;  %v10807_v49 = vpop.permute.xlu1 %10806  ;;  %v7411_v47 = vsel %vm291_vm5, %v10799_v2, %v10798_v19  ;;  %v10802_v23 = vpop.permute.xlu0 %10801  ;;  %v9757_v13 = vpack.c.bf16 %v7412_v57, %v7396_v22 }
 0xc0b   : > { %v9749_v8 = vpack.c.bf16 %v7414_v4, %v7398_v25  ;;  %v10809_v36 = vunpack.i.h.bf16 %v10807_v49  ;;  %v10808_v16 = vunpack.i.l.bf16 %v10807_v49  ;;  %v10804_v59 = vunpack.i.h.bf16 %v10802_v23 }
 0xc0c   : > { %v10803_v10 = vunpack.i.l.bf16 %v10802_v23  ;;  %v9755_v7 = vpack.c.bf16 %v7411_v47, %v7395_v15  ;;  %7238 = vmatpush1.msra.mxu0 %v7198_v17  ;;  %7308 = vmatpush1.msra.mxu1 %v7196_v12 }
 0xc0d   : > { %v7434_v54 = vsel %vm312_vm6, %v10809_v36, %v10808_v16  ;;  %v7431_v26 = vsel %vm312_vm6, %v10804_v59, %v10809_v36  ;;  %9278 = vmatmul.mubr.msk.f32.vlgmr.msra.gmra.mrb[30].mxu1 %vm482_vm8, %v7205_v28  ;;  %9748 = vmatprep.subr.bf16.mxu0 %v9747_v14 }
 0xc0e   : > { %v7433_v52 = vsel %vm312_vm6, %v10808_v16, %v10803_v10  ;;  %v7444_v46 = vpop.permute.xlu1 %7443  ;;  %v7432_v63 = vsel %vm312_vm6, %v10803_v10, %v10804_v59  ;;  %9756 = vmatprep.subr.bf16.mxu1 %v9755_v7  ;;  %9277 = vmatmul.mubr.msk.f32.vlgmr.msra.gmra.mrb[30].mxu0 %vm482_vm8, %v7205_v28  ;;  %v7442_v40 = vpop.permute.xlu0 %7441  ;;  %v9761_v37 = vpack.c.bf16 %v7431_v26, %v14035_v42 }
 0xc0f   : > { %v9751_v24 = vpack.c.bf16 %v7432_v63, %v14024_v51  ;;  %v9753_v43 = vpack.c.bf16 %v7433_v52, %v14021_v34  ;;  %9750 = vmatpush1.bf16.msra.mxu0 %v9749_v8  ;;  %9758 = vmatpush1.bf16.msra.mxu1 %v9757_v13  ;;  %v9759_v1 = vpack.c.bf16 %v7434_v54, %v14038_v20  ;;  %v14338_v13 = vld [vmem:[#allocation2 + $0x18] sm:$0xff] }
 0xc10   : > { %7544 = vmatprep.mubr.f32.mxu0 %v13804_v39  ;;  %7614 = vmatprep.mubr.f32.mxu1 %v13804_v39  ;;  %v7448_v34 = vsel %vm329_vm7, %v7442_v40, %v7444_v46 }
 0xc11   : > { %9752 = vmatprep.subr.bf16.mxu0 %v9751_v24  ;;  %9760 = vmatprep.subr.bf16.mxu1 %v9759_v1 }
 0xc12   : > { %v10817_v33 = vpop.permute.xlu1 %10816  ;;  %v10812_v45 = vpop.permute.xlu0 %10811 }
 0xc13   : > { %v10819_v35 = vunpack.i.h.bf16 %v10817_v33  ;;  %v10818_v38 = vunpack.i.l.bf16 %v10817_v33  ;;  %9754 = vmatpush1.bf16.msra.mxu0 %v9753_v43  ;;  %9762 = vmatpush1.bf16.msra.mxu1 %v9761_v37  ;;  %v10814_v51 = vunpack.i.h.bf16 %v10812_v45  ;;  %v10813_v42 = vunpack.i.l.bf16 %v10812_v45 }
 0xc14   : > { %7488 = vmatprep.subr.mxu0 %v7448_v34 }
 0xc15   : > { %v7664_v20 = vsel %vm291_vm5, %v10818_v38, %v10819_v35  ;;  %v7648_v44 = vsel %vm274_vm4, %v10813_v42, %v10814_v51 }
 0xc16   : > { %v10822_v61 = vpop.permute.xlu1 %10821  ;;  %v7440_v11 = vpop.permute.xlu0 %7439  ;;  %v9763_v18 = vpack.c.bf16 %v7664_v20, %v7648_v44 }
 0xc17   : > { %v7449_v32 = vsel %vm329_vm7, %v7440_v11, %v7442_v40  ;;  %v10824_v17 = vunpack.i.h.bf16 %v10822_v61  ;;  %v10823_v12 = vunpack.i.l.bf16 %v10822_v61 }
 0xc18   : > { %7489 = vmatpush1.msra.mxu0 %v7449_v32 }
 0xc19   : > { %9279 = vmatmul.mubr.msk.f32.vlgmr.msra.gmra.mrb[32].mxu0 %vm482_vm8, %v7456_v6  ;;  %9764 = vmatprep.subr.bf16.mxu0 %v9763_v18  ;;  %v7647_v15 = vsel %vm274_vm4, %v10814_v51, %v10824_v17  ;;  %v7649_v57 = vsel %vm274_vm4, %v10823_v12, %v10813_v42 }
 0xc1a   : > { %v7446_v2 = vpop.permute.xlu1 %7445  ;;  %v10827_v58 = vpop.permute.xlu0 %10826  ;;  %7795 = vmatprep.mubr.f32.mxu0 %v13804_v39  ;;  %v7646_v39 = vsel %vm274_vm4, %v10824_v17, %v10823_v12 }
 0xc1b   : > { %v7447_v19 = vsel %vm329_vm7, %v7444_v46, %v7446_v2  ;;  %v7450_v56 = vsel %vm329_vm7, %v7446_v2, %v7440_v11  ;;  %v10829_v22 = vunpack.i.h.bf16 %v10827_v58  ;;  %v10828_v25 = vunpack.i.l.bf16 %v10827_v58 }
 0xc1c   : > { %7558 = vmatprep.subr.mxu1 %v7450_v56 }
 0xc1d   : > { %7559 = vmatpush1.msra.mxu1 %v7447_v19  ;;  %v7663_v4 = vsel %vm291_vm5, %v10819_v35, %v10829_v22  ;;  %v7665_v49 = vsel %vm291_vm5, %v10828_v25, %v10818_v38  ;;  %v7662_v8 = vsel %vm291_vm5, %v10829_v22, %v10828_v25 }
 0xc1e   : > { %v10837_v47 = vpop.permute.xlu1 %10836  ;;  %9280 = vmatmul.mubr.msk.f32.vlgmr.msra.gmra.mrb[32].mxu1 %vm482_vm8, %v7456_v6  ;;  %v9765_v36 = vpack.c.bf16 %v7665_v49, %v7649_v57  ;;  %v9773_v16 = vpack.c.bf16 %v7663_v4, %v7647_v15  ;;  %v10832_v14 = vpop.permute.xlu0 %10831  ;;  %v9771_v7 = vpack.c.bf16 %v7662_v8, %v7646_v39 }
 0xc1f   : > { %v10839_v23 = vunpack.i.h.bf16 %v10837_v47  ;;  %v10838_v28 = vunpack.i.l.bf16 %v10837_v47  ;;  %7865 = vmatprep.mubr.f32.mxu1 %v14338_v13  ;;  %v10834_v59 = vunpack.i.h.bf16 %v10832_v14  ;;  %v10833_v10 = vunpack.i.l.bf16 %v10832_v14 }
 0xc20   : > { %9766 = vmatpush1.bf16.msra.mxu0 %v9765_v36  ;;  %9772 = vmatprep.subr.bf16.mxu1 %v9771_v7 }
 0xc21   : > { %v7685_v54 = vsel %vm312_vm6, %v10839_v23, %v10838_v28  ;;  %v7682_v26 = vsel %vm312_vm6, %v10834_v59, %v10839_v23  ;;  %v7684_v52 = vsel %vm312_vm6, %v10838_v28, %v10833_v10  ;;  %v7683_v63 = vsel %vm312_vm6, %v10833_v10, %v10834_v59  ;;  %9774 = vmatpush1.bf16.msra.mxu1 %v9773_v16 }
 0xc22   : > { %v7695_v46 = vpop.permute.xlu1 %7694  ;;  %v9775_v40 = vpack.c.bf16 %v7685_v54, %v14078_v31  ;;  %v9777_v24 = vpack.c.bf16 %v7682_v26, %v14075_v53  ;;  %v9769_v37 = vpack.c.bf16 %v7684_v52, %v14060_v62  ;;  %v7693_v43 = vpop.permute.xlu0 %7692  ;;  %v9767_v1 = vpack.c.bf16 %v7683_v63, %v14063_v5  ;;  %v7707_v5 = vld [vmem:[#allocation4 + $0xe8] sm:$0xff] }
 0xc23   : > { %v7699_v35 = vsel %vm329_vm7, %v7693_v43, %v7695_v46  ;;  %v7882_v63 = vld [vmem:[#allocation2 + $0x8] sm:$0xff] }
 0xc24   : > { %9776 = vmatprep.subr.bf16.mxu1 %v9775_v40  ;;  %9768 = vmatprep.subr.bf16.mxu0 %v9767_v1  ;;  %v10850_v1 = vpack.i.bf16 %v14338_v13, %v14338_v13 }
 0xc25   : > { %9770 = vmatpush1.bf16.msra.mxu0 %v9769_v37  ;;  %9778 = vmatpush1.bf16.msra.mxu1 %v9777_v24 }
 0xc26   : > { %v7697_v33 = vpop.permute.xlu1 %7696  ;;  %v7691_v38 = vpop.permute.xlu0 %7690  ;;  %7739 = vmatprep.subr.mxu0 %v7699_v35 }
 0xc27   : > { %v7698_v31 = vsel %vm329_vm7, %v7695_v46, %v7697_v33  ;;  %v7700_v62 = vsel %vm329_vm7, %v7691_v38, %v7693_v43  ;;  %v7701_v53 = vsel %vm329_vm7, %v7697_v33, %v7691_v38  ;;  %v7883_v46 = vld [vmem:[#allocation2 + $0x10] sm:$0xff] }
 0xc28   : > { %7809 = vmatprep.subr.mxu1 %v7701_v53 }
 0xc29   : > { %7740 = vmatpush1.msra.mxu0 %v7700_v62  ;;  %7810 = vmatpush1.msra.mxu1 %v7698_v31 }
 0xc2a   : > { %9281 = vmatmul.mubr.msk.f32.vlgmr.msra.gmra.mrb[34].mxu0 %vm482_vm8, %v7707_v5  ;;  %9282 = vmatmul.mubr.msk.f32.vlgmr.msra.gmra.mrb[34].mxu1 %vm482_vm8, %v7707_v5  ;;  %v14365_v45 = vpop.permute.xlu1 %7998 }
 0xc2b   : > { %8171 = vmatprep.mubr.f32.mxu0 %v14338_v13  ;;  %8241 = vmatprep.mubr.f32.mxu1 %v14338_v13 }
 0xc2e   : > { %v14367_v51 = vpop.permute.xlu1 %8004 }
 0xc2f   : > { %v8009_v42 = vsel %vm367_vm0, %v14367_v51, %v14365_v45 }
 0xc30   : > { %v14374_v34 = vmul.f32 %v8009_v42, %v15071_v21 }
 0xc32   : > { %8066 = vrot.lane.b32.xlu1 %v14374_v34, %s11047_s20  ;;  %v14378_v20 = vpop.permute.xlu1 %7892 }
 0xc36   : > { %v14380_v61 = vpop.permute.xlu1 %7898 }
 0xc37   : > { %v7903_v44 = vsel %vm241_vm1, %v14380_v61, %v14378_v20  ;;  %v7878_v54 = vpop.permute.xlu0 %7877 }
 0xc38   : > { %v14387_v11 = vmul.f32 %v7903_v44, %v15074_v60 }
 0xc3a   : > { %7960 = vrot.lane.b32.xlu1 %v14387_v11, %s11047_s20  ;;  %v14435_v35 = vpop.permute.xlu1 %8625 }
 0xc3b   : > { %v8632_v62 = vpop.permute.xlu0 %8631 }
 0xc3c   : > { %v8636_v42 = vsel %vm1020_vm2, %v8632_v62, %v14435_v35 }
 0xc3e   : > { %v14437_v38 = vpop.permute.xlu1 %8876 }
 0xc3f   : > { %v8883_v5 = vpop.permute.xlu0 %8882 }
 0xca4   : > { %v14439_v31 = vpop.permute.xlu1 %8066 }
 0xcac   : > { %v14441_v53 = vpop.permute.xlu1 %7960 }
 0xcc9   : > { %v6919_v21 = vpop.f32.mrb[26].mxu0 }
 0xcca   : > { %v6989_v6 = vpop.f32.mrb[26].mxu1  ;;  %v6920_v18 = vpop.f32.mrb[27].mxu0 }
 0xccb   : > { %v6991_v32 = vpop.f32.mrb[27].mxu1 }
 0xccc   : > { %v14452_v32 = vmul.f32 %v8636_v42, %v15081_v41 }
 0xcd6   : > { %v7132_v17 = vpop.f32.mrb[28].mxu1  ;;  %v7062_v12 = vpop.f32.mrb[28].mxu0 }
 0xcd7   : > { %v7133_v2 = vadd.f32 %v7132_v17, %v6989_v6  ;;  %v7134_v19 = vpop.f32.mrb[29].mxu1  ;;  %v7063_v58 = vpop.f32.mrb[29].mxu0 }
 0xcd8   : > { %v7064_v56 = vadd.f32 %v7063_v58, %v6920_v18 }
 0xce0   : > { %v7365_v22 = vpop.f32.mrb[30].mxu1 }
 0xce1   : > { %v7370_v25 = vadd.f32 %v7365_v22, %v7133_v2  ;;  %v7295_v15 = vpop.f32.mrb[30].mxu0  ;;  %v7367_v57 = vpop.f32.mrb[31].mxu1 }
 0xce2   : > { %v7296_v4 = vpop.f32.mrb[31].mxu0 }
 0xce3   : > { %v7369_v60 = vadd.f32 %v7296_v4, %v7064_v56 }
 0xcec   : > { %v7546_v49 = vpop.f32.mrb[32].mxu0 }
 0xced   : > { %v7547_v47 = vpop.f32.mrb[33].mxu0 }
 0xcee   : > { %v7620_v39 = vadd.f32 %v7547_v47, %v7369_v60 }
 0xcf1   : > { %v7616_v8 = vpop.f32.mrb[32].mxu1 }
 0xcf2   : > { %v7621_v36 = vadd.f32 %v7616_v8, %v7370_v25  ;;  %v7618_v16 = vpop.f32.mrb[33].mxu1 }
 0xcfd   : > { %v7797_v23 = vpop.f32.mrb[34].mxu0  ;;  %v7867_v28 = vpop.f32.mrb[34].mxu1 }
 0xcfe   : > { %v7798_v14 = vpop.f32.mrb[35].mxu0  ;;  %v7872_v59 = vadd.f32 %v7867_v28, %v7621_v36  ;;  %v7869_v7 = vpop.f32.mrb[35].mxu1 }
 0xcff   : > { %v7871_v10 = vadd.f32 %v7798_v14, %v7620_v39  ;;  %v8887_v7 = vsel %vm1292_vm3, %v8883_v5, %v14437_v38 }
 0xd00   : > { %v7881_v26 = vadd.f32 %v7878_v54, %v7872_v59 }
 0xd01   : > { %v7880_v52 = vadd.f32 %v7878_v54, %v7871_v10 }
 0xd02   : > { %v14391_v40 = vadd.f32 %v7883_v46, %v7881_v26  ;;  %v15087_v46 = vld [vmem:[#allocation24_spill] sm:$0xff] }
 0xd03   : > { %v14393_v24 = vadd.f32 %v7882_v63, %v7880_v52  ;;  %v14561_v63 = vmul.f32 %v8887_v7, %v15087_v46 }
 0xd04   : > { %7887 = vst [vmem:[#allocation2 + $0x10] sm:$0xff] %v14391_v40  ;;  %8629 = vrot.lane.b32.xlu1 %v14391_v40, %s11042_s13  ;;  %8002 = vrot.lane.b32.xlu0 %v14391_v40, %s11040_s7  ;;  %v10840_v37 = vpack.i.bf16 %v14338_v13, %v14391_v40 }
 0xd05   : > { %7886 = vst [vmem:[#allocation2 + $0x8] sm:$0xff] %v14393_v24  ;;  %v10855_v43 = vpack.i.bf16 %v14393_v24, %v14338_v13  ;;  %v10865_v33 = vpack.i.bf16 %v14391_v40, %v14393_v24 }
 0xd08   : > { %8880 = vrot.lane.b32.xlu1 %v14391_v40, %s11043_s14  ;;  %7896 = vrot.lane.b32.xlu0 %v14391_v40, %s11041_s8 }
 0xd0c   : > { %10841 = vrot.lane.b32.xlu1 %v10840_v37, %s11044_s17  ;;  %8000 = vrot.lane.b32.xlu0 %v14393_v24, %s11040_s7 }
 0xd10   : > { %8442 = vrot.lane.b32.xlu1 %v14338_v13, %s11047_s20  ;;  %10846 = vrot.lane.b32.xlu0 %v10840_v37, %s11045_s18  ;;  %v15088_v37 = vld [vmem:[#allocation16_spill] sm:$0xff] }
 0xd14   : > { %10856 = vrot.lane.b32.xlu1 %v10855_v43, %s11044_s17  ;;  %7894 = vrot.lane.b32.xlu0 %v14393_v24, %s11041_s8 }
 0xd18   : > { %10866 = vrot.lane.b32.xlu1 %v10865_v33, %s11046_s19  ;;  %10851 = vrot.lane.b32.xlu0 %v10850_v1, %s11046_s19 }
 0xd1c   : > { %8444 = vrot.lane.b32.xlu1 %v14393_v24, %s11047_s20  ;;  %8446 = vrot.lane.b32.xlu0 %v14391_v40, %s11047_s20 }
 0xd20   : > { %8448 = vrot.lane.b32.xlu0 %v14338_v13, %s11047_s20 }
 0xd24   : > { %8627 = vrot.lane.b32.xlu0 %v14393_v24, %s11042_s13 }
 0xd28   : > { %8878 = vrot.lane.b32.xlu0 %v14393_v24, %s11043_s14 }
 0xd2c   : > { %10861 = vrot.lane.b32.xlu0 %v10855_v43, %s11045_s18 }
 0xd76   : > { %v8630_v44 = vpop.permute.xlu1 %8629  ;;  %v8003_v21 = vpop.permute.xlu0 %8002 }
 0xd77   : > { %v8633_v6 = vsel %vm1020_vm2, %v8630_v44, %v8632_v62  ;;  %v8006_v18 = vsel %vm367_vm0, %v8003_v21, %v14367_v51 }
 0xd78   : > { %v14455_v17 = vmul.f32 %v8633_v6, %v15080_v30  ;;  %v14458_v12 = vmul.f32 %v8006_v18, %v15072_v27  ;;  %v15092_v18 = vld [vmem:[#allocation21_spill] sm:$0xff] }
 0xd7a   : > { %v7897_v2 = vpop.permute.xlu0 %7896  ;;  %v10880_v19 = vpack.i.bf16 %v14452_v32, %v14455_v17  ;;  %v10870_v58 = vpack.i.bf16 %v14458_v12, %v14374_v34 }
 0xd7b   : > { %v7900_v51 = vsel %vm241_vm1, %v7897_v2, %v14380_v61 }
 0xd7c   : > { %10881 = vrot.lane.b32.xlu1 %v10880_v19, %s11044_s17  ;;  %10871 = vrot.lane.b32.xlu0 %v10870_v58, %s11046_s19  ;;  %v14470_v30 = vmul.f32 %v7900_v51, %v15076_v55 }
 0xd7e   : > { %v8001_v27 = vpop.permute.xlu0 %8000  ;;  %v10875_v55 = vpack.i.bf16 %v14470_v30, %v14387_v11 }
 0xd7f   : > { %v8007_v41 = vsel %vm367_vm0, %v8001_v27, %v8003_v21  ;;  %v8008_v56 = vsel %vm367_vm0, %v14365_v45, %v8001_v27  ;;  %v15090_v21 = vld [vmem:[#allocation20_spill] sm:$0xff]  ;;  %v9294_v27 = vld [vmem:[%s14922_s2 + $0x30] sm:$0xff] }
 0xd80   : > { %v14478_v22 = vmul.f32 %v8008_v56, %v15032_v50  ;;  %8072 = vrot.lane.b32.xlu0 %v14458_v12, %s11047_s20  ;;  %v14483_v61 = vmul.f32 %v8007_v41, %v15073_v29  ;;  %v8881_v50 = vpop.permute.xlu1 %8880 }
 0xd81   : > { %v8884_v59 = vsel %vm1292_vm3, %v8881_v50, %v8883_v5 }
 0xd82   : > { %v14485_v25 = vpop.permute.xlu0 %10846  ;;  %v10890_v15 = vpack.i.bf16 %v14478_v22, %v14374_v34  ;;  %v10900_v57 = vpack.i.bf16 %v14458_v12, %v14483_v61  ;;  %v10910_v49 = vpack.i.bf16 %v14483_v61, %v14478_v22  ;;  %v14553_v54 = vmul.f32 %v8884_v59, %v15084_v0  ;;  %v15089_v0 = vld [vmem:[#allocation19_spill] sm:$0xff] }
 0xd84   : > { %10876 = vrot.lane.b32.xlu0 %v10875_v55, %s11046_s19  ;;  %10891 = vrot.lane.b32.xlu1 %v10890_v15, %s11044_s17  ;;  %v14508_v47 = vpop.permute.xlu1 %10841  ;;  %15086 = vst [vmem:[#allocation9_spill] sm:$0xff] %v14553_v54  ;;  %v10940_v33 = vpack.i.bf16 %v14561_v63, %v14553_v54 }
 0xd86   : > { %v7895_v45 = vpop.permute.xlu0 %7894 }
 0xd87   : > { %v7902_v29 = vsel %vm241_vm1, %v14378_v20, %v7895_v45 }
 0xd88   : > { %7966 = vrot.lane.b32.xlu0 %v14470_v30, %s11047_s20  ;;  %10901 = vrot.lane.b32.xlu1 %v10900_v57, %s11044_s17  ;;  %v14502_v4 = vmul.f32 %v7902_v29, %v15075_v3  ;;  %v7901_v3 = vsel %vm241_vm1, %v7895_v45, %v7897_v2  ;;  %v14520_v8 = vpop.permute.xlu1 %8442 }
 0xd89   : > { %v14523_v36 = vmul.f32 %v7901_v3, %v15077_v48 }
 0xd8a   : > { %v14504_v60 = vpop.permute.xlu0 %10851  ;;  %v10915_v39 = vpack.i.bf16 %v14502_v4, %v14387_v11 }
 0xd8b   : > { %v10925_v48 = vpack.i.bf16 %v14470_v30, %v14523_v36  ;;  %v10935_v14 = vpack.i.bf16 %v14523_v36, %v14502_v4 }
 0xd8c   : > { %10886 = vrot.lane.b32.xlu0 %v10880_v19, %s11045_s18  ;;  %10911 = vrot.lane.b32.xlu1 %v10910_v49, %s11046_s19  ;;  %v14628_v41 = vpop.permute.xlu1 %10856 }
 0xd8e   : > { %v14512_v20 = vpop.permute.xlu0 %8446 }
 0xd90   : > { %10896 = vrot.lane.b32.xlu0 %v10890_v15, %s11045_s18  ;;  %10916 = vrot.lane.b32.xlu1 %v10915_v39, %s11044_s17  ;;  %v14630_v56 = vpop.permute.xlu1 %10866 }
 0xd92   : > { %v8449_v16 = vpop.permute.xlu0 %8448 }
 0xd93   : > { %v14528_v23 = vsel %vm329_vm7, %v14512_v20, %v8449_v16  ;;  %v14533_v28 = vsel %vm329_vm7, %v8449_v16, %v14520_v8 }
 0xd94   : > { %10906 = vrot.lane.b32.xlu0 %v10900_v57, %s11045_s18  ;;  %8068 = vrot.lane.b32.xlu1 %v14478_v22, %s11047_s20  ;;  %v14634_v15 = vpop.permute.xlu1 %8444 }
 0xd96   : > { %v8628_v10 = vpop.permute.xlu0 %8627 }
 0xd97   : > { %v8634_v26 = vsel %vm1020_vm2, %v8628_v10, %v8630_v44  ;;  %v8635_v52 = vsel %vm1020_vm2, %v14435_v35, %v8628_v10 }
 0xd98   : > { %10921 = vrot.lane.b32.xlu0 %v10915_v39, %s11045_s18  ;;  %10926 = vrot.lane.b32.xlu1 %v10925_v48, %s11044_s17  ;;  %v14567_v43 = vmul.f32 %v8635_v52, %v15088_v37  ;;  %v14570_v1 = vmul.f32 %v8634_v26, %v15089_v0 }
 0xd9a   : > { %v10945_v35 = vpack.i.bf16 %v14570_v1, %v14567_v43  ;;  %v8879_v62 = vpop.permute.xlu0 %8878  ;;  %v10960_v5 = vpack.i.bf16 %v14455_v17, %v14570_v1 }
 0xd9b   : > { %v8885_v42 = vsel %vm1292_vm3, %v8879_v62, %v8881_v50  ;;  %v8886_v44 = vsel %vm1292_vm3, %v14437_v38, %v8879_v62  ;;  %v10965_v38 = vpack.i.bf16 %v14452_v32, %v14567_v43 }
 0xd9c   : > { %8070 = vrot.lane.b32.xlu0 %v14483_v61, %s11047_s20  ;;  %10936 = vrot.lane.b32.xlu1 %v10935_v14, %s11046_s19  ;;  %v14593_v6 = vmul.f32 %v8886_v44, %v15090_v21  ;;  %v14596_v2 = vmul.f32 %v8885_v42, %v15092_v18 }
 0xd9e   : > { %15091 = vst [vmem:[#allocation25_spill] sm:$0xff] %v14593_v6  ;;  %v10970_v19 = vpack.i.bf16 %v14596_v2, %v14593_v6  ;;  %v10980_v58 = vpack.i.bf16 %v14553_v54, %v14596_v2  ;;  %v10985_v51 = vpack.i.bf16 %v14561_v63, %v14593_v6  ;;  %v14632_v55 = vpop.permute.xlu0 %10861 }
 0xda0   : > { %10931 = vrot.lane.b32.xlu0 %v10925_v48, %s11045_s18  ;;  %7962 = vrot.lane.b32.xlu1 %v14502_v4, %s11047_s20 }
 0xda4   : > { %8697 = vrot.lane.b32.xlu0 %v14455_v17, %s11047_s20  ;;  %10941 = vrot.lane.b32.xlu1 %v10940_v33, %s11044_s17 }
 0xda8   : > { %7964 = vrot.lane.b32.xlu0 %v14523_v36, %s11047_s20  ;;  %10946 = vrot.lane.b32.xlu1 %v10945_v35, %s11044_s17 }
 0xdac   : > { %8699 = vrot.lane.b32.xlu0 %v14452_v32, %s11047_s20  ;;  %10961 = vrot.lane.b32.xlu1 %v10960_v5, %s11046_s19 }
 0xdb0   : > { %10951 = vrot.lane.b32.xlu0 %v10945_v35, %s11045_s18  ;;  %8695 = vrot.lane.b32.xlu1 %v14570_v1, %s11047_s20 }
 0xdb4   : > { %10956 = vrot.lane.b32.xlu0 %v10940_v33, %s11045_s18  ;;  %10971 = vrot.lane.b32.xlu1 %v10970_v19, %s11044_s17  ;;  %s212_s17 = scalar_lea.vmem %s14924_s4, %s9297_s9 }
 0xdb8   : > { %10966 = vrot.lane.b32.xlu0 %v10965_v38, %s11046_s19  ;;  %8693 = vrot.lane.b32.xlu1 %v14567_v43, %s11047_s20 }
 0xdbc   : > { %10976 = vrot.lane.b32.xlu0 %v10970_v19, %s11045_s18  ;;  %10981 = vrot.lane.b32.xlu1 %v10980_v58, %s11046_s19 }
 0xdc0   : > { %10986 = vrot.lane.b32.xlu0 %v10985_v51, %s11046_s19  ;;  %8946 = vrot.lane.b32.xlu1 %v14596_v2, %s11047_s20 }
 0xdc4   : > { %8948 = vrot.lane.b32.xlu0 %v14553_v54, %s11047_s20  ;;  %8944 = vrot.lane.b32.xlu1 %v14593_v6, %s11047_s20 }
 0xdc8   : > { %8950 = vrot.lane.b32.xlu0 %v14561_v63, %s11047_s20  ;;  %9131 = vperm.xlu1 %10389, %v9294_v27  }
 0xdee   : > { %v10872_v50 = vpop.permute.xlu0 %10871  ;;  %v14636_v45 = vpop.permute.xlu1 %10881 }
 0xdef   : > { %v10874_v26 = vunpack.i.h.bf16 %v10872_v50  ;;  %v10873_v52 = vunpack.i.l.bf16 %v10872_v50 }
 0xdf1   : > { %v8061_v50 = vsel %vm312_vm6, %v10874_v26, %v10873_v52 }
 0xdf2   : > { %v14638_v57 = vpop.permute.xlu0 %8072 }
 0xdf6   : > { %v10892_v29 = vpop.permute.xlu1 %10891  ;;  %v14640_v49 = vpop.permute.xlu0 %10876 }
 0xdf7   : > { %v10894_v14 = vunpack.i.h.bf16 %v10892_v29  ;;  %v10893_v59 = vunpack.i.l.bf16 %v10892_v29 }
 0xdf9   : > { %v8024_v5 = vsel %vm274_vm4, %v10893_v59, %v10894_v14 }
 0xdfa   : > { %v10902_v39 = vpop.permute.xlu1 %10901  ;;  %v14642_v3 = vpop.permute.xlu0 %7966 }
 0xdfb   : > { %v10904_v0 = vunpack.i.h.bf16 %v10902_v39  ;;  %v10903_v33 = vunpack.i.l.bf16 %v10902_v39 }
 0xdfd   : > { %v8025_v58 = vsel %vm274_vm4, %v10904_v0, %v10893_v59  ;;  %v8023_v51 = vsel %vm274_vm4, %v10894_v14, %v10903_v33 }
 0xdfe   : > { %v10912_v16 = vpop.permute.xlu1 %10911  ;;  %v14644_v48 = vpop.permute.xlu0 %10886 }
 0xdff   : > { %v10914_v35 = vunpack.i.h.bf16 %v10912_v16  ;;  %v10913_v62 = vunpack.i.l.bf16 %v10912_v16  ;;  %v8022_v16 = vsel %vm274_vm4, %v10903_v33, %v10904_v0  ;;  %v9791_v0 = vpack.c.bf16 %v8061_v50, %v14458_v12 }
 0xe00   : > { %v10879_v33 = vunpack.i.h.bf16 %v14640_v49 }
 0xe01   : > { %v8059_v27 = vsel %vm312_vm6, %v10913_v62, %v10914_v35 }
 0xe02   : > { %v14646_v10 = vpop.permute.xlu1 %10916  ;;  %v10897_v7 = vpop.permute.xlu0 %10896  ;;  %v9783_v54 = vpack.c.bf16 %v8059_v27, %v14478_v22 }
 0xe03   : > { %v10899_v46 = vunpack.i.h.bf16 %v10897_v7  ;;  %v10898_v37 = vunpack.i.l.bf16 %v10897_v7  ;;  %v10918_v22 = vunpack.i.l.bf16 %v14646_v10 }
 0xe05   : > { %v8040_v42 = vsel %vm291_vm5, %v10898_v37, %v10899_v46 }
 0xe06   : > { %v8069_v44 = vpop.permute.xlu1 %8068  ;;  %v10907_v21 = vpop.permute.xlu0 %10906  ;;  %v9779_v18 = vpack.c.bf16 %v8040_v42, %v8024_v5 }
 0xe07   : > { %v10909_v19 = vunpack.i.h.bf16 %v10907_v21  ;;  %v10908_v38 = vunpack.i.l.bf16 %v10907_v21 }
 0xe08   : > { %9780 = vmatprep.subr.bf16.mxu0 %v9779_v18  ;;  %v8060_v18 = vsel %vm312_vm6, %v10873_v52, %v10913_v62  ;;  %v10919_v52 = vunpack.i.h.bf16 %v14646_v10 }
 0xe09   : > { %v8039_v29 = vsel %vm291_vm5, %v10899_v46, %v10908_v38  ;;  %v8041_v39 = vsel %vm291_vm5, %v10909_v19, %v10898_v37  ;;  %v8038_v59 = vsel %vm291_vm5, %v10908_v38, %v10909_v19  ;;  %v8058_v46 = vsel %vm312_vm6, %v10914_v35, %v10874_v26 }
 0xe0a   : > { %v9781_v14 = vpack.c.bf16 %v8041_v39, %v8025_v58  ;;  %v9789_v7 = vpack.c.bf16 %v8039_v29, %v8023_v51  ;;  %v10927_v5 = vpop.permute.xlu1 %10926  ;;  %v10922_v42 = vpop.permute.xlu0 %10921  ;;  %v9787_v21 = vpack.c.bf16 %v8038_v59, %v8022_v16  ;;  %v10878_v19 = vunpack.i.l.bf16 %v14640_v49 }
 0xe0b   : > { %v10924_v37 = vunpack.i.h.bf16 %v10922_v42  ;;  %v10923_v6 = vunpack.i.l.bf16 %v10922_v42  ;;  %v9785_v38 = vpack.c.bf16 %v8060_v18, %v14374_v34  ;;  %v9793_v35 = vpack.c.bf16 %v8058_v46, %v14483_v61 }
 0xe0c   : > { %9782 = vmatpush1.bf16.msra.mxu0 %v9781_v14  ;;  %9788 = vmatprep.subr.bf16.mxu1 %v9787_v21  ;;  %v10929_v58 = vunpack.i.h.bf16 %v10927_v5  ;;  %v10928_v51 = vunpack.i.l.bf16 %v10927_v5  ;;  %v8077_v49 = vsel %vm329_vm7, %v14638_v57, %v14439_v31  ;;  %v8076_v61 = vsel %vm329_vm7, %v14439_v31, %v8069_v44  ;;  %v8083_v5 = vld [vmem:[#allocation4 + $0xf8] sm:$0xff] }
 0xe0d   : > { %9784 = vmatprep.subr.bf16.mxu0 %v9783_v54  ;;  %9790 = vmatpush1.bf16.msra.mxu1 %v9789_v7  ;;  %v7934_v34 = vsel %vm291_vm5, %v10923_v6, %v10924_v37  ;;  %v7918_v29 = vsel %vm274_vm4, %v10918_v22, %v10919_v52  ;;  %v7955_v39 = vsel %vm312_vm6, %v10879_v33, %v10878_v19  ;;  %v10849_v18 = vunpack.i.h.bf16 %v14485_v25 }
 0xe0e   : > { %v10937_v62 = vpop.permute.xlu1 %10936  ;;  %v8071_v26 = vpop.permute.xlu0 %8070  ;;  %9792 = vmatprep.subr.bf16.mxu1 %v9791_v0  ;;  %v7919_v16 = vsel %vm274_vm4, %v10929_v58, %v10918_v22  ;;  %v9795_v7 = vpack.c.bf16 %v7934_v34, %v7918_v29  ;;  %v7917_v31 = vsel %vm274_vm4, %v10919_v52, %v10928_v51  ;;  %v7916_v42 = vsel %vm274_vm4, %v10928_v51, %v10929_v58 }
 0xe0f   : > { %v8075_v12 = vsel %vm329_vm7, %v8069_v44, %v8071_v26  ;;  %v10939_v54 = vunpack.i.h.bf16 %v10937_v62  ;;  %v10938_v27 = vunpack.i.l.bf16 %v10937_v62  ;;  %v8074_v44 = vsel %vm329_vm7, %v8071_v26, %v14638_v57 }
 0xe10   : > { %9786 = vmatpush1.bf16.msra.mxu0 %v9785_v38  ;;  %v10848_v38 = vunpack.i.l.bf16 %v14485_v25  ;;  %v9807_v58 = vpack.c.bf16 %v7955_v39, %v14470_v30  ;;  %v10843_v51 = vunpack.i.l.bf16 %v14508_v47  ;;  %v10864_v34 = vunpack.i.h.bf16 %v14632_v55 }
 0xe11   : > { %8115 = vmatprep.subr.mxu0 %v8075_v12  ;;  %9794 = vmatpush1.bf16.msra.mxu1 %v9793_v35  ;;  %v7953_v21 = vsel %vm312_vm6, %v10938_v27, %v10939_v54  ;;  %v7952_v25 = vsel %vm312_vm6, %v10939_v54, %v10879_v33  ;;  %v10844_v12 = vunpack.i.h.bf16 %v14508_v47  ;;  %v10869_v47 = vunpack.i.h.bf16 %v14630_v56 }
 0xe12   : > { %v14691_v10 = vpop.permute.xlu1 %7962  ;;  %v10932_v50 = vpop.permute.xlu0 %10931  ;;  %8185 = vmatprep.subr.mxu1 %v8077_v49  ;;  %v8414_v30 = vsel %vm291_vm5, %v10848_v38, %v10849_v18 }
 0xe13   : > { %v10934_v59 = vunpack.i.h.bf16 %v10932_v50  ;;  %v10933_v14 = vunpack.i.l.bf16 %v10932_v50 }
 0xe14   : > { %8116 = vmatpush1.msra.mxu0 %v8076_v61  ;;  %v10868_v61 = vunpack.i.l.bf16 %v14630_v56  ;;  %v10854_v56 = vunpack.i.h.bf16 %v14504_v60 }
 0xe15   : > { %v7933_v46 = vsel %vm291_vm5, %v10924_v37, %v10933_v14  ;;  %v7935_v0 = vsel %vm291_vm5, %v10934_v59, %v10923_v6  ;;  %8186 = vmatpush1.msra.mxu1 %v8074_v44  ;;  %9796 = vmatprep.subr.bf16.mxu0 %v9795_v7  ;;  %v7932_v57 = vsel %vm291_vm5, %v10933_v14, %v10934_v59  ;;  %v7977_v14 = vld [vmem:[#allocation4 + $0xf0] sm:$0xff] }
 0xe16   : > { %v9797_v52 = vpack.c.bf16 %v7935_v0, %v7919_v16  ;;  %v9805_v22 = vpack.c.bf16 %v7933_v46, %v7917_v31  ;;  %v14716_v62 = vpop.permute.xlu1 %10941  ;;  %v14718_v26 = vpop.permute.xlu0 %8697  ;;  %9284 = vmatmul.mubr.msk.f32.vlgmr.msra.gmra.mrb[36].mxu0 %vm482_vm8, %v8083_v5  ;;  %v9803_v35 = vpack.c.bf16 %v7932_v57, %v7916_v42  ;;  %9285 = vmatmul.mubr.msk.f32.vlgmr.msra.gmra.mrb[36].mxu1 %vm482_vm8, %v8083_v5 }
 0xe17   : > { %v7954_v6 = vsel %vm312_vm6, %v10878_v19, %v10938_v27  ;;  %v9799_v37 = vpack.c.bf16 %v7953_v21, %v14502_v4  ;;  %8314 = vmatprep.mubr.f32.mxu0 %v14338_v13  ;;  %8384 = vmatprep.mubr.f32.mxu1 %v14338_v13  ;;  %v10863_v19 = vunpack.i.l.bf16 %v14632_v55  ;;  %v10859_v4 = vunpack.i.h.bf16 %v14628_v41 }
 0xe18   : > { %9798 = vmatpush1.bf16.msra.mxu0 %v9797_v52  ;;  %9804 = vmatprep.subr.bf16.mxu1 %v9803_v35  ;;  %v10858_v27 = vunpack.i.l.bf16 %v14628_v41  ;;  %v9801_v33 = vpack.c.bf16 %v7954_v6, %v14387_v11  ;;  %v9809_v55 = vpack.c.bf16 %v7952_v25, %v14523_v36  ;;  %v10853_v11 = vunpack.i.l.bf16 %v14504_v60 }
 0xe19   : > { %9800 = vmatprep.subr.bf16.mxu0 %v9799_v37  ;;  %9806 = vmatpush1.bf16.msra.mxu1 %v9805_v22  ;;  %v7971_v41 = vsel %vm329_vm7, %v14642_v3, %v14441_v53  ;;  %v8416_v29 = vsel %vm291_vm5, %v10863_v19, %v10864_v34  ;;  %v8398_v36 = vsel %vm274_vm4, %v10843_v51, %v10844_v12  ;;  %v10889_v35 = vunpack.i.h.bf16 %v14644_v48 }
 0xe1a   : > { %v14737_v54 = vpop.permute.xlu1 %10946  ;;  %v7965_v49 = vpop.permute.xlu0 %7964  ;;  %9808 = vmatprep.subr.bf16.mxu1 %v9807_v58  ;;  %v8417_v39 = vsel %vm291_vm5, %v10849_v18, %v10863_v19  ;;  %v9819_v7 = vpack.c.bf16 %v8414_v30, %v8398_v36  ;;  %v8415_v5 = vsel %vm291_vm5, %v10864_v34, %v10848_v38  ;;  %v7970_v31 = vsel %vm329_vm7, %v14441_v53, %v14691_v10 }
 0xe1b   : > { %v7969_v50 = vsel %vm329_vm7, %v14691_v10, %v7965_v49  ;;  %v8400_v60 = vsel %vm274_vm4, %v10858_v27, %v10859_v4  ;;  %v8435_v44 = vsel %vm312_vm6, %v10868_v61, %v10869_v47  ;;  %v8401_v42 = vsel %vm274_vm4, %v10844_v12, %v10858_v27 }
 0xe1c   : > { %9802 = vmatpush1.bf16.msra.mxu0 %v9801_v33  ;;  %v7968_v21 = vsel %vm329_vm7, %v7965_v49, %v14642_v3  ;;  %v9811_v18 = vpack.c.bf16 %v8416_v29, %v8400_v60  ;;  %v8437_v46 = vsel %vm312_vm6, %v10854_v56, %v10853_v11  ;;  %v8399_v53 = vsel %vm274_vm4, %v10859_v4, %v10843_v51 }
 0xe1d   : > { %8258 = vmatprep.subr.mxu0 %v7969_v50  ;;  %9810 = vmatpush1.bf16.msra.mxu1 %v9809_v55  ;;  %v8436_v10 = vsel %vm312_vm6, %v10853_v11, %v10868_v61  ;;  %v9813_v0 = vpack.c.bf16 %v8417_v39, %v8401_v42  ;;  %v9821_v57 = vpack.c.bf16 %v8415_v5, %v8399_v53  ;;  %v10888_v6 = vunpack.i.l.bf16 %v14644_v48  ;;  %v8459_v61 = vld [vmem:[#allocation4 + $0x100] sm:$0xff] }
 0xe1e   : > { %v14759_v16 = vpop.permute.xlu1 %10961  ;;  %v14761_v59 = vpop.permute.xlu0 %8699  ;;  %8328 = vmatprep.subr.mxu1 %v7971_v41  ;;  %v9815_v52 = vpack.c.bf16 %v8435_v44, %v14393_v24  ;;  %v8434_v22 = vsel %vm312_vm6, %v10869_v47, %v10854_v56  ;;  %v9823_v37 = vpack.c.bf16 %v8437_v46, %v14338_v13  ;;  %v9817_v25 = vpack.c.bf16 %v8436_v10, %v14338_v13 }
 0xe1f   : > { %v10884_v51 = vunpack.i.h.bf16 %v14636_v45  ;;  %v10883_v24 = vunpack.i.l.bf16 %v14636_v45  ;;  %v10964_v34 = vunpack.i.h.bf16 %v14759_v16  ;;  %v10963_v19 = vunpack.i.l.bf16 %v14759_v16 }
 0xe20   : > { %8259 = vmatpush1.msra.mxu0 %v7970_v31  ;;  %v9825_v48 = vpack.c.bf16 %v8434_v22, %v14391_v40  ;;  %v10949_v4 = vunpack.i.h.bf16 %v14737_v54  ;;  %v10948_v27 = vunpack.i.l.bf16 %v14737_v54  ;;  %v8451_v45 = vsel %vm329_vm7, %v14634_v15, %v14512_v20 }
 0xe21   : > { %9286 = vmatmul.mubr.msk.f32.vlgmr.msra.gmra.mrb[38].mxu0 %vm482_vm8, %v7977_v14  ;;  %8329 = vmatpush1.msra.mxu1 %v7968_v21  ;;  %v8665_v30 = vsel %vm291_vm5, %v10888_v6, %v10889_v35  ;;  %v8649_v20 = vsel %vm274_vm4, %v10883_v24, %v10884_v51  ;;  %v8686_v55 = vsel %vm312_vm6, %v10963_v19, %v10964_v34 }
 0xe22   : > { %9812 = vmatprep.subr.bf16.mxu0 %v9811_v18  ;;  %v14785_v38 = vpop.permute.xlu1 %8695  ;;  %v10952_v3 = vpop.permute.xlu0 %10951  ;;  %9287 = vmatmul.mubr.msk.f32.vlgmr.msra.gmra.mrb[38].mxu1 %vm482_vm8, %v7977_v14  ;;  %v8452_v50 = vsel %vm329_vm7, %v14520_v8, %v14634_v15  ;;  %v8650_v11 = vsel %vm274_vm4, %v10949_v4, %v10883_v24  ;;  %v9835_v36 = vpack.c.bf16 %v8665_v30, %v8649_v20 }
 0xe23   : > { %9814 = vmatpush1.bf16.msra.mxu0 %v9813_v0  ;;  %9820 = vmatprep.subr.bf16.mxu1 %v9819_v7  ;;  %v10954_v58 = vunpack.i.h.bf16 %v10952_v3  ;;  %v10953_v12 = vunpack.i.l.bf16 %v10952_v3  ;;  %v8652_v56 = vsel %vm274_vm4, %v10884_v51, %v10948_v27  ;;  %v9831_v8 = vpack.c.bf16 %v8686_v55, %v14570_v1 }
 0xe24   : > { %9816 = vmatprep.subr.bf16.mxu0 %v9815_v52  ;;  %9822 = vmatpush1.bf16.msra.mxu1 %v9821_v57  ;;  %v10943_v52 = vunpack.i.l.bf16 %v14716_v62  ;;  %v8702_v22 = vsel %vm329_vm7, %v14785_v38, %v14718_v26 }
 0xe25   : > { %9824 = vmatprep.subr.bf16.mxu1 %v9823_v37  ;;  %8547 = vmatprep.mubr.f32.mxu0 %v14338_v13  ;;  %v8667_v40 = vsel %vm291_vm5, %v10953_v12, %v10954_v58  ;;  %v8666_v54 = vsel %vm291_vm5, %v10954_v58, %v10888_v6  ;;  %v8668_v47 = vsel %vm291_vm5, %v10889_v35, %v10953_v12  ;;  %v8710_v12 = vld [vmem:[#allocation4 + $0x108] sm:$0xff] }
 0xe26   : > { %v14803_v33 = vpop.permute.xlu1 %10971  ;;  %v14805_v49 = vpop.permute.xlu0 %10956  ;;  %8617 = vmatprep.mubr.f32.mxu1 %v14338_v13  ;;  %v9829_v7 = vpack.c.bf16 %v8668_v47, %v8652_v56  ;;  %v9837_v5 = vpack.c.bf16 %v8666_v54, %v8650_v11 }
 0xe27   : > { %9818 = vmatpush1.bf16.msra.mxu0 %v9817_v25  ;;  %v10974_v44 = vunpack.i.h.bf16 %v14803_v33  ;;  %v10973_v18 = vunpack.i.l.bf16 %v14803_v33  ;;  %v10959_v0 = vunpack.i.h.bf16 %v14805_v49  ;;  %v10958_v57 = vunpack.i.l.bf16 %v14805_v49 }
 0xe28   : > { %8491 = vmatprep.subr.mxu0 %v8451_v45  ;;  %9826 = vmatpush1.bf16.msra.mxu1 %v9825_v48  ;;  %v8701_v33 = vsel %vm329_vm7, %v14718_v26, %v14761_v59 }
 0xe29   : > { %8561 = vmatprep.subr.mxu1 %v14533_v28  ;;  %v8651_v28 = vsel %vm274_vm4, %v10948_v27, %v10949_v4  ;;  %v8902_v58 = vsel %vm274_vm4, %v10973_v18, %v10974_v44  ;;  %v8916_v24 = vsel %vm291_vm5, %v10958_v57, %v10959_v0  ;;  %v8901_v49 = vsel %vm274_vm4, %v10974_v44, %v10943_v52 }
 0xe2a   : > { %v8694_v41 = vpop.permute.xlu1 %8693  ;;  %v10967_v29 = vpop.permute.xlu0 %10966  ;;  %v9827_v14 = vpack.c.bf16 %v8667_v40, %v8651_v28 }
 0xe2b   : > { %v10969_v39 = vunpack.i.h.bf16 %v10967_v29  ;;  %v10968_v16 = vunpack.i.l.bf16 %v10967_v29  ;;  %8492 = vmatpush1.msra.mxu0 %v8452_v50  ;;  %v8704_v25 = vsel %vm329_vm7, %v14761_v59, %v8694_v41  ;;  %v15093_v50 = vld [vmem:[#allocation25_spill] sm:$0xff] }
 0xe2c   : > { %9288 = vmatmul.mubr.msk.f32.vlgmr.msra.gmra.mrb[40].mxu0 %vm482_vm8, %v8459_v61  ;;  %8562 = vmatpush1.msra.mxu1 %v14528_v23 }
 0xe2d   : > { %v8685_v15 = vsel %vm312_vm6, %v10964_v34, %v10969_v39  ;;  %v8687_v31 = vsel %vm312_vm6, %v10968_v16, %v10963_v19  ;;  %9828 = vmatprep.subr.bf16.mxu0 %v9827_v14  ;;  %9289 = vmatmul.mubr.msk.f32.vlgmr.msra.gmra.mrb[40].mxu1 %vm482_vm8, %v8459_v61  ;;  %v8688_v60 = vsel %vm312_vm6, %v10969_v39, %v10968_v16 }
 0xe2e   : > { %v9833_v42 = vpack.c.bf16 %v8687_v31, %v14567_v43  ;;  %9830 = vmatpush1.bf16.msra.mxu0 %v9829_v7  ;;  %9836 = vmatprep.subr.bf16.mxu1 %v9835_v36  ;;  %v10982_v23 = vpop.permute.xlu1 %10981  ;;  %v10977_v1 = vpop.permute.xlu0 %10976  ;;  %v9839_v21 = vpack.c.bf16 %v8688_v60, %v14452_v32  ;;  %v9841_v46 = vpack.c.bf16 %v8685_v15, %v14455_v17  ;;  %v10944_v17 = vunpack.i.h.bf16 %v14716_v62  ;;  %v8961_v36 = vld [vmem:[#allocation4 + $0x110] sm:$0xff] }
 0xe2f   : > { %9832 = vmatprep.subr.bf16.mxu0 %v9831_v8  ;;  %9838 = vmatpush1.bf16.msra.mxu1 %v9837_v5  ;;  %v10979_v53 = vunpack.i.h.bf16 %v10977_v1  ;;  %v10978_v10 = vunpack.i.l.bf16 %v10977_v1  ;;  %v10984_v43 = vunpack.i.h.bf16 %v10982_v23  ;;  %v10983_v3 = vunpack.i.l.bf16 %v10982_v23 }
 0xe30   : > { %9840 = vmatprep.subr.bf16.mxu1 %v9839_v21  ;;  %8798 = vmatprep.mubr.f32.mxu0 %v14338_v13  ;;  %v8703_v34 = vsel %vm329_vm7, %v8694_v41, %v14785_v38  ;;  %v8903_v38 = vsel %vm274_vm4, %v10944_v17, %v10973_v18  ;;  %v8900_v30 = vsel %vm274_vm4, %v10943_v52, %v10944_v17  ;;  %v15094_v41 = vld [vmem:[#allocation9_spill] sm:$0xff] }
 0xe31   : > { %8868 = vmatprep.mubr.f32.mxu1 %v14338_v13  ;;  %v8918_v32 = vsel %vm291_vm5, %v10978_v10, %v10979_v53  ;;  %v8919_v62 = vsel %vm291_vm5, %v10959_v0, %v10978_v10  ;;  %v8917_v19 = vsel %vm291_vm5, %v10979_v53, %v10958_v57  ;;  %v8937_v4 = vsel %vm312_vm6, %v10983_v3, %v10984_v43 }
 0xe32   : > { %9834 = vmatpush1.bf16.msra.mxu0 %v9833_v42  ;;  %v10987_v35 = vpop.permute.xlu0 %10986  ;;  %v9843_v51 = vpack.c.bf16 %v8918_v32, %v8902_v58  ;;  %v8947_v48 = vpop.permute.xlu1 %8946  ;;  %v9845_v40 = vpack.c.bf16 %v8919_v62, %v8903_v38  ;;  %v9851_v54 = vpack.c.bf16 %v8916_v24, %v8900_v30  ;;  %v9853_v61 = vpack.c.bf16 %v8917_v19, %v8901_v49 }
 0xe33   : > { %8742 = vmatprep.subr.mxu0 %v8702_v22  ;;  %9842 = vmatpush1.bf16.msra.mxu1 %v9841_v46  ;;  %v10989_v6 = vunpack.i.h.bf16 %v10987_v35  ;;  %v10988_v37 = vunpack.i.l.bf16 %v10987_v35  ;;  %v9847_v59 = vpack.c.bf16 %v8937_v4, %v14596_v2 }
 0xe34   : > { %8812 = vmatprep.subr.mxu1 %v8704_v25 }
 0xe35   : > { %v8939_v27 = vsel %vm312_vm6, %v10989_v6, %v10988_v37  ;;  %v8938_v26 = vsel %vm312_vm6, %v10988_v37, %v10983_v3  ;;  %v8936_v20 = vsel %vm312_vm6, %v10984_v43, %v10989_v6 }
 0xe36   : > { %8743 = vmatpush1.msra.mxu0 %v8703_v34  ;;  %v8949_v45 = vpop.permute.xlu0 %8948  ;;  %v9855_v47 = vpack.c.bf16 %v8939_v27, %v14561_v63  ;;  %v9849_v11 = vpack.c.bf16 %v8938_v26, %v15093_v50  ;;  %v8945_v63 = vpop.permute.xlu1 %8944  ;;  %v9857_v29 = vpack.c.bf16 %v8936_v20, %v15094_v41 }
 0xe37   : > { %9290 = vmatmul.mubr.msk.f32.vlgmr.msra.gmra.mrb[42].mxu0 %vm482_vm8, %v8710_v12  ;;  %8813 = vmatpush1.msra.mxu1 %v8701_v33  ;;  %v8953_v2 = vsel %vm329_vm7, %v8947_v48, %v8949_v45  ;;  %v8954_v56 = vsel %vm329_vm7, %v8945_v63, %v8947_v48 }
 0xe38   : > { %9844 = vmatprep.subr.bf16.mxu0 %v9843_v51  ;;  %9291 = vmatmul.mubr.msk.f32.vlgmr.msra.gmra.mrb[42].mxu1 %vm482_vm8, %v8710_v12 }
 0xe39   : > { %9846 = vmatpush1.bf16.msra.mxu0 %v9845_v40  ;;  %9852 = vmatprep.subr.bf16.mxu1 %v9851_v54 }
 0xe3a   : > { %9848 = vmatprep.subr.bf16.mxu0 %v9847_v59  ;;  %9854 = vmatpush1.bf16.msra.mxu1 %v9853_v61  ;;  %v8951_v55 = vpop.permute.xlu0 %8950 }
 0xe3b   : > { %9856 = vmatprep.subr.bf16.mxu1 %v9855_v47  ;;  %9049 = vmatprep.mubr.f32.mxu0 %v14338_v13  ;;  %v8955_v28 = vsel %vm329_vm7, %v8951_v55, %v8945_v63  ;;  %v8952_v39 = vsel %vm329_vm7, %v8949_v45, %v8951_v55 }
 0xe3c   : > { %9119 = vmatprep.mubr.f32.mxu1 %v14338_v13 }
 0xe3d   : > { %9850 = vmatpush1.bf16.msra.mxu0 %v9849_v11 }
 0xe3e   : > { %8993 = vmatprep.subr.mxu0 %v8953_v2  ;;  %9858 = vmatpush1.bf16.msra.mxu1 %v9857_v29 }
 0xe3f   : > { %9063 = vmatprep.subr.mxu1 %v8955_v28 }
 0xe41   : > { %8994 = vmatpush1.msra.mxu0 %v8954_v56 }
 0xe42   : > { %9292 = vmatmul.mubr.msk.f32.vlgmr.msra.gmra.mrb[44].mxu0 %vm482_vm8, %v8961_v36  ;;  %9064 = vmatpush1.msra.mxu1 %v8952_v39 }
 0xe43   : > { %9293 = vmatmul.mubr.msk.f32.vlgmr.msra.gmra.mrb[44].mxu1 %vm482_vm8, %v8961_v36 }
 0xe47   : > { %v9132_v6 = vpop.permute.xlu1 %9131 }
 0xee9   : > { %v8173_v13 = vpop.f32.mrb[36].mxu0  ;;  %v8243_v16 = vpop.f32.mrb[36].mxu1 }
 0xeea   : > { %v8174_v14 = vpop.f32.mrb[37].mxu0  ;;  %v8245_v7 = vpop.f32.mrb[37].mxu1 }
 0xef4   : > { %v8316_v5 = vpop.f32.mrb[38].mxu0 }
 0xef5   : > { %v8317_v8 = vpop.f32.mrb[39].mxu0  ;;  %v8386_v15 = vpop.f32.mrb[38].mxu1 }
 0xef6   : > { %v8318_v31 = vadd.f32 %v8317_v8, %v8174_v14  ;;  %v8387_v60 = vadd.f32 %v8386_v15, %v8243_v16  ;;  %v8388_v44 = vpop.f32.mrb[39].mxu1 }
 0xeff   : > { %v8549_v42 = vpop.f32.mrb[40].mxu0 }
 0xf00   : > { %v8550_v23 = vpop.f32.mrb[41].mxu0  ;;  %v8619_v9 = vpop.f32.mrb[40].mxu1 }
 0xf01   : > { %v8623_v1 = vadd.f32 %v8550_v23, %v8318_v31  ;;  %v8624_v21 = vadd.f32 %v8619_v9, %v8387_v60  ;;  %v8621_v18 = vpop.f32.mrb[41].mxu1 }
 0xf0a   : > { %v8800_v46 = vpop.f32.mrb[42].mxu0 }
 0xf0b   : > { %v8801_v53 = vpop.f32.mrb[43].mxu0  ;;  %v8870_v10 = vpop.f32.mrb[42].mxu1 }
 0xf0c   : > { %v8874_v0 = vadd.f32 %v8801_v53, %v8623_v1  ;;  %v8875_v57 = vadd.f32 %v8870_v10, %v8624_v21  ;;  %v8872_v43 = vpop.f32.mrb[43].mxu1 }
 0xf15   : > { %v9051_v3 = vpop.f32.mrb[44].mxu0 }
 0xf16   : > { %v9052_v32 = vpop.f32.mrb[45].mxu0  ;;  %v9121_v17 = vpop.f32.mrb[44].mxu1 }
 0xf17   : > { %v9125_v52 = vadd.f32 %v9052_v32, %v8874_v0  ;;  %v9126_v22 = vadd.f32 %v9121_v17, %v8875_v57  ;;  %v9123_v35 = vpop.f32.mrb[45].mxu1 }
 0xf19   : > { %v9134_v37 = vadd.f32 %v9132_v6, %v9125_v52  ;;  %v9135_v25 = vadd.f32 %v9132_v6, %v9126_v22 }
 0xf1b   : > { %v9138_v58 = vcombine.low %v9134_v37, %v9135_v25 }
 0xf1d   : > { %9140 = vst [vmem:[%s212_s17] sm:$0x77] %v9138_v58 }
 0xf1e PF: > { %s15_s15 = sadd.s32 1, %s11034_s15  }
 0xf1f   : > { %p12_p3 = scmp.ge.s32.totalorder %s15_s15, 4  }
 0xf21   :  { %14 = sbr.rel (!%p12_p3) target bundleno = 1 (0x1), region = 111 }
 0xf28   :  { %9162 = vsyncpa [#allocation5], 1 }
 0xf29   :  { %9164 = vsyncpa [#allocation5 + $0x1], 1 }

</bundles_post_ra>
